<compile_context>
chip_gen: v5e
topology: v5e:2x2
jax: 0.10.0
libtpu: 0.0.40
codegen_flags: <defaults>
</compile_context>

<pallas_src>
import jax
import jax.numpy as jnp
from jax import lax
from jax.experimental import pallas as pl
from jax.experimental.pallas import tpu as pltpu


# ------------------------- Pallas kernels -------------------------

def _conv_leaky_kernel(cols_ref, w_ref, o_ref):
    # conv (as matmul) + LeakyReLU(0.2) epilogue (activation of the NEXT layer)
    z = jnp.dot(cols_ref[...], w_ref[...].astype(jnp.float32),
                preferred_element_type=jnp.float32)
    o_ref[...] = jnp.where(z > 0, z, 0.2 * z)


def _conv_bn_leaky_kernel(cols_ref, w_ref, g_ref, b_ref, o_ref):
    # conv (as matmul) + train-mode BatchNorm + LeakyReLU(0.2) epilogue
    z = jnp.dot(cols_ref[...], w_ref[...].astype(jnp.float32),
                preferred_element_type=jnp.float32)          # [M, C] f32
    mean = jnp.mean(z, axis=0, keepdims=True)
    var = jnp.mean(jnp.square(z - mean), axis=0, keepdims=True)   # biased
    zn = (z - mean) * lax.rsqrt(var + 1e-5) * g_ref[...] + b_ref[...]
    o_ref[...] = jnp.where(zn > 0, zn, 0.2 * zn)


def _head_kernel(h_ref, w4_ref, w5_ref, o4_ref, o5_ref):
    # layer4 (4x4 conv over the whole 4x4 map == FC) -> leaky -> layer5 (1x1 conv)
    z4 = jnp.dot(h_ref[...], w4_ref[...].astype(jnp.float32),
                 preferred_element_type=jnp.float32)          # [B, 128]
    o4_ref[...] = z4                                          # out4 (pre-leaky)
    a = jnp.where(z4 > 0, z4, 0.2 * z4)
    o5_ref[...] = jnp.dot(a, w5_ref[...].astype(jnp.float32),
                          preferred_element_type=jnp.float32)  # [B, 128-padded]


# ------------------------- pallas_call wrappers -------------------------

def _vmem():
    return pl.BlockSpec(memory_space=pltpu.MemorySpace.VMEM)


def conv_leaky(cols, w):
    M = cols.shape[0]
    N = w.shape[1]
    return pl.pallas_call(
        _conv_leaky_kernel,
        out_shape=jax.ShapeDtypeStruct((M, N), jnp.float32),
        in_specs=[_vmem(), _vmem()],
        out_specs=_vmem(),
    )(cols, w)


def conv_bn_leaky(cols, w, gamma, beta):
    M = cols.shape[0]
    N = w.shape[1]
    return pl.pallas_call(
        _conv_bn_leaky_kernel,
        out_shape=jax.ShapeDtypeStruct((M, N), jnp.float32),
        in_specs=[_vmem(), _vmem(), _vmem(), _vmem()],
        out_specs=_vmem(),
    )(cols, w,
      gamma.reshape(1, N).astype(jnp.float32),
      beta.reshape(1, N).astype(jnp.float32))


def head(h_flat, w4, w5_padded):
    B = h_flat.shape[0]
    N4 = w4.shape[1]
    N5 = w5_padded.shape[1]
    return pl.pallas_call(
        _head_kernel,
        out_shape=(jax.ShapeDtypeStruct((B, N4), jnp.float32),
                   jax.ShapeDtypeStruct((B, N5), jnp.float32)),
        in_specs=[_vmem(), _vmem(), _vmem()],
        out_specs=(_vmem(), _vmem()),
    )(h_flat, w4, w5_padded)


# ------------------------- JAX glue -------------------------

def im2col(x, k, stride, pad):
    """x: [B, H, W, C] -> ([B*Ho*Wo, k*k*C], (B, Ho, Wo))"""
    B, H, W, C = x.shape
    if pad:
        x = jnp.pad(x, ((0, 0), (pad, pad), (pad, pad), (0, 0)))
    Hp, Wp = H + 2 * pad, W + 2 * pad
    Ho = (Hp - k) // stride + 1
    Wo = (Wp - k) // stride + 1
    patches = []
    for i in range(k):
        for j in range(k):
            patches.append(
                x[:, i:i + (Ho - 1) * stride + 1:stride,
                     j:j + (Wo - 1) * stride + 1:stride, :])
    cols = jnp.stack(patches, axis=3)                # [B, Ho, Wo, k*k, C]
    return cols.reshape(B * Ho * Wo, k * k * C), (B, Ho, Wo)


def init_params(key, input_nc, nclasses):
    ks = jax.random.split(key, 5)

    def w(key_, k, cin, cout):
        scale = 1.0 / jnp.sqrt(jnp.float32(k * k * cin))
        wf = (jax.random.normal(key_, (k, k, cin, cout), jnp.float32)
              * scale).reshape(k * k * cin, cout)
        return wf.astype(jnp.bfloat16)          # bf16 storage: halves weight DMA

    return {
        'w1': w(ks[0], 4, input_nc, 64),
        'w2': w(ks[1], 4, 64, 128),
        'g2': jnp.ones((128,), jnp.float32),
        'b2': jnp.zeros((128,), jnp.float32),
        'w3': w(ks[2], 4, 128, 256),
        'g3': jnp.ones((256,), jnp.float32),
        'b3': jnp.zeros((256,), jnp.float32),
        'w4': w(ks[3], 4, 256, 128),
        'w5': w(ks[4], 1, 128, nclasses),
    }


def forward(params, x_nchw):
    x = jnp.transpose(x_nchw, (0, 2, 3, 1)).astype(jnp.float32)   # -> NHWC

    # layer1: Conv 4x4 s2 p1 ; layer2's LeakyReLU fused as epilogue
    cols, (B, Ho, Wo) = im2col(x, 4, 2, 1)
    h1 = conv_leaky(cols, params['w1']).reshape(B, Ho, Wo, -1)

    # layer2: Conv 4x4 s2 p1 -> BN (train mode) ; layer3's LeakyReLU fused
    cols, (B, Ho, Wo) = im2col(h1, 4, 2, 1)
    h2 = conv_bn_leaky(cols, params['w2'],
                       params['g2'], params['b2']).reshape(B, Ho, Wo, -1)

    # layer3: Conv 4x4 s2 p1 -> BN ; layer4's LeakyReLU fused
    cols, (B, Ho, Wo) = im2col(h2, 4, 2, 1)
    h3 = conv_bn_leaky(cols, params['w3'], params['g3'], params['b3'])
    # rows of h3 are (b, h, w)-major -> [B, 4*4*256] matches w4's
    # (kH, kW, Cin) row order (layer4's 4x4 valid conv covers the whole map)
    h3_flat = h3.reshape(B, -1)

    # layer4 + layer5 fused head; pad w5's out-channels to 128 lanes
    nclasses = params['w5'].shape[1]
    padn = (-nclasses) % 128
    w5p = jnp.pad(params['w5'], ((0, 0), (0, padn))) if padn else params['w5']
    out4, out5p = head(h3_flat, params['w4'], w5p)
    out5 = out5p[:, :nclasses]

    # back to NCHW (spatial dims are 1x1 here) to mirror the PyTorch module
    return (out5.reshape(B, nclasses, 1, 1),
            out4.reshape(B, out4.shape[1], 1, 1))


# ------------------------- pure-JAX reference (sanity check) -------------------------

def reference(params, x_nchw):
    def conv(x, wflat, k, stride, pad):
        cin, cout = x.shape[-1], wflat.shape[-1]
        w = wflat.astype(jnp.float32).reshape(k, k, cin, cout)
        return lax.conv_general_dilated(
            x, w, (stride, stride), [(pad, pad), (pad, pad)],
            dimension_numbers=('NHWC', 'HWIO', 'NHWC'),
            precision=lax.Precision.HIGHEST)

    def leaky(x):
        return jnp.where(x > 0, x, 0.2 * x)

    def bn(x, g, b):
        mean = jnp.mean(x, axis=(0, 1, 2), keepdims=True)
        var = jnp.mean(jnp.square(x - mean), axis=(0, 1, 2), keepdims=True)
        return (x - mean) * lax.rsqrt(var + 1e-5) * g + b

    x = jnp.transpose(x_nchw, (0, 2, 3, 1)).astype(jnp.float32)
    out1 = conv(x, params['w1'], 4, 2, 1)
    out2 = bn(conv(leaky(out1), params['w2'], 4, 2, 1), params['g2'], params['b2'])
    out3 = bn(conv(leaky(out2), params['w3'], 4, 2, 1), params['g3'], params['b3'])
    out4 = conv(leaky(out3), params['w4'], 4, 1, 0)
    out5 = conv(leaky(out4), params['w5'], 1, 1, 0)
    return (jnp.transpose(out5, (0, 3, 1, 2)),
            jnp.transpose(out4, (0, 3, 1, 2)))


# ------------------------- main -------------------------

if __name__ == "__main__":
    key = jax.random.PRNGKey(0)
    k_x, k_p = jax.random.split(key)

    B, input_nc, H, W = 2, 3, 32, 32          # DTNet_32 -> 32x32 input
    nclasses = 10
    x = jax.random.normal(k_x, (B, input_nc, H, W), jnp.float32)   # NCHW

    params = init_params(k_p, input_nc, nclasses)

    out5, out4 = jax.jit(forward)(params, x)
    jax.block_until_ready((out5, out4))

    assert out5.shape == (B, nclasses, 1, 1), out5.shape
    assert out4.shape == (B, 128, 1, 1), out4.shape

    ref5, ref4 = reference(params, x)
    assert jnp.allclose(out5, ref5, atol=2e-2, rtol=2e-2)
    assert jnp.allclose(out4, ref4, atol=2e-2, rtol=2e-2)

    print("KERNEL_OK")
</pallas_src>

<mosaic_0001>
module attributes {stable_mosaic.version = 11 : i64} {
  func.func @_conv_leaky_kernel(%arg0: memref<512x48xf32, #tpu.memory_space<vmem>>, %arg1: memref<48x64xbf16, #tpu.memory_space<vmem>>, %arg2: memref<512x64xf32, #tpu.memory_space<vmem>>) attributes {dimension_semantics = [], scalar_prefetch = 0 : i64, scratch_operands = 0 : i64, tpu.core_type = #tpu.core_type<tc>} {
    %c0 = arith.constant 0 : index
    %c0_0 = arith.constant 0 : index
    %0 = vector.load %arg0[%c0, %c0_0] : memref<512x48xf32, #tpu.memory_space<vmem>>, vector<512x48xf32>
    %c0_1 = arith.constant 0 : index
    %c0_2 = arith.constant 0 : index
    %1 = vector.load %arg1[%c0_1, %c0_2] : memref<48x64xbf16, #tpu.memory_space<vmem>>, vector<48x64xbf16>
    %2 = arith.extf %1 : vector<48x64xbf16> to vector<48x64xf32>
    %cst = arith.constant dense<0.000000e+00> : vector<512x64xf32>
    %3 = tpu.matmul %0, %2, %cst {dimension_numbers = #tpu.dot_dimension_numbers<[1], [0], [0], [1], [0, 0, 1, 1], [], []>} : vector<512x48xf32>, vector<48x64xf32>, vector<512x64xf32> -> vector<512x64xf32>
    %cst_3 = arith.constant 0.000000e+00 : f32
    %4 = vector.broadcast %cst_3 : f32 to vector<512x64xf32>
    %5 = arith.cmpf ogt, %3, %4 : vector<512x64xf32>
    %cst_4 = arith.constant 2.000000e-01 : f32
    %6 = vector.broadcast %cst_4 : f32 to vector<512x64xf32>
    %7 = arith.mulf %6, %3 : vector<512x64xf32>
    %8 = arith.select %5, %3, %7 : vector<512x64xi1>, vector<512x64xf32>
    %c0_5 = arith.constant 0 : index
    %c0_6 = arith.constant 0 : index
    %9 = vector.load %arg2[%c0_5, %c0_6] : memref<512x64xf32, #tpu.memory_space<vmem>>, vector<512x64xf32>
    tpu.vector_store %arg2[%c0_5, %c0_6], %8 {strides = array<i32>} : memref<512x64xf32, #tpu.memory_space<vmem>>, vector<512x64xf32>,
    return
  }
}

module attributes {stable_mosaic.version = 11 : i64} {
  func.func @_conv_bn_leaky_kernel(%arg0: memref<128x1024xf32, #tpu.memory_space<vmem>>, %arg1: memref<1024x128xbf16, #tpu.memory_space<vmem>>, %arg2: memref<1x128xf32, #tpu.memory_space<vmem>>, %arg3: memref<1x128xf32, #tpu.memory_space<vmem>>, %arg4: memref<128x128xf32, #tpu.memory_space<vmem>>) attributes {dimension_semantics = [], scalar_prefetch = 0 : i64, scratch_operands = 0 : i64, tpu.core_type = #tpu.core_type<tc>} {
    %c0 = arith.constant 0 : index
    %c0_0 = arith.constant 0 : index
    %0 = vector.load %arg0[%c0, %c0_0] : memref<128x1024xf32, #tpu.memory_space<vmem>>, vector<128x1024xf32>
    %c0_1 = arith.constant 0 : index
    %c0_2 = arith.constant 0 : index
    %1 = vector.load %arg1[%c0_1, %c0_2] : memref<1024x128xbf16, #tpu.memory_space<vmem>>, vector<1024x128xbf16>
    %2 = arith.extf %1 : vector<1024x128xbf16> to vector<1024x128xf32>
    %cst = arith.constant dense<0.000000e+00> : vector<128x128xf32>
    %3 = tpu.matmul %0, %2, %cst {dimension_numbers = #tpu.dot_dimension_numbers<[1], [0], [0], [1], [0, 0, 1, 1], [], []>} : vector<128x1024xf32>, vector<1024x128xf32>, vector<128x128xf32> -> vector<128x128xf32>
    %cst_3 = arith.constant dense<0.000000e+00> : vector<128xf32>
    %4 = vector.multi_reduction <add>, %3, %cst_3 [0] : vector<128x128xf32> to vector<128xf32>
    %5 = vector.shape_cast %4 : vector<128xf32> to vector<1x128xf32>
    %cst_4 = arith.constant 1.280000e+02 : f32
    %6 = vector.broadcast %cst_4 : f32 to vector<1x128xf32>
    %7 = arith.divf %5, %6 : vector<1x128xf32>
    %8 = vector.broadcast %7 : vector<1x128xf32> to vector<128x128xf32>
    %9 = arith.subf %3, %8 : vector<128x128xf32>
    %10 = arith.mulf %9, %9 : vector<128x128xf32>
    %cst_5 = arith.constant dense<0.000000e+00> : vector<128xf32>
    %11 = vector.multi_reduction <add>, %10, %cst_5 [0] : vector<128x128xf32> to vector<128xf32>
    %12 = vector.shape_cast %11 : vector<128xf32> to vector<1x128xf32>
    %cst_6 = arith.constant 1.280000e+02 : f32
    %13 = vector.broadcast %cst_6 : f32 to vector<1x128xf32>
    %14 = arith.divf %12, %13 : vector<1x128xf32>
    %15 = vector.broadcast %7 : vector<1x128xf32> to vector<128x128xf32>
    %16 = arith.subf %3, %15 : vector<128x128xf32>
    %cst_7 = arith.constant 9.99999974E-6 : f32
    %17 = vector.broadcast %cst_7 : f32 to vector<1x128xf32>
    %18 = arith.addf %14, %17 : vector<1x128xf32>
    %19 = math.rsqrt %18 : vector<1x128xf32>
    %20 = vector.broadcast %19 : vector<1x128xf32> to vector<128x128xf32>
    %21 = arith.mulf %16, %20 : vector<128x128xf32>
    %c0_8 = arith.constant 0 : index
    %c0_9 = arith.constant 0 : index
    %22 = vector.load %arg2[%c0_8, %c0_9] : memref<1x128xf32, #tpu.memory_space<vmem>>, vector<1x128xf32>
    %23 = vector.broadcast %22 : vector<1x128xf32> to vector<128x128xf32>
    %24 = arith.mulf %21, %23 : vector<128x128xf32>
    %c0_10 = arith.constant 0 : index
    %c0_11 = arith.constant 0 : index
    %25 = vector.load %arg3[%c0_10, %c0_11] : memref<1x128xf32, #tpu.memory_space<vmem>>, vector<1x128xf32>
    %26 = vector.broadcast %25 : vector<1x128xf32> to vector<128x128xf32>
    %27 = arith.addf %24, %26 : vector<128x128xf32>
    %cst_12 = arith.constant 0.000000e+00 : f32
    %28 = vector.broadcast %cst_12 : f32 to vector<128x128xf32>
    %29 = arith.cmpf ogt, %27, %28 : vector<128x128xf32>
    %cst_13 = arith.constant 2.000000e-01 : f32
    %30 = vector.broadcast %cst_13 : f32 to vector<128x128xf32>
    %31 = arith.mulf %30, %27 : vector<128x128xf32>
    %32 = arith.select %29, %27, %31 : vector<128x128xi1>, vector<128x128xf32>
    %c0_14 = arith.constant 0 : index
    %c0_15 = arith.constant 0 : index
    %33 = vector.load %arg4[%c0_14, %c0_15] : memref<128x128xf32, #tpu.memory_space<vmem>>, vector<128x128xf32>
    tpu.vector_store %arg4[%c0_14, %c0_15], %32 {strides = array<i32>} : memref<128x128xf32, #tpu.memory_space<vmem>>, vector<128x128xf32>,
    return
  }
}

module attributes {stable_mosaic.version = 11 : i64} {
  func.func @_conv_bn_leaky_kernel(%arg0: memref<32x2048xf32, #tpu.memory_space<vmem>>, %arg1: memref<2048x256xbf16, #tpu.memory_space<vmem>>, %arg2: memref<1x256xf32, #tpu.memory_space<vmem>>, %arg3: memref<1x256xf32, #tpu.memory_space<vmem>>, %arg4: memref<32x256xf32, #tpu.memory_space<vmem>>) attributes {dimension_semantics = [], scalar_prefetch = 0 : i64, scratch_operands = 0 : i64, tpu.core_type = #tpu.core_type<tc>} {
    %c0 = arith.constant 0 : index
    %c0_0 = arith.constant 0 : index
    %0 = vector.load %arg0[%c0, %c0_0] : memref<32x2048xf32, #tpu.memory_space<vmem>>, vector<32x2048xf32>
    %c0_1 = arith.constant 0 : index
    %c0_2 = arith.constant 0 : index
    %1 = vector.load %arg1[%c0_1, %c0_2] : memref<2048x256xbf16, #tpu.memory_space<vmem>>, vector<2048x256xbf16>
    %2 = arith.extf %1 : vector<2048x256xbf16> to vector<2048x256xf32>
    %cst = arith.constant dense<0.000000e+00> : vector<32x256xf32>
    %3 = tpu.matmul %0, %2, %cst {dimension_numbers = #tpu.dot_dimension_numbers<[1], [0], [0], [1], [0, 0, 1, 1], [], []>} : vector<32x2048xf32>, vector<2048x256xf32>, vector<32x256xf32> -> vector<32x256xf32>
    %cst_3 = arith.constant dense<0.000000e+00> : vector<256xf32>
    %4 = vector.multi_reduction <add>, %3, %cst_3 [0] : vector<32x256xf32> to vector<256xf32>
    %5 = vector.shape_cast %4 : vector<256xf32> to vector<1x256xf32>
    %cst_4 = arith.constant 3.200000e+01 : f32
    %6 = vector.broadcast %cst_4 : f32 to vector<1x256xf32>
    %7 = arith.divf %5, %6 : vector<1x256xf32>
    %8 = vector.broadcast %7 : vector<1x256xf32> to vector<32x256xf32>
    %9 = arith.subf %3, %8 : vector<32x256xf32>
    %10 = arith.mulf %9, %9 : vector<32x256xf32>
    %cst_5 = arith.constant dense<0.000000e+00> : vector<256xf32>
    %11 = vector.multi_reduction <add>, %10, %cst_5 [0] : vector<32x256xf32> to vector<256xf32>
    %12 = vector.shape_cast %11 : vector<256xf32> to vector<1x256xf32>
    %cst_6 = arith.constant 3.200000e+01 : f32
    %13 = vector.broadcast %cst_6 : f32 to vector<1x256xf32>
    %14 = arith.divf %12, %13 : vector<1x256xf32>
    %15 = vector.broadcast %7 : vector<1x256xf32> to vector<32x256xf32>
    %16 = arith.subf %3, %15 : vector<32x256xf32>
    %cst_7 = arith.constant 9.99999974E-6 : f32
    %17 = vector.broadcast %cst_7 : f32 to vector<1x256xf32>
    %18 = arith.addf %14, %17 : vector<1x256xf32>
    %19 = math.rsqrt %18 : vector<1x256xf32>
    %20 = vector.broadcast %19 : vector<1x256xf32> to vector<32x256xf32>
    %21 = arith.mulf %16, %20 : vector<32x256xf32>
    %c0_8 = arith.constant 0 : index
    %c0_9 = arith.constant 0 : index
    %22 = vector.load %arg2[%c0_8, %c0_9] : memref<1x256xf32, #tpu.memory_space<vmem>>, vector<1x256xf32>
    %23 = vector.broadcast %22 : vector<1x256xf32> to vector<32x256xf32>
    %24 = arith.mulf %21, %23 : vector<32x256xf32>
    %c0_10 = arith.constant 0 : index
    %c0_11 = arith.constant 0 : index
    %25 = vector.load %arg3[%c0_10, %c0_11] : memref<1x256xf32, #tpu.memory_space<vmem>>, vector<1x256xf32>
    %26 = vector.broadcast %25 : vector<1x256xf32> to vector<32x256xf32>
    %27 = arith.addf %24, %26 : vector<32x256xf32>
    %cst_12 = arith.constant 0.000000e+00 : f32
    %28 = vector.broadcast %cst_12 : f32 to vector<32x256xf32>
    %29 = arith.cmpf ogt, %27, %28 : vector<32x256xf32>
    %cst_13 = arith.constant 2.000000e-01 : f32
    %30 = vector.broadcast %cst_13 : f32 to vector<32x256xf32>
    %31 = arith.mulf %30, %27 : vector<32x256xf32>
    %32 = arith.select %29, %27, %31 : vector<32x256xi1>, vector<32x256xf32>
    %c0_14 = arith.constant 0 : index
    %c0_15 = arith.constant 0 : index
    %33 = vector.load %arg4[%c0_14, %c0_15] : memref<32x256xf32, #tpu.memory_space<vmem>>, vector<32x256xf32>
    tpu.vector_store %arg4[%c0_14, %c0_15], %32 {strides = array<i32>} : memref<32x256xf32, #tpu.memory_space<vmem>>, vector<32x256xf32>,
    return
  }
}

module attributes {stable_mosaic.version = 11 : i64} {
  func.func @_head_kernel(%arg0: memref<2x4096xf32, #tpu.memory_space<vmem>>, %arg1: memref<4096x128xbf16, #tpu.memory_space<vmem>>, %arg2: memref<128x128xbf16, #tpu.memory_space<vmem>>, %arg3: memref<2x128xf32, #tpu.memory_space<vmem>>, %arg4: memref<2x128xf32, #tpu.memory_space<vmem>>) attributes {dimension_semantics = [], scalar_prefetch = 0 : i64, scratch_operands = 0 : i64, tpu.core_type = #tpu.core_type<tc>} {
    %c0 = arith.constant 0 : index
    %c0_0 = arith.constant 0 : index
    %0 = vector.load %arg0[%c0, %c0_0] : memref<2x4096xf32, #tpu.memory_space<vmem>>, vector<2x4096xf32>
    %c0_1 = arith.constant 0 : index
    %c0_2 = arith.constant 0 : index
    %1 = vector.load %arg1[%c0_1, %c0_2] : memref<4096x128xbf16, #tpu.memory_space<vmem>>, vector<4096x128xbf16>
    %2 = arith.extf %1 : vector<4096x128xbf16> to vector<4096x128xf32>
    %cst = arith.constant dense<0.000000e+00> : vector<2x128xf32>
    %3 = tpu.matmul %0, %2, %cst {dimension_numbers = #tpu.dot_dimension_numbers<[1], [0], [0], [1], [0, 0, 1, 1], [], []>} : vector<2x4096xf32>, vector<4096x128xf32>, vector<2x128xf32> -> vector<2x128xf32>
    %c0_3 = arith.constant 0 : index
    %c0_4 = arith.constant 0 : index
    %4 = vector.load %arg3[%c0_3, %c0_4] : memref<2x128xf32, #tpu.memory_space<vmem>>, vector<2x128xf32>
    tpu.vector_store %arg3[%c0_3, %c0_4], %3 {strides = array<i32>} : memref<2x128xf32, #tpu.memory_space<vmem>>, vector<2x128xf32>,
    %cst_5 = arith.constant 0.000000e+00 : f32
    %5 = vector.broadcast %cst_5 : f32 to vector<2x128xf32>
    %6 = arith.cmpf ogt, %3, %5 : vector<2x128xf32>
    %cst_6 = arith.constant 2.000000e-01 : f32
    %7 = vector.broadcast %cst_6 : f32 to vector<2x128xf32>
    %8 = arith.mulf %7, %3 : vector<2x128xf32>
    %9 = arith.select %6, %3, %8 : vector<2x128xi1>, vector<2x128xf32>
    %c0_7 = arith.constant 0 : index
    %c0_8 = arith.constant 0 : index
    %10 = vector.load %arg2[%c0_7, %c0_8] : memref<128x128xbf16, #tpu.memory_space<vmem>>, vector<128x128xbf16>
    %11 = arith.extf %10 : vector<128x128xbf16> to vector<128x128xf32>
    %cst_9 = arith.constant dense<0.000000e+00> : vector<2x128xf32>
    %12 = tpu.matmul %9, %11, %cst_9 {dimension_numbers = #tpu.dot_dimension_numbers<[1], [0], [0], [1], [0, 0, 1, 1], [], []>} : vector<2x128xf32>, vector<128x128xf32>, vector<2x128xf32> -> vector<2x128xf32>
    %c0_10 = arith.constant 0 : index
    %c0_11 = arith.constant 0 : index
    %13 = vector.load %arg4[%c0_10, %c0_11] : memref<2x128xf32, #tpu.memory_space<vmem>>, vector<2x128xf32>
    tpu.vector_store %arg4[%c0_10, %c0_11], %12 {strides = array<i32>} : memref<2x128xf32, #tpu.memory_space<vmem>>, vector<2x128xf32>,
    return
  }
}

</mosaic_0001>

<bundles_post_ra>
// kernel: forward.4
= control target key start
LH: loop header
LB: loop body
LE: loop exit
PB: predicated region body
PF: predicated region fallthrough
CT: control target
= control target key end

     0   :  { %vm87_vm0 = vcmask 392192   ;;  %vm681_vm1 = vcmask 523264   ;;  %s1382_s1 = inlined_call_operand.vmem [shape: bf16[48,64], index: 1, kind: input, shape index: {}]   ;;  %s1383_s0 = inlined_call_operand.vmem [shape: f32[512,48], index: 0, kind: input, shape index: {}]   ;;  %s1384_s2 = inlined_call_operand.vmem [shape: f32[512,64], index: 2, kind: output, shape index: {}]  }
   0x1   :  { %v827_v0 = vld [vmem:[%s1382_s1 + $0x10] sm:$0xff]   ;;  %v826_v1 = vld [vmem:[%s1382_s1 + $0x8] sm:$0xff]   ;;  %v815_v5 = vld [vmem:[%s1382_s1] sm:$0xff]  }
   0x2   :  { %v825_v2 = vunpack.c.h.bf16 %v827_v0  ;;  %v824_v3 = vunpack.c.l.bf16 %v827_v0  ;;  %v821_v4 = vunpack.c.h.bf16 %v826_v1  ;;  %v820_v6 = vunpack.c.l.bf16 %v826_v1  ;;  %v43_v9 = vld [vmem:[%s1383_s0 + $0x100] sm:$0xff]  ;;  %v44_v13 = vld [vmem:[%s1383_s0 + $0x108] sm:$0xff]  ;;  %v45_v17 = vld [vmem:[%s1383_s0 + $0x110] sm:$0xff] }
   0x3   :  { %v817_v7 = vunpack.c.h.bf16 %v815_v5  ;;  %v816_v8 = vunpack.c.l.bf16 %v815_v5  ;;  %v59_v10 = vld [vmem:[%s1383_s0 + $0x180] sm:$0xff]  ;;  %v60_v14 = vld [vmem:[%s1383_s0 + $0x188] sm:$0xff]  ;;  %v61_v18 = vld [vmem:[%s1383_s0 + $0x190] sm:$0xff] }
   0x4   :  { %829 = vmatpush.msra.mxu2 %v825_v2  ;;  %830 = vmatpush.msra.mxu3 %v825_v2  ;;  %v11_v11 = vld [vmem:[%s1383_s0] sm:$0xff]  ;;  %v12_v15 = vld [vmem:[%s1383_s0 + $0x8] sm:$0xff]  ;;  %v13_v19 = vld [vmem:[%s1383_s0 + $0x10] sm:$0xff] }
   0x5   :  { %290 = vmatpush.msra.mxu0 %v825_v2  ;;  %828 = vmatpush.msra.mxu1 %v825_v2  ;;  %v27_v12 = vld [vmem:[%s1383_s0 + $0x80] sm:$0xff]  ;;  %v28_v16 = vld [vmem:[%s1383_s0 + $0x88] sm:$0xff]  ;;  %v29_v20 = vld [vmem:[%s1383_s0 + $0x90] sm:$0xff] }
   0x6   :  { %832 = vmatpush.msra.mxu2 %v824_v3  ;;  %833 = vmatpush.msra.mxu3 %v824_v3  ;;  %v46_v21 = vld [vmem:[%s1383_s0 + $0x118] sm:$0xff]  ;;  %v47_v25 = vld [vmem:[%s1383_s0 + $0x120] sm:$0xff]  ;;  %v48_v29 = vld [vmem:[%s1383_s0 + $0x128] sm:$0xff] }
   0x7   :  { %291 = vmatpush.msra.mxu0 %v824_v3  ;;  %831 = vmatpush.msra.mxu1 %v824_v3  ;;  %v62_v22 = vld [vmem:[%s1383_s0 + $0x198] sm:$0xff]  ;;  %v63_v26 = vld [vmem:[%s1383_s0 + $0x1a0] sm:$0xff]  ;;  %v64_v30 = vld [vmem:[%s1383_s0 + $0x1a8] sm:$0xff] }
   0x8   :  { %835 = vmatpush.msra.mxu2 %v821_v4  ;;  %836 = vmatpush.msra.mxu3 %v821_v4  ;;  %v14_v23 = vld [vmem:[%s1383_s0 + $0x18] sm:$0xff]  ;;  %v15_v27 = vld [vmem:[%s1383_s0 + $0x20] sm:$0xff]  ;;  %v16_v31 = vld [vmem:[%s1383_s0 + $0x28] sm:$0xff] }
   0x9   :  { %292 = vmatpush.msra.mxu0 %v821_v4  ;;  %834 = vmatpush.msra.mxu1 %v821_v4  ;;  %v30_v24 = vld [vmem:[%s1383_s0 + $0x98] sm:$0xff]  ;;  %v31_v28 = vld [vmem:[%s1383_s0 + $0xa0] sm:$0xff]  ;;  %v32_v32 = vld [vmem:[%s1383_s0 + $0xa8] sm:$0xff] }
   0xa   :  { %838 = vmatpush.msra.mxu2 %v820_v6  ;;  %839 = vmatpush.msra.mxu3 %v820_v6  ;;  %v49_v33 = vld [vmem:[%s1383_s0 + $0x130] sm:$0xff]  ;;  %v50_v37 = vld [vmem:[%s1383_s0 + $0x138] sm:$0xff]  ;;  %v51_v41 = vld [vmem:[%s1383_s0 + $0x140] sm:$0xff] }
   0xb   :  { %293 = vmatpush.msra.mxu0 %v820_v6  ;;  %837 = vmatpush.msra.mxu1 %v820_v6  ;;  %v65_v34 = vld [vmem:[%s1383_s0 + $0x1b0] sm:$0xff]  ;;  %v66_v38 = vld [vmem:[%s1383_s0 + $0x1b8] sm:$0xff]  ;;  %v67_v42 = vld [vmem:[%s1383_s0 + $0x1c0] sm:$0xff] }
   0xc   :  { %841 = vmatpush.msra.mxu2 %v817_v7  ;;  %842 = vmatpush.msra.mxu3 %v817_v7  ;;  %v17_v35 = vld [vmem:[%s1383_s0 + $0x30] sm:$0xff]  ;;  %v18_v39 = vld [vmem:[%s1383_s0 + $0x38] sm:$0xff]  ;;  %v19_v43 = vld [vmem:[%s1383_s0 + $0x40] sm:$0xff] }
   0xd   :  { %294 = vmatpush.msra.mxu0 %v817_v7  ;;  %840 = vmatpush.msra.mxu1 %v817_v7  ;;  %v33_v36 = vld [vmem:[%s1383_s0 + $0xb0] sm:$0xff]  ;;  %v34_v40 = vld [vmem:[%s1383_s0 + $0xb8] sm:$0xff]  ;;  %v35_v44 = vld [vmem:[%s1383_s0 + $0xc0] sm:$0xff] }
   0xe   :  { %844 = vmatpush.msra.mxu2 %v816_v8  ;;  %845 = vmatpush.msra.mxu3 %v816_v8  ;;  %v52_v45 = vld [vmem:[%s1383_s0 + $0x148] sm:$0xff]  ;;  %v53_v49 = vld [vmem:[%s1383_s0 + $0x150] sm:$0xff]  ;;  %v54_v53 = vld [vmem:[%s1383_s0 + $0x158] sm:$0xff] }
   0xf   :  { %782 = vmatmul.msk.f32.vlgmr.msra.gmra.mxu2 %vm87_vm0, %v43_v9  ;;  %798 = vmatmul.msk.f32.vlgmr.msra.gmra.mxu3 %vm87_vm0, %v59_v10  ;;  %v68_v46 = vld [vmem:[%s1383_s0 + $0x1c8] sm:$0xff]  ;;  %v69_v50 = vld [vmem:[%s1383_s0 + $0x1d0] sm:$0xff]  ;;  %v70_v54 = vld [vmem:[%s1383_s0 + $0x1d8] sm:$0xff] }
  0x10   :  { %295 = vmatpush.msra.mxu0 %v816_v8  ;;  %843 = vmatpush.msra.mxu1 %v816_v8  ;;  %v20_v47 = vld [vmem:[%s1383_s0 + $0x48] sm:$0xff]  ;;  %v21_v51 = vld [vmem:[%s1383_s0 + $0x50] sm:$0xff]  ;;  %v22_v55 = vld [vmem:[%s1383_s0 + $0x58] sm:$0xff] }
  0x11   :  { %750 = vmatmul.msk.f32.vlgmr.msra.gmra.mxu0 %vm87_vm0, %v11_v11  ;;  %766 = vmatmul.msk.f32.vlgmr.msra.gmra.mxu1 %vm87_vm0, %v27_v12  ;;  %v36_v48 = vld [vmem:[%s1383_s0 + $0xc8] sm:$0xff]  ;;  %v37_v52 = vld [vmem:[%s1383_s0 + $0xd0] sm:$0xff]  ;;  %v38_v56 = vld [vmem:[%s1383_s0 + $0xd8] sm:$0xff] }
  0x12   :  { %v55_v57 = vld [vmem:[%s1383_s0 + $0x160] sm:$0xff]  ;;  %v56_v61 = vld [vmem:[%s1383_s0 + $0x168] sm:$0xff]  ;;  %v57_v1 = vld [vmem:[%s1383_s0 + $0x170] sm:$0xff] }
  0x13   :  { %v71_v58 = vld [vmem:[%s1383_s0 + $0x1e0] sm:$0xff]  ;;  %v72_v62 = vld [vmem:[%s1383_s0 + $0x1e8] sm:$0xff]  ;;  %v73_v2 = vld [vmem:[%s1383_s0 + $0x1f0] sm:$0xff] }
  0x14   :  { %v23_v59 = vld [vmem:[%s1383_s0 + $0x60] sm:$0xff]  ;;  %v24_v63 = vld [vmem:[%s1383_s0 + $0x68] sm:$0xff]  ;;  %v25_v3 = vld [vmem:[%s1383_s0 + $0x70] sm:$0xff] }
  0x15   :  { %v39_v60 = vld [vmem:[%s1383_s0 + $0xe0] sm:$0xff]  ;;  %v40_v0 = vld [vmem:[%s1383_s0 + $0xe8] sm:$0xff]  ;;  %v41_v4 = vld [vmem:[%s1383_s0 + $0xf0] sm:$0xff] }
  0x16   :  { %v58_v5 = vld [vmem:[%s1383_s0 + $0x178] sm:$0xff] }
  0x17   :  { %783 = vmatmul.msk.f32.gmra.mxu2 %vm87_vm0, %v44_v13  ;;  %799 = vmatmul.msk.f32.gmra.mxu3 %vm87_vm0, %v60_v14  ;;  %v74_v6 = vld [vmem:[%s1383_s0 + $0x1f8] sm:$0xff] }
  0x18   :  { %v26_v7 = vld [vmem:[%s1383_s0 + $0x78] sm:$0xff] }
  0x19   :  { %751 = vmatmul.msk.f32.gmra.mxu0 %vm87_vm0, %v12_v15  ;;  %767 = vmatmul.msk.f32.gmra.mxu1 %vm87_vm0, %v28_v16  ;;  %v42_v8 = vld [vmem:[%s1383_s0 + $0xf8] sm:$0xff] }
  0x1f   :  { %784 = vmatmul.msk.f32.gmra.mxu2 %vm87_vm0, %v45_v17  ;;  %800 = vmatmul.msk.f32.gmra.mxu3 %vm87_vm0, %v61_v18 }
  0x21   :  { %752 = vmatmul.msk.f32.gmra.mxu0 %vm87_vm0, %v13_v19  ;;  %768 = vmatmul.msk.f32.gmra.mxu1 %vm87_vm0, %v29_v20 }
  0x27   :  { %785 = vmatmul.msk.f32.gmra.mxu2 %vm87_vm0, %v46_v21  ;;  %801 = vmatmul.msk.f32.gmra.mxu3 %vm87_vm0, %v62_v22 }
  0x29   :  { %753 = vmatmul.msk.f32.gmra.mxu0 %vm87_vm0, %v14_v23  ;;  %769 = vmatmul.msk.f32.gmra.mxu1 %vm87_vm0, %v30_v24 }
  0x2f   :  { %786 = vmatmul.msk.f32.gmra.mxu2 %vm87_vm0, %v47_v25  ;;  %802 = vmatmul.msk.f32.gmra.mxu3 %vm87_vm0, %v63_v26 }
  0x31   :  { %754 = vmatmul.msk.f32.gmra.mxu0 %vm87_vm0, %v15_v27  ;;  %770 = vmatmul.msk.f32.gmra.mxu1 %vm87_vm0, %v31_v28 }
  0x37   :  { %787 = vmatmul.msk.f32.gmra.mxu2 %vm87_vm0, %v48_v29  ;;  %803 = vmatmul.msk.f32.gmra.mxu3 %vm87_vm0, %v64_v30 }
  0x39   :  { %755 = vmatmul.msk.f32.gmra.mxu0 %vm87_vm0, %v16_v31  ;;  %771 = vmatmul.msk.f32.gmra.mxu1 %vm87_vm0, %v32_v32 }
  0x3f   :  { %788 = vmatmul.msk.f32.gmra.mxu2 %vm87_vm0, %v49_v33  ;;  %804 = vmatmul.msk.f32.gmra.mxu3 %vm87_vm0, %v65_v34 }
  0x41   :  { %756 = vmatmul.msk.f32.gmra.mxu0 %vm87_vm0, %v17_v35  ;;  %772 = vmatmul.msk.f32.gmra.mxu1 %vm87_vm0, %v33_v36 }
  0x47   :  { %789 = vmatmul.msk.f32.gmra.mxu2 %vm87_vm0, %v50_v37  ;;  %805 = vmatmul.msk.f32.gmra.mxu3 %vm87_vm0, %v66_v38 }
  0x49   :  { %757 = vmatmul.msk.f32.gmra.mxu0 %vm87_vm0, %v18_v39  ;;  %773 = vmatmul.msk.f32.gmra.mxu1 %vm87_vm0, %v34_v40 }
  0x4f   :  { %790 = vmatmul.msk.f32.gmra.mxu2 %vm87_vm0, %v51_v41  ;;  %806 = vmatmul.msk.f32.gmra.mxu3 %vm87_vm0, %v67_v42 }
  0x51   :  { %758 = vmatmul.msk.f32.gmra.mxu0 %vm87_vm0, %v19_v43  ;;  %774 = vmatmul.msk.f32.gmra.mxu1 %vm87_vm0, %v35_v44 }
  0x57   :  { %791 = vmatmul.msk.f32.gmra.mxu2 %vm87_vm0, %v52_v45  ;;  %807 = vmatmul.msk.f32.gmra.mxu3 %vm87_vm0, %v68_v46 }
  0x59   :  { %759 = vmatmul.msk.f32.gmra.mxu0 %vm87_vm0, %v20_v47  ;;  %775 = vmatmul.msk.f32.gmra.mxu1 %vm87_vm0, %v36_v48 }
  0x5f   :  { %792 = vmatmul.msk.f32.gmra.mxu2 %vm87_vm0, %v53_v49  ;;  %808 = vmatmul.msk.f32.gmra.mxu3 %vm87_vm0, %v69_v50 }
  0x61   :  { %760 = vmatmul.msk.f32.gmra.mxu0 %vm87_vm0, %v21_v51  ;;  %776 = vmatmul.msk.f32.gmra.mxu1 %vm87_vm0, %v37_v52 }
  0x67   :  { %793 = vmatmul.msk.f32.gmra.mxu2 %vm87_vm0, %v54_v53  ;;  %809 = vmatmul.msk.f32.gmra.mxu3 %vm87_vm0, %v70_v54 }
  0x69   :  { %761 = vmatmul.msk.f32.gmra.mxu0 %vm87_vm0, %v22_v55  ;;  %777 = vmatmul.msk.f32.gmra.mxu1 %vm87_vm0, %v38_v56 }
  0x6f   :  { %794 = vmatmul.msk.f32.gmra.mxu2 %vm87_vm0, %v55_v57  ;;  %810 = vmatmul.msk.f32.gmra.mxu3 %vm87_vm0, %v71_v58 }
  0x71   :  { %762 = vmatmul.msk.f32.gmra.mxu0 %vm87_vm0, %v23_v59  ;;  %778 = vmatmul.msk.f32.gmra.mxu1 %vm87_vm0, %v39_v60 }
  0x77   :  { %795 = vmatmul.msk.f32.gmra.mxu2 %vm87_vm0, %v56_v61  ;;  %811 = vmatmul.msk.f32.gmra.mxu3 %vm87_vm0, %v72_v62 }
  0x79   :  { %763 = vmatmul.msk.f32.gmra.mxu0 %vm87_vm0, %v24_v63  ;;  %779 = vmatmul.msk.f32.gmra.mxu1 %vm87_vm0, %v40_v0 }
  0x7f   :  { %796 = vmatmul.msk.f32.gmra.mxu2 %vm87_vm0, %v57_v1  ;;  %812 = vmatmul.msk.f32.gmra.mxu3 %vm87_vm0, %v73_v2 }
  0x81   :  { %764 = vmatmul.msk.f32.gmra.mxu0 %vm87_vm0, %v25_v3  ;;  %780 = vmatmul.msk.f32.gmra.mxu1 %vm87_vm0, %v41_v4 }
  0x87   :  { %797 = vmatmul.msk.f32.gmra.mxu2 %vm87_vm0, %v58_v5  ;;  %813 = vmatmul.msk.f32.gmra.mxu3 %vm87_vm0, %v74_v6 }
  0x89   :  { %765 = vmatmul.msk.f32.gmra.mxu0 %vm87_vm0, %v26_v7  ;;  %781 = vmatmul.msk.f32.gmra.mxu1 %vm87_vm0, %v42_v8 }
  0x8e   :  { %v297_v9 = vpop.f32.mrf.mxu0  ;;  %v345_v10 = vpop.f32.mrf.mxu1 }
  0x8f   :  { %vm489_vm2 = vcmp.gt.f32.partialorder %v297_v9, 0.0  ;;  %v553_v11 = vmul.f32 0.2, %v297_v9  ;;  %vm505_vm3 = vcmp.gt.f32.partialorder %v345_v10, 0.0  ;;  %v569_v12 = vmul.f32 0.2, %v345_v10 }
  0x91   :  { %v617_v13 = vsel %vm489_vm2, %v297_v9, %v553_v11  ;;  %v633_v14 = vsel %vm505_vm3, %v345_v10, %v569_v12 }
  0x92   :  { %682 = vst.msk [vmem:[%s1384_s2] sm:$0xff] %vm681_vm1, %v617_v13  ;;  %v393_v15 = vpop.f32.mrf.mxu2  ;;  %v441_v16 = vpop.f32.mrf.mxu3 }
  0x93   :  { %698 = vst.msk [vmem:[%s1384_s2 + $0x80] sm:$0xff] %vm681_vm1, %v633_v14  ;;  %vm521_vm4 = vcmp.gt.f32.partialorder %v393_v15, 0.0  ;;  %v585_v17 = vmul.f32 0.2, %v393_v15  ;;  %vm537_vm5 = vcmp.gt.f32.partialorder %v441_v16, 0.0 }
  0x94   :  { %v601_v18 = vmul.f32 0.2, %v441_v16 }
  0x95   :  { %v649_v19 = vsel %vm521_vm4, %v393_v15, %v585_v17 }
  0x96   :  { %714 = vst.msk [vmem:[%s1384_s2 + $0x100] sm:$0xff] %vm681_vm1, %v649_v19  ;;  %v665_v20 = vsel %vm537_vm5, %v441_v16, %v601_v18  ;;  %v300_v21 = vpop.f32.mrf.mxu0  ;;  %v348_v22 = vpop.f32.mrf.mxu1 }
  0x97   :  { %730 = vst.msk [vmem:[%s1384_s2 + $0x180] sm:$0xff] %vm681_vm1, %v665_v20  ;;  %vm490_vm6 = vcmp.gt.f32.partialorder %v300_v21, 0.0  ;;  %v554_v23 = vmul.f32 0.2, %v300_v21  ;;  %vm506_vm7 = vcmp.gt.f32.partialorder %v348_v22, 0.0 }
  0x98   :  { %v570_v24 = vmul.f32 0.2, %v348_v22 }
  0x99   :  { %v618_v25 = vsel %vm490_vm6, %v300_v21, %v554_v23 }
  0x9a   :  { %683 = vst.msk [vmem:[%s1384_s2 + $0x8] sm:$0xff] %vm681_vm1, %v618_v25  ;;  %v634_v26 = vsel %vm506_vm7, %v348_v22, %v570_v24  ;;  %v396_v27 = vpop.f32.mrf.mxu2  ;;  %v444_v28 = vpop.f32.mrf.mxu3 }
  0x9b   :  { %699 = vst.msk [vmem:[%s1384_s2 + $0x88] sm:$0xff] %vm681_vm1, %v634_v26  ;;  %vm522_vm8 = vcmp.gt.f32.partialorder %v396_v27, 0.0  ;;  %v586_v29 = vmul.f32 0.2, %v396_v27  ;;  %vm538_vm9 = vcmp.gt.f32.partialorder %v444_v28, 0.0 }
  0x9c   :  { %v602_v30 = vmul.f32 0.2, %v444_v28 }
  0x9d   :  { %v650_v31 = vsel %vm522_vm8, %v396_v27, %v586_v29 }
  0x9e   :  { %715 = vst.msk [vmem:[%s1384_s2 + $0x108] sm:$0xff] %vm681_vm1, %v650_v31  ;;  %v666_v32 = vsel %vm538_vm9, %v444_v28, %v602_v30  ;;  %v303_v33 = vpop.f32.mrf.mxu0  ;;  %v351_v34 = vpop.f32.mrf.mxu1 }
  0x9f   :  { %731 = vst.msk [vmem:[%s1384_s2 + $0x188] sm:$0xff] %vm681_vm1, %v666_v32  ;;  %vm491_vm10 = vcmp.gt.f32.partialorder %v303_v33, 0.0  ;;  %v555_v35 = vmul.f32 0.2, %v303_v33  ;;  %vm507_vm11 = vcmp.gt.f32.partialorder %v351_v34, 0.0 }
  0xa0   :  { %v571_v36 = vmul.f32 0.2, %v351_v34 }
  0xa1   :  { %v619_v37 = vsel %vm491_vm10, %v303_v33, %v555_v35 }
  0xa2   :  { %684 = vst.msk [vmem:[%s1384_s2 + $0x10] sm:$0xff] %vm681_vm1, %v619_v37  ;;  %v635_v38 = vsel %vm507_vm11, %v351_v34, %v571_v36  ;;  %v399_v39 = vpop.f32.mrf.mxu2  ;;  %v447_v40 = vpop.f32.mrf.mxu3 }
  0xa3   :  { %700 = vst.msk [vmem:[%s1384_s2 + $0x90] sm:$0xff] %vm681_vm1, %v635_v38  ;;  %vm523_vm12 = vcmp.gt.f32.partialorder %v399_v39, 0.0  ;;  %v587_v41 = vmul.f32 0.2, %v399_v39  ;;  %vm539_vm13 = vcmp.gt.f32.partialorder %v447_v40, 0.0 }
  0xa4   :  { %v603_v42 = vmul.f32 0.2, %v447_v40 }
  0xa5   :  { %v651_v43 = vsel %vm523_vm12, %v399_v39, %v587_v41 }
  0xa6   :  { %716 = vst.msk [vmem:[%s1384_s2 + $0x110] sm:$0xff] %vm681_vm1, %v651_v43  ;;  %v667_v44 = vsel %vm539_vm13, %v447_v40, %v603_v42  ;;  %v306_v45 = vpop.f32.mrf.mxu0  ;;  %v354_v46 = vpop.f32.mrf.mxu1 }
  0xa7   :  { %732 = vst.msk [vmem:[%s1384_s2 + $0x190] sm:$0xff] %vm681_vm1, %v667_v44  ;;  %vm492_vm14 = vcmp.gt.f32.partialorder %v306_v45, 0.0  ;;  %v556_v47 = vmul.f32 0.2, %v306_v45  ;;  %vm508_vm15 = vcmp.gt.f32.partialorder %v354_v46, 0.0 }
  0xa8   :  { %v572_v48 = vmul.f32 0.2, %v354_v46 }
  0xa9   :  { %v620_v49 = vsel %vm492_vm14, %v306_v45, %v556_v47 }
  0xaa   :  { %685 = vst.msk [vmem:[%s1384_s2 + $0x18] sm:$0xff] %vm681_vm1, %v620_v49  ;;  %v636_v50 = vsel %vm508_vm15, %v354_v46, %v572_v48  ;;  %v402_v51 = vpop.f32.mrf.mxu2  ;;  %v450_v52 = vpop.f32.mrf.mxu3 }
  0xab   :  { %701 = vst.msk [vmem:[%s1384_s2 + $0x98] sm:$0xff] %vm681_vm1, %v636_v50  ;;  %vm524_vm0 = vcmp.gt.f32.partialorder %v402_v51, 0.0  ;;  %v588_v53 = vmul.f32 0.2, %v402_v51  ;;  %vm540_vm2 = vcmp.gt.f32.partialorder %v450_v52, 0.0 }
  0xac   :  { %v604_v54 = vmul.f32 0.2, %v450_v52 }
  0xad   :  { %v652_v55 = vsel %vm524_vm0, %v402_v51, %v588_v53 }
  0xae   :  { %717 = vst.msk [vmem:[%s1384_s2 + $0x118] sm:$0xff] %vm681_vm1, %v652_v55  ;;  %v668_v56 = vsel %vm540_vm2, %v450_v52, %v604_v54  ;;  %v309_v57 = vpop.f32.mrf.mxu0  ;;  %v357_v58 = vpop.f32.mrf.mxu1 }
  0xaf   :  { %733 = vst.msk [vmem:[%s1384_s2 + $0x198] sm:$0xff] %vm681_vm1, %v668_v56  ;;  %vm493_vm3 = vcmp.gt.f32.partialorder %v309_v57, 0.0  ;;  %v557_v59 = vmul.f32 0.2, %v309_v57  ;;  %vm509_vm4 = vcmp.gt.f32.partialorder %v357_v58, 0.0 }
  0xb0   :  { %v573_v60 = vmul.f32 0.2, %v357_v58 }
  0xb1   :  { %v621_v61 = vsel %vm493_vm3, %v309_v57, %v557_v59 }
  0xb2   :  { %686 = vst.msk [vmem:[%s1384_s2 + $0x20] sm:$0xff] %vm681_vm1, %v621_v61  ;;  %v637_v62 = vsel %vm509_vm4, %v357_v58, %v573_v60  ;;  %v405_v63 = vpop.f32.mrf.mxu2  ;;  %v453_v0 = vpop.f32.mrf.mxu3 }
  0xb3   :  { %702 = vst.msk [vmem:[%s1384_s2 + $0xa0] sm:$0xff] %vm681_vm1, %v637_v62  ;;  %vm525_vm5 = vcmp.gt.f32.partialorder %v405_v63, 0.0  ;;  %v589_v1 = vmul.f32 0.2, %v405_v63  ;;  %vm541_vm6 = vcmp.gt.f32.partialorder %v453_v0, 0.0 }
  0xb4   :  { %v605_v2 = vmul.f32 0.2, %v453_v0 }
  0xb5   :  { %v653_v3 = vsel %vm525_vm5, %v405_v63, %v589_v1 }
  0xb6   :  { %718 = vst.msk [vmem:[%s1384_s2 + $0x120] sm:$0xff] %vm681_vm1, %v653_v3  ;;  %v669_v4 = vsel %vm541_vm6, %v453_v0, %v605_v2  ;;  %v312_v5 = vpop.f32.mrf.mxu0  ;;  %v360_v6 = vpop.f32.mrf.mxu1 }
  0xb7   :  { %734 = vst.msk [vmem:[%s1384_s2 + $0x1a0] sm:$0xff] %vm681_vm1, %v669_v4  ;;  %vm494_vm7 = vcmp.gt.f32.partialorder %v312_v5, 0.0  ;;  %v558_v7 = vmul.f32 0.2, %v312_v5  ;;  %vm510_vm8 = vcmp.gt.f32.partialorder %v360_v6, 0.0 }
  0xb8   :  { %v574_v8 = vmul.f32 0.2, %v360_v6 }
  0xb9   :  { %v622_v9 = vsel %vm494_vm7, %v312_v5, %v558_v7 }
  0xba   :  { %687 = vst.msk [vmem:[%s1384_s2 + $0x28] sm:$0xff] %vm681_vm1, %v622_v9  ;;  %v638_v10 = vsel %vm510_vm8, %v360_v6, %v574_v8  ;;  %v408_v11 = vpop.f32.mrf.mxu2  ;;  %v456_v12 = vpop.f32.mrf.mxu3 }
  0xbb   :  { %703 = vst.msk [vmem:[%s1384_s2 + $0xa8] sm:$0xff] %vm681_vm1, %v638_v10  ;;  %vm526_vm9 = vcmp.gt.f32.partialorder %v408_v11, 0.0  ;;  %v590_v13 = vmul.f32 0.2, %v408_v11  ;;  %vm542_vm10 = vcmp.gt.f32.partialorder %v456_v12, 0.0 }
  0xbc   :  { %v606_v14 = vmul.f32 0.2, %v456_v12 }
  0xbd   :  { %v654_v15 = vsel %vm526_vm9, %v408_v11, %v590_v13 }
  0xbe   :  { %719 = vst.msk [vmem:[%s1384_s2 + $0x128] sm:$0xff] %vm681_vm1, %v654_v15  ;;  %v670_v16 = vsel %vm542_vm10, %v456_v12, %v606_v14  ;;  %v315_v17 = vpop.f32.mrf.mxu0  ;;  %v363_v18 = vpop.f32.mrf.mxu1 }
  0xbf   :  { %735 = vst.msk [vmem:[%s1384_s2 + $0x1a8] sm:$0xff] %vm681_vm1, %v670_v16  ;;  %vm495_vm11 = vcmp.gt.f32.partialorder %v315_v17, 0.0  ;;  %v559_v19 = vmul.f32 0.2, %v315_v17  ;;  %vm511_vm12 = vcmp.gt.f32.partialorder %v363_v18, 0.0 }
  0xc0   :  { %v575_v20 = vmul.f32 0.2, %v363_v18 }
  0xc1   :  { %v623_v21 = vsel %vm495_vm11, %v315_v17, %v559_v19 }
  0xc2   :  { %688 = vst.msk [vmem:[%s1384_s2 + $0x30] sm:$0xff] %vm681_vm1, %v623_v21  ;;  %v639_v22 = vsel %vm511_vm12, %v363_v18, %v575_v20  ;;  %v411_v23 = vpop.f32.mrf.mxu2  ;;  %v459_v24 = vpop.f32.mrf.mxu3 }
  0xc3   :  { %704 = vst.msk [vmem:[%s1384_s2 + $0xb0] sm:$0xff] %vm681_vm1, %v639_v22  ;;  %vm527_vm13 = vcmp.gt.f32.partialorder %v411_v23, 0.0  ;;  %v591_v25 = vmul.f32 0.2, %v411_v23  ;;  %vm543_vm14 = vcmp.gt.f32.partialorder %v459_v24, 0.0 }
  0xc4   :  { %v607_v26 = vmul.f32 0.2, %v459_v24 }
  0xc5   :  { %v655_v27 = vsel %vm527_vm13, %v411_v23, %v591_v25 }
  0xc6   :  { %720 = vst.msk [vmem:[%s1384_s2 + $0x130] sm:$0xff] %vm681_vm1, %v655_v27  ;;  %v671_v28 = vsel %vm543_vm14, %v459_v24, %v607_v26  ;;  %v318_v29 = vpop.f32.mrf.mxu0  ;;  %v366_v30 = vpop.f32.mrf.mxu1 }
  0xc7   :  { %736 = vst.msk [vmem:[%s1384_s2 + $0x1b0] sm:$0xff] %vm681_vm1, %v671_v28  ;;  %vm496_vm15 = vcmp.gt.f32.partialorder %v318_v29, 0.0  ;;  %v560_v31 = vmul.f32 0.2, %v318_v29  ;;  %vm512_vm0 = vcmp.gt.f32.partialorder %v366_v30, 0.0 }
  0xc8   :  { %v576_v32 = vmul.f32 0.2, %v366_v30 }
  0xc9   :  { %v624_v33 = vsel %vm496_vm15, %v318_v29, %v560_v31 }
  0xca   :  { %689 = vst.msk [vmem:[%s1384_s2 + $0x38] sm:$0xff] %vm681_vm1, %v624_v33  ;;  %v640_v34 = vsel %vm512_vm0, %v366_v30, %v576_v32  ;;  %v414_v35 = vpop.f32.mrf.mxu2  ;;  %v462_v36 = vpop.f32.mrf.mxu3 }
  0xcb   :  { %705 = vst.msk [vmem:[%s1384_s2 + $0xb8] sm:$0xff] %vm681_vm1, %v640_v34  ;;  %vm528_vm2 = vcmp.gt.f32.partialorder %v414_v35, 0.0  ;;  %v592_v37 = vmul.f32 0.2, %v414_v35  ;;  %vm544_vm3 = vcmp.gt.f32.partialorder %v462_v36, 0.0 }
  0xcc   :  { %v608_v38 = vmul.f32 0.2, %v462_v36 }
  0xcd   :  { %v656_v39 = vsel %vm528_vm2, %v414_v35, %v592_v37 }
  0xce   :  { %721 = vst.msk [vmem:[%s1384_s2 + $0x138] sm:$0xff] %vm681_vm1, %v656_v39  ;;  %v672_v40 = vsel %vm544_vm3, %v462_v36, %v608_v38  ;;  %v321_v41 = vpop.f32.mrf.mxu0  ;;  %v369_v42 = vpop.f32.mrf.mxu1 }
  0xcf   :  { %737 = vst.msk [vmem:[%s1384_s2 + $0x1b8] sm:$0xff] %vm681_vm1, %v672_v40  ;;  %vm497_vm4 = vcmp.gt.f32.partialorder %v321_v41, 0.0  ;;  %v561_v43 = vmul.f32 0.2, %v321_v41  ;;  %vm513_vm5 = vcmp.gt.f32.partialorder %v369_v42, 0.0 }
  0xd0   :  { %v577_v44 = vmul.f32 0.2, %v369_v42 }
  0xd1   :  { %v625_v45 = vsel %vm497_vm4, %v321_v41, %v561_v43 }
  0xd2   :  { %690 = vst.msk [vmem:[%s1384_s2 + $0x40] sm:$0xff] %vm681_vm1, %v625_v45  ;;  %v641_v46 = vsel %vm513_vm5, %v369_v42, %v577_v44  ;;  %v417_v47 = vpop.f32.mrf.mxu2  ;;  %v465_v48 = vpop.f32.mrf.mxu3 }
  0xd3   :  { %706 = vst.msk [vmem:[%s1384_s2 + $0xc0] sm:$0xff] %vm681_vm1, %v641_v46  ;;  %vm529_vm6 = vcmp.gt.f32.partialorder %v417_v47, 0.0  ;;  %v593_v49 = vmul.f32 0.2, %v417_v47  ;;  %vm545_vm7 = vcmp.gt.f32.partialorder %v465_v48, 0.0 }
  0xd4   :  { %v609_v50 = vmul.f32 0.2, %v465_v48 }
  0xd5   :  { %v657_v51 = vsel %vm529_vm6, %v417_v47, %v593_v49 }
  0xd6   :  { %722 = vst.msk [vmem:[%s1384_s2 + $0x140] sm:$0xff] %vm681_vm1, %v657_v51  ;;  %v673_v52 = vsel %vm545_vm7, %v465_v48, %v609_v50  ;;  %v324_v53 = vpop.f32.mrf.mxu0  ;;  %v372_v54 = vpop.f32.mrf.mxu1 }
  0xd7   :  { %738 = vst.msk [vmem:[%s1384_s2 + $0x1c0] sm:$0xff] %vm681_vm1, %v673_v52  ;;  %vm498_vm8 = vcmp.gt.f32.partialorder %v324_v53, 0.0  ;;  %v562_v55 = vmul.f32 0.2, %v324_v53  ;;  %vm514_vm9 = vcmp.gt.f32.partialorder %v372_v54, 0.0 }
  0xd8   :  { %v578_v56 = vmul.f32 0.2, %v372_v54 }
  0xd9   :  { %v626_v57 = vsel %vm498_vm8, %v324_v53, %v562_v55 }
  0xda   :  { %691 = vst.msk [vmem:[%s1384_s2 + $0x48] sm:$0xff] %vm681_vm1, %v626_v57  ;;  %v642_v58 = vsel %vm514_vm9, %v372_v54, %v578_v56  ;;  %v420_v59 = vpop.f32.mrf.mxu2  ;;  %v468_v60 = vpop.f32.mrf.mxu3 }
  0xdb   :  { %707 = vst.msk [vmem:[%s1384_s2 + $0xc8] sm:$0xff] %vm681_vm1, %v642_v58  ;;  %vm530_vm10 = vcmp.gt.f32.partialorder %v420_v59, 0.0  ;;  %v594_v61 = vmul.f32 0.2, %v420_v59  ;;  %vm546_vm11 = vcmp.gt.f32.partialorder %v468_v60, 0.0 }
  0xdc   :  { %v610_v62 = vmul.f32 0.2, %v468_v60 }
  0xdd   :  { %v658_v63 = vsel %vm530_vm10, %v420_v59, %v594_v61 }
  0xde   :  { %723 = vst.msk [vmem:[%s1384_s2 + $0x148] sm:$0xff] %vm681_vm1, %v658_v63  ;;  %v674_v0 = vsel %vm546_vm11, %v468_v60, %v610_v62  ;;  %v327_v1 = vpop.f32.mrf.mxu0  ;;  %v375_v2 = vpop.f32.mrf.mxu1 }
  0xdf   :  { %739 = vst.msk [vmem:[%s1384_s2 + $0x1c8] sm:$0xff] %vm681_vm1, %v674_v0  ;;  %vm499_vm12 = vcmp.gt.f32.partialorder %v327_v1, 0.0  ;;  %v563_v3 = vmul.f32 0.2, %v327_v1  ;;  %vm515_vm13 = vcmp.gt.f32.partialorder %v375_v2, 0.0 }
  0xe0   :  { %v579_v4 = vmul.f32 0.2, %v375_v2 }
  0xe1   :  { %v627_v5 = vsel %vm499_vm12, %v327_v1, %v563_v3 }
  0xe2   :  { %692 = vst.msk [vmem:[%s1384_s2 + $0x50] sm:$0xff] %vm681_vm1, %v627_v5  ;;  %v643_v6 = vsel %vm515_vm13, %v375_v2, %v579_v4  ;;  %v423_v7 = vpop.f32.mrf.mxu2  ;;  %v471_v8 = vpop.f32.mrf.mxu3 }
  0xe3   :  { %708 = vst.msk [vmem:[%s1384_s2 + $0xd0] sm:$0xff] %vm681_vm1, %v643_v6  ;;  %vm531_vm14 = vcmp.gt.f32.partialorder %v423_v7, 0.0  ;;  %v595_v9 = vmul.f32 0.2, %v423_v7  ;;  %vm547_vm15 = vcmp.gt.f32.partialorder %v471_v8, 0.0 }
  0xe4   :  { %v611_v10 = vmul.f32 0.2, %v471_v8 }
  0xe5   :  { %v659_v11 = vsel %vm531_vm14, %v423_v7, %v595_v9 }
  0xe6   :  { %724 = vst.msk [vmem:[%s1384_s2 + $0x150] sm:$0xff] %vm681_vm1, %v659_v11  ;;  %v675_v12 = vsel %vm547_vm15, %v471_v8, %v611_v10  ;;  %v330_v13 = vpop.f32.mrf.mxu0  ;;  %v378_v14 = vpop.f32.mrf.mxu1 }
  0xe7   :  { %740 = vst.msk [vmem:[%s1384_s2 + $0x1d0] sm:$0xff] %vm681_vm1, %v675_v12  ;;  %vm500_vm0 = vcmp.gt.f32.partialorder %v330_v13, 0.0  ;;  %v564_v15 = vmul.f32 0.2, %v330_v13  ;;  %vm516_vm2 = vcmp.gt.f32.partialorder %v378_v14, 0.0 }
  0xe8   :  { %v580_v16 = vmul.f32 0.2, %v378_v14 }
  0xe9   :  { %v628_v17 = vsel %vm500_vm0, %v330_v13, %v564_v15 }
  0xea   :  { %693 = vst.msk [vmem:[%s1384_s2 + $0x58] sm:$0xff] %vm681_vm1, %v628_v17  ;;  %v644_v18 = vsel %vm516_vm2, %v378_v14, %v580_v16  ;;  %v426_v19 = vpop.f32.mrf.mxu2  ;;  %v474_v20 = vpop.f32.mrf.mxu3 }
  0xeb   :  { %709 = vst.msk [vmem:[%s1384_s2 + $0xd8] sm:$0xff] %vm681_vm1, %v644_v18  ;;  %vm532_vm3 = vcmp.gt.f32.partialorder %v426_v19, 0.0  ;;  %v596_v21 = vmul.f32 0.2, %v426_v19  ;;  %vm548_vm4 = vcmp.gt.f32.partialorder %v474_v20, 0.0 }
  0xec   :  { %v612_v22 = vmul.f32 0.2, %v474_v20 }
  0xed   :  { %v660_v23 = vsel %vm532_vm3, %v426_v19, %v596_v21 }
  0xee   :  { %725 = vst.msk [vmem:[%s1384_s2 + $0x158] sm:$0xff] %vm681_vm1, %v660_v23  ;;  %v676_v24 = vsel %vm548_vm4, %v474_v20, %v612_v22  ;;  %v333_v25 = vpop.f32.mrf.mxu0  ;;  %v381_v26 = vpop.f32.mrf.mxu1 }
  0xef   :  { %741 = vst.msk [vmem:[%s1384_s2 + $0x1d8] sm:$0xff] %vm681_vm1, %v676_v24  ;;  %vm501_vm5 = vcmp.gt.f32.partialorder %v333_v25, 0.0  ;;  %v565_v27 = vmul.f32 0.2, %v333_v25  ;;  %vm517_vm6 = vcmp.gt.f32.partialorder %v381_v26, 0.0 }
  0xf0   :  { %v581_v28 = vmul.f32 0.2, %v381_v26 }
  0xf1   :  { %v629_v29 = vsel %vm501_vm5, %v333_v25, %v565_v27 }
  0xf2   :  { %694 = vst.msk [vmem:[%s1384_s2 + $0x60] sm:$0xff] %vm681_vm1, %v629_v29  ;;  %v645_v30 = vsel %vm517_vm6, %v381_v26, %v581_v28  ;;  %v429_v31 = vpop.f32.mrf.mxu2  ;;  %v477_v32 = vpop.f32.mrf.mxu3 }
  0xf3   :  { %710 = vst.msk [vmem:[%s1384_s2 + $0xe0] sm:$0xff] %vm681_vm1, %v645_v30  ;;  %vm533_vm7 = vcmp.gt.f32.partialorder %v429_v31, 0.0  ;;  %v597_v33 = vmul.f32 0.2, %v429_v31  ;;  %vm549_vm8 = vcmp.gt.f32.partialorder %v477_v32, 0.0 }
  0xf4   :  { %v613_v34 = vmul.f32 0.2, %v477_v32 }
  0xf5   :  { %v661_v35 = vsel %vm533_vm7, %v429_v31, %v597_v33 }
  0xf6   :  { %726 = vst.msk [vmem:[%s1384_s2 + $0x160] sm:$0xff] %vm681_vm1, %v661_v35  ;;  %v677_v36 = vsel %vm549_vm8, %v477_v32, %v613_v34  ;;  %v336_v37 = vpop.f32.mrf.mxu0  ;;  %v384_v38 = vpop.f32.mrf.mxu1 }
  0xf7   :  { %742 = vst.msk [vmem:[%s1384_s2 + $0x1e0] sm:$0xff] %vm681_vm1, %v677_v36  ;;  %vm502_vm9 = vcmp.gt.f32.partialorder %v336_v37, 0.0  ;;  %v566_v39 = vmul.f32 0.2, %v336_v37  ;;  %vm518_vm10 = vcmp.gt.f32.partialorder %v384_v38, 0.0 }
  0xf8   :  { %v582_v40 = vmul.f32 0.2, %v384_v38 }
  0xf9   :  { %v630_v41 = vsel %vm502_vm9, %v336_v37, %v566_v39 }
  0xfa   :  { %695 = vst.msk [vmem:[%s1384_s2 + $0x68] sm:$0xff] %vm681_vm1, %v630_v41  ;;  %v646_v42 = vsel %vm518_vm10, %v384_v38, %v582_v40  ;;  %v432_v43 = vpop.f32.mrf.mxu2  ;;  %v480_v44 = vpop.f32.mrf.mxu3 }
  0xfb   :  { %711 = vst.msk [vmem:[%s1384_s2 + $0xe8] sm:$0xff] %vm681_vm1, %v646_v42  ;;  %vm534_vm11 = vcmp.gt.f32.partialorder %v432_v43, 0.0  ;;  %v598_v45 = vmul.f32 0.2, %v432_v43  ;;  %vm550_vm12 = vcmp.gt.f32.partialorder %v480_v44, 0.0 }
  0xfc   :  { %v614_v46 = vmul.f32 0.2, %v480_v44 }
  0xfd   :  { %v662_v47 = vsel %vm534_vm11, %v432_v43, %v598_v45 }
  0xfe   :  { %727 = vst.msk [vmem:[%s1384_s2 + $0x168] sm:$0xff] %vm681_vm1, %v662_v47  ;;  %v678_v48 = vsel %vm550_vm12, %v480_v44, %v614_v46  ;;  %v339_v49 = vpop.f32.mrf.mxu0  ;;  %v387_v50 = vpop.f32.mrf.mxu1 }
  0xff   :  { %743 = vst.msk [vmem:[%s1384_s2 + $0x1e8] sm:$0xff] %vm681_vm1, %v678_v48  ;;  %vm503_vm13 = vcmp.gt.f32.partialorder %v339_v49, 0.0  ;;  %v567_v51 = vmul.f32 0.2, %v339_v49  ;;  %vm519_vm14 = vcmp.gt.f32.partialorder %v387_v50, 0.0 }
 0x100   :  { %v583_v52 = vmul.f32 0.2, %v387_v50 }
 0x101   :  { %v631_v53 = vsel %vm503_vm13, %v339_v49, %v567_v51 }
 0x102   :  { %696 = vst.msk [vmem:[%s1384_s2 + $0x70] sm:$0xff] %vm681_vm1, %v631_v53  ;;  %v647_v54 = vsel %vm519_vm14, %v387_v50, %v583_v52  ;;  %v435_v55 = vpop.f32.mrf.mxu2  ;;  %v483_v56 = vpop.f32.mrf.mxu3 }
 0x103   :  { %712 = vst.msk [vmem:[%s1384_s2 + $0xf0] sm:$0xff] %vm681_vm1, %v647_v54  ;;  %vm535_vm15 = vcmp.gt.f32.partialorder %v435_v55, 0.0  ;;  %v599_v57 = vmul.f32 0.2, %v435_v55  ;;  %vm551_vm0 = vcmp.gt.f32.partialorder %v483_v56, 0.0 }
 0x104   :  { %v615_v58 = vmul.f32 0.2, %v483_v56 }
 0x105   :  { %v663_v59 = vsel %vm535_vm15, %v435_v55, %v599_v57 }
 0x106   :  { %728 = vst.msk [vmem:[%s1384_s2 + $0x170] sm:$0xff] %vm681_vm1, %v663_v59  ;;  %v679_v60 = vsel %vm551_vm0, %v483_v56, %v615_v58  ;;  %v342_v61 = vpop.f32.mrf.mxu0  ;;  %v390_v62 = vpop.f32.mrf.mxu1 }
 0x107   :  { %744 = vst.msk [vmem:[%s1384_s2 + $0x1f0] sm:$0xff] %vm681_vm1, %v679_v60  ;;  %vm504_vm2 = vcmp.gt.f32.partialorder %v342_v61, 0.0  ;;  %v568_v63 = vmul.f32 0.2, %v342_v61  ;;  %vm520_vm3 = vcmp.gt.f32.partialorder %v390_v62, 0.0 }
 0x108   :  { %v584_v0 = vmul.f32 0.2, %v390_v62 }
 0x109   :  { %v632_v1 = vsel %vm504_vm2, %v342_v61, %v568_v63 }
 0x10a   :  { %697 = vst.msk [vmem:[%s1384_s2 + $0x78] sm:$0xff] %vm681_vm1, %v632_v1  ;;  %v648_v2 = vsel %vm520_vm3, %v390_v62, %v584_v0  ;;  %v438_v3 = vpop.f32.mrf.mxu2  ;;  %v486_v4 = vpop.f32.mrf.mxu3 }
 0x10b   :  { %713 = vst.msk [vmem:[%s1384_s2 + $0xf8] sm:$0xff] %vm681_vm1, %v648_v2  ;;  %vm536_vm4 = vcmp.gt.f32.partialorder %v438_v3, 0.0  ;;  %v600_v5 = vmul.f32 0.2, %v438_v3  ;;  %vm552_vm5 = vcmp.gt.f32.partialorder %v486_v4, 0.0 }
 0x10c   :  { %v616_v6 = vmul.f32 0.2, %v486_v4 }
 0x10d   :  { %v664_v7 = vsel %vm536_vm4, %v438_v3, %v600_v5 }
 0x10e   :  { %729 = vst.msk [vmem:[%s1384_s2 + $0x178] sm:$0xff] %vm681_vm1, %v664_v7  ;;  %v680_v8 = vsel %vm552_vm5, %v486_v4, %v616_v6 }
 0x10f   :  { %745 = vst.msk [vmem:[%s1384_s2 + $0x1f8] sm:$0xff] %vm681_vm1, %v680_v8 }

// kernel: forward.5
= control target key start
LH: loop header
LB: loop body
LE: loop exit
PB: predicated region body
PF: predicated region fallthrough
CT: control target
= control target key end

     0   :  { %s2320_s1 = inlined_call_operand.vmem [shape: bf16[1024,128], index: 1, kind: input, shape index: {}]   ;;  %s2321_s0 = inlined_call_operand.vmem [shape: f32[128,1024], index: 0, kind: input, shape index: {}]   ;;  %s2322_s2 = inlined_call_operand.vmem [shape: f32[1,128], index: 2, kind: input, shape index: {}]   ;;  %s2323_s3 = inlined_call_operand.vmem [shape: f32[1,128], index: 3, kind: input, shape index: {}]   ;;  %s2324_s4 = inlined_call_operand.vmem [shape: f32[128,128], index: 4, kind: output, shape index: {}]  }
   0x1   :  { %v1401_v0 = vld [vmem:[%s2320_s1 + $0x38] sm:$0xff]   ;;  %v1400_v8 = vld [vmem:[%s2320_s1 + $0x30] sm:$0xff]   ;;  %v1399_v20 = vld [vmem:[%s2320_s1 + $0x28] sm:$0xff]  }
   0x2   :  { %v1417_v1 = vld [vmem:[%s2320_s1 + $0xb8] sm:$0xff]   ;;  %v1170_v3 = vunpack.c.h.bf16 %v1401_v0  ;;  %v1169_v5 = vunpack.c.l.bf16 %v1401_v0  ;;  %v1416_v9 = vld [vmem:[%s2320_s1 + $0xb0] sm:$0xff]   ;;  %v1166_v15 = vunpack.c.h.bf16 %v1400_v8  ;;  %v1415_v21 = vld [vmem:[%s2320_s1 + $0xa8] sm:$0xff]   ;;  %v1165_v22 = vunpack.c.l.bf16 %v1400_v8 }
   0x3   :  { %v1409_v2 = vld [vmem:[%s2320_s1 + $0x78] sm:$0xff]   ;;  %v1234_v4 = vunpack.c.h.bf16 %v1417_v1  ;;  %v1233_v10 = vunpack.c.l.bf16 %v1417_v1  ;;  %v1408_v13 = vld [vmem:[%s2320_s1 + $0x70] sm:$0xff]   ;;  %v1230_v16 = vunpack.c.h.bf16 %v1416_v9  ;;  %v1229_v23 = vunpack.c.l.bf16 %v1416_v9  ;;  %v1407_v24 = vld [vmem:[%s2320_s1 + $0x68] sm:$0xff]  }
   0x4   :  { %v1202_v6 = vunpack.c.h.bf16 %v1409_v2  ;;  %v1425_v7 = vld [vmem:[%s2320_s1 + $0xf8] sm:$0xff]   ;;  %v1201_v12 = vunpack.c.l.bf16 %v1409_v2  ;;  %v1424_v14 = vld [vmem:[%s2320_s1 + $0xf0] sm:$0xff]   ;;  %401 = vmatpush.msra.mxu0 %v1170_v3  ;;  %v1198_v18 = vunpack.c.h.bf16 %v1408_v13  ;;  %v1423_v25 = vld [vmem:[%s2320_s1 + $0xe8] sm:$0xff]   ;;  %v1197_v26 = vunpack.c.l.bf16 %v1408_v13 }
   0x5   :  { %v1266_v11 = vunpack.c.h.bf16 %v1425_v7  ;;  %531 = vmatpush.msra.mxu2 %v1234_v4  ;;  %v1265_v17 = vunpack.c.l.bf16 %v1425_v7  ;;  %v1262_v19 = vunpack.c.h.bf16 %v1424_v14  ;;  %v1261_v27 = vunpack.c.l.bf16 %v1424_v14  ;;  %v1398_v32 = vld [vmem:[%s2320_s1 + $0x20] sm:$0xff]   ;;  %v1397_v44 = vld [vmem:[%s2320_s1 + $0x18] sm:$0xff]   ;;  %v1396_v56 = vld [vmem:[%s2320_s1 + $0x10] sm:$0xff]  }
   0x6   :  { %466 = vmatpush.msra.mxu1 %v1202_v6  ;;  %402 = vmatpush.msra.mxu0 %v1169_v5  ;;  %v1162_v28 = vunpack.c.h.bf16 %v1399_v20  ;;  %v1226_v29 = vunpack.c.h.bf16 %v1415_v21  ;;  %v1194_v30 = vunpack.c.h.bf16 %v1407_v24  ;;  %v1258_v31 = vunpack.c.h.bf16 %v1423_v25  ;;  %v1414_v33 = vld [vmem:[%s2320_s1 + $0xa0] sm:$0xff]   ;;  %v1413_v45 = vld [vmem:[%s2320_s1 + $0x98] sm:$0xff]   ;;  %v1412_v57 = vld [vmem:[%s2320_s1 + $0x90] sm:$0xff]  }
   0x7   :  { %596 = vmatpush.msra.mxu3 %v1266_v11  ;;  %532 = vmatpush.msra.mxu2 %v1233_v10  ;;  %v1161_v34 = vunpack.c.l.bf16 %v1399_v20  ;;  %v1225_v35 = vunpack.c.l.bf16 %v1415_v21  ;;  %v1406_v36 = vld [vmem:[%s2320_s1 + $0x60] sm:$0xff]   ;;  %v1193_v38 = vunpack.c.l.bf16 %v1407_v24  ;;  %v1257_v39 = vunpack.c.l.bf16 %v1423_v25  ;;  %v1405_v48 = vld [vmem:[%s2320_s1 + $0x58] sm:$0xff]   ;;  %v1404_v60 = vld [vmem:[%s2320_s1 + $0x50] sm:$0xff]  }
   0x8   :  { %467 = vmatpush.msra.mxu1 %v1201_v12  ;;  %403 = vmatpush.msra.mxu0 %v1166_v15  ;;  %v1422_v37 = vld [vmem:[%s2320_s1 + $0xe0] sm:$0xff]   ;;  %v1158_v40 = vunpack.c.h.bf16 %v1398_v32  ;;  %v1222_v41 = vunpack.c.h.bf16 %v1414_v33  ;;  %v1190_v42 = vunpack.c.h.bf16 %v1406_v36  ;;  %v1157_v46 = vunpack.c.l.bf16 %v1398_v32  ;;  %v1421_v49 = vld [vmem:[%s2320_s1 + $0xd8] sm:$0xff]   ;;  %v1420_v61 = vld [vmem:[%s2320_s1 + $0xd0] sm:$0xff]  }
   0x9   :  { %597 = vmatpush.msra.mxu3 %v1265_v17  ;;  %533 = vmatpush.msra.mxu2 %v1230_v16  ;;  %v1254_v43 = vunpack.c.h.bf16 %v1422_v37  ;;  %v1221_v47 = vunpack.c.l.bf16 %v1414_v33  ;;  %v1189_v50 = vunpack.c.l.bf16 %v1406_v36  ;;  %v1253_v51 = vunpack.c.l.bf16 %v1422_v37  ;;  %v1395_v4 = vld [vmem:[%s2320_s1 + $0x8] sm:$0xff]   ;;  %v1140_v16 = vld [vmem:[%s2320_s1] sm:$0xff]   ;;  %v1433_v32 = vld [vmem:[%s2320_s1 + $0x138] sm:$0xff]  }
   0xa   :  { %468 = vmatpush.msra.mxu1 %v1198_v18  ;;  %404 = vmatpush.msra.mxu0 %v1165_v22  ;;  %v1154_v52 = vunpack.c.h.bf16 %v1397_v44  ;;  %v1218_v53 = vunpack.c.h.bf16 %v1413_v45  ;;  %v1186_v54 = vunpack.c.h.bf16 %v1405_v48  ;;  %v1250_v55 = vunpack.c.h.bf16 %v1421_v49  ;;  %v1411_v5 = vld [vmem:[%s2320_s1 + $0x88] sm:$0xff]   ;;  %v1410_v17 = vld [vmem:[%s2320_s1 + $0x80] sm:$0xff]   ;;  %v19_v33 = vld [vmem:[%s2321_s0 + $0x10] sm:$0xff] }
   0xb   :  { %598 = vmatpush.msra.mxu3 %v1262_v19  ;;  %534 = vmatpush.msra.mxu2 %v1229_v23  ;;  %v1153_v58 = vunpack.c.l.bf16 %v1397_v44  ;;  %v1217_v59 = vunpack.c.l.bf16 %v1413_v45  ;;  %v1185_v62 = vunpack.c.l.bf16 %v1405_v48  ;;  %v1249_v63 = vunpack.c.l.bf16 %v1421_v49  ;;  %v1403_v8 = vld [vmem:[%s2320_s1 + $0x48] sm:$0xff]   ;;  %v1402_v20 = vld [vmem:[%s2320_s1 + $0x40] sm:$0xff]   ;;  %v1457_v36 = vld [vmem:[%s2320_s1 + $0x1f8] sm:$0xff]  }
   0xc   :  { %469 = vmatpush.msra.mxu1 %v1197_v26  ;;  %405 = vmatpush.msra.mxu0 %v1162_v28  ;;  %v1150_v0 = vunpack.c.h.bf16 %v1396_v56  ;;  %v1214_v1 = vunpack.c.h.bf16 %v1412_v57  ;;  %v1182_v2 = vunpack.c.h.bf16 %v1404_v60  ;;  %v1246_v3 = vunpack.c.h.bf16 %v1420_v61  ;;  %v1419_v9 = vld [vmem:[%s2320_s1 + $0xc8] sm:$0xff]   ;;  %v1418_v21 = vld [vmem:[%s2320_s1 + $0xc0] sm:$0xff]   ;;  %v1449_v28 = vld [vmem:[%s2320_s1 + $0x1b8] sm:$0xff]  }
   0xd   :  { %599 = vmatpush.msra.mxu3 %v1261_v27  ;;  %535 = vmatpush.msra.mxu2 %v1226_v29  ;;  %v1149_v6 = vunpack.c.l.bf16 %v1396_v56  ;;  %v1213_v7 = vunpack.c.l.bf16 %v1412_v57  ;;  %v1181_v10 = vunpack.c.l.bf16 %v1404_v60  ;;  %v1245_v11 = vunpack.c.l.bf16 %v1420_v61  ;;  %v1441_v37 = vld [vmem:[%s2320_s1 + $0x178] sm:$0xff]   ;;  %v1448_v44 = vld [vmem:[%s2320_s1 + $0x1b0] sm:$0xff]   ;;  %v1431_v60 = vld [vmem:[%s2320_s1 + $0x128] sm:$0xff]  }
   0xe   :  { %470 = vmatpush.msra.mxu1 %v1194_v30  ;;  %406 = vmatpush.msra.mxu0 %v1161_v34  ;;  %v1146_v12 = vunpack.c.h.bf16 %v1395_v4  ;;  %v1210_v13 = vunpack.c.h.bf16 %v1411_v5  ;;  %v1178_v14 = vunpack.c.h.bf16 %v1403_v8  ;;  %v1242_v15 = vunpack.c.h.bf16 %v1419_v9  ;;  %v1432_v45 = vld [vmem:[%s2320_s1 + $0x130] sm:$0xff]   ;;  %v26_v61 = vld [vmem:[%s2321_s0 + $0x48] sm:$0xff] }
   0xf   :  { %600 = vmatpush.msra.mxu3 %v1258_v31  ;;  %536 = vmatpush.msra.mxu2 %v1225_v35  ;;  %v1145_v18 = vunpack.c.l.bf16 %v1395_v4  ;;  %v1209_v19 = vunpack.c.l.bf16 %v1411_v5  ;;  %v1177_v22 = vunpack.c.l.bf16 %v1403_v8  ;;  %v1241_v23 = vunpack.c.l.bf16 %v1419_v9  ;;  %v17_v31 = vld [vmem:[%s2321_s0] sm:$0xff] }
  0x10   :  { %471 = vmatpush.msra.mxu1 %v1193_v38  ;;  %407 = vmatpush.msra.mxu0 %v1158_v40  ;;  %v1142_v24 = vunpack.c.h.bf16 %v1140_v16  ;;  %v1206_v25 = vunpack.c.h.bf16 %v1410_v17  ;;  %v1174_v26 = vunpack.c.h.bf16 %v1402_v20  ;;  %v1238_v27 = vunpack.c.h.bf16 %v1418_v21 }
  0x11   :  { %601 = vmatpush.msra.mxu3 %v1257_v39  ;;  %537 = vmatpush.msra.mxu2 %v1222_v41  ;;  %v1141_v29 = vunpack.c.l.bf16 %v1140_v16  ;;  %v1205_v30 = vunpack.c.l.bf16 %v1410_v17  ;;  %v1362_v34 = vunpack.c.h.bf16 %v1449_v28  ;;  %v1173_v35 = vunpack.c.l.bf16 %v1402_v20  ;;  %v18_v39 = vld [vmem:[%s2321_s0 + $0x8] sm:$0xff]  ;;  %v20_v41 = vld [vmem:[%s2321_s0 + $0x18] sm:$0xff]  ;;  %v1446_v16 = vld [vmem:[%s2320_s1 + $0x1a0] sm:$0xff]  }
  0x12   :  { %472 = vmatpush.msra.mxu1 %v1190_v42  ;;  %408 = vmatpush.msra.mxu0 %v1157_v46  ;;  %v1237_v38 = vunpack.c.l.bf16 %v1418_v21  ;;  %v1298_v40 = vunpack.c.h.bf16 %v1433_v32  ;;  %v1394_v42 = vunpack.c.h.bf16 %v1457_v36  ;;  %v1361_v46 = vunpack.c.l.bf16 %v1449_v28  ;;  %v1438_v20 = vld [vmem:[%s2320_s1 + $0x160] sm:$0xff]  }
  0x13   :  { %602 = vmatpush.msra.mxu3 %v1254_v43  ;;  %538 = vmatpush.msra.mxu2 %v1221_v47  ;;  %v1330_v43 = vunpack.c.h.bf16 %v1441_v37  ;;  %v1297_v47 = vunpack.c.l.bf16 %v1433_v32  ;;  %v1393_v48 = vunpack.c.l.bf16 %v1457_v36  ;;  %v1329_v49 = vunpack.c.l.bf16 %v1441_v37  ;;  %v49_v32 = vld [vmem:[%s2321_s0 + $0x100] sm:$0xff]  ;;  %v1445_v36 = vld [vmem:[%s2320_s1 + $0x198] sm:$0xff]  }
  0x14   :  { %473 = vmatpush.msra.mxu1 %v1189_v50  ;;  %409 = vmatpush.msra.mxu0 %v1154_v52  ;;  %v1456_v50 = vld [vmem:[%s2320_s1 + $0x1f0] sm:$0xff]   ;;  %v1358_v52 = vunpack.c.h.bf16 %v1448_v44  ;;  %v1290_v5 = vunpack.c.h.bf16 %v1431_v60  ;;  %v1289_v9 = vunpack.c.l.bf16 %v1431_v60  ;;  %v1350_v17 = vunpack.c.h.bf16 %v1446_v16 }
  0x15   :  { %603 = vmatpush.msra.mxu3 %v1253_v51  ;;  %539 = vmatpush.msra.mxu2 %v1218_v53  ;;  %v1440_v51 = vld [vmem:[%s2320_s1 + $0x170] sm:$0xff]   ;;  %v1294_v53 = vunpack.c.h.bf16 %v1432_v45  ;;  %v1390_v56 = vunpack.c.h.bf16 %v1456_v50  ;;  %v1349_v28 = vunpack.c.l.bf16 %v1446_v16  ;;  %v1346_v37 = vunpack.c.h.bf16 %v1445_v36  ;;  %v1435_v16 = vld [vmem:[%s2320_s1 + $0x148] sm:$0xff]  }
  0x16   :  { %474 = vmatpush.msra.mxu1 %v1186_v54  ;;  %410 = vmatpush.msra.mxu0 %v1153_v58  ;;  %v25_v54 = vld [vmem:[%s2321_s0 + $0x40] sm:$0xff]  ;;  %v1326_v57 = vunpack.c.h.bf16 %v1440_v51  ;;  %v1357_v58 = vunpack.c.l.bf16 %v1448_v44  ;;  %v1436_v60 = vld [vmem:[%s2320_s1 + $0x150] sm:$0xff]  }
  0x17   :  { %604 = vmatpush.msra.mxu3 %v1250_v55  ;;  %540 = vmatpush.msra.mxu2 %v1217_v59  ;;  %v27_v55 = vld [vmem:[%s2321_s0 + $0x50] sm:$0xff]  ;;  %v1447_v59 = vld [vmem:[%s2320_s1 + $0x1a8] sm:$0xff]   ;;  %v57_v44 = vld [vmem:[%s2321_s0 + $0x140] sm:$0xff] }
  0x18   :  { %475 = vmatpush.msra.mxu1 %v1185_v62  ;;  %411 = vmatpush.msra.mxu0 %v1150_v0  ;;  %v1293_v62 = vunpack.c.l.bf16 %v1432_v45  ;;  %v1439_v0 = vld [vmem:[%s2320_s1 + $0x168] sm:$0xff]   ;;  %v1354_v4 = vunpack.c.h.bf16 %v1447_v59  ;;  %v1353_v8 = vunpack.c.l.bf16 %v1447_v59  ;;  %v59_v45 = vld [vmem:[%s2321_s0 + $0x150] sm:$0xff] }
  0x19   :  { %605 = vmatpush.msra.mxu3 %v1249_v63  ;;  %541 = vmatpush.msra.mxu2 %v1214_v1  ;;  %v1455_v63 = vld [vmem:[%s2320_s1 + $0x1e8] sm:$0xff]   ;;  %v28_v1 = vld [vmem:[%s2321_s0 + $0x58] sm:$0xff]  ;;  %v1452_v59 = vld [vmem:[%s2320_s1 + $0x1d0] sm:$0xff]  }
  0x1a   :  { %476 = vmatpush.msra.mxu1 %v1182_v2  ;;  %412 = vmatpush.msra.mxu0 %v1149_v6  ;;  %v1389_v2 = vunpack.c.l.bf16 %v1456_v50  ;;  %v1386_v6 = vunpack.c.h.bf16 %v1455_v63 }
  0x1b   :  { %606 = vmatpush.msra.mxu3 %v1246_v3  ;;  %542 = vmatpush.msra.mxu2 %v1213_v7  ;;  %v1325_v3 = vunpack.c.l.bf16 %v1440_v51  ;;  %v1322_v7 = vunpack.c.h.bf16 %v1439_v0 }
  0x1c   :  { %477 = vmatpush.msra.mxu1 %v1181_v10  ;;  %413 = vmatpush.msra.mxu0 %v1146_v12  ;;  %v33_v10 = vld [vmem:[%s2321_s0 + $0x80] sm:$0xff]  ;;  %v1385_v12 = vunpack.c.l.bf16 %v1455_v63  ;;  %v1310_v63 = vunpack.c.h.bf16 %v1436_v60 }
  0x1d   :  { %607 = vmatpush.msra.mxu3 %v1245_v11  ;;  %543 = vmatpush.msra.mxu2 %v1210_v13  ;;  %v35_v11 = vld [vmem:[%s2321_s0 + $0x90] sm:$0xff]  ;;  %v1321_v13 = vunpack.c.l.bf16 %v1439_v0  ;;  %v73_v0 = vld [vmem:[%s2321_s0 + $0x1c0] sm:$0xff] }
  0x1e   :  { %478 = vmatpush.msra.mxu1 %v1178_v14  ;;  %414 = vmatpush.msra.mxu0 %v1145_v18  ;;  %v34_v14 = vld [vmem:[%s2321_s0 + $0x88] sm:$0xff]  ;;  %v1430_v18 = vld [vmem:[%s2320_s1 + $0x120] sm:$0xff]  }
  0x1f   :  { %608 = vmatpush.msra.mxu3 %v1242_v15  ;;  %544 = vmatpush.msra.mxu2 %v1209_v19  ;;  %v36_v15 = vld [vmem:[%s2321_s0 + $0x98] sm:$0xff]  ;;  %v1454_v19 = vld [vmem:[%s2320_s1 + $0x1e0] sm:$0xff]   ;;  %v1286_v21 = vunpack.c.h.bf16 %v1430_v18 }
  0x20   :  { %479 = vmatpush.msra.mxu1 %v1177_v22  ;;  %415 = vmatpush.msra.mxu0 %v1142_v24  ;;  %v1382_v22 = vunpack.c.h.bf16 %v1454_v19  ;;  %v41_v24 = vld [vmem:[%s2321_s0 + $0xc0] sm:$0xff] }
  0x21   :  { %609 = vmatpush.msra.mxu3 %v1241_v23  ;;  %545 = vmatpush.msra.mxu2 %v1206_v25  ;;  %v1318_v23 = vunpack.c.h.bf16 %v1438_v20  ;;  %v43_v25 = vld [vmem:[%s2321_s0 + $0xd0] sm:$0xff] }
  0x22   :  { %480 = vmatpush.msra.mxu1 %v1174_v26  ;;  %416 = vmatpush.msra.mxu0 %v1141_v29  ;;  %v42_v26 = vld [vmem:[%s2321_s0 + $0xc8] sm:$0xff]  ;;  %v1285_v29 = vunpack.c.l.bf16 %v1430_v18 }
  0x23   :  { %610 = vmatpush.msra.mxu3 %v1238_v27  ;;  %546 = vmatpush.msra.mxu2 %v1205_v30  ;;  %v44_v27 = vld [vmem:[%s2321_s0 + $0xd8] sm:$0xff]  ;;  %v1381_v30 = vunpack.c.l.bf16 %v1454_v19  ;;  %v1306_v19 = vunpack.c.h.bf16 %v1435_v16 }
  0x24   :  { %417 = vmatmul.f32.vlgmr.msra.gmra.mxu0 %v17_v31  ;;  %547 = vmatmul.f32.vlgmr.msra.gmra.mxu2 %v19_v33  ;;  %v1317_v31 = vunpack.c.l.bf16 %v1438_v20  ;;  %v51_v33 = vld [vmem:[%s2321_s0 + $0x110] sm:$0xff]  ;;  %v89_v20 = vld [vmem:[%s2321_s0 + $0x240] sm:$0xff] }
  0x25   :  { %791 = vmatpush.msrb.mxu2 %v1362_v34  ;;  %481 = vmatpush.msra.mxu1 %v1173_v35  ;;  %v50_v34 = vld [vmem:[%s2321_s0 + $0x108] sm:$0xff]  ;;  %v52_v35 = vld [vmem:[%s2321_s0 + $0x118] sm:$0xff] }
  0x26   :  { %611 = vmatpush.msra.mxu3 %v1237_v38  ;;  %482 = vmatmul.f32.vlgmr.msra.gmra.mxu1 %v18_v39  ;;  %v1429_v38 = vld [vmem:[%s2320_s1 + $0x118] sm:$0xff]  }
  0x27   :  { %612 = vmatmul.f32.vlgmr.msra.gmra.mxu3 %v20_v41  ;;  %661 = vmatpush.msrb.mxu0 %v1298_v40  ;;  %v1453_v39 = vld [vmem:[%s2320_s1 + $0x1d8] sm:$0xff]   ;;  %v1282_v41 = vunpack.c.h.bf16 %v1429_v38 }
  0x28   :  { %856 = vmatpush.msrb.mxu3 %v1394_v42  ;;  %726 = vmatpush.msrb.mxu1 %v1330_v43  ;;  %v1437_v40 = vld [vmem:[%s2320_s1 + $0x158] sm:$0xff]   ;;  %v1378_v42 = vunpack.c.h.bf16 %v1453_v39  ;;  %v1377_v50 = vunpack.c.l.bf16 %v1453_v39 }
  0x29   :  { %792 = vmatpush.msrb.mxu2 %v1361_v46  ;;  %662 = vmatpush.msrb.mxu0 %v1297_v47  ;;  %v1314_v43 = vunpack.c.h.bf16 %v1437_v40  ;;  %v58_v46 = vld [vmem:[%s2321_s0 + $0x148] sm:$0xff]  ;;  %v60_v47 = vld [vmem:[%s2321_s0 + $0x158] sm:$0xff]  ;;  %v1313_v51 = vunpack.c.l.bf16 %v1437_v40  ;;  %v105_v40 = vld [vmem:[%s2321_s0 + $0x2c0] sm:$0xff] }
  0x2a   :  { %857 = vmatpush.msrb.mxu3 %v1393_v48  ;;  %727 = vmatpush.msrb.mxu1 %v1329_v49  ;;  %v1345_v48 = vunpack.c.l.bf16 %v1445_v36  ;;  %v1281_v49 = vunpack.c.l.bf16 %v1429_v38  ;;  %v1434_v36 = vld [vmem:[%s2320_s1 + $0x140] sm:$0xff]  }
  0x2b   :  { %793 = vmatpush.msrb.mxu2 %v1358_v52  ;;  %663 = vmatpush.msrb.mxu0 %v1294_v53  ;;  %v65_v52 = vld [vmem:[%s2321_s0 + $0x180] sm:$0xff]  ;;  %v67_v53 = vld [vmem:[%s2321_s0 + $0x190] sm:$0xff]  ;;  %v1302_v39 = vunpack.c.h.bf16 %v1434_v36 }
  0x2c   :  { %420 = vmatmul.f32.gmra.mxu0 %v25_v54  ;;  %550 = vmatmul.f32.gmra.mxu2 %v27_v55  ;;  %v66_v54 = vld [vmem:[%s2321_s0 + $0x188] sm:$0xff]  ;;  %v68_v55 = vld [vmem:[%s2321_s0 + $0x198] sm:$0xff] }
  0x2d   :  { %858 = vmatpush.msrb.mxu3 %v1390_v56  ;;  %728 = vmatpush.msrb.mxu1 %v1326_v57  ;;  %v1444_v56 = vld [vmem:[%s2320_s1 + $0x190] sm:$0xff]  }
  0x2e   :  { %485 = vmatmul.f32.gmra.mxu1 %v26_v61  ;;  %794 = vmatpush.msrb.mxu2 %v1357_v58  ;;  %v1342_v57 = vunpack.c.h.bf16 %v1444_v56  ;;  %v1428_v58 = vld [vmem:[%s2320_s1 + $0x110] sm:$0xff]  }
  0x2f   :  { %615 = vmatmul.f32.gmra.mxu3 %v28_v1  ;;  %664 = vmatpush.msrb.mxu0 %v1293_v62  ;;  %v1278_v61 = vunpack.c.h.bf16 %v1428_v58  ;;  %v1374_v62 = vunpack.c.h.bf16 %v1452_v59  ;;  %v75_v1 = vld [vmem:[%s2321_s0 + $0x1d0] sm:$0xff] }
  0x30   :  { %859 = vmatpush.msrb.mxu3 %v1389_v2  ;;  %729 = vmatpush.msrb.mxu1 %v1325_v3  ;;  %v74_v2 = vld [vmem:[%s2321_s0 + $0x1c8] sm:$0xff]  ;;  %v76_v3 = vld [vmem:[%s2321_s0 + $0x1d8] sm:$0xff] }
  0x31   :  { %795 = vmatpush.msrb.mxu2 %v1354_v4  ;;  %665 = vmatpush.msrb.mxu0 %v1290_v5  ;;  %v1341_v4 = vunpack.c.l.bf16 %v1444_v56  ;;  %v1277_v5 = vunpack.c.l.bf16 %v1428_v58  ;;  %v129_v56 = vld [vmem:[%s2321_s0 + $0x380] sm:$0xff]  ;;  %v130_v58 = vld [vmem:[%s2321_s0 + $0x388] sm:$0xff] }
  0x32   :  { %860 = vmatpush.msrb.mxu3 %v1386_v6  ;;  %730 = vmatpush.msrb.mxu1 %v1322_v7  ;;  %v1373_v6 = vunpack.c.l.bf16 %v1452_v59  ;;  %v1309_v7 = vunpack.c.l.bf16 %v1436_v60  ;;  %v132_v59 = vld [vmem:[%s2321_s0 + $0x398] sm:$0xff]  ;;  %v137_v60 = vld [vmem:[%s2321_s0 + $0x3c0] sm:$0xff] }
  0x33   :  { %796 = vmatpush.msrb.mxu2 %v1353_v8  ;;  %666 = vmatpush.msrb.mxu0 %v1289_v9  ;;  %v81_v8 = vld [vmem:[%s2321_s0 + $0x200] sm:$0xff]  ;;  %v83_v9 = vld [vmem:[%s2321_s0 + $0x210] sm:$0xff] }
  0x34   :  { %423 = vmatmul.f32.gmra.mxu0 %v33_v10  ;;  %553 = vmatmul.f32.gmra.mxu2 %v35_v11  ;;  %v82_v10 = vld [vmem:[%s2321_s0 + $0x208] sm:$0xff]  ;;  %v84_v11 = vld [vmem:[%s2321_s0 + $0x218] sm:$0xff] }
  0x35   :  { %861 = vmatpush.msrb.mxu3 %v1385_v12  ;;  %731 = vmatpush.msrb.mxu1 %v1321_v13  ;;  %v1443_v12 = vld [vmem:[%s2320_s1 + $0x188] sm:$0xff]  }
  0x36   :  { %488 = vmatmul.f32.gmra.mxu1 %v34_v14  ;;  %797 = vmatpush.msrb.mxu2 %v1350_v17  ;;  %v1338_v13 = vunpack.c.h.bf16 %v1443_v12  ;;  %v1427_v14 = vld [vmem:[%s2320_s1 + $0x108] sm:$0xff]  }
  0x37   :  { %618 = vmatmul.f32.gmra.mxu3 %v36_v15  ;;  %667 = vmatpush.msrb.mxu0 %v1286_v21  ;;  %v1451_v15 = vld [vmem:[%s2320_s1 + $0x1c8] sm:$0xff]   ;;  %v1274_v17 = vunpack.c.h.bf16 %v1427_v14  ;;  %v91_v21 = vld [vmem:[%s2321_s0 + $0x250] sm:$0xff] }
  0x38   :  { %862 = vmatpush.msrb.mxu3 %v1382_v22  ;;  %732 = vmatpush.msrb.mxu1 %v1318_v23  ;;  %v1370_v18 = vunpack.c.h.bf16 %v1451_v15  ;;  %v90_v22 = vld [vmem:[%s2321_s0 + $0x248] sm:$0xff]  ;;  %v92_v23 = vld [vmem:[%s2321_s0 + $0x258] sm:$0xff] }
  0x39   :  { %798 = vmatpush.msrb.mxu2 %v1349_v28  ;;  %668 = vmatpush.msrb.mxu0 %v1285_v29  ;;  %v97_v28 = vld [vmem:[%s2321_s0 + $0x280] sm:$0xff]  ;;  %v99_v29 = vld [vmem:[%s2321_s0 + $0x290] sm:$0xff] }
  0x3a   :  { %863 = vmatpush.msrb.mxu3 %v1381_v30  ;;  %733 = vmatpush.msrb.mxu1 %v1317_v31  ;;  %v98_v30 = vld [vmem:[%s2321_s0 + $0x288] sm:$0xff]  ;;  %v100_v31 = vld [vmem:[%s2321_s0 + $0x298] sm:$0xff] }
  0x3b   :  { %799 = vmatpush.msrb.mxu2 %v1346_v37  ;;  %669 = vmatpush.msrb.mxu0 %v1282_v41  ;;  %v107_v41 = vld [vmem:[%s2321_s0 + $0x2d0] sm:$0xff] }
  0x3c   :  { %426 = vmatmul.f32.gmra.mxu0 %v41_v24  ;;  %556 = vmatmul.f32.gmra.mxu2 %v43_v25  ;;  %v1337_v24 = vunpack.c.l.bf16 %v1443_v12  ;;  %v1273_v25 = vunpack.c.l.bf16 %v1427_v14 }
  0x3d   :  { %864 = vmatpush.msrb.mxu3 %v1378_v42  ;;  %734 = vmatpush.msrb.mxu1 %v1314_v43  ;;  %v106_v42 = vld [vmem:[%s2321_s0 + $0x2c8] sm:$0xff]  ;;  %v108_v43 = vld [vmem:[%s2321_s0 + $0x2d8] sm:$0xff] }
  0x3e   :  { %491 = vmatmul.f32.gmra.mxu1 %v42_v26  ;;  %800 = vmatpush.msrb.mxu2 %v1345_v48  ;;  %v1369_v26 = vunpack.c.l.bf16 %v1451_v15  ;;  %v113_v48 = vld [vmem:[%s2321_s0 + $0x300] sm:$0xff]  ;;  %v30_v15 = vld [vmem:[%s2321_s0 + $0x68] sm:$0xff] }
  0x3f   :  { %621 = vmatmul.f32.gmra.mxu3 %v44_v27  ;;  %670 = vmatpush.msrb.mxu0 %v1281_v49  ;;  %v1305_v27 = vunpack.c.l.bf16 %v1435_v16  ;;  %v115_v49 = vld [vmem:[%s2321_s0 + $0x310] sm:$0xff]  ;;  %v32_v16 = vld [vmem:[%s2321_s0 + $0x78] sm:$0xff] }
  0x40   :  { %865 = vmatpush.msrb.mxu3 %v1377_v50  ;;  %735 = vmatpush.msrb.mxu1 %v1313_v51  ;;  %v114_v50 = vld [vmem:[%s2321_s0 + $0x308] sm:$0xff]  ;;  %v116_v51 = vld [vmem:[%s2321_s0 + $0x318] sm:$0xff] }
  0x41   :  { %801 = vmatpush.msrb.mxu2 %v1342_v57  ;;  %671 = vmatpush.msrb.mxu0 %v1278_v61  ;;  %v131_v57 = vld [vmem:[%s2321_s0 + $0x390] sm:$0xff] }
  0x42   :  { %866 = vmatpush.msrb.mxu3 %v1374_v62  ;;  %736 = vmatpush.msrb.mxu1 %v1310_v63  ;;  %v139_v61 = vld [vmem:[%s2321_s0 + $0x3d0] sm:$0xff]  ;;  %v138_v62 = vld [vmem:[%s2321_s0 + $0x3c8] sm:$0xff]  ;;  %v140_v63 = vld [vmem:[%s2321_s0 + $0x3d8] sm:$0xff] }
  0x43   :  { %802 = vmatpush.msrb.mxu2 %v1341_v4  ;;  %672 = vmatpush.msrb.mxu0 %v1277_v5  ;;  %v22_v4 = vld [vmem:[%s2321_s0 + $0x28] sm:$0xff]  ;;  %v24_v5 = vld [vmem:[%s2321_s0 + $0x38] sm:$0xff] }
  0x44   :  { %429 = vmatmul.f32.gmra.mxu0 %v49_v32  ;;  %559 = vmatmul.f32.gmra.mxu2 %v51_v33  ;;  %v1442_v32 = vld [vmem:[%s2320_s1 + $0x180] sm:$0xff]  }
  0x45   :  { %867 = vmatpush.msrb.mxu3 %v1373_v6  ;;  %737 = vmatpush.msrb.mxu1 %v1309_v7  ;;  %v1334_v33 = vunpack.c.h.bf16 %v1442_v32 }
  0x46   :  { %494 = vmatmul.f32.gmra.mxu1 %v50_v34  ;;  %803 = vmatpush.msrb.mxu2 %v1338_v13  ;;  %v1426_v34 = vld [vmem:[%s2320_s1 + $0x100] sm:$0xff]  }
  0x47   :  { %624 = vmatmul.f32.gmra.mxu3 %v52_v35  ;;  %673 = vmatpush.msrb.mxu0 %v1274_v17  ;;  %v1450_v35 = vld [vmem:[%s2320_s1 + $0x1c0] sm:$0xff]   ;;  %v1270_v37 = vunpack.c.h.bf16 %v1426_v34 }
  0x48   :  { %868 = vmatpush.msrb.mxu3 %v1370_v18  ;;  %738 = vmatpush.msrb.mxu1 %v1306_v19  ;;  %v1366_v38 = vunpack.c.h.bf16 %v1450_v35 }
  0x49   :  { %804 = vmatpush.msrb.mxu2 %v1337_v24  ;;  %674 = vmatpush.msrb.mxu0 %v1273_v25 }
  0x4a   :  { %869 = vmatpush.msrb.mxu3 %v1369_v26  ;;  %739 = vmatpush.msrb.mxu1 %v1305_v27  ;;  %v38_v26 = vld [vmem:[%s2321_s0 + $0xa8] sm:$0xff]  ;;  %v40_v27 = vld [vmem:[%s2321_s0 + $0xb8] sm:$0xff] }
  0x4b   :  { %805 = vmatpush.msrb.mxu2 %v1334_v33  ;;  %675 = vmatpush.msrb.mxu0 %v1270_v37  ;;  %v47_v33 = vld [vmem:[%s2321_s0 + $0xf0] sm:$0xff]  ;;  %v46_v37 = vld [vmem:[%s2321_s0 + $0xe8] sm:$0xff] }
  0x4c   :  { %432 = vmatmul.f32.gmra.mxu0 %v57_v44  ;;  %562 = vmatmul.f32.gmra.mxu2 %v59_v45  ;;  %v1333_v44 = vunpack.c.l.bf16 %v1442_v32  ;;  %v1269_v45 = vunpack.c.l.bf16 %v1426_v34  ;;  %v45_v32 = vld [vmem:[%s2321_s0 + $0xe0] sm:$0xff] }
  0x4d   :  { %870 = vmatpush.msrb.mxu3 %v1366_v38  ;;  %740 = vmatpush.msrb.mxu1 %v1302_v39  ;;  %v48_v38 = vld [vmem:[%s2321_s0 + $0xf8] sm:$0xff] }
  0x4e   :  { %497 = vmatmul.f32.gmra.mxu1 %v58_v46  ;;  %806 = vmatpush.msrb.mxu2 %v1333_v44  ;;  %v1365_v46 = vunpack.c.l.bf16 %v1450_v35  ;;  %v55_v44 = vld [vmem:[%s2321_s0 + $0x130] sm:$0xff] }
  0x4f   :  { %627 = vmatmul.f32.gmra.mxu3 %v60_v47  ;;  %v1301_v47 = vunpack.c.l.bf16 %v1434_v36  ;;  %676 = vmatpush.msrb.mxu0 %v1269_v45 }
  0x50   :  { %871 = vmatpush.msrb.mxu3 %v1365_v46 }
  0x51   :  { %741 = vmatpush.msrb.mxu1 %v1301_v47 }
  0x54   :  { %435 = vmatmul.f32.gmra.mxu0 %v65_v52  ;;  %565 = vmatmul.f32.gmra.mxu2 %v67_v53  ;;  %v121_v52 = vld [vmem:[%s2321_s0 + $0x340] sm:$0xff]  ;;  %v123_v53 = vld [vmem:[%s2321_s0 + $0x350] sm:$0xff] }
  0x56   :  { %500 = vmatmul.f32.gmra.mxu1 %v66_v54  ;;  %v122_v54 = vld [vmem:[%s2321_s0 + $0x348] sm:$0xff] }
  0x57   :  { %630 = vmatmul.f32.gmra.mxu3 %v68_v55  ;;  %v124_v55 = vld [vmem:[%s2321_s0 + $0x358] sm:$0xff] }
  0x5c   :  { %438 = vmatmul.f32.gmra.mxu0 %v73_v0  ;;  %568 = vmatmul.f32.gmra.mxu2 %v75_v1  ;;  %v21_v1 = vld [vmem:[%s2321_s0 + $0x20] sm:$0xff] }
  0x5e   :  { %503 = vmatmul.f32.gmra.mxu1 %v74_v2  ;;  %v23_v2 = vld [vmem:[%s2321_s0 + $0x30] sm:$0xff] }
  0x5f   :  { %633 = vmatmul.f32.gmra.mxu3 %v76_v3 }
  0x64   :  { %441 = vmatmul.f32.gmra.mxu0 %v81_v8  ;;  %571 = vmatmul.f32.gmra.mxu2 %v83_v9 }
  0x66   :  { %506 = vmatmul.f32.gmra.mxu1 %v82_v10  ;;  %v29_v10 = vld [vmem:[%s2321_s0 + $0x60] sm:$0xff] }
  0x67   :  { %636 = vmatmul.f32.gmra.mxu3 %v84_v11  ;;  %v31_v11 = vld [vmem:[%s2321_s0 + $0x70] sm:$0xff] }
  0x6c   :  { %444 = vmatmul.f32.gmra.mxu0 %v89_v20  ;;  %574 = vmatmul.f32.gmra.mxu2 %v91_v21  ;;  %v37_v21 = vld [vmem:[%s2321_s0 + $0xa0] sm:$0xff] }
  0x6e   :  { %509 = vmatmul.f32.gmra.mxu1 %v90_v22  ;;  %v39_v22 = vld [vmem:[%s2321_s0 + $0xb0] sm:$0xff] }
  0x6f   :  { %639 = vmatmul.f32.gmra.mxu3 %v92_v23 }
  0x74   :  { %447 = vmatmul.f32.gmra.mxu0 %v97_v28  ;;  %577 = vmatmul.f32.gmra.mxu2 %v99_v29 }
  0x76   :  { %512 = vmatmul.f32.gmra.mxu1 %v98_v30 }
  0x77   :  { %642 = vmatmul.f32.gmra.mxu3 %v100_v31 }
  0x7c   :  { %450 = vmatmul.f32.gmra.mxu0 %v105_v40  ;;  %580 = vmatmul.f32.gmra.mxu2 %v107_v41 }
  0x7e   :  { %515 = vmatmul.f32.gmra.mxu1 %v106_v42 }
  0x7f   :  { %645 = vmatmul.f32.gmra.mxu3 %v108_v43  ;;  %v53_v43 = vld [vmem:[%s2321_s0 + $0x120] sm:$0xff] }
  0x84   :  { %453 = vmatmul.f32.gmra.mxu0 %v113_v48  ;;  %583 = vmatmul.f32.gmra.mxu2 %v115_v49  ;;  %v54_v48 = vld [vmem:[%s2321_s0 + $0x128] sm:$0xff]  ;;  %v56_v49 = vld [vmem:[%s2321_s0 + $0x138] sm:$0xff] }
  0x86   :  { %518 = vmatmul.f32.gmra.mxu1 %v114_v50 }
  0x87   :  { %648 = vmatmul.f32.gmra.mxu3 %v116_v51 }
  0x8c   :  { %456 = vmatmul.f32.gmra.mxu0 %v121_v52  ;;  %586 = vmatmul.f32.gmra.mxu2 %v123_v53 }
  0x8e   :  { %521 = vmatmul.f32.gmra.mxu1 %v122_v54  ;;  %v61_v54 = vld [vmem:[%s2321_s0 + $0x160] sm:$0xff] }
  0x8f   :  { %651 = vmatmul.f32.gmra.mxu3 %v124_v55  ;;  %v63_v55 = vld [vmem:[%s2321_s0 + $0x170] sm:$0xff] }
  0x94   :  { %459 = vmatmul.f32.gmra.mxu0 %v129_v56  ;;  %589 = vmatmul.f32.gmra.mxu2 %v131_v57 }
  0x96   :  { %524 = vmatmul.f32.gmra.mxu1 %v130_v58 }
  0x97   :  { %654 = vmatmul.f32.gmra.mxu3 %v132_v59  ;;  %v62_v59 = vld [vmem:[%s2321_s0 + $0x168] sm:$0xff] }
  0x9c   :  { %462 = vmatmul.f32.gmra.mxu0 %v137_v60  ;;  %592 = vmatmul.f32.gmra.mxu2 %v139_v61  ;;  %v64_v60 = vld [vmem:[%s2321_s0 + $0x178] sm:$0xff] }
  0x9e   :  { %527 = vmatmul.f32.gmra.mxu1 %v138_v62 }
  0x9f   :  { %657 = vmatmul.f32.gmra.mxu3 %v140_v63 }
  0xa1   :  { %v418_v0 = vpop.f32.mrf.mxu0 }
  0xa3   :  { %v483_v3 = vpop.f32.mrf.mxu1 }
  0xa4   :  { %677 = vmatmul.f32.vlgmr.msrb.gmra.mxu0 %v21_v1  ;;  %807 = vmatmul.f32.vlgmr.msrb.gmra.mxu2 %v23_v2  ;;  %v484_v6 = vadd.f32 %v483_v3, %v418_v0  ;;  %v69_v1 = vld [vmem:[%s2321_s0 + $0x1a0] sm:$0xff]  ;;  %v71_v2 = vld [vmem:[%s2321_s0 + $0x1b0] sm:$0xff] }
  0xa6   :  { %742 = vmatmul.f32.vlgmr.msrb.gmra.mxu1 %v22_v4 }
  0xa7   :  { %872 = vmatmul.f32.vlgmr.msrb.gmra.mxu3 %v24_v5  ;;  %v548_v7 = vpop.f32.mrf.mxu2 }
  0xa8   :  { %v549_v8 = vadd.f32 %v548_v7, %v484_v6  ;;  %v70_v6 = vld [vmem:[%s2321_s0 + $0x1a8] sm:$0xff]  ;;  %v72_v7 = vld [vmem:[%s2321_s0 + $0x1b8] sm:$0xff] }
  0xa9   :  { %v421_v9 = vpop.f32.mrf.mxu0 }
  0xaa   :  { %v613_v12 = vpop.f32.mrf.mxu3 }
  0xab   :  { %v1893_v13 = vadd.f32 %v613_v12, %v549_v8  ;;  %v486_v14 = vpop.f32.mrf.mxu1  ;;  %v77_v12 = vld [vmem:[%s2321_s0 + $0x1e0] sm:$0xff] }
  0xac   :  { %680 = vmatmul.f32.gmra.mxu0 %v29_v10  ;;  %810 = vmatmul.f32.gmra.mxu2 %v31_v11  ;;  %v487_v17 = vadd.f32 %v486_v14, %v421_v9  ;;  %v79_v14 = vld [vmem:[%s2321_s0 + $0x1f0] sm:$0xff] }
  0xae   :  { %745 = vmatmul.f32.gmra.mxu1 %v30_v15 }
  0xaf   :  { %875 = vmatmul.f32.gmra.mxu3 %v32_v16  ;;  %v551_v18 = vpop.f32.mrf.mxu2 }
  0xb0   :  { %v552_v19 = vadd.f32 %v551_v18, %v487_v17  ;;  %v78_v18 = vld [vmem:[%s2321_s0 + $0x1e8] sm:$0xff] }
  0xb1   :  { %v424_v20 = vpop.f32.mrf.mxu0 }
  0xb2   :  { %v616_v23 = vpop.f32.mrf.mxu3 }
  0xb3   :  { %v1907_v24 = vadd.f32 %v616_v23, %v552_v19  ;;  %v489_v25 = vpop.f32.mrf.mxu1  ;;  %v80_v19 = vld [vmem:[%s2321_s0 + $0x1f8] sm:$0xff] }
  0xb4   :  { %683 = vmatmul.f32.gmra.mxu0 %v37_v21  ;;  %813 = vmatmul.f32.gmra.mxu2 %v39_v22  ;;  %v490_v28 = vadd.f32 %v489_v25, %v424_v20  ;;  %v85_v25 = vld [vmem:[%s2321_s0 + $0x220] sm:$0xff] }
  0xb6   :  { %748 = vmatmul.f32.gmra.mxu1 %v38_v26  ;;  %v87_v26 = vld [vmem:[%s2321_s0 + $0x230] sm:$0xff] }
  0xb7   :  { %878 = vmatmul.f32.gmra.mxu3 %v40_v27  ;;  %v554_v29 = vpop.f32.mrf.mxu2 }
  0xb8   :  { %v555_v30 = vadd.f32 %v554_v29, %v490_v28 }
  0xb9   :  { %v427_v31 = vpop.f32.mrf.mxu0 }
  0xba   :  { %v619_v34 = vpop.f32.mrf.mxu3 }
  0xbb   :  { %v1921_v35 = vadd.f32 %v619_v34, %v555_v30  ;;  %v492_v36 = vpop.f32.mrf.mxu1  ;;  %v86_v30 = vld [vmem:[%s2321_s0 + $0x228] sm:$0xff] }
  0xbc   :  { %686 = vmatmul.f32.gmra.mxu0 %v45_v32  ;;  %816 = vmatmul.f32.gmra.mxu2 %v47_v33  ;;  %v493_v39 = vadd.f32 %v492_v36, %v427_v31  ;;  %v88_v32 = vld [vmem:[%s2321_s0 + $0x238] sm:$0xff] }
  0xbe   :  { %751 = vmatmul.f32.gmra.mxu1 %v46_v37  ;;  %v93_v37 = vld [vmem:[%s2321_s0 + $0x260] sm:$0xff] }
  0xbf   :  { %881 = vmatmul.f32.gmra.mxu3 %v48_v38  ;;  %v557_v40 = vpop.f32.mrf.mxu2  ;;  %v95_v38 = vld [vmem:[%s2321_s0 + $0x270] sm:$0xff] }
  0xc0   :  { %v558_v41 = vadd.f32 %v557_v40, %v493_v39 }
  0xc1   :  { %v430_v42 = vpop.f32.mrf.mxu0 }
  0xc2   :  { %v622_v45 = vpop.f32.mrf.mxu3 }
  0xc3   :  { %v1935_v46 = vadd.f32 %v622_v45, %v558_v41  ;;  %v495_v47 = vpop.f32.mrf.mxu1 }
  0xc4   :  { %689 = vmatmul.f32.gmra.mxu0 %v53_v43  ;;  %819 = vmatmul.f32.gmra.mxu2 %v55_v44  ;;  %v496_v50 = vadd.f32 %v495_v47, %v430_v42  ;;  %v94_v42 = vld [vmem:[%s2321_s0 + $0x268] sm:$0xff]  ;;  %v96_v44 = vld [vmem:[%s2321_s0 + $0x278] sm:$0xff] }
  0xc6   :  { %754 = vmatmul.f32.gmra.mxu1 %v54_v48 }
  0xc7   :  { %884 = vmatmul.f32.gmra.mxu3 %v56_v49  ;;  %v560_v51 = vpop.f32.mrf.mxu2  ;;  %v101_v49 = vld [vmem:[%s2321_s0 + $0x2a0] sm:$0xff] }
  0xc8   :  { %v561_v52 = vadd.f32 %v560_v51, %v496_v50  ;;  %v103_v50 = vld [vmem:[%s2321_s0 + $0x2b0] sm:$0xff] }
  0xc9   :  { %v433_v53 = vpop.f32.mrf.mxu0 }
  0xca   :  { %v625_v56 = vpop.f32.mrf.mxu3 }
  0xcb   :  { %v1949_v57 = vadd.f32 %v625_v56, %v561_v52  ;;  %v498_v58 = vpop.f32.mrf.mxu1  ;;  %v104_v56 = vld [vmem:[%s2321_s0 + $0x2b8] sm:$0xff] }
  0xcc   :  { %692 = vmatmul.f32.gmra.mxu0 %v61_v54  ;;  %822 = vmatmul.f32.gmra.mxu2 %v63_v55  ;;  %v499_v61 = vadd.f32 %v498_v58, %v433_v53  ;;  %v102_v54 = vld [vmem:[%s2321_s0 + $0x2a8] sm:$0xff] }
  0xce   :  { %757 = vmatmul.f32.gmra.mxu1 %v62_v59 }
  0xcf   :  { %887 = vmatmul.f32.gmra.mxu3 %v64_v60  ;;  %v563_v62 = vpop.f32.mrf.mxu2 }
  0xd0   :  { %v564_v63 = vadd.f32 %v563_v62, %v499_v61  ;;  %v109_v61 = vld [vmem:[%s2321_s0 + $0x2e0] sm:$0xff]  ;;  %v111_v62 = vld [vmem:[%s2321_s0 + $0x2f0] sm:$0xff] }
  0xd1   :  { %v436_v0 = vpop.f32.mrf.mxu0 }
  0xd2   :  { %v628_v3 = vpop.f32.mrf.mxu3 }
  0xd3   :  { %v1963_v4 = vadd.f32 %v628_v3, %v564_v63  ;;  %v501_v5 = vpop.f32.mrf.mxu1 }
  0xd4   :  { %695 = vmatmul.f32.gmra.mxu0 %v69_v1  ;;  %825 = vmatmul.f32.gmra.mxu2 %v71_v2  ;;  %v502_v8 = vadd.f32 %v501_v5, %v436_v0  ;;  %v110_v2 = vld [vmem:[%s2321_s0 + $0x2e8] sm:$0xff]  ;;  %v112_v5 = vld [vmem:[%s2321_s0 + $0x2f8] sm:$0xff] }
  0xd6   :  { %760 = vmatmul.f32.gmra.mxu1 %v70_v6 }
  0xd7   :  { %890 = vmatmul.f32.gmra.mxu3 %v72_v7  ;;  %v566_v9 = vpop.f32.mrf.mxu2 }
  0xd8   :  { %v567_v10 = vadd.f32 %v566_v9, %v502_v8  ;;  %v117_v9 = vld [vmem:[%s2321_s0 + $0x320] sm:$0xff] }
  0xd9   :  { %v439_v11 = vpop.f32.mrf.mxu0 }
  0xda   :  { %v631_v15 = vpop.f32.mrf.mxu3 }
  0xdb   :  { %v1977_v16 = vadd.f32 %v631_v15, %v567_v10  ;;  %v504_v17 = vpop.f32.mrf.mxu1  ;;  %v119_v10 = vld [vmem:[%s2321_s0 + $0x330] sm:$0xff]  ;;  %v118_v15 = vld [vmem:[%s2321_s0 + $0x328] sm:$0xff] }
  0xdc   :  { %698 = vmatmul.f32.gmra.mxu0 %v77_v12  ;;  %828 = vmatmul.f32.gmra.mxu2 %v79_v14  ;;  %v505_v20 = vadd.f32 %v504_v17, %v439_v11 }
  0xde   :  { %763 = vmatmul.f32.gmra.mxu1 %v78_v18  ;;  %v120_v18 = vld [vmem:[%s2321_s0 + $0x338] sm:$0xff] }
  0xdf   :  { %893 = vmatmul.f32.gmra.mxu3 %v80_v19  ;;  %v569_v21 = vpop.f32.mrf.mxu2 }
  0xe0   :  { %v570_v22 = vadd.f32 %v569_v21, %v505_v20 }
  0xe1   :  { %v442_v23 = vpop.f32.mrf.mxu0 }
  0xe2   :  { %v634_v27 = vpop.f32.mrf.mxu3 }
  0xe3   :  { %v1991_v28 = vadd.f32 %v634_v27, %v570_v22  ;;  %v507_v29 = vpop.f32.mrf.mxu1  ;;  %v125_v22 = vld [vmem:[%s2321_s0 + $0x360] sm:$0xff] }
  0xe4   :  { %v508_v31 = vadd.f32 %v507_v29, %v442_v23  ;;  %701 = vmatmul.f32.gmra.mxu0 %v85_v25  ;;  %831 = vmatmul.f32.gmra.mxu2 %v87_v26  ;;  %v127_v23 = vld [vmem:[%s2321_s0 + $0x370] sm:$0xff]  ;;  %v126_v29 = vld [vmem:[%s2321_s0 + $0x368] sm:$0xff] }
  0xe6   :  { %766 = vmatmul.f32.gmra.mxu1 %v86_v30 }
  0xe7   :  { %896 = vmatmul.f32.gmra.mxu3 %v88_v32  ;;  %v572_v33 = vpop.f32.mrf.mxu2 }
  0xe8   :  { %v573_v34 = vadd.f32 %v572_v33, %v508_v31  ;;  %v128_v31 = vld [vmem:[%s2321_s0 + $0x378] sm:$0xff] }
  0xe9   :  { %v445_v36 = vpop.f32.mrf.mxu0 }
  0xea   :  { %v637_v39 = vpop.f32.mrf.mxu3 }
  0xeb   :  { %v2005_v40 = vadd.f32 %v637_v39, %v573_v34  ;;  %v510_v41 = vpop.f32.mrf.mxu1 }
  0xec   :  { %v511_v43 = vadd.f32 %v510_v41, %v445_v36  ;;  %704 = vmatmul.f32.gmra.mxu0 %v93_v37  ;;  %834 = vmatmul.f32.gmra.mxu2 %v95_v38  ;;  %v133_v36 = vld [vmem:[%s2321_s0 + $0x3a0] sm:$0xff]  ;;  %v135_v37 = vld [vmem:[%s2321_s0 + $0x3b0] sm:$0xff] }
  0xee   :  { %769 = vmatmul.f32.gmra.mxu1 %v94_v42  ;;  %v134_v42 = vld [vmem:[%s2321_s0 + $0x3a8] sm:$0xff] }
  0xef   :  { %899 = vmatmul.f32.gmra.mxu3 %v96_v44  ;;  %v575_v45 = vpop.f32.mrf.mxu2  ;;  %v136_v44 = vld [vmem:[%s2321_s0 + $0x3b8] sm:$0xff] }
  0xf0   :  { %v576_v47 = vadd.f32 %v575_v45, %v511_v43 }
  0xf1   :  { %v448_v48 = vpop.f32.mrf.mxu0 }
  0xf2   :  { %v640_v51 = vpop.f32.mrf.mxu3 }
  0xf3   :  { %v2019_v52 = vadd.f32 %v640_v51, %v576_v47  ;;  %v513_v53 = vpop.f32.mrf.mxu1 }
  0xf4   :  { %v514_v55 = vadd.f32 %v513_v53, %v448_v48  ;;  %707 = vmatmul.f32.gmra.mxu0 %v101_v49  ;;  %837 = vmatmul.f32.gmra.mxu2 %v103_v50  ;;  %v141_v49 = vld [vmem:[%s2321_s0 + $0x3e0] sm:$0xff]  ;;  %v143_v50 = vld [vmem:[%s2321_s0 + $0x3f0] sm:$0xff] }
  0xf6   :  { %772 = vmatmul.f32.gmra.mxu1 %v102_v54 }
  0xf7   :  { %902 = vmatmul.f32.gmra.mxu3 %v104_v56  ;;  %v578_v58 = vpop.f32.mrf.mxu2 }
  0xf8   :  { %v579_v59 = vadd.f32 %v578_v58, %v514_v55  ;;  %v142_v55 = vld [vmem:[%s2321_s0 + $0x3e8] sm:$0xff]  ;;  %v144_v58 = vld [vmem:[%s2321_s0 + $0x3f8] sm:$0xff] }
  0xf9   :  { %v451_v60 = vpop.f32.mrf.mxu0 }
  0xfa   :  { %v643_v63 = vpop.f32.mrf.mxu3 }
  0xfb   :  { %v2033_v0 = vadd.f32 %v643_v63, %v579_v59  ;;  %v516_v1 = vpop.f32.mrf.mxu1 }
  0xfc   :  { %v517_v3 = vadd.f32 %v516_v1, %v451_v60  ;;  %710 = vmatmul.f32.gmra.mxu0 %v109_v61  ;;  %840 = vmatmul.f32.gmra.mxu2 %v111_v62 }
  0xfe   :  { %775 = vmatmul.f32.gmra.mxu1 %v110_v2 }
  0xff   :  { %905 = vmatmul.f32.gmra.mxu3 %v112_v5  ;;  %v581_v6 = vpop.f32.mrf.mxu2 }
 0x100   :  { %v582_v7 = vadd.f32 %v581_v6, %v517_v3 }
 0x101   :  { %v454_v8 = vpop.f32.mrf.mxu0 }
 0x102   :  { %v646_v11 = vpop.f32.mrf.mxu3 }
 0x103   :  { %v2047_v12 = vadd.f32 %v646_v11, %v582_v7  ;;  %v519_v14 = vpop.f32.mrf.mxu1 }
 0x104   :  { %v520_v17 = vadd.f32 %v519_v14, %v454_v8  ;;  %713 = vmatmul.f32.gmra.mxu0 %v117_v9  ;;  %843 = vmatmul.f32.gmra.mxu2 %v119_v10 }
 0x106   :  { %778 = vmatmul.f32.gmra.mxu1 %v118_v15 }
 0x107   :  { %908 = vmatmul.f32.gmra.mxu3 %v120_v18  ;;  %v584_v19 = vpop.f32.mrf.mxu2 }
 0x108   :  { %v585_v20 = vadd.f32 %v584_v19, %v520_v17 }
 0x109   :  { %v457_v21 = vpop.f32.mrf.mxu0 }
 0x10a   :  { %v649_v25 = vpop.f32.mrf.mxu3 }
 0x10b   :  { %v2061_v26 = vadd.f32 %v649_v25, %v585_v20  ;;  %v522_v27 = vpop.f32.mrf.mxu1 }
 0x10c   :  { %v523_v30 = vadd.f32 %v522_v27, %v457_v21  ;;  %716 = vmatmul.f32.gmra.mxu0 %v125_v22  ;;  %846 = vmatmul.f32.gmra.mxu2 %v127_v23 }
 0x10e   :  { %781 = vmatmul.f32.gmra.mxu1 %v126_v29 }
 0x10f   :  { %911 = vmatmul.f32.gmra.mxu3 %v128_v31  ;;  %v587_v32 = vpop.f32.mrf.mxu2 }
 0x110   :  { %v588_v33 = vadd.f32 %v587_v32, %v523_v30 }
 0x111   :  { %v460_v34 = vpop.f32.mrf.mxu0 }
 0x112   :  { %v652_v38 = vpop.f32.mrf.mxu3 }
 0x113   :  { %v2075_v39 = vadd.f32 %v652_v38, %v588_v33  ;;  %v525_v41 = vpop.f32.mrf.mxu1 }
 0x114   :  { %v526_v43 = vadd.f32 %v525_v41, %v460_v34  ;;  %719 = vmatmul.f32.gmra.mxu0 %v133_v36  ;;  %849 = vmatmul.f32.gmra.mxu2 %v135_v37 }
 0x116   :  { %784 = vmatmul.f32.gmra.mxu1 %v134_v42 }
 0x117   :  { %914 = vmatmul.f32.gmra.mxu3 %v136_v44  ;;  %v590_v45 = vpop.f32.mrf.mxu2 }
 0x118   :  { %v591_v47 = vadd.f32 %v590_v45, %v526_v43 }
 0x119   :  { %v463_v48 = vpop.f32.mrf.mxu0 }
 0x11a   :  { %v655_v51 = vpop.f32.mrf.mxu3 }
 0x11b   :  { %v2089_v53 = vadd.f32 %v655_v51, %v591_v47  ;;  %v528_v54 = vpop.f32.mrf.mxu1 }
 0x11c   :  { %v529_v56 = vadd.f32 %v528_v54, %v463_v48  ;;  %722 = vmatmul.f32.gmra.mxu0 %v141_v49  ;;  %852 = vmatmul.f32.gmra.mxu2 %v143_v50 }
 0x11e   :  { %787 = vmatmul.f32.gmra.mxu1 %v142_v55 }
 0x11f   :  { %917 = vmatmul.f32.gmra.mxu3 %v144_v58  ;;  %v593_v59 = vpop.f32.mrf.mxu2 }
 0x120   :  { %v594_v60 = vadd.f32 %v593_v59, %v529_v56 }
 0x121   :  { %v678_v61 = vpop.f32.mrf.mxu0 }
 0x122   :  { %v658_v62 = vpop.f32.mrf.mxu3  ;;  %v679_v63 = vadd.f32 %v678_v61, %v1893_v13 }
 0x123   :  { %v2098_v1 = vadd.f32 %v658_v62, %v594_v60  ;;  %v743_v2 = vpop.f32.mrf.mxu1 }
 0x124   :  { %v744_v3 = vadd.f32 %v743_v2, %v679_v63 }
 0x127   :  { %v808_v5 = vpop.f32.mrf.mxu2 }
 0x128   :  { %v809_v6 = vadd.f32 %v808_v5, %v744_v3 }
 0x129   :  { %v681_v7 = vpop.f32.mrf.mxu0 }
 0x12a   :  { %v682_v8 = vadd.f32 %v681_v7, %v1907_v24  ;;  %v873_v9 = vpop.f32.mrf.mxu3 }
 0x12b   :  { %v2101_v10 = vadd.f32 %v873_v9, %v809_v6  ;;  %v746_v11 = vpop.f32.mrf.mxu1 }
 0x12c   :  { %v747_v14 = vadd.f32 %v746_v11, %v682_v8 }
 0x12f   :  { %v811_v15 = vpop.f32.mrf.mxu2 }
 0x130   :  { %v812_v17 = vadd.f32 %v811_v15, %v747_v14 }
 0x131   :  { %v684_v18 = vpop.f32.mrf.mxu0 }
 0x132   :  { %v685_v19 = vadd.f32 %v684_v18, %v1921_v35  ;;  %v876_v13 = vpop.f32.mrf.mxu3 }
 0x133   :  { %v2104_v20 = vadd.f32 %v876_v13, %v812_v17  ;;  %v749_v21 = vpop.f32.mrf.mxu1 }
 0x134   :  { %v750_v22 = vadd.f32 %v749_v21, %v685_v19 }
 0x135   :  { %v921_v23 = vadd.f32 %v2104_v20, %v2101_v10 }
 0x137   :  { %v814_v25 = vpop.f32.mrf.mxu2 }
 0x138   :  { %v815_v24 = vadd.f32 %v814_v25, %v750_v22 }
 0x139   :  { %v687_v27 = vpop.f32.mrf.mxu0 }
 0x13a   :  { %v688_v29 = vadd.f32 %v687_v27, %v1935_v46  ;;  %v879_v30 = vpop.f32.mrf.mxu3 }
 0x13b   :  { %v2109_v31 = vadd.f32 %v879_v30, %v815_v24  ;;  %v752_v32 = vpop.f32.mrf.mxu1 }
 0x13c   :  { %v753_v33 = vadd.f32 %v752_v32, %v688_v29 }
 0x13d   :  { %v922_v35 = vadd.f32 %v921_v23, %v2109_v31 }
 0x13f   :  { %v817_v34 = vpop.f32.mrf.mxu2 }
 0x140   :  { %v818_v36 = vadd.f32 %v817_v34, %v753_v33 }
 0x141   :  { %v690_v37 = vpop.f32.mrf.mxu0 }
 0x142   :  { %v691_v38 = vadd.f32 %v690_v37, %v1949_v57  ;;  %v882_v41 = vpop.f32.mrf.mxu3 }
 0x143   :  { %v2113_v42 = vadd.f32 %v882_v41, %v818_v36  ;;  %v755_v43 = vpop.f32.mrf.mxu1 }
 0x144   :  { %v756_v44 = vadd.f32 %v755_v43, %v691_v38 }
 0x145   :  { %v923_v45 = vadd.f32 %v922_v35, %v2113_v42 }
 0x147   :  { %v820_v46 = vpop.f32.mrf.mxu2 }
 0x148   :  { %v821_v47 = vadd.f32 %v820_v46, %v756_v44 }
 0x149   :  { %v693_v48 = vpop.f32.mrf.mxu0 }
 0x14a   :  { %v694_v49 = vadd.f32 %v693_v48, %v1963_v4  ;;  %v885_v50 = vpop.f32.mrf.mxu3 }
 0x14b   :  { %v2117_v51 = vadd.f32 %v885_v50, %v821_v47  ;;  %v758_v54 = vpop.f32.mrf.mxu1 }
 0x14c   :  { %v759_v56 = vadd.f32 %v758_v54, %v694_v49 }
 0x14d   :  { %v924_v55 = vadd.f32 %v923_v45, %v2117_v51 }
 0x14f   :  { %v823_v57 = vpop.f32.mrf.mxu2 }
 0x150   :  { %v824_v58 = vadd.f32 %v823_v57, %v759_v56 }
 0x151   :  { %v696_v59 = vpop.f32.mrf.mxu0 }
 0x152   :  { %v697_v60 = vadd.f32 %v696_v59, %v1977_v16  ;;  %v888_v61 = vpop.f32.mrf.mxu3 }
 0x153   :  { %v2121_v62 = vadd.f32 %v888_v61, %v824_v58  ;;  %v761_v63 = vpop.f32.mrf.mxu1 }
 0x154   :  { %v762_v3 = vadd.f32 %v761_v63, %v697_v60 }
 0x155   :  { %v925_v2 = vadd.f32 %v924_v55, %v2121_v62 }
 0x157   :  { %v826_v4 = vpop.f32.mrf.mxu2 }
 0x158   :  { %v827_v5 = vadd.f32 %v826_v4, %v762_v3 }
 0x159   :  { %v699_v6 = vpop.f32.mrf.mxu0 }
 0x15a   :  { %v700_v7 = vadd.f32 %v699_v6, %v1991_v28  ;;  %v891_v8 = vpop.f32.mrf.mxu3 }
 0x15b   :  { %v2125_v9 = vadd.f32 %v891_v8, %v827_v5  ;;  %v764_v11 = vpop.f32.mrf.mxu1 }
 0x15c   :  { %v765_v15 = vadd.f32 %v764_v11, %v700_v7 }
 0x15d   :  { %v926_v14 = vadd.f32 %v925_v2, %v2125_v9 }
 0x15f   :  { %v829_v16 = vpop.f32.mrf.mxu2 }
 0x160   :  { %v830_v17 = vadd.f32 %v829_v16, %v765_v15 }
 0x161   :  { %v702_v18 = vpop.f32.mrf.mxu0 }
 0x162   :  { %v703_v19 = vadd.f32 %v702_v18, %v2005_v40  ;;  %v894_v13 = vpop.f32.mrf.mxu3 }
 0x163   :  { %v2129_v21 = vadd.f32 %v894_v13, %v830_v17  ;;  %v767_v22 = vpop.f32.mrf.mxu1 }
 0x164   :  { %v768_v25 = vadd.f32 %v767_v22, %v703_v19 }
 0x165   :  { %v927_v23 = vadd.f32 %v926_v14, %v2129_v21 }
 0x167   :  { %v832_v28 = vpop.f32.mrf.mxu2 }
 0x168   :  { %v833_v24 = vadd.f32 %v832_v28, %v768_v25 }
 0x169   :  { %v705_v27 = vpop.f32.mrf.mxu0 }
 0x16a   :  { %v706_v29 = vadd.f32 %v705_v27, %v2019_v52  ;;  %v897_v30 = vpop.f32.mrf.mxu3  ;;  %v1465_v27 = vmov 128.0  }
 0x16b   :  { %v2133_v32 = vadd.f32 %v897_v30, %v833_v24  ;;  %v770_v33 = vpop.f32.mrf.mxu1  ;;  %1461 = vrcp.f32 %v1465_v27 }
 0x16c   :  { %v771_v34 = vadd.f32 %v770_v33, %v706_v29 }
 0x16d   :  { %v928_v35 = vadd.f32 %v927_v23, %v2133_v32 }
 0x16f   :  { %v835_v40 = vpop.f32.mrf.mxu2 }
 0x170   :  { %v836_v36 = vadd.f32 %v835_v40, %v771_v34 }
 0x171   :  { %v708_v37 = vpop.f32.mrf.mxu0  ;;  %v1462_v40 = vpop.eup %1461 }
 0x172   :  { %v709_v38 = vadd.f32 %v708_v37, %v2033_v0  ;;  %v900_v41 = vpop.f32.mrf.mxu3  ;;  %vm947_vm0 = vweird.f32 %v1462_v40 }
 0x173   :  { %v2137_v43 = vadd.f32 %v900_v41, %v836_v36  ;;  %v773_v44 = vpop.f32.mrf.mxu1  ;;  %v943_v41 = vmul.f32 128.0, %v1462_v40 }
 0x174   :  { %v774_v46 = vadd.f32 %v773_v44, %v709_v38 }
 0x175   :  { %v929_v45 = vadd.f32 %v928_v35, %v2137_v43 }
 0x177   :  { %v838_v52 = vpop.f32.mrf.mxu2 }
 0x178   :  { %v839_v47 = vadd.f32 %v838_v52, %v774_v46  ;;  %v944_v46 = vsub.f32 1.0, %v943_v41 }
 0x179   :  { %v711_v48 = vpop.f32.mrf.mxu0 }
 0x17a   :  { %v712_v49 = vadd.f32 %v711_v48, %v2047_v12  ;;  %v903_v50 = vpop.f32.mrf.mxu3  ;;  %v945_v48 = vmul.f32 %v1462_v40, %v944_v46 }
 0x17b   :  { %v2141_v54 = vadd.f32 %v903_v50, %v839_v47  ;;  %v776_v55 = vpop.f32.mrf.mxu1 }
 0x17c   :  { %v777_v57 = vadd.f32 %v776_v55, %v712_v49  ;;  %v946_v55 = vadd.f32 %v1462_v40, %v945_v48 }
 0x17d   :  { %v930_v56 = vadd.f32 %v929_v45, %v2141_v54 }
 0x17f   :  { %v841_v0 = vpop.f32.mrf.mxu2 }
 0x180   :  { %v842_v58 = vadd.f32 %v841_v0, %v777_v57  ;;  %v948_v57 = vsel %vm947_vm0, %v1462_v40, %v946_v55 }
 0x181   :  { %v714_v59 = vpop.f32.mrf.mxu0 }
 0x182   :  { %v715_v60 = vadd.f32 %v714_v59, %v2061_v26  ;;  %v906_v61 = vpop.f32.mrf.mxu3 }
 0x183   :  { %v2145_v63 = vadd.f32 %v906_v61, %v842_v58  ;;  %v779_v2 = vpop.f32.mrf.mxu1 }
 0x184   :  { %v780_v4 = vadd.f32 %v779_v2, %v715_v60 }
 0x185   :  { %v931_v3 = vadd.f32 %v930_v56, %v2145_v63 }
 0x187   :  { %v844_v12 = vpop.f32.mrf.mxu2 }
 0x188   :  { %v845_v5 = vadd.f32 %v844_v12, %v780_v4 }
 0x189   :  { %v717_v6 = vpop.f32.mrf.mxu0 }
 0x18a   :  { %v718_v7 = vadd.f32 %v717_v6, %v2075_v39  ;;  %v909_v8 = vpop.f32.mrf.mxu3 }
 0x18b   :  { %v910_v11 = vadd.f32 %v909_v8, %v845_v5  ;;  %v782_v14 = vpop.f32.mrf.mxu1 }
 0x18c   :  { %v783_v16 = vadd.f32 %v782_v14, %v718_v7 }
 0x18d   :  { %v932_v15 = vadd.f32 %v931_v3, %v910_v11 }
 0x18f   :  { %v847_v17 = vpop.f32.mrf.mxu2 }
 0x190   :  { %v848_v18 = vadd.f32 %v847_v17, %v783_v16 }
 0x191   :  { %v720_v26 = vpop.f32.mrf.mxu0 }
 0x192   :  { %v721_v19 = vadd.f32 %v720_v26, %v2089_v53  ;;  %v912_v13 = vpop.f32.mrf.mxu3 }
 0x193   :  { %v913_v22 = vadd.f32 %v912_v13, %v848_v18  ;;  %v785_v23 = vpop.f32.mrf.mxu1 }
 0x194   :  { %v786_v28 = vadd.f32 %v785_v23, %v721_v19 }
 0x195   :  { %v933_v25 = vadd.f32 %v932_v15, %v913_v22 }
 0x197   :  { %v850_v24 = vpop.f32.mrf.mxu2 }
 0x198   :  { %v851_v29 = vadd.f32 %v850_v24, %v786_v28 }
 0x199   :  { %v723_v39 = vpop.f32.mrf.mxu0 }
 0x19a   :  { %v724_v30 = vadd.f32 %v723_v39, %v2098_v1  ;;  %v915_v33 = vpop.f32.mrf.mxu3 }
 0x19b   :  { %v916_v35 = vadd.f32 %v915_v33, %v851_v29  ;;  %v788_v34 = vpop.f32.mrf.mxu1 }
 0x19c   :  { %v789_v37 = vadd.f32 %v788_v34, %v724_v30 }
 0x19d   :  { %v934_v36 = vadd.f32 %v933_v25, %v916_v35 }
 0x19f   :  { %v853_v38 = vpop.f32.mrf.mxu2 }
 0x1a0   :  { %v854_v53 = vadd.f32 %v853_v38, %v789_v37 }
 0x1a2   :  { %v918_v44 = vpop.f32.mrf.mxu3 }
 0x1a3   :  { %v919_v45 = vadd.f32 %v918_v44, %v854_v53 }
 0x1a5   :  { %v935_v52 = vadd.f32 %v934_v36, %v919_v45 }
 0x1a7   :  { %v936_v47 = vrot.slane %v935_v52, 4 }
 0x1a9   :  { %v937_v49 = vadd.f32 %v936_v47, %v935_v52 }
 0x1ab   :  { %v938_v50 = vrot.slane %v937_v49, 2 }
 0x1ad   :  { %v939_v56 = vadd.f32 %v938_v50, %v937_v49 }
 0x1af   :  { %v940_v1 = vrot.slane %v939_v56, 1 }
 0x1b1   :  { %v941_v0 = vadd.f32 %v940_v1, %v939_v56 }
 0x1b3   :  { %v949_v58 = vmul.f32 %v948_v57, %v941_v0 }
 0x1b5   :  { %v2152_v59 = vsub.f32 %v2101_v10, %v949_v58  ;;  %v2155_v60 = vsub.f32 %v2104_v20, %v949_v58  ;;  %v2158_v61 = vsub.f32 %v2109_v31, %v949_v58  ;;  %v2161_v2 = vsub.f32 %v2113_v42, %v949_v58 }
 0x1b6   :  { %v2164_v3 = vsub.f32 %v2117_v51, %v949_v58  ;;  %v2167_v4 = vsub.f32 %v2121_v62, %v949_v58  ;;  %v2170_v12 = vsub.f32 %v2125_v9, %v949_v58  ;;  %v2173_v10 = vsub.f32 %v2129_v21, %v949_v58 }
 0x1b7   :  { %v2176_v20 = vsub.f32 %v2133_v32, %v949_v58  ;;  %v2179_v31 = vsub.f32 %v2137_v43, %v949_v58  ;;  %v2182_v42 = vsub.f32 %v2141_v54, %v949_v58  ;;  %v2185_v51 = vsub.f32 %v2145_v63, %v949_v58 }
 0x1b8   :  { %v2187_v62 = vsub.f32 %v910_v11, %v949_v58  ;;  %v2189_v5 = vsub.f32 %v913_v22, %v949_v58  ;;  %v2191_v9 = vsub.f32 %v916_v35, %v949_v58  ;;  %v2193_v21 = vsub.f32 %v919_v45, %v949_v58 }
 0x1b9   :  { %v966_v32 = vmul.f32 %v2152_v59, %v2152_v59  ;;  %v967_v43 = vmul.f32 %v2155_v60, %v2155_v60  ;;  %v968_v54 = vmul.f32 %v2158_v61, %v2158_v61  ;;  %v969_v63 = vmul.f32 %v2161_v2, %v2161_v2 }
 0x1ba   :  { %v970_v8 = vmul.f32 %v2164_v3, %v2164_v3  ;;  %v971_v14 = vmul.f32 %v2167_v4, %v2167_v4  ;;  %v972_v16 = vmul.f32 %v2170_v12, %v2170_v12  ;;  %v973_v18 = vmul.f32 %v2173_v10, %v2173_v10 }
 0x1bb   :  { %v982_v6 = vadd.f32 %v967_v43, %v966_v32  ;;  %v974_v19 = vmul.f32 %v2176_v20, %v2176_v20  ;;  %v975_v22 = vmul.f32 %v2179_v31, %v2179_v31  ;;  %v976_v25 = vmul.f32 %v2182_v42, %v2182_v42 }
 0x1bc   :  { %v977_v24 = vmul.f32 %v2185_v51, %v2185_v51  ;;  %v978_v29 = vmul.f32 %v2187_v62, %v2187_v62  ;;  %v979_v30 = vmul.f32 %v2189_v5, %v2189_v5  ;;  %v980_v35 = vmul.f32 %v2191_v9, %v2191_v9 }
 0x1bd   :  { %v983_v7 = vadd.f32 %v982_v6, %v968_v54  ;;  %v981_v40 = vmul.f32 %v2193_v21, %v2193_v21 }
 0x1bf   :  { %v984_v11 = vadd.f32 %v983_v7, %v969_v63 }
 0x1c1   :  { %v985_v15 = vadd.f32 %v984_v11, %v970_v8 }
 0x1c3   :  { %v986_v17 = vadd.f32 %v985_v15, %v971_v14 }
 0x1c5   :  { %v987_v26 = vadd.f32 %v986_v17, %v972_v16 }
 0x1c7   :  { %v988_v13 = vadd.f32 %v987_v26, %v973_v18 }
 0x1c9   :  { %v989_v23 = vadd.f32 %v988_v13, %v974_v19 }
 0x1cb   :  { %v990_v28 = vadd.f32 %v989_v23, %v975_v22 }
 0x1cd   :  { %v991_v27 = vadd.f32 %v990_v28, %v976_v25 }
 0x1cf   :  { %v992_v39 = vadd.f32 %v991_v27, %v977_v24 }
 0x1d1   :  { %v993_v33 = vadd.f32 %v992_v39, %v978_v29 }
 0x1d3   :  { %v994_v34 = vadd.f32 %v993_v33, %v979_v30 }
 0x1d5   :  { %v995_v36 = vadd.f32 %v994_v34, %v980_v35 }
 0x1d7   :  { %v996_v37 = vadd.f32 %v995_v36, %v981_v40 }
 0x1d9   :  { %v997_v38 = vrot.slane %v996_v37, 4 }
 0x1db   :  { %v998_v53 = vadd.f32 %v997_v38, %v996_v37 }
 0x1dd   :  { %v999_v41 = vrot.slane %v998_v53, 2 }
 0x1df   :  { %v1000_v44 = vadd.f32 %v999_v41, %v998_v53 }
 0x1e1   :  { %v1001_v45 = vrot.slane %v1000_v44, 1 }
 0x1e3   :  { %v1002_v46 = vadd.f32 %v1001_v45, %v1000_v44 }
 0x1e5   :  { %v1003_v52 = vmul.f32 %v1002_v46, %v948_v57 }
 0x1e7   :  { %v1004_v47 = vadd.f32 1e-05, %v1003_v52 }
 0x1e9   :  { %1463 = vrsqrt.f32 %v1004_v47  ;;  %vm1011_vm2 = vweird.f32 %v1004_v47 }
 0x1ef   :  { %v1464_v48 = vpop.eup %1463 }
 0x1f0   :  { %v1006_v49 = vmul.f32 %v1464_v48, %v1004_v47  ;;  %vm1012_vm1 = vweird.f32 %v1464_v48 }
 0x1f1   :  { %vm1013_vm3 = vmor %vm1011_vm2, %vm1012_vm1 }
 0x1f2   :  { %v1007_v50 = vmul.f32 %v1464_v48, %v1006_v49 }
 0x1f4   :  { %v1008_v55 = vmul.f32 0.5, %v1007_v50 }
 0x1f6   :  { %v1009_v56 = vsub.f32 1.5, %v1008_v55 }
 0x1f8   :  { %v1010_v1 = vmul.f32 %v1464_v48, %v1009_v56 }
 0x1fa   :  { %v1014_v0 = vsel %vm1013_vm3, %v1464_v48, %v1010_v1 }
 0x1fb   :  { %v1015_v58 = vmul.f32 %v1014_v0, %v2152_v59  ;;  %v1016_v32 = vmul.f32 %v1014_v0, %v2155_v60  ;;  %v1020_v43 = vmul.f32 %v1014_v0, %v2167_v4  ;;  %v1021_v57 = vmul.f32 %v1014_v0, %v2170_v12  ;;  %v1459_v12 = vld [vmem:[%s2322_s2] ss:$0 sm:$0xff] }
 0x1fc   :  { %v1022_v54 = vmul.f32 %v1014_v0, %v2173_v10  ;;  %v1023_v6 = vmul.f32 %v1014_v0, %v2176_v20  ;;  %v1024_v63 = vmul.f32 %v1014_v0, %v2179_v31  ;;  %v1025_v7 = vmul.f32 %v1014_v0, %v2182_v42 }
 0x1fd   :  { %v1026_v8 = vmul.f32 %v1014_v0, %v2185_v51  ;;  %v1027_v11 = vmul.f32 %v1014_v0, %v2187_v62  ;;  %v1028_v59 = vmul.f32 %v1014_v0, %v2189_v5  ;;  %v1029_v60 = vmul.f32 %v1014_v0, %v2191_v9  ;;  %v2249_v62 = vld [vmem:[%s2323_s3] ss:$0 sm:$0xff] }
 0x1fe   :  { %v1030_v4 = vmul.f32 %v1014_v0, %v2193_v21  ;;  %v1017_v10 = vmul.f32 %v1014_v0, %v2158_v61  ;;  %v1018_v20 = vmul.f32 %v1014_v0, %v2161_v2  ;;  %v1019_v31 = vmul.f32 %v1014_v0, %v2164_v3 }
 0x1ff   :  { %v1035_v42 = vmul.f32 %v1459_v12, %v1015_v58  ;;  %v1036_v51 = vmul.f32 %v1459_v12, %v1016_v32  ;;  %v1040_v14 = vmul.f32 %v1459_v12, %v1020_v43  ;;  %v1041_v15 = vmul.f32 %v1459_v12, %v1021_v57 }
 0x200   :  { %v1037_v5 = vmul.f32 %v1459_v12, %v1017_v10  ;;  %v1038_v9 = vmul.f32 %v1459_v12, %v1018_v20  ;;  %v1039_v21 = vmul.f32 %v1459_v12, %v1019_v31  ;;  %v1042_v16 = vmul.f32 %v1459_v12, %v1022_v54 }
 0x201   :  { %v1043_v17 = vmul.f32 %v1459_v12, %v1023_v6  ;;  %v1055_v61 = vadd.f32 %v2249_v62, %v1035_v42  ;;  %v1056_v2 = vadd.f32 %v2249_v62, %v1036_v51  ;;  %v1044_v18 = vmul.f32 %v1459_v12, %v1024_v63 }
 0x202   :  { %v1045_v3 = vmul.f32 %v1459_v12, %v1025_v7  ;;  %v1046_v26 = vmul.f32 %v1459_v12, %v1026_v8  ;;  %v1057_v19 = vadd.f32 %v2249_v62, %v1037_v5  ;;  %v1047_v13 = vmul.f32 %v1459_v12, %v1027_v11 }
 0x203   :  { %v1048_v22 = vmul.f32 %v1459_v12, %v1028_v59  ;;  %v1058_v23 = vadd.f32 %v2249_v62, %v1038_v9  ;;  %v1059_v25 = vadd.f32 %v2249_v62, %v1039_v21  ;;  %v1049_v28 = vmul.f32 %v1459_v12, %v1029_v60 }
 0x204   :  { %v1050_v24 = vmul.f32 %v1459_v12, %v1030_v4  ;;  %v1060_v27 = vadd.f32 %v2249_v62, %v1040_v14  ;;  %v1061_v29 = vadd.f32 %v2249_v62, %v1041_v15  ;;  %v1062_v39 = vadd.f32 %v2249_v62, %v1042_v16 }
 0x205   :  { %v1063_v30 = vadd.f32 %v2249_v62, %v1043_v17  ;;  %vm1071_vm4 = vcmp.gt.f32.partialorder %v1055_v61, 0.0  ;;  %vm1072_vm5 = vcmp.gt.f32.partialorder %v1056_v2, 0.0  ;;  %v1064_v33 = vadd.f32 %v2249_v62, %v1044_v18 }
 0x206   :  { %v1087_v35 = vmul.f32 0.2, %v1055_v61  ;;  %v1088_v34 = vmul.f32 0.2, %v1056_v2  ;;  %v1089_v40 = vmul.f32 0.2, %v1057_v19  ;;  %v1065_v36 = vadd.f32 %v2249_v62, %v1045_v3 }
 0x207   :  { %vm1073_vm6 = vcmp.gt.f32.partialorder %v1057_v19, 0.0  ;;  %v1090_v37 = vmul.f32 0.2, %v1058_v23  ;;  %v1091_v38 = vmul.f32 0.2, %v1059_v25  ;;  %vm1074_vm7 = vcmp.gt.f32.partialorder %v1058_v23, 0.0 }
 0x208   :  { %vm1075_vm8 = vcmp.gt.f32.partialorder %v1059_v25, 0.0  ;;  %v1092_v53 = vmul.f32 0.2, %v1060_v27  ;;  %v1103_v41 = vsel %vm1071_vm4, %v1055_v61, %v1087_v35  ;;  %v1066_v44 = vadd.f32 %v2249_v62, %v1046_v26 }
 0x209   :  { %vm1076_vm9 = vcmp.gt.f32.partialorder %v1060_v27, 0.0  ;;  %v1093_v45 = vmul.f32 0.2, %v1061_v29  ;;  %v1104_v46 = vsel %vm1072_vm5, %v1056_v2, %v1088_v34  ;;  %1119 = vst [vmem:[%s2324_s4] sm:$0xff] %v1103_v41  ;;  %v1067_v52 = vadd.f32 %v2249_v62, %v1047_v13 }
 0x20a   :  { %vm1077_vm10 = vcmp.gt.f32.partialorder %v1061_v29, 0.0  ;;  %v1094_v47 = vmul.f32 0.2, %v1062_v39  ;;  %v1105_v48 = vsel %vm1073_vm6, %v1057_v19, %v1089_v40  ;;  %vm1078_vm11 = vcmp.gt.f32.partialorder %v1062_v39, 0.0  ;;  %1120 = vst [vmem:[%s2324_s4 + $0x8] sm:$0xff] %v1104_v46 }
 0x20b   :  { %v1095_v49 = vmul.f32 0.2, %v1063_v30  ;;  %v1106_v50 = vsel %vm1074_vm7, %v1058_v23, %v1090_v37  ;;  %v1107_v55 = vsel %vm1075_vm8, %v1059_v25, %v1091_v38  ;;  %v1068_v56 = vadd.f32 %v2249_v62, %v1048_v22  ;;  %1121 = vst [vmem:[%s2324_s4 + $0x10] sm:$0xff] %v1105_v48 }
 0x20c   :  { %vm1079_vm12 = vcmp.gt.f32.partialorder %v1063_v30, 0.0  ;;  %v1096_v1 = vmul.f32 0.2, %v1064_v33  ;;  %v1108_v0 = vsel %vm1076_vm9, %v1060_v27, %v1092_v53  ;;  %v1069_v58 = vadd.f32 %v2249_v62, %v1049_v28  ;;  %1122 = vst [vmem:[%s2324_s4 + $0x18] sm:$0xff] %v1106_v50 }
 0x20d   :  { %vm1080_vm13 = vcmp.gt.f32.partialorder %v1064_v33, 0.0  ;;  %v1097_v32 = vmul.f32 0.2, %v1065_v36  ;;  %v1109_v43 = vsel %vm1077_vm10, %v1061_v29, %v1093_v45  ;;  %v1070_v57 = vadd.f32 %v2249_v62, %v1050_v24  ;;  %1123 = vst [vmem:[%s2324_s4 + $0x20] sm:$0xff] %v1107_v55 }
 0x20e   :  { %vm1081_vm14 = vcmp.gt.f32.partialorder %v1065_v36, 0.0  ;;  %v1098_v54 = vmul.f32 0.2, %v1066_v44  ;;  %v1110_v6 = vsel %vm1078_vm11, %v1062_v39, %v1094_v47  ;;  %vm1082_vm15 = vcmp.gt.f32.partialorder %v1066_v44, 0.0  ;;  %1124 = vst [vmem:[%s2324_s4 + $0x28] sm:$0xff] %v1108_v0 }
 0x20f   :  { %v1099_v63 = vmul.f32 0.2, %v1067_v52  ;;  %v1111_v7 = vsel %vm1079_vm12, %v1063_v30, %v1095_v49  ;;  %vm1083_vm0 = vcmp.gt.f32.partialorder %v1067_v52, 0.0  ;;  %v1100_v8 = vmul.f32 0.2, %v1068_v56  ;;  %1125 = vst [vmem:[%s2324_s4 + $0x30] sm:$0xff] %v1109_v43 }
 0x210   :  { %v1112_v11 = vsel %vm1080_vm13, %v1064_v33, %v1096_v1  ;;  %vm1084_vm1 = vcmp.gt.f32.partialorder %v1068_v56, 0.0  ;;  %v1101_v59 = vmul.f32 0.2, %v1069_v58  ;;  %v1113_v60 = vsel %vm1081_vm14, %v1065_v36, %v1097_v32  ;;  %1126 = vst [vmem:[%s2324_s4 + $0x38] sm:$0xff] %v1110_v6 }
 0x211   :  { %vm1085_vm2 = vcmp.gt.f32.partialorder %v1069_v58, 0.0  ;;  %v1102_v4 = vmul.f32 0.2, %v1070_v57  ;;  %v1114_v12 = vsel %vm1082_vm15, %v1066_v44, %v1098_v54  ;;  %1127 = vst [vmem:[%s2324_s4 + $0x40] sm:$0xff] %v1111_v7  ;;  %vm1086_vm3 = vcmp.gt.f32.partialorder %v1070_v57, 0.0 }
 0x212   :  { %v1115_v10 = vsel %vm1083_vm0, %v1067_v52, %v1099_v63  ;;  %1128 = vst [vmem:[%s2324_s4 + $0x48] sm:$0xff] %v1112_v11  ;;  %v1116_v20 = vsel %vm1084_vm1, %v1068_v56, %v1100_v8  ;;  %v1117_v31 = vsel %vm1085_vm2, %v1069_v58, %v1101_v59 }
 0x213   :  { %1129 = vst [vmem:[%s2324_s4 + $0x50] sm:$0xff] %v1113_v60  ;;  %v1118_v42 = vsel %vm1086_vm3, %v1070_v57, %v1102_v4 }
 0x214   :  { %1130 = vst [vmem:[%s2324_s4 + $0x58] sm:$0xff] %v1114_v12 }
 0x215   :  { %1131 = vst [vmem:[%s2324_s4 + $0x60] sm:$0xff] %v1115_v10 }
 0x216   :  { %1132 = vst [vmem:[%s2324_s4 + $0x68] sm:$0xff] %v1116_v20 }
 0x217   :  { %1133 = vst [vmem:[%s2324_s4 + $0x70] sm:$0xff] %v1117_v31 }
 0x218   :  { %1134 = vst [vmem:[%s2324_s4 + $0x78] sm:$0xff] %v1118_v42 }

// kernel: forward.6
= control target key start
LH: loop header
LB: loop body
LE: loop exit
PB: predicated region body
PF: predicated region fallthrough
CT: control target
= control target key end

     0   :  { %s4461_s1 = inlined_call_operand.vmem [shape: bf16[2048,256], index: 1, kind: input, shape index: {}]   ;;  %s4462_s0 = inlined_call_operand.vmem [shape: f32[32,2048], index: 0, kind: input, shape index: {}]   ;;  %s4463_s2 = inlined_call_operand.vmem [shape: f32[1,256], index: 2, kind: input, shape index: {}]   ;;  %s4464_s3 = inlined_call_operand.vmem [shape: f32[1,256], index: 3, kind: input, shape index: {}]   ;;  %s4465_s4 = inlined_call_operand.vmem [shape: f32[32,256], index: 4, kind: output, shape index: {}]  }
   0x1   :  { %v96_v0 = vld [vmem:[%s4461_s1 + $0x78] sm:$0xff]  ;;  %v95_v2 = vld [vmem:[%s4461_s1 + $0x70] sm:$0xff]  ;;  %v94_v10 = vld [vmem:[%s4461_s1 + $0x68] sm:$0xff] }
   0x2   :  { %v128_v1 = vld [vmem:[%s4461_s1 + $0x178] sm:$0xff]  ;;  %v367_v3 = vunpack.c.l.bf16 %v96_v0  ;;  %v127_v6 = vld [vmem:[%s4461_s1 + $0x170] sm:$0xff]  ;;  %v365_v8 = vunpack.c.l.bf16 %v95_v2  ;;  %v126_v12 = vld [vmem:[%s4461_s1 + $0x168] sm:$0xff]  ;;  %v363_v18 = vunpack.c.l.bf16 %v94_v10 }
   0x3   :  { %v431_v4 = vunpack.c.l.bf16 %v128_v1  ;;  %v112_v5 = vld [vmem:[%s4461_s1 + $0xf8] sm:$0xff]  ;;  %v111_v11 = vld [vmem:[%s4461_s1 + $0xf0] sm:$0xff]  ;;  %v429_v13 = vunpack.c.l.bf16 %v127_v6  ;;  %v93_v16 = vld [vmem:[%s4461_s1 + $0x60] sm:$0xff]  ;;  %v427_v22 = vunpack.c.l.bf16 %v126_v12 }
   0x4   :  { %v144_v7 = vld [vmem:[%s4461_s1 + $0x1f8] sm:$0xff]  ;;  %v399_v9 = vunpack.c.l.bf16 %v112_v5  ;;  %849 = vmatpush.msra.mxu0 %v367_v3  ;;  %v143_v15 = vld [vmem:[%s4461_s1 + $0x1f0] sm:$0xff]  ;;  %v110_v17 = vld [vmem:[%s4461_s1 + $0xe8] sm:$0xff]  ;;  %v397_v19 = vunpack.c.l.bf16 %v111_v11  ;;  %v361_v26 = vunpack.c.l.bf16 %v93_v16 }
   0x5   :  { %907 = vmatpush.msra.mxu2 %v431_v4  ;;  %v463_v14 = vunpack.c.l.bf16 %v144_v7  ;;  %v125_v20 = vld [vmem:[%s4461_s1 + $0x160] sm:$0xff]  ;;  %v142_v21 = vld [vmem:[%s4461_s1 + $0x1e8] sm:$0xff]  ;;  %v461_v23 = vunpack.c.l.bf16 %v143_v15  ;;  %v92_v24 = vld [vmem:[%s4461_s1 + $0x58] sm:$0xff]  ;;  %v395_v27 = vunpack.c.l.bf16 %v110_v17 }
   0x6   :  { %878 = vmatpush.msra.mxu1 %v399_v9  ;;  %850 = vmatpush.msra.mxu0 %v365_v8  ;;  %v109_v25 = vld [vmem:[%s4461_s1 + $0xe0] sm:$0xff]  ;;  %v124_v28 = vld [vmem:[%s4461_s1 + $0x158] sm:$0xff]  ;;  %v425_v30 = vunpack.c.l.bf16 %v125_v20  ;;  %v459_v31 = vunpack.c.l.bf16 %v142_v21  ;;  %v91_v32 = vld [vmem:[%s4461_s1 + $0x50] sm:$0xff]  ;;  %v359_v34 = vunpack.c.l.bf16 %v92_v24 }
   0x7   :  { %908 = vmatpush.msra.mxu2 %v429_v13  ;;  %936 = vmatpush.msra.mxu3 %v463_v14  ;;  %v141_v29 = vld [vmem:[%s4461_s1 + $0x1e0] sm:$0xff]  ;;  %v108_v33 = vld [vmem:[%s4461_s1 + $0xd8] sm:$0xff]  ;;  %v393_v35 = vunpack.c.l.bf16 %v109_v25  ;;  %v123_v36 = vld [vmem:[%s4461_s1 + $0x150] sm:$0xff]  ;;  %v423_v38 = vunpack.c.l.bf16 %v124_v28  ;;  %v357_v42 = vunpack.c.l.bf16 %v91_v32 }
   0x8   :  { %879 = vmatpush.msra.mxu1 %v397_v19  ;;  %851 = vmatpush.msra.mxu0 %v363_v18  ;;  %v140_v37 = vld [vmem:[%s4461_s1 + $0x1d8] sm:$0xff]  ;;  %v457_v39 = vunpack.c.l.bf16 %v141_v29  ;;  %v90_v40 = vld [vmem:[%s4461_s1 + $0x48] sm:$0xff]  ;;  %v107_v41 = vld [vmem:[%s4461_s1 + $0xd0] sm:$0xff]  ;;  %v391_v43 = vunpack.c.l.bf16 %v108_v33  ;;  %v421_v46 = vunpack.c.l.bf16 %v123_v36 }
   0x9   :  { %909 = vmatpush.msra.mxu2 %v427_v22  ;;  %937 = vmatpush.msra.mxu3 %v461_v23  ;;  %v122_v44 = vld [vmem:[%s4461_s1 + $0x148] sm:$0xff]  ;;  %v139_v45 = vld [vmem:[%s4461_s1 + $0x1d0] sm:$0xff]  ;;  %v455_v47 = vunpack.c.l.bf16 %v140_v37  ;;  %v89_v48 = vld [vmem:[%s4461_s1 + $0x40] sm:$0xff]  ;;  %v355_v50 = vunpack.c.l.bf16 %v90_v40  ;;  %v389_v51 = vunpack.c.l.bf16 %v107_v41 }
   0xa   :  { %880 = vmatpush.msra.mxu1 %v395_v27  ;;  %852 = vmatpush.msra.mxu0 %v361_v26  ;;  %v106_v49 = vld [vmem:[%s4461_s1 + $0xc8] sm:$0xff]  ;;  %v121_v52 = vld [vmem:[%s4461_s1 + $0x140] sm:$0xff]  ;;  %v419_v54 = vunpack.c.l.bf16 %v122_v44  ;;  %v453_v55 = vunpack.c.l.bf16 %v139_v45  ;;  %v88_v56 = vld [vmem:[%s4461_s1 + $0x38] sm:$0xff]  ;;  %v353_v58 = vunpack.c.l.bf16 %v89_v48 }
   0xb   :  { %910 = vmatpush.msra.mxu2 %v425_v30  ;;  %938 = vmatpush.msra.mxu3 %v459_v31  ;;  %v138_v53 = vld [vmem:[%s4461_s1 + $0x1c8] sm:$0xff]  ;;  %v105_v57 = vld [vmem:[%s4461_s1 + $0xc0] sm:$0xff]  ;;  %v387_v59 = vunpack.c.l.bf16 %v106_v49  ;;  %v120_v60 = vld [vmem:[%s4461_s1 + $0x138] sm:$0xff]  ;;  %v417_v62 = vunpack.c.l.bf16 %v121_v52  ;;  %v351_v2 = vunpack.c.l.bf16 %v88_v56 }
   0xc   :  { %881 = vmatpush.msra.mxu1 %v393_v35  ;;  %853 = vmatpush.msra.mxu0 %v359_v34  ;;  %v137_v61 = vld [vmem:[%s4461_s1 + $0x1c0] sm:$0xff]  ;;  %v451_v63 = vunpack.c.l.bf16 %v138_v53  ;;  %v87_v0 = vld [vmem:[%s4461_s1 + $0x30] sm:$0xff]  ;;  %v104_v1 = vld [vmem:[%s4461_s1 + $0xb8] sm:$0xff]  ;;  %v385_v3 = vunpack.c.l.bf16 %v105_v57  ;;  %v415_v6 = vunpack.c.l.bf16 %v120_v60 }
   0xd   :  { %911 = vmatpush.msra.mxu2 %v423_v38  ;;  %939 = vmatpush.msra.mxu3 %v457_v39  ;;  %v119_v4 = vld [vmem:[%s4461_s1 + $0x130] sm:$0xff]  ;;  %v136_v5 = vld [vmem:[%s4461_s1 + $0x1b8] sm:$0xff]  ;;  %v449_v7 = vunpack.c.l.bf16 %v137_v61  ;;  %v86_v8 = vld [vmem:[%s4461_s1 + $0x28] sm:$0xff]  ;;  %v349_v10 = vunpack.c.l.bf16 %v87_v0  ;;  %v383_v11 = vunpack.c.l.bf16 %v104_v1 }
   0xe   :  { %882 = vmatpush.msra.mxu1 %v391_v43  ;;  %854 = vmatpush.msra.mxu0 %v357_v42  ;;  %v103_v9 = vld [vmem:[%s4461_s1 + $0xb0] sm:$0xff]  ;;  %v118_v12 = vld [vmem:[%s4461_s1 + $0x128] sm:$0xff]  ;;  %v413_v14 = vunpack.c.l.bf16 %v119_v4  ;;  %v447_v15 = vunpack.c.l.bf16 %v136_v5  ;;  %v85_v16 = vld [vmem:[%s4461_s1 + $0x20] sm:$0xff]  ;;  %v347_v18 = vunpack.c.l.bf16 %v86_v8 }
   0xf   :  { %912 = vmatpush.msra.mxu2 %v421_v46  ;;  %940 = vmatpush.msra.mxu3 %v455_v47  ;;  %v135_v13 = vld [vmem:[%s4461_s1 + $0x1b0] sm:$0xff]  ;;  %v102_v17 = vld [vmem:[%s4461_s1 + $0xa8] sm:$0xff]  ;;  %v381_v19 = vunpack.c.l.bf16 %v103_v9  ;;  %v117_v20 = vld [vmem:[%s4461_s1 + $0x120] sm:$0xff]  ;;  %v411_v22 = vunpack.c.l.bf16 %v118_v12  ;;  %v345_v26 = vunpack.c.l.bf16 %v85_v16 }
  0x10   :  { %883 = vmatpush.msra.mxu1 %v389_v51  ;;  %855 = vmatpush.msra.mxu0 %v355_v50  ;;  %v134_v21 = vld [vmem:[%s4461_s1 + $0x1a8] sm:$0xff]  ;;  %v445_v23 = vunpack.c.l.bf16 %v135_v13  ;;  %v84_v24 = vld [vmem:[%s4461_s1 + $0x18] sm:$0xff]  ;;  %v101_v25 = vld [vmem:[%s4461_s1 + $0xa0] sm:$0xff]  ;;  %v379_v27 = vunpack.c.l.bf16 %v102_v17  ;;  %v409_v30 = vunpack.c.l.bf16 %v117_v20 }
  0x11   :  { %913 = vmatpush.msra.mxu2 %v419_v54  ;;  %941 = vmatpush.msra.mxu3 %v453_v55  ;;  %v116_v28 = vld [vmem:[%s4461_s1 + $0x118] sm:$0xff]  ;;  %v133_v29 = vld [vmem:[%s4461_s1 + $0x1a0] sm:$0xff]  ;;  %v443_v31 = vunpack.c.l.bf16 %v134_v21  ;;  %v83_v32 = vld [vmem:[%s4461_s1 + $0x10] sm:$0xff]  ;;  %v343_v34 = vunpack.c.l.bf16 %v84_v24  ;;  %v377_v35 = vunpack.c.l.bf16 %v101_v25 }
  0x12   :  { %884 = vmatpush.msra.mxu1 %v387_v59  ;;  %856 = vmatpush.msra.mxu0 %v353_v58  ;;  %v100_v33 = vld [vmem:[%s4461_s1 + $0x98] sm:$0xff]  ;;  %v115_v36 = vld [vmem:[%s4461_s1 + $0x110] sm:$0xff]  ;;  %v407_v38 = vunpack.c.l.bf16 %v116_v28  ;;  %v441_v39 = vunpack.c.l.bf16 %v133_v29  ;;  %v82_v40 = vld [vmem:[%s4461_s1 + $0x8] sm:$0xff]  ;;  %v341_v42 = vunpack.c.l.bf16 %v83_v32 }
  0x13   :  { %914 = vmatpush.msra.mxu2 %v417_v62  ;;  %942 = vmatpush.msra.mxu3 %v451_v63  ;;  %v132_v37 = vld [vmem:[%s4461_s1 + $0x198] sm:$0xff]  ;;  %v99_v41 = vld [vmem:[%s4461_s1 + $0x90] sm:$0xff]  ;;  %v375_v43 = vunpack.c.l.bf16 %v100_v33  ;;  %v114_v44 = vld [vmem:[%s4461_s1 + $0x108] sm:$0xff]  ;;  %v405_v46 = vunpack.c.l.bf16 %v115_v36  ;;  %v339_v50 = vunpack.c.l.bf16 %v82_v40 }
  0x14   :  { %885 = vmatpush.msra.mxu1 %v385_v3  ;;  %857 = vmatpush.msra.mxu0 %v351_v2  ;;  %v131_v45 = vld [vmem:[%s4461_s1 + $0x190] sm:$0xff]  ;;  %v439_v47 = vunpack.c.l.bf16 %v132_v37  ;;  %v81_v48 = vld [vmem:[%s4461_s1] sm:$0xff]  ;;  %v98_v49 = vld [vmem:[%s4461_s1 + $0x88] sm:$0xff]  ;;  %v373_v51 = vunpack.c.l.bf16 %v99_v41  ;;  %v403_v54 = vunpack.c.l.bf16 %v114_v44 }
  0x15   :  { %915 = vmatpush.msra.mxu2 %v415_v6  ;;  %943 = vmatpush.msra.mxu3 %v449_v7  ;;  %v113_v52 = vld [vmem:[%s4461_s1 + $0x100] sm:$0xff]  ;;  %v130_v53 = vld [vmem:[%s4461_s1 + $0x188] sm:$0xff]  ;;  %v437_v55 = vunpack.c.l.bf16 %v131_v45  ;;  %v192_v56 = vld [vmem:[%s4461_s1 + $0x378] sm:$0xff]  ;;  %v337_v58 = vunpack.c.l.bf16 %v81_v48  ;;  %v371_v59 = vunpack.c.l.bf16 %v98_v49 }
  0x16   :  { %886 = vmatpush.msra.mxu1 %v383_v11  ;;  %858 = vmatpush.msra.mxu0 %v349_v10  ;;  %v97_v57 = vld [vmem:[%s4461_s1 + $0x80] sm:$0xff]  ;;  %v160_v61 = vld [vmem:[%s4461_s1 + $0x278] sm:$0xff]  ;;  %v401_v62 = vunpack.c.l.bf16 %v113_v52  ;;  %v435_v63 = vunpack.c.l.bf16 %v130_v53  ;;  %v191_v1 = vld [vmem:[%s4461_s1 + $0x370] sm:$0xff]  ;;  %v559_v3 = vunpack.c.l.bf16 %v192_v56 }
  0x17   :  { %916 = vmatpush.msra.mxu2 %v413_v14  ;;  %944 = vmatpush.msra.mxu3 %v447_v15  ;;  %v129_v60 = vld [vmem:[%s4461_s1 + $0x180] sm:$0xff]  ;;  %v19_v2 = vld [vmem:[%s4462_s0 + $0x10] sm:$0xff]  ;;  %v369_v4 = vunpack.c.l.bf16 %v97_v57  ;;  %v208_v5 = vld [vmem:[%s4461_s1 + $0x3f8] sm:$0xff]  ;;  %v495_v8 = vunpack.c.l.bf16 %v160_v61  ;;  %v557_v12 = vunpack.c.l.bf16 %v191_v1 }
  0x18   :  { %887 = vmatpush.msra.mxu1 %v381_v19  ;;  %859 = vmatpush.msra.mxu0 %v347_v18  ;;  %v17_v0 = vld [vmem:[%s4462_s0] sm:$0xff]  ;;  %v159_v6 = vld [vmem:[%s4461_s1 + $0x270] sm:$0xff]  ;;  %v433_v7 = vunpack.c.l.bf16 %v129_v60  ;;  %v176_v9 = vld [vmem:[%s4461_s1 + $0x2f8] sm:$0xff]  ;;  %v591_v16 = vunpack.c.l.bf16 %v208_v5 }
  0x19   :  { %917 = vmatpush.msra.mxu2 %v411_v22  ;;  %945 = vmatpush.msra.mxu3 %v445_v23  ;;  %v190_v10 = vld [vmem:[%s4461_s1 + $0x368] sm:$0xff]  ;;  %v207_v13 = vld [vmem:[%s4461_s1 + $0x3f0] sm:$0xff]  ;;  %v20_v15 = vld [vmem:[%s4462_s0 + $0x18] sm:$0xff]  ;;  %v493_v17 = vunpack.c.l.bf16 %v159_v6  ;;  %v527_v20 = vunpack.c.l.bf16 %v176_v9 }
  0x1a   :  { %888 = vmatpush.msra.mxu1 %v379_v27  ;;  %860 = vmatpush.msra.mxu0 %v345_v26  ;;  %v18_v11 = vld [vmem:[%s4462_s0 + $0x8] sm:$0xff]  ;;  %v175_v18 = vld [vmem:[%s4461_s1 + $0x2f0] sm:$0xff]  ;;  %v189_v19 = vld [vmem:[%s4461_s1 + $0x360] sm:$0xff]  ;;  %v555_v21 = vunpack.c.l.bf16 %v190_v10  ;;  %v589_v24 = vunpack.c.l.bf16 %v207_v13 }
  0x1b   :  { %918 = vmatpush.msra.mxu2 %v409_v30  ;;  %946 = vmatpush.msra.mxu3 %v443_v31  ;;  %v158_v14 = vld [vmem:[%s4461_s1 + $0x268] sm:$0xff]  ;;  %v157_v23 = vld [vmem:[%s4461_s1 + $0x260] sm:$0xff]  ;;  %v525_v27 = vunpack.c.l.bf16 %v175_v18  ;;  %v553_v28 = vunpack.c.l.bf16 %v189_v19  ;;  %v188_v32 = vld [vmem:[%s4461_s1 + $0x358] sm:$0xff] }
  0x1c   :  { %889 = vmatpush.msra.mxu1 %v377_v35  ;;  %861 = vmatpush.msra.mxu0 %v343_v34  ;;  %v206_v22 = vld [vmem:[%s4461_s1 + $0x3e8] sm:$0xff]  ;;  %v491_v25 = vunpack.c.l.bf16 %v158_v14  ;;  %v205_v29 = vld [vmem:[%s4461_s1 + $0x3e0] sm:$0xff]  ;;  %v489_v31 = vunpack.c.l.bf16 %v157_v23  ;;  %v156_v33 = vld [vmem:[%s4461_s1 + $0x258] sm:$0xff]  ;;  %v551_v40 = vunpack.c.l.bf16 %v188_v32 }
  0x1d   :  { %919 = vmatpush.msra.mxu2 %v407_v38  ;;  %947 = vmatpush.msra.mxu3 %v441_v39  ;;  %v174_v26 = vld [vmem:[%s4461_s1 + $0x2e8] sm:$0xff]  ;;  %v587_v30 = vunpack.c.l.bf16 %v206_v22  ;;  %v173_v35 = vld [vmem:[%s4461_s1 + $0x2e0] sm:$0xff]  ;;  %v585_v37 = vunpack.c.l.bf16 %v205_v29  ;;  %v187_v38 = vld [vmem:[%s4461_s1 + $0x350] sm:$0xff]  ;;  %v487_v41 = vunpack.c.l.bf16 %v156_v33 }
  0x1e   :  { %890 = vmatpush.msra.mxu1 %v375_v43  ;;  %862 = vmatpush.msra.mxu0 %v341_v42  ;;  %v523_v34 = vunpack.c.l.bf16 %v174_v26  ;;  %v33_v36 = vld [vmem:[%s4462_s0 + $0x80] sm:$0xff]  ;;  %v35_v39 = vld [vmem:[%s4462_s0 + $0x90] sm:$0xff]  ;;  %v204_v42 = vld [vmem:[%s4461_s1 + $0x3d8] sm:$0xff]  ;;  %v521_v44 = vunpack.c.l.bf16 %v173_v35  ;;  %v549_v48 = vunpack.c.l.bf16 %v187_v38 }
  0x1f   :  { %920 = vmatpush.msra.mxu2 %v405_v46  ;;  %948 = vmatpush.msra.mxu3 %v439_v47  ;;  %v155_v43 = vld [vmem:[%s4461_s1 + $0x250] sm:$0xff]  ;;  %v172_v45 = vld [vmem:[%s4461_s1 + $0x2d8] sm:$0xff]  ;;  %v186_v46 = vld [vmem:[%s4461_s1 + $0x348] sm:$0xff]  ;;  %v583_v52 = vunpack.c.l.bf16 %v204_v42 }
  0x20   :  { %891 = vmatpush.msra.mxu1 %v373_v51  ;;  %863 = vmatpush.msra.mxu0 %v339_v50  ;;  %v36_v47 = vld [vmem:[%s4462_s0 + $0x98] sm:$0xff]  ;;  %v203_v49 = vld [vmem:[%s4461_s1 + $0x3d0] sm:$0xff]  ;;  %v154_v50 = vld [vmem:[%s4461_s1 + $0x248] sm:$0xff]  ;;  %v485_v53 = vunpack.c.l.bf16 %v155_v43  ;;  %v519_v56 = vunpack.c.l.bf16 %v172_v45  ;;  %v547_v57 = vunpack.c.l.bf16 %v186_v46 }
  0x21   :  { %921 = vmatpush.msra.mxu2 %v403_v54  ;;  %949 = vmatpush.msra.mxu3 %v437_v55  ;;  %v34_v51 = vld [vmem:[%s4462_s0 + $0x88] sm:$0xff]  ;;  %v171_v54 = vld [vmem:[%s4461_s1 + $0x2d0] sm:$0xff]  ;;  %v185_v55 = vld [vmem:[%s4461_s1 + $0x340] sm:$0xff]  ;;  %v581_v60 = vunpack.c.l.bf16 %v203_v49  ;;  %v483_v61 = vunpack.c.l.bf16 %v154_v50 }
  0x22   :  { %892 = vmatpush.msra.mxu1 %v371_v59  ;;  %864 = vmatpush.msra.mxu0 %v337_v58  ;;  %v202_v58 = vld [vmem:[%s4461_s1 + $0x3c8] sm:$0xff]  ;;  %v153_v59 = vld [vmem:[%s4461_s1 + $0x240] sm:$0xff]  ;;  %v152_v5 = vld [vmem:[%s4461_s1 + $0x238] sm:$0xff] }
  0x23   :  { %922 = vmatpush.msra.mxu2 %v401_v62  ;;  %950 = vmatpush.msra.mxu3 %v435_v63  ;;  %v170_v62 = vld [vmem:[%s4461_s1 + $0x2c8] sm:$0xff]  ;;  %v517_v63 = vunpack.c.l.bf16 %v171_v54  ;;  %v201_v1 = vld [vmem:[%s4461_s1 + $0x3c0] sm:$0xff]  ;;  %v183_v10 = vld [vmem:[%s4461_s1 + $0x330] sm:$0xff]  ;;  %v479_v13 = vunpack.c.l.bf16 %v152_v5 }
  0x24   :  { %865 = vmatmul.f32.vlgmr.msra.gmra.mxu0 %v17_v0  ;;  %923 = vmatmul.f32.vlgmr.msra.gmra.mxu2 %v19_v2  ;;  %v545_v0 = vunpack.c.l.bf16 %v185_v55  ;;  %v579_v2 = vunpack.c.l.bf16 %v202_v58  ;;  %v515_v6 = vunpack.c.l.bf16 %v170_v62  ;;  %v577_v9 = vunpack.c.l.bf16 %v201_v1  ;;  %v200_v14 = vld [vmem:[%s4461_s1 + $0x3b8] sm:$0xff]  ;;  %v182_v18 = vld [vmem:[%s4461_s1 + $0x328] sm:$0xff]  ;;  %v167_v26 = vld [vmem:[%s4461_s1 + $0x2b0] sm:$0xff] }
  0x25   :  { %893 = vmatpush.msra.mxu1 %v369_v4  ;;  %1023 = vmatpush.msrb.mxu2 %v559_v3  ;;  %v481_v3 = vunpack.c.l.bf16 %v153_v59  ;;  %v184_v4 = vld [vmem:[%s4461_s1 + $0x338] sm:$0xff]  ;;  %v150_v22 = vld [vmem:[%s4461_s1 + $0x228] sm:$0xff]  ;;  %v539_v29 = vunpack.c.l.bf16 %v182_v18  ;;  %v509_v35 = vunpack.c.l.bf16 %v167_v26  ;;  %v165_v43 = vld [vmem:[%s4461_s1 + $0x2a0] sm:$0xff] }
  0x26   :  { %951 = vmatpush.msra.mxu3 %v433_v7  ;;  %965 = vmatpush.msrb.mxu0 %v495_v8  ;;  %v169_v7 = vld [vmem:[%s4461_s1 + $0x2c0] sm:$0xff]  ;;  %v52_v19 = vld [vmem:[%s4462_s0 + $0x118] sm:$0xff]  ;;  %v50_v23 = vld [vmem:[%s4462_s0 + $0x108] sm:$0xff]  ;;  %v475_v33 = vunpack.c.l.bf16 %v150_v22 }
  0x27   :  { %894 = vmatmul.f32.vlgmr.msra.gmra.mxu1 %v18_v11  ;;  %952 = vmatmul.f32.vlgmr.msra.gmra.mxu3 %v20_v15  ;;  %v49_v8 = vld [vmem:[%s4462_s0 + $0x100] sm:$0xff]  ;;  %v51_v11 = vld [vmem:[%s4462_s0 + $0x110] sm:$0xff]  ;;  %v196_v50 = vld [vmem:[%s4461_s1 + $0x398] sm:$0xff] }
  0x28   :  { %1024 = vmatpush.msrb.mxu2 %v557_v12  ;;  %1052 = vmatpush.msrb.mxu3 %v591_v16  ;;  %v543_v12 = vunpack.c.l.bf16 %v184_v4  ;;  %v151_v15 = vld [vmem:[%s4461_s1 + $0x230] sm:$0xff]  ;;  %v513_v16 = vunpack.c.l.bf16 %v169_v7  ;;  %v178_v54 = vld [vmem:[%s4461_s1 + $0x308] sm:$0xff]  ;;  %v68_v55 = vld [vmem:[%s4462_s0 + $0x198] sm:$0xff] }
  0x29   :  { %966 = vmatpush.msrb.mxu0 %v493_v17  ;;  %994 = vmatpush.msrb.mxu1 %v527_v20  ;;  %v168_v17 = vld [vmem:[%s4461_s1 + $0x2b8] sm:$0xff]  ;;  %v541_v20 = vunpack.c.l.bf16 %v183_v10  ;;  %v179_v46 = vld [vmem:[%s4461_s1 + $0x310] sm:$0xff]  ;;  %v146_v58 = vld [vmem:[%s4461_s1 + $0x208] sm:$0xff]  ;;  %v531_v1 = vunpack.c.l.bf16 %v178_v54 }
  0x2a   :  { %1025 = vmatpush.msrb.mxu2 %v555_v21  ;;  %1053 = vmatpush.msrb.mxu3 %v589_v24  ;;  %v199_v21 = vld [vmem:[%s4461_s1 + $0x3b0] sm:$0xff]  ;;  %v575_v24 = vunpack.c.l.bf16 %v200_v14  ;;  %v66_v59 = vld [vmem:[%s4462_s0 + $0x188] sm:$0xff]  ;;  %v467_v5 = vunpack.c.l.bf16 %v146_v58  ;;  %v272_v22 = vld [vmem:[%s4461_s1 + $0x5f8] sm:$0xff] }
  0x2b   :  { %967 = vmatpush.msrb.mxu0 %v491_v25  ;;  %995 = vmatpush.msrb.mxu1 %v525_v27  ;;  %v477_v25 = vunpack.c.l.bf16 %v151_v15  ;;  %v181_v27 = vld [vmem:[%s4461_s1 + $0x320] sm:$0xff]  ;;  %v573_v32 = vunpack.c.l.bf16 %v199_v21  ;;  %v163_v62 = vld [vmem:[%s4461_s1 + $0x290] sm:$0xff]  ;;  %v224_v15 = vld [vmem:[%s4461_s1 + $0x478] sm:$0xff] }
  0x2c   :  { %1026 = vmatpush.msrb.mxu2 %v553_v28  ;;  %1054 = vmatpush.msrb.mxu3 %v587_v30  ;;  %v511_v28 = vunpack.c.l.bf16 %v168_v17  ;;  %v198_v30 = vld [vmem:[%s4461_s1 + $0x3a8] sm:$0xff]  ;;  %v501_v7 = vunpack.c.l.bf16 %v163_v62  ;;  %v255_v18 = vld [vmem:[%s4461_s1 + $0x570] sm:$0xff]  ;;  %v268_v58 = vld [vmem:[%s4461_s1 + $0x5d8] sm:$0xff] }
  0x2d   :  { %968 = vmatpush.msrb.mxu0 %v489_v31  ;;  %996 = vmatpush.msrb.mxu1 %v523_v34  ;;  %v149_v31 = vld [vmem:[%s4461_s1 + $0x220] sm:$0xff]  ;;  %v166_v34 = vld [vmem:[%s4461_s1 + $0x2a8] sm:$0xff]  ;;  %v571_v38 = vunpack.c.l.bf16 %v198_v30  ;;  %v251_v54 = vld [vmem:[%s4461_s1 + $0x550] sm:$0xff] }
  0x2e   :  { %868 = vmatmul.f32.gmra.mxu0 %v33_v36  ;;  %926 = vmatmul.f32.gmra.mxu2 %v35_v39  ;;  %v537_v36 = vunpack.c.l.bf16 %v181_v27  ;;  %v473_v39 = vunpack.c.l.bf16 %v149_v31  ;;  %v507_v42 = vunpack.c.l.bf16 %v166_v34  ;;  %v254_v26 = vld [vmem:[%s4461_s1 + $0x568] sm:$0xff]  ;;  %v24_v31 = vld [vmem:[%s4462_s0 + $0x38] sm:$0xff]  ;;  %v239_v34 = vld [vmem:[%s4461_s1 + $0x4f0] sm:$0xff] }
  0x2f   :  { %1055 = vmatpush.msrb.mxu3 %v585_v37  ;;  %1027 = vmatpush.msrb.mxu2 %v551_v40  ;;  %v197_v37 = vld [vmem:[%s4461_s1 + $0x3a0] sm:$0xff]  ;;  %v180_v40 = vld [vmem:[%s4461_s1 + $0x318] sm:$0xff]  ;;  %v22_v27 = vld [vmem:[%s4462_s0 + $0x28] sm:$0xff] }
  0x30   :  { %969 = vmatpush.msrb.mxu0 %v487_v41  ;;  %997 = vmatpush.msrb.mxu1 %v521_v44  ;;  %v148_v41 = vld [vmem:[%s4461_s1 + $0x218] sm:$0xff]  ;;  %v65_v44 = vld [vmem:[%s4462_s0 + $0x180] sm:$0xff]  ;;  %v569_v45 = vunpack.c.l.bf16 %v197_v37  ;;  %v222_v30 = vld [vmem:[%s4461_s1 + $0x468] sm:$0xff]  ;;  %v683_v37 = vunpack.c.l.bf16 %v254_v26 }
  0x31   :  { %955 = vmatmul.f32.gmra.mxu3 %v36_v47  ;;  %897 = vmatmul.f32.gmra.mxu1 %v34_v51  ;;  %v67_v47 = vld [vmem:[%s4462_s0 + $0x190] sm:$0xff]  ;;  %v471_v49 = vunpack.c.l.bf16 %v148_v41  ;;  %v619_v41 = vunpack.c.l.bf16 %v222_v30  ;;  %v250_v62 = vld [vmem:[%s4461_s1 + $0x548] sm:$0xff]  ;;  %v264_v30 = vld [vmem:[%s4461_s1 + $0x5b8] sm:$0xff] }
  0x32   :  { %1028 = vmatpush.msrb.mxu2 %v549_v48  ;;  %1056 = vmatpush.msrb.mxu3 %v583_v52  ;;  %v535_v48 = vunpack.c.l.bf16 %v180_v40  ;;  %v147_v51 = vld [vmem:[%s4461_s1 + $0x210] sm:$0xff]  ;;  %v505_v52 = vunpack.c.l.bf16 %v165_v43  ;;  %v653_v43 = vunpack.c.l.bf16 %v239_v34  ;;  %v246_v34 = vld [vmem:[%s4461_s1 + $0x528] sm:$0xff] }
  0x33   :  { %970 = vmatpush.msrb.mxu0 %v485_v53  ;;  %998 = vmatpush.msrb.mxu1 %v519_v56  ;;  %v164_v53 = vld [vmem:[%s4461_s1 + $0x298] sm:$0xff]  ;;  %v533_v56 = vunpack.c.l.bf16 %v179_v46  ;;  %v247_v26 = vld [vmem:[%s4461_s1 + $0x530] sm:$0xff] }
  0x34   :  { %1029 = vmatpush.msrb.mxu2 %v547_v57  ;;  %1057 = vmatpush.msrb.mxu3 %v581_v60  ;;  %v195_v57 = vld [vmem:[%s4461_s1 + $0x390] sm:$0xff]  ;;  %v567_v60 = vunpack.c.l.bf16 %v196_v50 }
  0x35   :  { %971 = vmatpush.msrb.mxu0 %v483_v61  ;;  %999 = vmatpush.msrb.mxu1 %v517_v63  ;;  %v469_v61 = vunpack.c.l.bf16 %v147_v51  ;;  %v177_v63 = vld [vmem:[%s4461_s1 + $0x300] sm:$0xff]  ;;  %v565_v4 = vunpack.c.l.bf16 %v195_v57 }
  0x36   :  { %1030 = vmatpush.msrb.mxu2 %v545_v0  ;;  %1058 = vmatpush.msrb.mxu3 %v579_v2  ;;  %v503_v0 = vunpack.c.l.bf16 %v164_v53  ;;  %v194_v2 = vld [vmem:[%s4461_s1 + $0x388] sm:$0xff]  ;;  %v237_v51 = vld [vmem:[%s4461_s1 + $0x4e0] sm:$0xff] }
  0x37   :  { %972 = vmatpush.msrb.mxu0 %v481_v3  ;;  %1000 = vmatpush.msrb.mxu1 %v515_v6  ;;  %v145_v3 = vld [vmem:[%s4461_s1 + $0x200] sm:$0xff]  ;;  %v162_v6 = vld [vmem:[%s4461_s1 + $0x288] sm:$0xff]  ;;  %v563_v10 = vunpack.c.l.bf16 %v194_v2 }
  0x38   :  { %871 = vmatmul.f32.gmra.mxu0 %v49_v8  ;;  %929 = vmatmul.f32.gmra.mxu2 %v51_v11  ;;  %v529_v8 = vunpack.c.l.bf16 %v177_v63  ;;  %v465_v11 = vunpack.c.l.bf16 %v145_v3  ;;  %v499_v14 = vunpack.c.l.bf16 %v162_v6  ;;  %v40_v63 = vld [vmem:[%s4462_s0 + $0xb8] sm:$0xff]  ;;  %v218_v2 = vld [vmem:[%s4461_s1 + $0x448] sm:$0xff]  ;;  %v235_v6 = vld [vmem:[%s4461_s1 + $0x4d0] sm:$0xff] }
  0x39   :  { %1059 = vmatpush.msrb.mxu3 %v577_v9  ;;  %1031 = vmatpush.msrb.mxu2 %v543_v12  ;;  %v193_v9 = vld [vmem:[%s4461_s1 + $0x380] sm:$0xff]  ;;  %v256_v12 = vld [vmem:[%s4461_s1 + $0x578] sm:$0xff]  ;;  %v38_v3 = vld [vmem:[%s4462_s0 + $0xa8] sm:$0xff] }
  0x3a   :  { %973 = vmatpush.msrb.mxu0 %v479_v13  ;;  %1001 = vmatpush.msrb.mxu1 %v513_v16  ;;  %v161_v13 = vld [vmem:[%s4461_s1 + $0x280] sm:$0xff]  ;;  %v561_v17 = vunpack.c.l.bf16 %v193_v9  ;;  %v675_v9 = vunpack.c.l.bf16 %v250_v62  ;;  %v243_v62 = vld [vmem:[%s4461_s1 + $0x510] sm:$0xff] }
  0x3b   :  { %958 = vmatmul.f32.gmra.mxu3 %v52_v19  ;;  %900 = vmatmul.f32.gmra.mxu1 %v50_v23  ;;  %v21_v16 = vld [vmem:[%s4462_s0 + $0x20] sm:$0xff]  ;;  %v23_v19 = vld [vmem:[%s4462_s0 + $0x30] sm:$0xff]  ;;  %v497_v21 = vunpack.c.l.bf16 %v161_v13  ;;  %v611_v13 = vunpack.c.l.bf16 %v218_v2  ;;  %v260_v2 = vld [vmem:[%s4461_s1 + $0x598] sm:$0xff] }
  0x3c   :  { %1032 = vmatpush.msrb.mxu2 %v541_v20  ;;  %1060 = vmatpush.msrb.mxu3 %v575_v24  ;;  %v687_v20 = vunpack.c.l.bf16 %v256_v12  ;;  %v223_v23 = vld [vmem:[%s4461_s1 + $0x470] sm:$0xff]  ;;  %v623_v24 = vunpack.c.l.bf16 %v224_v15  ;;  %v645_v15 = vunpack.c.l.bf16 %v235_v6  ;;  %v242_v6 = vld [vmem:[%s4461_s1 + $0x508] sm:$0xff] }
  0x3d   :  { %974 = vmatpush.msrb.mxu0 %v477_v25  ;;  %1002 = vmatpush.msrb.mxu1 %v511_v28  ;;  %v240_v25 = vld [vmem:[%s4461_s1 + $0x4f8] sm:$0xff]  ;;  %v685_v28 = vunpack.c.l.bf16 %v255_v18 }
  0x3e   :  { %1033 = vmatpush.msrb.mxu2 %v539_v29  ;;  %1061 = vmatpush.msrb.mxu3 %v573_v32  ;;  %v271_v29 = vld [vmem:[%s4461_s1 + $0x5f0] sm:$0xff]  ;;  %v719_v32 = vunpack.c.l.bf16 %v272_v22 }
  0x3f   :  { %975 = vmatpush.msrb.mxu0 %v475_v33  ;;  %1003 = vmatpush.msrb.mxu1 %v509_v35  ;;  %v621_v33 = vunpack.c.l.bf16 %v223_v23  ;;  %v253_v35 = vld [vmem:[%s4461_s1 + $0x560] sm:$0xff]  ;;  %v717_v40 = vunpack.c.l.bf16 %v271_v29 }
  0x40   :  { %1034 = vmatpush.msrb.mxu2 %v537_v36  ;;  %1062 = vmatpush.msrb.mxu3 %v571_v38  ;;  %v655_v36 = vunpack.c.l.bf16 %v240_v25  ;;  %v270_v38 = vld [vmem:[%s4461_s1 + $0x5e8] sm:$0xff]  ;;  %v233_v23 = vld [vmem:[%s4461_s1 + $0x4c0] sm:$0xff] }
  0x41   :  { %976 = vmatpush.msrb.mxu0 %v473_v39  ;;  %1004 = vmatpush.msrb.mxu1 %v507_v42  ;;  %v221_v39 = vld [vmem:[%s4461_s1 + $0x460] sm:$0xff]  ;;  %v238_v42 = vld [vmem:[%s4461_s1 + $0x4e8] sm:$0xff]  ;;  %v715_v46 = vunpack.c.l.bf16 %v270_v38 }
  0x42   :  { %874 = vmatmul.f32.gmra.mxu0 %v65_v44  ;;  %932 = vmatmul.f32.gmra.mxu2 %v67_v47  ;;  %v681_v44 = vunpack.c.l.bf16 %v253_v35  ;;  %v617_v47 = vunpack.c.l.bf16 %v221_v39  ;;  %v651_v50 = vunpack.c.l.bf16 %v238_v42  ;;  %v56_v35 = vld [vmem:[%s4462_s0 + $0x138] sm:$0xff]  ;;  %v214_v38 = vld [vmem:[%s4461_s1 + $0x428] sm:$0xff]  ;;  %v231_v42 = vld [vmem:[%s4461_s1 + $0x4b0] sm:$0xff] }
  0x43   :  { %1063 = vmatpush.msrb.mxu3 %v569_v45  ;;  %1035 = vmatpush.msrb.mxu2 %v535_v48  ;;  %v269_v45 = vld [vmem:[%s4461_s1 + $0x5e0] sm:$0xff]  ;;  %v252_v48 = vld [vmem:[%s4461_s1 + $0x558] sm:$0xff]  ;;  %v54_v39 = vld [vmem:[%s4462_s0 + $0x128] sm:$0xff] }
  0x44   :  { %977 = vmatpush.msrb.mxu0 %v471_v49  ;;  %1005 = vmatpush.msrb.mxu1 %v505_v52  ;;  %v220_v49 = vld [vmem:[%s4461_s1 + $0x458] sm:$0xff]  ;;  %v37_v52 = vld [vmem:[%s4462_s0 + $0xa0] sm:$0xff]  ;;  %v713_v53 = vunpack.c.l.bf16 %v269_v45  ;;  %v667_v45 = vunpack.c.l.bf16 %v246_v34  ;;  %v319_v34 = vld [vmem:[%s4461_s1 + $0x770] sm:$0xff] }
  0x45   :  { %961 = vmatmul.f32.gmra.mxu3 %v68_v55  ;;  %903 = vmatmul.f32.gmra.mxu1 %v66_v59  ;;  %v39_v55 = vld [vmem:[%s4462_s0 + $0xb0] sm:$0xff]  ;;  %v615_v57 = vunpack.c.l.bf16 %v220_v49  ;;  %v603_v49 = vunpack.c.l.bf16 %v214_v38  ;;  %v336_v38 = vld [vmem:[%s4461_s1 + $0x7f8] sm:$0xff] }
  0x46   :  { %1036 = vmatpush.msrb.mxu2 %v533_v56  ;;  %1064 = vmatpush.msrb.mxu3 %v567_v60  ;;  %v679_v56 = vunpack.c.l.bf16 %v252_v48  ;;  %v219_v59 = vld [vmem:[%s4461_s1 + $0x450] sm:$0xff]  ;;  %v649_v60 = vunpack.c.l.bf16 %v237_v51  ;;  %v637_v51 = vunpack.c.l.bf16 %v231_v42  ;;  %v318_v42 = vld [vmem:[%s4461_s1 + $0x768] sm:$0xff] }
  0x47   :  { %978 = vmatpush.msrb.mxu0 %v469_v61  ;;  %1006 = vmatpush.msrb.mxu1 %v503_v0  ;;  %v236_v61 = vld [vmem:[%s4461_s1 + $0x4d8] sm:$0xff]  ;;  %v677_v0 = vunpack.c.l.bf16 %v251_v54 }
  0x48   :  { %1037 = vmatpush.msrb.mxu2 %v531_v1  ;;  %1065 = vmatpush.msrb.mxu3 %v565_v4  ;;  %v267_v1 = vld [vmem:[%s4461_s1 + $0x5d0] sm:$0xff]  ;;  %v711_v4 = vunpack.c.l.bf16 %v268_v58 }
  0x49   :  { %979 = vmatpush.msrb.mxu0 %v467_v5  ;;  %1007 = vmatpush.msrb.mxu1 %v501_v7  ;;  %v613_v5 = vunpack.c.l.bf16 %v219_v59  ;;  %v249_v7 = vld [vmem:[%s4461_s1 + $0x540] sm:$0xff]  ;;  %v709_v12 = vunpack.c.l.bf16 %v267_v1 }
  0x4a   :  { %1038 = vmatpush.msrb.mxu2 %v529_v8  ;;  %1066 = vmatpush.msrb.mxu3 %v563_v10  ;;  %v647_v8 = vunpack.c.l.bf16 %v236_v61  ;;  %v266_v10 = vld [vmem:[%s4461_s1 + $0x5c8] sm:$0xff]  ;;  %v229_v59 = vld [vmem:[%s4461_s1 + $0x4a0] sm:$0xff] }
  0x4b   :  { %980 = vmatpush.msrb.mxu0 %v465_v11  ;;  %1008 = vmatpush.msrb.mxu1 %v499_v14  ;;  %v217_v11 = vld [vmem:[%s4461_s1 + $0x440] sm:$0xff]  ;;  %v234_v14 = vld [vmem:[%s4461_s1 + $0x4c8] sm:$0xff]  ;;  %v707_v18 = vunpack.c.l.bf16 %v266_v10 }
  0x4c   :  { %981 = vmatmul.f32.vlgmr.msrb.gmra.mxu0 %v21_v16  ;;  %1039 = vmatmul.f32.vlgmr.msrb.gmra.mxu2 %v23_v19  ;;  %v673_v16 = vunpack.c.l.bf16 %v249_v7  ;;  %v609_v19 = vunpack.c.l.bf16 %v217_v11  ;;  %v643_v22 = vunpack.c.l.bf16 %v234_v14  ;;  %v72_v7 = vld [vmem:[%s4462_s0 + $0x1b8] sm:$0xff]  ;;  %v210_v10 = vld [vmem:[%s4461_s1 + $0x408] sm:$0xff]  ;;  %v227_v14 = vld [vmem:[%s4461_s1 + $0x490] sm:$0xff] }
  0x4d   :  { %1067 = vmatpush.msrb.mxu3 %v561_v17  ;;  %1139 = vmatpush.msra.mxu2 %v687_v20  ;;  %v265_v17 = vld [vmem:[%s4461_s1 + $0x5c0] sm:$0xff]  ;;  %v248_v20 = vld [vmem:[%s4461_s1 + $0x538] sm:$0xff]  ;;  %v70_v11 = vld [vmem:[%s4462_s0 + $0x1a8] sm:$0xff] }
  0x4e   :  { %1009 = vmatpush.msrb.mxu1 %v497_v21  ;;  %1081 = vmatpush.msra.mxu0 %v623_v24  ;;  %v216_v21 = vld [vmem:[%s4461_s1 + $0x438] sm:$0xff]  ;;  %v53_v24 = vld [vmem:[%s4462_s0 + $0x120] sm:$0xff]  ;;  %v705_v25 = vunpack.c.l.bf16 %v265_v17  ;;  %v659_v17 = vunpack.c.l.bf16 %v242_v6  ;;  %v315_v6 = vld [vmem:[%s4461_s1 + $0x750] sm:$0xff] }
  0x4f   :  { %1010 = vmatmul.f32.vlgmr.msrb.gmra.mxu1 %v22_v27  ;;  %1068 = vmatmul.f32.vlgmr.msrb.gmra.mxu3 %v24_v31  ;;  %v55_v27 = vld [vmem:[%s4462_s0 + $0x130] sm:$0xff]  ;;  %v607_v29 = vunpack.c.l.bf16 %v216_v21  ;;  %v595_v21 = vunpack.c.l.bf16 %v210_v10  ;;  %v332_v10 = vld [vmem:[%s4461_s1 + $0x7d8] sm:$0xff] }
  0x50   :  { %1140 = vmatpush.msra.mxu2 %v685_v28  ;;  %1168 = vmatpush.msra.mxu3 %v719_v32  ;;  %v671_v28 = vunpack.c.l.bf16 %v248_v20  ;;  %v215_v31 = vld [vmem:[%s4461_s1 + $0x430] sm:$0xff]  ;;  %v641_v32 = vunpack.c.l.bf16 %v233_v23  ;;  %v629_v23 = vunpack.c.l.bf16 %v227_v14  ;;  %v314_v14 = vld [vmem:[%s4461_s1 + $0x748] sm:$0xff] }
  0x51   :  { %1082 = vmatpush.msra.mxu0 %v621_v33  ;;  %1110 = vmatpush.msra.mxu1 %v655_v36  ;;  %v232_v33 = vld [vmem:[%s4461_s1 + $0x4b8] sm:$0xff]  ;;  %v669_v36 = vunpack.c.l.bf16 %v247_v26 }
  0x52   :  { %1141 = vmatpush.msra.mxu2 %v683_v37  ;;  %1169 = vmatpush.msra.mxu3 %v717_v40  ;;  %v263_v37 = vld [vmem:[%s4461_s1 + $0x5b0] sm:$0xff]  ;;  %v703_v40 = vunpack.c.l.bf16 %v264_v30 }
  0x53   :  { %1083 = vmatpush.msra.mxu0 %v619_v41  ;;  %1111 = vmatpush.msra.mxu1 %v653_v43  ;;  %v605_v41 = vunpack.c.l.bf16 %v215_v31  ;;  %v245_v43 = vld [vmem:[%s4461_s1 + $0x520] sm:$0xff]  ;;  %v701_v48 = vunpack.c.l.bf16 %v263_v37  ;;  %v288_v31 = vld [vmem:[%s4461_s1 + $0x678] sm:$0xff] }
  0x54   :  { %1142 = vmatpush.msra.mxu2 %v681_v44  ;;  %1170 = vmatpush.msra.mxu3 %v715_v46  ;;  %v639_v44 = vunpack.c.l.bf16 %v232_v33  ;;  %v262_v46 = vld [vmem:[%s4461_s1 + $0x5a8] sm:$0xff] }
  0x55   :  { %1084 = vmatpush.msra.mxu0 %v617_v47  ;;  %1112 = vmatpush.msra.mxu1 %v651_v50  ;;  %v213_v47 = vld [vmem:[%s4461_s1 + $0x420] sm:$0xff]  ;;  %v230_v50 = vld [vmem:[%s4461_s1 + $0x4a8] sm:$0xff]  ;;  %v699_v54 = vunpack.c.l.bf16 %v262_v46 }
  0x56   :  { %984 = vmatmul.f32.gmra.mxu0 %v37_v52  ;;  %1042 = vmatmul.f32.gmra.mxu2 %v39_v55  ;;  %v665_v52 = vunpack.c.l.bf16 %v245_v43  ;;  %v601_v55 = vunpack.c.l.bf16 %v213_v47  ;;  %v635_v58 = vunpack.c.l.bf16 %v230_v50  ;;  %v26_v43 = vld [vmem:[%s4462_s0 + $0x48] sm:$0xff]  ;;  %v28_v47 = vld [vmem:[%s4462_s0 + $0x58] sm:$0xff]  ;;  %v303_v50 = vld [vmem:[%s4461_s1 + $0x6f0] sm:$0xff] }
  0x57   :  { %1171 = vmatpush.msra.mxu3 %v713_v53  ;;  %1143 = vmatpush.msra.mxu2 %v679_v56  ;;  %v261_v53 = vld [vmem:[%s4461_s1 + $0x5a0] sm:$0xff]  ;;  %v244_v56 = vld [vmem:[%s4461_s1 + $0x518] sm:$0xff]  ;;  %v286_v46 = vld [vmem:[%s4461_s1 + $0x668] sm:$0xff] }
  0x58   :  { %1085 = vmatpush.msra.mxu0 %v615_v57  ;;  %1113 = vmatpush.msra.mxu1 %v649_v60  ;;  %v212_v57 = vld [vmem:[%s4461_s1 + $0x418] sm:$0xff]  ;;  %v69_v60 = vld [vmem:[%s4462_s0 + $0x1a0] sm:$0xff]  ;;  %v697_v61 = vunpack.c.l.bf16 %v261_v53  ;;  %v811_v53 = vunpack.c.l.bf16 %v318_v42  ;;  %v311_v42 = vld [vmem:[%s4461_s1 + $0x730] sm:$0xff] }
  0x59   :  { %1071 = vmatmul.f32.gmra.mxu3 %v40_v63  ;;  %1013 = vmatmul.f32.gmra.mxu1 %v38_v3  ;;  %v71_v63 = vld [vmem:[%s4462_s0 + $0x1b0] sm:$0xff]  ;;  %v599_v1 = vunpack.c.l.bf16 %v212_v57  ;;  %v747_v57 = vunpack.c.l.bf16 %v286_v46  ;;  %v328_v46 = vld [vmem:[%s4461_s1 + $0x7b8] sm:$0xff] }
  0x5a   :  { %1144 = vmatpush.msra.mxu2 %v677_v0  ;;  %1172 = vmatpush.msra.mxu3 %v711_v4  ;;  %v663_v0 = vunpack.c.l.bf16 %v244_v56  ;;  %v211_v3 = vld [vmem:[%s4461_s1 + $0x410] sm:$0xff]  ;;  %v633_v4 = vunpack.c.l.bf16 %v229_v59  ;;  %v781_v59 = vunpack.c.l.bf16 %v303_v50  ;;  %v310_v50 = vld [vmem:[%s4461_s1 + $0x728] sm:$0xff] }
  0x5b   :  { %1086 = vmatpush.msra.mxu0 %v613_v5  ;;  %1114 = vmatpush.msra.mxu1 %v647_v8  ;;  %v228_v5 = vld [vmem:[%s4461_s1 + $0x498] sm:$0xff]  ;;  %v661_v8 = vunpack.c.l.bf16 %v243_v62 }
  0x5c   :  { %1145 = vmatpush.msra.mxu2 %v675_v9  ;;  %1173 = vmatpush.msra.mxu3 %v709_v12  ;;  %v259_v9 = vld [vmem:[%s4461_s1 + $0x590] sm:$0xff]  ;;  %v695_v12 = vunpack.c.l.bf16 %v260_v2 }
  0x5d   :  { %1087 = vmatpush.msra.mxu0 %v611_v13  ;;  %1115 = vmatpush.msra.mxu1 %v645_v15  ;;  %v597_v13 = vunpack.c.l.bf16 %v211_v3  ;;  %v241_v15 = vld [vmem:[%s4461_s1 + $0x500] sm:$0xff]  ;;  %v693_v20 = vunpack.c.l.bf16 %v259_v9 }
  0x5e   :  { %1146 = vmatpush.msra.mxu2 %v673_v16  ;;  %1174 = vmatpush.msra.mxu3 %v707_v18  ;;  %v631_v16 = vunpack.c.l.bf16 %v228_v5  ;;  %v258_v18 = vld [vmem:[%s4461_s1 + $0x588] sm:$0xff]  ;;  %v301_v3 = vld [vmem:[%s4461_s1 + $0x6e0] sm:$0xff] }
  0x5f   :  { %1088 = vmatpush.msra.mxu0 %v609_v19  ;;  %1116 = vmatpush.msra.mxu1 %v643_v22  ;;  %v209_v19 = vld [vmem:[%s4461_s1 + $0x400] sm:$0xff]  ;;  %v226_v22 = vld [vmem:[%s4461_s1 + $0x488] sm:$0xff]  ;;  %v691_v26 = vunpack.c.l.bf16 %v258_v18 }
  0x60   :  { %987 = vmatmul.f32.gmra.mxu0 %v53_v24  ;;  %1045 = vmatmul.f32.gmra.mxu2 %v55_v27  ;;  %v657_v24 = vunpack.c.l.bf16 %v241_v15  ;;  %v593_v27 = vunpack.c.l.bf16 %v209_v19  ;;  %v627_v30 = vunpack.c.l.bf16 %v226_v22  ;;  %v44_v15 = vld [vmem:[%s4462_s0 + $0xd8] sm:$0xff]  ;;  %v282_v18 = vld [vmem:[%s4461_s1 + $0x648] sm:$0xff]  ;;  %v299_v22 = vld [vmem:[%s4461_s1 + $0x6d0] sm:$0xff] }
  0x61   :  { %1175 = vmatpush.msra.mxu3 %v705_v25  ;;  %1147 = vmatpush.msra.mxu2 %v671_v28  ;;  %v257_v25 = vld [vmem:[%s4461_s1 + $0x580] sm:$0xff]  ;;  %v320_v28 = vld [vmem:[%s4461_s1 + $0x778] sm:$0xff]  ;;  %v42_v19 = vld [vmem:[%s4462_s0 + $0xc8] sm:$0xff] }
  0x62   :  { %1089 = vmatpush.msra.mxu0 %v607_v29  ;;  %1117 = vmatpush.msra.mxu1 %v641_v32  ;;  %v225_v29 = vld [vmem:[%s4461_s1 + $0x480] sm:$0xff]  ;;  %v689_v33 = vunpack.c.l.bf16 %v257_v25  ;;  %v803_v25 = vunpack.c.l.bf16 %v314_v14  ;;  %v307_v14 = vld [vmem:[%s4461_s1 + $0x710] sm:$0xff] }
  0x63   :  { %1074 = vmatmul.f32.gmra.mxu3 %v56_v35  ;;  %1016 = vmatmul.f32.gmra.mxu1 %v54_v39  ;;  %v25_v32 = vld [vmem:[%s4462_s0 + $0x40] sm:$0xff]  ;;  %v27_v35 = vld [vmem:[%s4462_s0 + $0x50] sm:$0xff]  ;;  %v625_v37 = vunpack.c.l.bf16 %v225_v29  ;;  %v739_v29 = vunpack.c.l.bf16 %v282_v18  ;;  %v324_v18 = vld [vmem:[%s4461_s1 + $0x798] sm:$0xff] }
  0x64   :  { %1148 = vmatpush.msra.mxu2 %v669_v36  ;;  %1176 = vmatpush.msra.mxu3 %v703_v40  ;;  %v815_v36 = vunpack.c.l.bf16 %v320_v28  ;;  %v287_v39 = vld [vmem:[%s4461_s1 + $0x670] sm:$0xff]  ;;  %v751_v40 = vunpack.c.l.bf16 %v288_v31  ;;  %v773_v31 = vunpack.c.l.bf16 %v299_v22  ;;  %v306_v22 = vld [vmem:[%s4461_s1 + $0x708] sm:$0xff] }
  0x65   :  { %1090 = vmatpush.msra.mxu0 %v605_v41  ;;  %1118 = vmatpush.msra.mxu1 %v639_v44  ;;  %v304_v41 = vld [vmem:[%s4461_s1 + $0x6f8] sm:$0xff]  ;;  %v813_v44 = vunpack.c.l.bf16 %v319_v34 }
  0x66   :  { %1149 = vmatpush.msra.mxu2 %v667_v45  ;;  %1177 = vmatpush.msra.mxu3 %v701_v48  ;;  %v335_v45 = vld [vmem:[%s4461_s1 + $0x7f0] sm:$0xff]  ;;  %v847_v48 = vunpack.c.l.bf16 %v336_v38 }
  0x67   :  { %1091 = vmatpush.msra.mxu0 %v603_v49  ;;  %1119 = vmatpush.msra.mxu1 %v637_v51  ;;  %v749_v49 = vunpack.c.l.bf16 %v287_v39  ;;  %v317_v51 = vld [vmem:[%s4461_s1 + $0x760] sm:$0xff]  ;;  %v845_v56 = vunpack.c.l.bf16 %v335_v45 }
  0x68   :  { %1150 = vmatpush.msra.mxu2 %v665_v52  ;;  %1178 = vmatpush.msra.mxu3 %v699_v54  ;;  %v783_v52 = vunpack.c.l.bf16 %v304_v41  ;;  %v334_v54 = vld [vmem:[%s4461_s1 + $0x7e8] sm:$0xff]  ;;  %v297_v39 = vld [vmem:[%s4461_s1 + $0x6c0] sm:$0xff] }
  0x69   :  { %1092 = vmatpush.msra.mxu0 %v601_v55  ;;  %1120 = vmatpush.msra.mxu1 %v635_v58  ;;  %v285_v55 = vld [vmem:[%s4461_s1 + $0x660] sm:$0xff]  ;;  %v302_v58 = vld [vmem:[%s4461_s1 + $0x6e8] sm:$0xff]  ;;  %v843_v62 = vunpack.c.l.bf16 %v334_v54 }
  0x6a   :  { %990 = vmatmul.f32.gmra.mxu0 %v69_v60  ;;  %1048 = vmatmul.f32.gmra.mxu2 %v71_v63  ;;  %v809_v60 = vunpack.c.l.bf16 %v317_v51  ;;  %v745_v63 = vunpack.c.l.bf16 %v285_v55  ;;  %v779_v2 = vunpack.c.l.bf16 %v302_v58  ;;  %v60_v51 = vld [vmem:[%s4462_s0 + $0x158] sm:$0xff]  ;;  %v278_v54 = vld [vmem:[%s4461_s1 + $0x628] sm:$0xff]  ;;  %v295_v58 = vld [vmem:[%s4461_s1 + $0x6b0] sm:$0xff] }
  0x6b   :  { %1179 = vmatpush.msra.mxu3 %v697_v61  ;;  %1151 = vmatpush.msra.mxu2 %v663_v0  ;;  %v333_v61 = vld [vmem:[%s4461_s1 + $0x7e0] sm:$0xff]  ;;  %v316_v0 = vld [vmem:[%s4461_s1 + $0x758] sm:$0xff]  ;;  %v58_v55 = vld [vmem:[%s4462_s0 + $0x148] sm:$0xff] }
  0x6c   :  { %1093 = vmatpush.msra.mxu0 %v599_v1  ;;  %1121 = vmatpush.msra.mxu1 %v633_v4  ;;  %v284_v1 = vld [vmem:[%s4461_s1 + $0x658] sm:$0xff]  ;;  %v41_v4 = vld [vmem:[%s4462_s0 + $0xc0] sm:$0xff]  ;;  %v841_v5 = vunpack.c.l.bf16 %v333_v61  ;;  %v795_v61 = vunpack.c.l.bf16 %v310_v50  ;;  %v31_v50 = vld [vmem:[%s4462_s0 + $0x70] sm:$0xff] }
  0x6d   :  { %1077 = vmatmul.f32.gmra.mxu3 %v72_v7  ;;  %1019 = vmatmul.f32.gmra.mxu1 %v70_v11  ;;  %v43_v7 = vld [vmem:[%s4462_s0 + $0xd0] sm:$0xff]  ;;  %v743_v9 = vunpack.c.l.bf16 %v284_v1  ;;  %v731_v1 = vunpack.c.l.bf16 %v278_v54 }
  0x6e   :  { %1152 = vmatpush.msra.mxu2 %v661_v8  ;;  %1180 = vmatpush.msra.mxu3 %v695_v12  ;;  %v807_v8 = vunpack.c.l.bf16 %v316_v0  ;;  %v283_v11 = vld [vmem:[%s4461_s1 + $0x650] sm:$0xff]  ;;  %v777_v12 = vunpack.c.l.bf16 %v301_v3  ;;  %v765_v3 = vunpack.c.l.bf16 %v295_v58 }
  0x6f   :  { %1094 = vmatpush.msra.mxu0 %v597_v13  ;;  %1122 = vmatpush.msra.mxu1 %v631_v16  ;;  %v300_v13 = vld [vmem:[%s4461_s1 + $0x6d8] sm:$0xff]  ;;  %v805_v16 = vunpack.c.l.bf16 %v315_v6  ;;  %v1943_v54 = vld [vmem:[%s4461_s1 + $0x170] sm:$0xff] }
  0x70   :  { %1153 = vmatpush.msra.mxu2 %v659_v17  ;;  %1181 = vmatpush.msra.mxu3 %v693_v20  ;;  %v331_v17 = vld [vmem:[%s4461_s1 + $0x7d0] sm:$0xff]  ;;  %v839_v20 = vunpack.c.l.bf16 %v332_v10 }
  0x71   :  { %1095 = vmatpush.msra.mxu0 %v595_v21  ;;  %1123 = vmatpush.msra.mxu1 %v629_v23  ;;  %v741_v21 = vunpack.c.l.bf16 %v283_v11  ;;  %v313_v23 = vld [vmem:[%s4461_s1 + $0x740] sm:$0xff]  ;;  %v837_v28 = vunpack.c.l.bf16 %v331_v17 }
  0x72   :  { %1154 = vmatpush.msra.mxu2 %v657_v24  ;;  %1182 = vmatpush.msra.mxu3 %v691_v26  ;;  %v775_v24 = vunpack.c.l.bf16 %v300_v13  ;;  %v330_v26 = vld [vmem:[%s4461_s1 + $0x7c8] sm:$0xff]  ;;  %v293_v11 = vld [vmem:[%s4461_s1 + $0x6a0] sm:$0xff] }
  0x73   :  { %1096 = vmatpush.msra.mxu0 %v593_v27  ;;  %1124 = vmatpush.msra.mxu1 %v627_v30  ;;  %v281_v27 = vld [vmem:[%s4461_s1 + $0x640] sm:$0xff]  ;;  %v298_v30 = vld [vmem:[%s4461_s1 + $0x6c8] sm:$0xff]  ;;  %v835_v34 = vunpack.c.l.bf16 %v330_v26 }
  0x74   :  { %1097 = vmatmul.f32.vlgmr.msra.gmra.mxu0 %v25_v32  ;;  %1155 = vmatmul.f32.vlgmr.msra.gmra.mxu2 %v27_v35  ;;  %v801_v32 = vunpack.c.l.bf16 %v313_v23  ;;  %v737_v35 = vunpack.c.l.bf16 %v281_v27  ;;  %v771_v38 = vunpack.c.l.bf16 %v298_v30  ;;  %v76_v23 = vld [vmem:[%s4462_s0 + $0x1d8] sm:$0xff]  ;;  %v274_v26 = vld [vmem:[%s4461_s1 + $0x608] sm:$0xff]  ;;  %v291_v30 = vld [vmem:[%s4461_s1 + $0x690] sm:$0xff] }
  0x75   :  { %1183 = vmatpush.msra.mxu3 %v689_v33  ;;  %1255 = vmatpush.msrb.mxu2 %v815_v36  ;;  %v329_v33 = vld [vmem:[%s4461_s1 + $0x7c0] sm:$0xff]  ;;  %v312_v36 = vld [vmem:[%s4461_s1 + $0x738] sm:$0xff]  ;;  %v74_v27 = vld [vmem:[%s4462_s0 + $0x1c8] sm:$0xff] }
  0x76   :  { %1125 = vmatpush.msra.mxu1 %v625_v37  ;;  %1197 = vmatpush.msrb.mxu0 %v751_v40  ;;  %v280_v37 = vld [vmem:[%s4461_s1 + $0x638] sm:$0xff]  ;;  %v57_v40 = vld [vmem:[%s4462_s0 + $0x140] sm:$0xff]  ;;  %v833_v41 = vunpack.c.l.bf16 %v329_v33  ;;  %v787_v33 = vunpack.c.l.bf16 %v306_v22 }
  0x77   :  { %1126 = vmatmul.f32.vlgmr.msra.gmra.mxu1 %v26_v43  ;;  %1184 = vmatmul.f32.vlgmr.msra.gmra.mxu3 %v28_v47  ;;  %v59_v43 = vld [vmem:[%s4462_s0 + $0x150] sm:$0xff]  ;;  %v735_v45 = vunpack.c.l.bf16 %v280_v37  ;;  %v723_v37 = vunpack.c.l.bf16 %v274_v26  ;;  %v1957_v22 = vld [vmem:[%s4461_s1 + $0x158] sm:$0xff] }
  0x78   :  { %1256 = vmatpush.msrb.mxu2 %v813_v44  ;;  %1284 = vmatpush.msrb.mxu3 %v847_v48  ;;  %v799_v44 = vunpack.c.l.bf16 %v312_v36  ;;  %v279_v47 = vld [vmem:[%s4461_s1 + $0x630] sm:$0xff]  ;;  %v769_v48 = vunpack.c.l.bf16 %v297_v39  ;;  %v757_v39 = vunpack.c.l.bf16 %v291_v30  ;;  %v48_v30 = vld [vmem:[%s4462_s0 + $0xf8] sm:$0xff] }
  0x79   :  { %1198 = vmatpush.msrb.mxu0 %v749_v49  ;;  %1226 = vmatpush.msrb.mxu1 %v783_v52  ;;  %v296_v49 = vld [vmem:[%s4461_s1 + $0x6b8] sm:$0xff]  ;;  %v797_v52 = vunpack.c.l.bf16 %v311_v42 }
  0x7a   :  { %1257 = vmatpush.msrb.mxu2 %v811_v53  ;;  %1285 = vmatpush.msrb.mxu3 %v845_v56  ;;  %v327_v53 = vld [vmem:[%s4461_s1 + $0x7b0] sm:$0xff]  ;;  %v831_v56 = vunpack.c.l.bf16 %v328_v46  ;;  %v29_v46 = vld [vmem:[%s4462_s0 + $0x60] sm:$0xff] }
  0x7b   :  { %1199 = vmatpush.msrb.mxu0 %v747_v57  ;;  %1227 = vmatpush.msrb.mxu1 %v781_v59  ;;  %v733_v57 = vunpack.c.l.bf16 %v279_v47  ;;  %v309_v59 = vld [vmem:[%s4461_s1 + $0x720] sm:$0xff]  ;;  %v829_v0 = vunpack.c.l.bf16 %v327_v53 }
  0x7c   :  { %1258 = vmatpush.msrb.mxu2 %v809_v60  ;;  %1286 = vmatpush.msrb.mxu3 %v843_v62  ;;  %v767_v60 = vunpack.c.l.bf16 %v296_v49  ;;  %v326_v62 = vld [vmem:[%s4461_s1 + $0x7a8] sm:$0xff] }
  0x7d   :  { %1200 = vmatpush.msrb.mxu0 %v745_v63  ;;  %1228 = vmatpush.msrb.mxu1 %v779_v2  ;;  %v277_v63 = vld [vmem:[%s4461_s1 + $0x620] sm:$0xff]  ;;  %v294_v2 = vld [vmem:[%s4461_s1 + $0x6a8] sm:$0xff]  ;;  %v827_v6 = vunpack.c.l.bf16 %v326_v62  ;;  %v1946_v62 = vld [vmem:[%s4461_s1 + $0xf8] sm:$0xff] }
  0x7e   :  { %1100 = vmatmul.f32.gmra.mxu0 %v41_v4  ;;  %1158 = vmatmul.f32.gmra.mxu2 %v43_v7  ;;  %v793_v4 = vunpack.c.l.bf16 %v309_v59  ;;  %v729_v7 = vunpack.c.l.bf16 %v277_v63  ;;  %v763_v10 = vunpack.c.l.bf16 %v294_v2  ;;  %v1945_v59 = vld [vmem:[%s4461_s1 + $0x1f8] sm:$0xff]  ;;  %v400_v63 = vunpack.c.h.bf16 %v1946_v62  ;;  %v1948_v2 = vld [vmem:[%s4461_s1 + $0x68] sm:$0xff] }
  0x7f   :  { %1287 = vmatpush.msrb.mxu3 %v841_v5  ;;  %1259 = vmatpush.msrb.mxu2 %v807_v8  ;;  %v325_v5 = vld [vmem:[%s4461_s1 + $0x7a0] sm:$0xff]  ;;  %v308_v8 = vld [vmem:[%s4461_s1 + $0x718] sm:$0xff] }
  0x80   :  { %1201 = vmatpush.msrb.mxu0 %v743_v9  ;;  %1229 = vmatpush.msrb.mxu1 %v777_v12  ;;  %v276_v9 = vld [vmem:[%s4461_s1 + $0x618] sm:$0xff]  ;;  %v73_v12 = vld [vmem:[%s4462_s0 + $0x1c0] sm:$0xff]  ;;  %v825_v13 = vunpack.c.l.bf16 %v325_v5 }
  0x81   :  { %1187 = vmatmul.f32.gmra.mxu3 %v44_v15  ;;  %1129 = vmatmul.f32.gmra.mxu1 %v42_v19  ;;  %v75_v15 = vld [vmem:[%s4462_s0 + $0x1d0] sm:$0xff]  ;;  %v727_v17 = vunpack.c.l.bf16 %v276_v9  ;;  %v1973_v62 = vld [vmem:[%s4461_s1 + $0x138] sm:$0xff] }
  0x82   :  { %1260 = vmatpush.msrb.mxu2 %v805_v16  ;;  %1288 = vmatpush.msrb.mxu3 %v839_v20  ;;  %v791_v16 = vunpack.c.l.bf16 %v308_v8  ;;  %v275_v19 = vld [vmem:[%s4461_s1 + $0x610] sm:$0xff]  ;;  %v761_v20 = vunpack.c.l.bf16 %v293_v11  ;;  %v1951_v8 = vld [vmem:[%s4461_s1 + $0x160] sm:$0xff] }
  0x83   :  { %1202 = vmatpush.msrb.mxu0 %v741_v21  ;;  %1230 = vmatpush.msrb.mxu1 %v775_v24  ;;  %v292_v21 = vld [vmem:[%s4461_s1 + $0x698] sm:$0xff]  ;;  %v789_v24 = vunpack.c.l.bf16 %v307_v14  ;;  %v426_v9 = vunpack.c.h.bf16 %v1951_v8 }
  0x84   :  { %1261 = vmatpush.msrb.mxu2 %v803_v25  ;;  %1289 = vmatpush.msrb.mxu3 %v837_v28  ;;  %v323_v25 = vld [vmem:[%s4461_s1 + $0x790] sm:$0xff]  ;;  %v823_v28 = vunpack.c.l.bf16 %v324_v18 }
  0x85   :  { %1203 = vmatpush.msrb.mxu0 %v739_v29  ;;  %1231 = vmatpush.msrb.mxu1 %v773_v31  ;;  %v725_v29 = vunpack.c.l.bf16 %v275_v19  ;;  %v305_v31 = vld [vmem:[%s4461_s1 + $0x700] sm:$0xff]  ;;  %v821_v36 = vunpack.c.l.bf16 %v323_v25 }
  0x86   :  { %1262 = vmatpush.msrb.mxu2 %v801_v32  ;;  %1290 = vmatpush.msrb.mxu3 %v835_v34  ;;  %v759_v32 = vunpack.c.l.bf16 %v292_v21  ;;  %v322_v34 = vld [vmem:[%s4461_s1 + $0x788] sm:$0xff]  ;;  %v45_v19 = vld [vmem:[%s4462_s0 + $0xe0] sm:$0xff] }
  0x87   :  { %1204 = vmatpush.msrb.mxu0 %v737_v35  ;;  %1232 = vmatpush.msrb.mxu1 %v771_v38  ;;  %v273_v35 = vld [vmem:[%s4461_s1 + $0x600] sm:$0xff]  ;;  %v290_v38 = vld [vmem:[%s4461_s1 + $0x688] sm:$0xff]  ;;  %v819_v42 = vunpack.c.l.bf16 %v322_v34 }
  0x88   :  { %1103 = vmatmul.f32.gmra.mxu0 %v57_v40  ;;  %1161 = vmatmul.f32.gmra.mxu2 %v59_v43  ;;  %v785_v40 = vunpack.c.l.bf16 %v305_v31  ;;  %v721_v43 = vunpack.c.l.bf16 %v273_v35  ;;  %v1958_v25 = vld [vmem:[%s4461_s1 + $0xe0] sm:$0xff]  ;;  %v1960_v31 = vld [vmem:[%s4461_s1 + $0x50] sm:$0xff]  ;;  %v46_v35 = vld [vmem:[%s4462_s0 + $0xe8] sm:$0xff] }
  0x89   :  { %1291 = vmatpush.msrb.mxu3 %v833_v41  ;;  %1263 = vmatpush.msrb.mxu2 %v799_v44  ;;  %v321_v41 = vld [vmem:[%s4461_s1 + $0x780] sm:$0xff]  ;;  %v394_v26 = vunpack.c.h.bf16 %v1958_v25 }
  0x8a   :  { %1205 = vmatpush.msrb.mxu0 %v735_v45  ;;  %1233 = vmatpush.msrb.mxu1 %v769_v48  ;;  %v289_v44 = vld [vmem:[%s4461_s1 + $0x680] sm:$0xff]  ;;  %v755_v45 = vunpack.c.l.bf16 %v290_v38  ;;  %v817_v47 = vunpack.c.l.bf16 %v321_v41  ;;  %v1941_v48 = vld [vmem:[%s4461_s1 + $0x178] sm:$0xff]  ;;  %v1963_v38 = vld [vmem:[%s4461_s1 + $0x148] sm:$0xff] }
  0x8b   :  { %1190 = vmatmul.f32.gmra.mxu3 %v60_v51  ;;  %1132 = vmatmul.f32.gmra.mxu1 %v58_v55  ;;  %v432_v49 = vunpack.c.h.bf16 %v1941_v48  ;;  %v753_v51 = vunpack.c.l.bf16 %v289_v44  ;;  %v430_v55 = vunpack.c.h.bf16 %v1943_v54 }
  0x8c   :  { %1264 = vmatpush.msrb.mxu2 %v797_v52  ;;  %1292 = vmatpush.msrb.mxu3 %v831_v56  ;;  %v1942_v52 = vld [vmem:[%s4461_s1 + $0x78] sm:$0xff]  ;;  %v30_v56 = vld [vmem:[%s4462_s0 + $0x68] sm:$0xff] }
  0x8d   :  { %1206 = vmatpush.msrb.mxu0 %v733_v57  ;;  %1234 = vmatpush.msrb.mxu1 %v767_v60  ;;  %v368_v53 = vunpack.c.h.bf16 %v1942_v52  ;;  %v1944_v57 = vld [vmem:[%s4461_s1 + $0x70] sm:$0xff]  ;;  %v464_v60 = vunpack.c.h.bf16 %v1945_v59  ;;  %v61_v59 = vld [vmem:[%s4462_s0 + $0x160] sm:$0xff] }
  0x8e   :  { %1265 = vmatpush.msrb.mxu2 %v795_v61  ;;  %1293 = vmatpush.msrb.mxu3 %v829_v0  ;;  %v366_v58 = vunpack.c.h.bf16 %v1944_v57  ;;  %v32_v61 = vld [vmem:[%s4462_s0 + $0x78] sm:$0xff]  ;;  %v1947_v0 = vld [vmem:[%s4461_s1 + $0x168] sm:$0xff]  ;;  %v1971_v57 = vld [vmem:[%s4461_s1 + $0x1c0] sm:$0xff] }
  0x8f   :  { %1207 = vmatpush.msrb.mxu0 %v731_v1  ;;  %1235 = vmatpush.msrb.mxu1 %v765_v3  ;;  %v428_v1 = vunpack.c.h.bf16 %v1947_v0  ;;  %v364_v3 = vunpack.c.h.bf16 %v1948_v2  ;;  %v63_v0 = vld [vmem:[%s4462_s0 + $0x170] sm:$0xff] }
  0x90   :  { %1266 = vmatpush.msrb.mxu2 %v793_v4  ;;  %1294 = vmatpush.msrb.mxu3 %v827_v6  ;;  %v1949_v4 = vld [vmem:[%s4461_s1 + $0x1f0] sm:$0xff] }
  0x91   :  { %1208 = vmatpush.msrb.mxu0 %v729_v7  ;;  %1236 = vmatpush.msrb.mxu1 %v763_v10  ;;  %v462_v5 = vunpack.c.h.bf16 %v1949_v4  ;;  %v1950_v6 = vld [vmem:[%s4461_s1 + $0xf0] sm:$0xff]  ;;  %v1952_v10 = vld [vmem:[%s4461_s1 + $0x60] sm:$0xff] }
  0x92   :  { %1106 = vmatmul.f32.gmra.mxu0 %v73_v12  ;;  %1164 = vmatmul.f32.gmra.mxu2 %v75_v15  ;;  %v398_v7 = vunpack.c.h.bf16 %v1950_v6  ;;  %v362_v11 = vunpack.c.h.bf16 %v1952_v10  ;;  %v1953_v12 = vld [vmem:[%s4461_s1 + $0x1e8] sm:$0xff]  ;;  %v1975_v4 = vld [vmem:[%s4461_s1 + $0x130] sm:$0xff]  ;;  %v64_v6 = vld [vmem:[%s4462_s0 + $0x178] sm:$0xff] }
  0x93   :  { %1295 = vmatpush.msrb.mxu3 %v825_v13  ;;  %1267 = vmatpush.msrb.mxu2 %v791_v16  ;;  %v460_v13 = vunpack.c.h.bf16 %v1953_v12  ;;  %v1954_v15 = vld [vmem:[%s4461_s1 + $0xe8] sm:$0xff]  ;;  %v1978_v12 = vld [vmem:[%s4461_s1 + $0xb8] sm:$0xff] }
  0x94   :  { %1209 = vmatpush.msrb.mxu0 %v727_v17  ;;  %1237 = vmatpush.msrb.mxu1 %v761_v20  ;;  %v396_v16 = vunpack.c.h.bf16 %v1954_v15  ;;  %v1955_v17 = vld [vmem:[%s4461_s1 + $0x1e0] sm:$0xff]  ;;  %v1956_v20 = vld [vmem:[%s4461_s1 + $0x58] sm:$0xff]  ;;  %v1979_v15 = vld [vmem:[%s4461_s1 + $0x128] sm:$0xff] }
  0x95   :  { %1193 = vmatmul.f32.gmra.mxu3 %v76_v23  ;;  %1135 = vmatmul.f32.gmra.mxu1 %v74_v27  ;;  %v458_v18 = vunpack.c.h.bf16 %v1955_v17  ;;  %v360_v21 = vunpack.c.h.bf16 %v1956_v20  ;;  %v424_v23 = vunpack.c.h.bf16 %v1957_v22  ;;  %v1980_v17 = vld [vmem:[%s4461_s1 + $0x28] sm:$0xff]  ;;  %v1982_v22 = vld [vmem:[%s4461_s1 + $0xb0] sm:$0xff] }
  0x96   :  { %1268 = vmatpush.msrb.mxu2 %v789_v24  ;;  %1296 = vmatpush.msrb.mxu3 %v823_v28  ;;  %v47_v24 = vld [vmem:[%s4462_s0 + $0xf0] sm:$0xff] }
  0x97   :  { %1210 = vmatpush.msrb.mxu0 %v725_v29  ;;  %1238 = vmatpush.msrb.mxu1 %v759_v32  ;;  %v1959_v28 = vld [vmem:[%s4461_s1 + $0x150] sm:$0xff]  ;;  %v358_v32 = vunpack.c.h.bf16 %v1960_v31 }
  0x98   :  { %1269 = vmatpush.msrb.mxu2 %v787_v33  ;;  %1297 = vmatpush.msrb.mxu3 %v821_v36  ;;  %v422_v29 = vunpack.c.h.bf16 %v1959_v28  ;;  %v1961_v33 = vld [vmem:[%s4461_s1 + $0x1d8] sm:$0xff] }
  0x99   :  { %1211 = vmatpush.msrb.mxu0 %v723_v37  ;;  %1239 = vmatpush.msrb.mxu1 %v757_v39  ;;  %v456_v34 = vunpack.c.h.bf16 %v1961_v33  ;;  %v1962_v36 = vld [vmem:[%s4461_s1 + $0xd8] sm:$0xff]  ;;  %v420_v39 = vunpack.c.h.bf16 %v1963_v38  ;;  %v1986_v33 = vld [vmem:[%s4461_s1 + $0xa8] sm:$0xff] }
  0x9a   :  { %1270 = vmatpush.msrb.mxu2 %v785_v40  ;;  %1298 = vmatpush.msrb.mxu3 %v819_v42  ;;  %v392_v37 = vunpack.c.h.bf16 %v1962_v36  ;;  %v1964_v40 = vld [vmem:[%s4461_s1 + $0x48] sm:$0xff]  ;;  %v1965_v42 = vld [vmem:[%s4461_s1 + $0x1d0] sm:$0xff]  ;;  %v1988_v38 = vld [vmem:[%s4461_s1 + $0x18] sm:$0xff] }
  0x9b   :  { %1212 = vmatpush.msrb.mxu0 %v721_v43  ;;  %1240 = vmatpush.msrb.mxu1 %v755_v45  ;;  %v356_v41 = vunpack.c.h.bf16 %v1964_v40  ;;  %v454_v43 = vunpack.c.h.bf16 %v1965_v42  ;;  %v1966_v45 = vld [vmem:[%s4461_s1 + $0xd0] sm:$0xff]  ;;  %v1989_v40 = vld [vmem:[%s4461_s1 + $0x118] sm:$0xff] }
  0x9c   :  { %1213 = vmatmul.f32.vlgmr.msrb.gmra.mxu0 %v29_v46  ;;  %1271 = vmatmul.f32.vlgmr.msrb.gmra.mxu2 %v31_v50  ;;  %v390_v46 = vunpack.c.h.bf16 %v1966_v45  ;;  %v79_v42 = vld [vmem:[%s4462_s0 + $0x1f0] sm:$0xff] }
  0x9d   :  { %1299 = vmatpush.msrb.mxu3 %v817_v47  ;;  %1371 = vmatpush.msra.mxu2 %v432_v49  ;;  %v1967_v47 = vld [vmem:[%s4461_s1 + $0x140] sm:$0xff] }
  0x9e   :  { %1241 = vmatpush.msrb.mxu1 %v753_v51  ;;  %1313 = vmatpush.msra.mxu0 %v368_v53  ;;  %v418_v48 = vunpack.c.h.bf16 %v1967_v47  ;;  %v1968_v49 = vld [vmem:[%s4461_s1 + $0x40] sm:$0xff]  ;;  %v1969_v51 = vld [vmem:[%s4461_s1 + $0x1c8] sm:$0xff]  ;;  %v1991_v47 = vld [vmem:[%s4461_s1 + $0x110] sm:$0xff] }
  0x9f   :  { %1242 = vmatmul.f32.vlgmr.msrb.gmra.mxu1 %v30_v56  ;;  %1300 = vmatmul.f32.vlgmr.msrb.gmra.mxu3 %v32_v61  ;;  %v354_v50 = vunpack.c.h.bf16 %v1968_v49  ;;  %v452_v52 = vunpack.c.h.bf16 %v1969_v51  ;;  %v80_v49 = vld [vmem:[%s4462_s0 + $0x1f8] sm:$0xff] }
  0xa0   :  { %1372 = vmatpush.msra.mxu2 %v430_v55  ;;  %1400 = vmatpush.msra.mxu3 %v464_v60  ;;  %v1970_v55 = vld [vmem:[%s4461_s1 + $0xc8] sm:$0xff]  ;;  %v1972_v60 = vld [vmem:[%s4461_s1 + $0x38] sm:$0xff] }
  0xa1   :  { %1314 = vmatpush.msra.mxu0 %v366_v58  ;;  %v3250_v14 = vpop.f32.mrf.mxu0  ;;  %1342 = vmatpush.msra.mxu1 %v400_v63  ;;  %v388_v56 = vunpack.c.h.bf16 %v1970_v55  ;;  %v450_v58 = vunpack.c.h.bf16 %v1971_v57  ;;  %v352_v61 = vunpack.c.h.bf16 %v1972_v60  ;;  %v416_v63 = vunpack.c.h.bf16 %v1973_v62  ;;  %v1994_v57 = vld [vmem:[%s4461_s1 + $0x98] sm:$0xff] }
  0xa2   :  { %1373 = vmatpush.msra.mxu2 %v428_v1  ;;  %1401 = vmatpush.msra.mxu3 %v462_v5  ;;  %v1974_v1 = vld [vmem:[%s4461_s1 + $0xc0] sm:$0xff]  ;;  %v414_v5 = vunpack.c.h.bf16 %v1975_v4 }
  0xa3   :  { %1315 = vmatpush.msra.mxu0 %v364_v3  ;;  %1343 = vmatpush.msra.mxu1 %v398_v7  ;;  %v386_v2 = vunpack.c.h.bf16 %v1974_v1  ;;  %v1976_v7 = vld [vmem:[%s4461_s1 + $0x30] sm:$0xff] }
  0xa4   :  { %1374 = vmatpush.msra.mxu2 %v426_v9  ;;  %1402 = vmatpush.msra.mxu3 %v460_v13  ;;  %v3273_v27 = vpop.f32.mrf.mxu1  ;;  %v350_v8 = vunpack.c.h.bf16 %v1976_v7  ;;  %v1977_v9 = vld [vmem:[%s4461_s1 + $0x1b8] sm:$0xff]  ;;  %v384_v13 = vunpack.c.h.bf16 %v1978_v12  ;;  %v2000_v7 = vld [vmem:[%s4461_s1] sm:$0xff] }
  0xa5   :  { %1316 = vmatpush.msra.mxu0 %v362_v11  ;;  %1344 = vmatpush.msra.mxu1 %v396_v16  ;;  %v448_v10 = vunpack.c.h.bf16 %v1977_v9  ;;  %v62_v11 = vld [vmem:[%s4462_s0 + $0x168] sm:$0xff]  ;;  %v412_v16 = vunpack.c.h.bf16 %v1979_v15 }
  0xa6   :  { %1216 = vmatmul.f32.gmra.mxu0 %v45_v19  ;;  %1274 = vmatmul.f32.gmra.mxu2 %v47_v24  ;;  %v1981_v19 = vld [vmem:[%s4461_s1 + $0x1b0] sm:$0xff]  ;;  %v1983_v24 = vld [vmem:[%s4461_s1 + $0x120] sm:$0xff]  ;;  %v2001_v9 = vld [vmem:[%s4461_s1 + $0x188] sm:$0xff] }
  0xa7   :  { %1403 = vmatpush.msra.mxu3 %v458_v18  ;;  %1375 = vmatpush.msra.mxu2 %v424_v23  ;;  %v3302_v44 = vpop.f32.mrf.mxu2  ;;  %v348_v18 = vunpack.c.h.bf16 %v1980_v17  ;;  %v446_v20 = vunpack.c.h.bf16 %v1981_v19  ;;  %v382_v23 = vunpack.c.h.bf16 %v1982_v22  ;;  %v410_v25 = vunpack.c.h.bf16 %v1983_v24 }
  0xa8   :  { %1317 = vmatpush.msra.mxu0 %v360_v21  ;;  %1345 = vmatpush.msra.mxu1 %v394_v26  ;;  %v1984_v26 = vld [vmem:[%s4461_s1 + $0x20] sm:$0xff] }
  0xa9   :  { %1303 = vmatmul.f32.gmra.mxu3 %v48_v30  ;;  %1245 = vmatmul.f32.gmra.mxu1 %v46_v35  ;;  %v346_v28 = vunpack.c.h.bf16 %v1984_v26  ;;  %v1987_v35 = vld [vmem:[%s4461_s1 + $0x1a0] sm:$0xff]  ;;  %v2007_v26 = vld [vmem:[%s4461_s1 + $0x370] sm:$0xff] }
  0xaa   :  { %1376 = vmatpush.msra.mxu2 %v422_v29  ;;  %1404 = vmatpush.msra.mxu3 %v456_v34  ;;  %v3318_v54 = vpop.f32.mrf.mxu3  ;;  %v1985_v29 = vld [vmem:[%s4461_s1 + $0x1a8] sm:$0xff]  ;;  %v380_v34 = vunpack.c.h.bf16 %v1986_v33  ;;  %v442_v36 = vunpack.c.h.bf16 %v1987_v35 }
  0xab   :  { %1318 = vmatpush.msra.mxu0 %v358_v32  ;;  %v3316_v53 = vpop.f32.mrf.mxu0  ;;  %1346 = vmatpush.msra.mxu1 %v392_v37  ;;  %v444_v30 = vunpack.c.h.bf16 %v1985_v29  ;;  %v77_v37 = vld [vmem:[%s4462_s0 + $0x1e0] sm:$0xff] }
  0xac   :  { %1377 = vmatpush.msra.mxu2 %v420_v39  ;;  %1405 = vmatpush.msra.mxu3 %v454_v43  ;;  %v344_v39 = vunpack.c.h.bf16 %v1988_v38  ;;  %v1990_v43 = vld [vmem:[%s4461_s1 + $0xa0] sm:$0xff] }
  0xad   :  { %1319 = vmatpush.msra.mxu0 %v356_v41  ;;  %1347 = vmatpush.msra.mxu1 %v390_v46  ;;  %v408_v41 = vunpack.c.h.bf16 %v1989_v40  ;;  %v378_v45 = vunpack.c.h.bf16 %v1990_v43  ;;  %v2008_v29 = vld [vmem:[%s4462_s0] sm:$0xff]  ;;  %v2015_v43 = vld [vmem:[%s4461_s1 + $0x268] sm:$0xff] }
  0xae   :  { %1378 = vmatpush.msra.mxu2 %v418_v48  ;;  %1406 = vmatpush.msra.mxu3 %v452_v52  ;;  %v3341_v3 = vpop.f32.mrf.mxu1  ;;  %v406_v48 = vunpack.c.h.bf16 %v1991_v47  ;;  %v1993_v52 = vld [vmem:[%s4461_s1 + $0x198] sm:$0xff]  ;;  %v2016_v47 = vld [vmem:[%s4462_s0 + $0x8] sm:$0xff] }
  0xaf   :  { %1320 = vmatpush.msra.mxu0 %v354_v50  ;;  %1348 = vmatpush.msra.mxu1 %v388_v56  ;;  %v1992_v50 = vld [vmem:[%s4461_s1 + $0x10] sm:$0xff]  ;;  %v440_v55 = vunpack.c.h.bf16 %v1993_v52  ;;  %v78_v56 = vld [vmem:[%s4462_s0 + $0x1e8] sm:$0xff] }
  0xb0   :  { %1219 = vmatmul.f32.gmra.mxu0 %v61_v59  ;;  %1277 = vmatmul.f32.gmra.mxu2 %v63_v0  ;;  %v342_v51 = vunpack.c.h.bf16 %v1992_v50  ;;  %v1995_v59 = vld [vmem:[%s4461_s1 + $0x108] sm:$0xff] }
  0xb1   :  { %1407 = vmatpush.msra.mxu3 %v450_v58  ;;  %1379 = vmatpush.msra.mxu2 %v416_v63  ;;  %v3370_v21 = vpop.f32.mrf.mxu2  ;;  %v376_v58 = vunpack.c.h.bf16 %v1994_v57  ;;  %v404_v60 = vunpack.c.h.bf16 %v1995_v59  ;;  %v1997_v63 = vld [vmem:[%s4461_s1 + $0x190] sm:$0xff] }
  0xb2   :  { %1321 = vmatpush.msra.mxu0 %v352_v61  ;;  %1349 = vmatpush.msra.mxu1 %v386_v2  ;;  %v1996_v61 = vld [vmem:[%s4461_s1 + $0x8] sm:$0xff]  ;;  %v438_v0 = vunpack.c.h.bf16 %v1997_v63  ;;  %v1998_v2 = vld [vmem:[%s4461_s1 + $0x90] sm:$0xff] }
  0xb3   :  { %1306 = vmatmul.f32.gmra.mxu3 %v64_v6  ;;  %1248 = vmatmul.f32.gmra.mxu1 %v62_v11  ;;  %v340_v62 = vunpack.c.h.bf16 %v1996_v61  ;;  %v374_v4 = vunpack.c.h.bf16 %v1998_v2 }
  0xb4   :  { %1380 = vmatpush.msra.mxu2 %v414_v5  ;;  %1408 = vmatpush.msra.mxu3 %v448_v10  ;;  %v3386_v32 = vpop.f32.mrf.mxu3  ;;  %v1999_v5 = vld [vmem:[%s4461_s1 + $0x100] sm:$0xff]  ;;  %v436_v10 = vunpack.c.h.bf16 %v2001_v9 }
  0xb5   :  { %1322 = vmatpush.msra.mxu0 %v350_v8  ;;  %v3384_v31 = vpop.f32.mrf.mxu0  ;;  %1350 = vmatpush.msra.mxu1 %v384_v13  ;;  %v402_v6 = vunpack.c.h.bf16 %v1999_v5  ;;  %v338_v8 = vunpack.c.h.bf16 %v2000_v7  ;;  %v2002_v13 = vld [vmem:[%s4461_s1 + $0x88] sm:$0xff] }
  0xb6   :  { %1381 = vmatpush.msra.mxu2 %v412_v16  ;;  %1409 = vmatpush.msra.mxu3 %v446_v20  ;;  %v372_v15 = vunpack.c.h.bf16 %v2002_v13  ;;  %v2003_v16 = vld [vmem:[%s4461_s1 + $0x180] sm:$0xff]  ;;  %v2027_v13 = vld [vmem:[%s4461_s1 + $0x350] sm:$0xff] }
  0xb7   :  { %1323 = vmatpush.msra.mxu0 %v348_v18  ;;  %1351 = vmatpush.msra.mxu1 %v382_v23  ;;  %v434_v17 = vunpack.c.h.bf16 %v2003_v16  ;;  %v2004_v18 = vld [vmem:[%s4461_s1 + $0x378] sm:$0xff]  ;;  %v2005_v20 = vld [vmem:[%s4461_s1 + $0x80] sm:$0xff] }
  0xb8   :  { %1382 = vmatpush.msra.mxu2 %v410_v25  ;;  %1410 = vmatpush.msra.mxu3 %v444_v30  ;;  %v3409_v46 = vpop.f32.mrf.mxu1  ;;  %v560_v19 = vunpack.c.h.bf16 %v2004_v18  ;;  %v370_v22 = vunpack.c.h.bf16 %v2005_v20  ;;  %v2006_v23 = vld [vmem:[%s4461_s1 + $0x278] sm:$0xff]  ;;  %v2028_v16 = vld [vmem:[%s4462_s0 + $0x80] sm:$0xff] }
  0xb9   :  { %1324 = vmatpush.msra.mxu0 %v346_v28  ;;  %1352 = vmatpush.msra.mxu1 %v380_v34  ;;  %v496_v24 = vunpack.c.h.bf16 %v2006_v23  ;;  %v558_v28 = vunpack.c.h.bf16 %v2007_v26  ;;  %v2009_v30 = vld [vmem:[%s4461_s1 + $0x3f8] sm:$0xff]  ;;  %v2010_v34 = vld [vmem:[%s4461_s1 + $0x270] sm:$0xff]  ;;  %v2033_v26 = vld [vmem:[%s4461_s1 + $0x348] sm:$0xff] }
  0xba   :  { %1222 = vmatmul.f32.gmra.mxu0 %v77_v37  ;;  %1280 = vmatmul.f32.gmra.mxu2 %v79_v42  ;;  %v592_v33 = vunpack.c.h.bf16 %v2009_v30  ;;  %v494_v35 = vunpack.c.h.bf16 %v2010_v34  ;;  %v2012_v37 = vld [vmem:[%s4461_s1 + $0x2f8] sm:$0xff] }
  0xbb   :  { %1411 = vmatpush.msra.mxu3 %v442_v36  ;;  %1383 = vmatpush.msra.mxu2 %v408_v41  ;;  %v3438_v1 = vpop.f32.mrf.mxu2  ;;  %v2011_v36 = vld [vmem:[%s4462_s0 + $0x10] sm:$0xff]  ;;  %v528_v38 = vunpack.c.h.bf16 %v2012_v37  ;;  %v2032_v23 = vld [vmem:[%s4461_s1 + $0x2d8] sm:$0xff] }
  0xbc   :  { %1325 = vmatpush.msra.mxu0 %v344_v39  ;;  %1353 = vmatpush.msra.mxu1 %v378_v45  ;;  %v2013_v39 = vld [vmem:[%s4461_s1 + $0x368] sm:$0xff]  ;;  %v2014_v41 = vld [vmem:[%s4461_s1 + $0x3f0] sm:$0xff]  ;;  %v492_v45 = vunpack.c.h.bf16 %v2015_v43 }
  0xbd   :  { %1309 = vmatmul.f32.gmra.mxu3 %v80_v49  ;;  %1251 = vmatmul.f32.gmra.mxu1 %v78_v56  ;;  %v556_v40 = vunpack.c.h.bf16 %v2013_v39  ;;  %v590_v42 = vunpack.c.h.bf16 %v2014_v41  ;;  %v2017_v49 = vld [vmem:[%s4461_s1 + $0x2f0] sm:$0xff]  ;;  %v2020_v56 = vld [vmem:[%s4461_s1 + $0x3e8] sm:$0xff]  ;;  %v2038_v39 = vld [vmem:[%s4461_s1 + $0x340] sm:$0xff] }
  0xbe   :  { %1384 = vmatpush.msra.mxu2 %v406_v48  ;;  %1412 = vmatpush.msra.mxu3 %v440_v55  ;;  %v3454_v12 = vpop.f32.mrf.mxu3  ;;  %v526_v50 = vunpack.c.h.bf16 %v2017_v49  ;;  %v2019_v55 = vld [vmem:[%s4462_s0 + $0x18] sm:$0xff]  ;;  %v588_v57 = vunpack.c.h.bf16 %v2020_v56  ;;  %v2037_v37 = vld [vmem:[%s4461_s1 + $0x2d0] sm:$0xff]  ;;  %v2039_v41 = vld [vmem:[%s4462_s0 + $0x88] sm:$0xff] }
  0xbf   :  { %1326 = vmatpush.msra.mxu0 %v342_v51  ;;  %v3452_v11 = vpop.f32.mrf.mxu0  ;;  %1354 = vmatpush.msra.mxu1 %v376_v58  ;;  %v2018_v51 = vld [vmem:[%s4461_s1 + $0x360] sm:$0xff] }
  0xc0   :  { %1385 = vmatpush.msra.mxu2 %v404_v60  ;;  %1413 = vmatpush.msra.mxu3 %v438_v0  ;;  %v554_v52 = vunpack.c.h.bf16 %v2018_v51  ;;  %v2021_v58 = vld [vmem:[%s4461_s1 + $0x260] sm:$0xff]  ;;  %v2042_v51 = vld [vmem:[%s4461_s1 + $0x2c8] sm:$0xff] }
  0xc1   :  { %1327 = vmatpush.msra.mxu0 %v340_v62  ;;  %1355 = vmatpush.msra.mxu1 %v374_v4  ;;  %v490_v59 = vunpack.c.h.bf16 %v2021_v58  ;;  %v2022_v62 = vld [vmem:[%s4461_s1 + $0x2e8] sm:$0xff]  ;;  %v2023_v0 = vld [vmem:[%s4461_s1 + $0x3e0] sm:$0xff]  ;;  %v2024_v4 = vld [vmem:[%s4461_s1 + $0x358] sm:$0xff] }
  0xc2   :  { %1386 = vmatpush.msra.mxu2 %v402_v6  ;;  %1414 = vmatpush.msra.mxu3 %v436_v10  ;;  %v3471_v25 = vpop.f32.mrf.mxu1  ;;  %v524_v63 = vunpack.c.h.bf16 %v2022_v62  ;;  %v586_v2 = vunpack.c.h.bf16 %v2023_v0  ;;  %v552_v5 = vunpack.c.h.bf16 %v2024_v4  ;;  %v2025_v6 = vld [vmem:[%s4461_s1 + $0x258] sm:$0xff]  ;;  %v2047_v4 = vld [vmem:[%s4461_s1 + $0x330] sm:$0xff] }
  0xc3   :  { %1328 = vmatpush.msra.mxu0 %v338_v8  ;;  %1356 = vmatpush.msra.mxu1 %v372_v15  ;;  %v488_v7 = vunpack.c.h.bf16 %v2025_v6  ;;  %v2026_v8 = vld [vmem:[%s4461_s1 + $0x2e0] sm:$0xff]  ;;  %v550_v15 = vunpack.c.h.bf16 %v2027_v13 }
  0xc4   :  { %1329 = vmatmul.f32.vlgmr.msra.gmra.mxu0 %v2008_v29  ;;  %1387 = vmatmul.f32.vlgmr.msra.gmra.mxu2 %v2011_v36  ;;  %v522_v9 = vunpack.c.h.bf16 %v2026_v8  ;;  %v2034_v29 = vld [vmem:[%s4461_s1 + $0x3d0] sm:$0xff]  ;;  %v2048_v6 = vld [vmem:[%s4462_s0 + $0x100] sm:$0xff] }
  0xc5   :  { %1415 = vmatpush.msra.mxu3 %v434_v17  ;;  %1487 = vmatpush.msrb.mxu2 %v560_v19  ;;  %v3503_v48 = vpop.f32.mrf.mxu2  ;;  %v2029_v17 = vld [vmem:[%s4461_s1 + $0x3d8] sm:$0xff]  ;;  %v2030_v19 = vld [vmem:[%s4461_s1 + $0x250] sm:$0xff]  ;;  %v582_v30 = vunpack.c.h.bf16 %v2034_v29 }
  0xc6   :  { %1357 = vmatpush.msra.mxu1 %v370_v22  ;;  %1429 = vmatpush.msrb.mxu0 %v496_v24  ;;  %v584_v18 = vunpack.c.h.bf16 %v2029_v17  ;;  %v486_v20 = vunpack.c.h.bf16 %v2030_v19  ;;  %v2031_v22 = vld [vmem:[%s4462_s0 + $0x90] sm:$0xff]  ;;  %v520_v24 = vunpack.c.h.bf16 %v2032_v23  ;;  %v2055_v23 = vld [vmem:[%s4461_s1 + $0x228] sm:$0xff] }
  0xc7   :  { %1358 = vmatmul.f32.vlgmr.msra.gmra.mxu1 %v2016_v47  ;;  %1416 = vmatmul.f32.vlgmr.msra.gmra.mxu3 %v2019_v55  ;;  %v2043_v55 = vld [vmem:[%s4461_s1 + $0x3c0] sm:$0xff]  ;;  %v2057_v29 = vld [vmem:[%s4461_s1 + $0x2b0] sm:$0xff] }
  0xc8   :  { %1488 = vmatpush.msrb.mxu2 %v558_v28  ;;  %1516 = vmatpush.msrb.mxu3 %v592_v33  ;;  %v3520_v60 = vpop.f32.mrf.mxu3  ;;  %v548_v28 = vunpack.c.h.bf16 %v2033_v26  ;;  %v2035_v33 = vld [vmem:[%s4461_s1 + $0x248] sm:$0xff]  ;;  %v578_v56 = vunpack.c.h.bf16 %v2043_v55  ;;  %v2056_v26 = vld [vmem:[%s4462_s0 + $0x118] sm:$0xff] }
  0xc9   :  { %1430 = vmatpush.msrb.mxu0 %v494_v35  ;;  %v3522_v61 = vpop.f32.mrf.mxu0  ;;  %1458 = vmatpush.msrb.mxu1 %v528_v38  ;;  %v484_v34 = vunpack.c.h.bf16 %v2035_v33  ;;  %v2036_v35 = vld [vmem:[%s4462_s0 + $0x98] sm:$0xff]  ;;  %v518_v38 = vunpack.c.h.bf16 %v2037_v37  ;;  %v2058_v33 = vld [vmem:[%s4461_s1 + $0x320] sm:$0xff]  ;;  %v2060_v37 = vld [vmem:[%s4461_s1 + $0x3a8] sm:$0xff] }
  0xca   :  { %1489 = vmatpush.msrb.mxu2 %v556_v40  ;;  %1517 = vmatpush.msrb.mxu3 %v590_v42  ;;  %v546_v40 = vunpack.c.h.bf16 %v2038_v39  ;;  %v2040_v42 = vld [vmem:[%s4461_s1 + $0x3c8] sm:$0xff]  ;;  %v2061_v39 = vld [vmem:[%s4461_s1 + $0x220] sm:$0xff] }
  0xcb   :  { %1431 = vmatpush.msrb.mxu0 %v492_v45  ;;  %1459 = vmatpush.msrb.mxu1 %v526_v50  ;;  %v580_v43 = vunpack.c.h.bf16 %v2040_v42  ;;  %v2041_v45 = vld [vmem:[%s4461_s1 + $0x240] sm:$0xff] }
  0xcc   :  { %1490 = vmatpush.msrb.mxu2 %v554_v52  ;;  %1518 = vmatpush.msrb.mxu3 %v588_v57  ;;  %v3539_v10 = vpop.f32.mrf.mxu1  ;;  %v482_v47 = vunpack.c.h.bf16 %v2041_v45  ;;  %v516_v52 = vunpack.c.h.bf16 %v2042_v51  ;;  %v2044_v57 = vld [vmem:[%s4461_s1 + $0x338] sm:$0xff] }
  0xcd   :  { %1432 = vmatpush.msrb.mxu0 %v490_v59  ;;  %1460 = vmatpush.msrb.mxu1 %v524_v63  ;;  %v544_v58 = vunpack.c.h.bf16 %v2044_v57  ;;  %v2045_v59 = vld [vmem:[%s4461_s1 + $0x238] sm:$0xff]  ;;  %v2046_v63 = vld [vmem:[%s4461_s1 + $0x2c0] sm:$0xff] }
  0xce   :  { %1332 = vmatmul.f32.gmra.mxu0 %v2028_v16  ;;  %1390 = vmatmul.f32.gmra.mxu2 %v2031_v22  ;;  %v480_v62 = vunpack.c.h.bf16 %v2045_v59  ;;  %v514_v0 = vunpack.c.h.bf16 %v2046_v63  ;;  %v2052_v16 = vld [vmem:[%s4461_s1 + $0x2b8] sm:$0xff]  ;;  %v2067_v63 = vld [vmem:[%s4461_s1 + $0x310] sm:$0xff] }
  0xcf   :  { %1519 = vmatpush.msrb.mxu3 %v586_v2  ;;  %1491 = vmatpush.msrb.mxu2 %v552_v5  ;;  %v3571_v36 = vpop.f32.mrf.mxu2  ;;  %v542_v5 = vunpack.c.h.bf16 %v2047_v4  ;;  %v512_v17 = vunpack.c.h.bf16 %v2052_v16  ;;  %v2068_v4 = vld [vmem:[%s4462_s0 + $0x180] sm:$0xff]  ;;  %v2073_v16 = vld [vmem:[%s4461_s1 + $0x308] sm:$0xff] }
  0xd0   :  { %1433 = vmatpush.msrb.mxu0 %v488_v7  ;;  %1461 = vmatpush.msrb.mxu1 %v522_v9  ;;  %v2049_v7 = vld [vmem:[%s4461_s1 + $0x3b8] sm:$0xff]  ;;  %v2050_v9 = vld [vmem:[%s4461_s1 + $0x230] sm:$0xff] }
  0xd1   :  { %1419 = vmatmul.f32.gmra.mxu3 %v2036_v35  ;;  %1361 = vmatmul.f32.gmra.mxu1 %v2039_v41  ;;  %v576_v8 = vunpack.c.h.bf16 %v2049_v7  ;;  %v478_v13 = vunpack.c.h.bf16 %v2050_v9  ;;  %v2059_v35 = vld [vmem:[%s4462_s0 + $0x108] sm:$0xff]  ;;  %v2070_v7 = vld [vmem:[%s4461_s1 + $0x210] sm:$0xff] }
  0xd2   :  { %1492 = vmatpush.msrb.mxu2 %v550_v15  ;;  %1520 = vmatpush.msrb.mxu3 %v584_v18  ;;  %v3590_v50 = vpop.f32.mrf.mxu3  ;;  %v2051_v15 = vld [vmem:[%s4462_s0 + $0x110] sm:$0xff]  ;;  %v2053_v18 = vld [vmem:[%s4461_s1 + $0x328] sm:$0xff] }
  0xd3   :  { %1434 = vmatpush.msrb.mxu0 %v486_v20  ;;  %v3588_v49 = vpop.f32.mrf.mxu0  ;;  %1462 = vmatpush.msrb.mxu1 %v520_v24  ;;  %v540_v19 = vunpack.c.h.bf16 %v2053_v18  ;;  %v2054_v20 = vld [vmem:[%s4461_s1 + $0x3b0] sm:$0xff]  ;;  %v476_v24 = vunpack.c.h.bf16 %v2055_v23  ;;  %v2076_v23 = vld [vmem:[%s4462_s0 + $0x198] sm:$0xff] }
  0xd4   :  { %1493 = vmatpush.msrb.mxu2 %v548_v28  ;;  %1521 = vmatpush.msrb.mxu3 %v582_v30  ;;  %v574_v22 = vunpack.c.h.bf16 %v2054_v20  ;;  %v510_v30 = vunpack.c.h.bf16 %v2057_v29  ;;  %v2071_v9 = vld [vmem:[%s4462_s0 + $0x190] sm:$0xff]  ;;  %v2075_v20 = vld [vmem:[%s4461_s1 + $0x208] sm:$0xff] }
  0xd5   :  { %1435 = vmatpush.msrb.mxu0 %v484_v34  ;;  %1463 = vmatpush.msrb.mxu1 %v518_v38  ;;  %v538_v34 = vunpack.c.h.bf16 %v2058_v33  ;;  %v572_v38 = vunpack.c.h.bf16 %v2060_v37  ;;  %v2074_v18 = vld [vmem:[%s4461_s1 + $0x390] sm:$0xff] }
  0xd6   :  { %1494 = vmatpush.msrb.mxu2 %v546_v40  ;;  %1522 = vmatpush.msrb.mxu3 %v580_v43  ;;  %v3607_v2 = vpop.f32.mrf.mxu1  ;;  %v474_v40 = vunpack.c.h.bf16 %v2061_v39  ;;  %v2062_v43 = vld [vmem:[%s4461_s1 + $0x2a8] sm:$0xff] }
  0xd7   :  { %1436 = vmatpush.msrb.mxu0 %v482_v47  ;;  %1464 = vmatpush.msrb.mxu1 %v516_v52  ;;  %v508_v45 = vunpack.c.h.bf16 %v2062_v43  ;;  %v2063_v47 = vld [vmem:[%s4461_s1 + $0x3a0] sm:$0xff]  ;;  %v2064_v52 = vld [vmem:[%s4461_s1 + $0x318] sm:$0xff] }
  0xd8   :  { %1335 = vmatmul.f32.gmra.mxu0 %v2048_v6  ;;  %1393 = vmatmul.f32.gmra.mxu2 %v2051_v15  ;;  %v570_v51 = vunpack.c.h.bf16 %v2063_v47  ;;  %v536_v55 = vunpack.c.h.bf16 %v2064_v52 }
  0xd9   :  { %1523 = vmatpush.msrb.mxu3 %v578_v56  ;;  %1495 = vmatpush.msrb.mxu2 %v544_v58  ;;  %v3639_v28 = vpop.f32.mrf.mxu2  ;;  %v2065_v56 = vld [vmem:[%s4461_s1 + $0x218] sm:$0xff]  ;;  %v2066_v58 = vld [vmem:[%s4461_s1 + $0x2a0] sm:$0xff] }
  0xda   :  { %1437 = vmatpush.msrb.mxu0 %v480_v62  ;;  %1465 = vmatpush.msrb.mxu1 %v514_v0  ;;  %v472_v57 = vunpack.c.h.bf16 %v2065_v56  ;;  %v506_v59 = vunpack.c.h.bf16 %v2066_v58  ;;  %v534_v0 = vunpack.c.h.bf16 %v2067_v63 }
  0xdb   :  { %1422 = vmatmul.f32.gmra.mxu3 %v2056_v26  ;;  %1364 = vmatmul.f32.gmra.mxu1 %v2059_v35  ;;  %v2077_v26 = vld [vmem:[%s4461_s1 + $0x290] sm:$0xff]  ;;  %v2080_v35 = vld [vmem:[%s4461_s1 + $0x388] sm:$0xff] }
  0xdc   :  { %1496 = vmatpush.msrb.mxu2 %v542_v5  ;;  %1524 = vmatpush.msrb.mxu3 %v576_v8  ;;  %v3658_v42 = vpop.f32.mrf.mxu3  ;;  %v2069_v5 = vld [vmem:[%s4461_s1 + $0x398] sm:$0xff]  ;;  %v470_v8 = vunpack.c.h.bf16 %v2070_v7  ;;  %v502_v29 = vunpack.c.h.bf16 %v2077_v26  ;;  %v564_v37 = vunpack.c.h.bf16 %v2080_v35  ;;  %v2089_v7 = vld [vmem:[%s4462_s0 + $0x30] sm:$0xff]  ;;  %v2096_v26 = vld [vmem:[%s4461_s1 + $0x468] sm:$0xff] }
  0xdd   :  { %1438 = vmatpush.msrb.mxu0 %v478_v13  ;;  %v3656_v41 = vpop.f32.mrf.mxu0  ;;  %1466 = vmatpush.msrb.mxu1 %v512_v17  ;;  %v568_v6 = vunpack.c.h.bf16 %v2069_v5  ;;  %v2072_v13 = vld [vmem:[%s4461_s1 + $0x298] sm:$0xff]  ;;  %v532_v17 = vunpack.c.h.bf16 %v2073_v16  ;;  %v2088_v5 = vld [vmem:[%s4461_s1 + $0x570] sm:$0xff] }
  0xde   :  { %1497 = vmatpush.msrb.mxu2 %v540_v19  ;;  %1525 = vmatpush.msrb.mxu3 %v574_v22  ;;  %v504_v15 = vunpack.c.h.bf16 %v2072_v13  ;;  %v566_v19 = vunpack.c.h.bf16 %v2074_v18  ;;  %v468_v22 = vunpack.c.h.bf16 %v2075_v20  ;;  %v2091_v13 = vld [vmem:[%s4461_s1 + $0x470] sm:$0xff]  ;;  %v2092_v16 = vld [vmem:[%s4461_s1 + $0x4f8] sm:$0xff]  ;;  %v2093_v18 = vld [vmem:[%s4461_s1 + $0x568] sm:$0xff] }
  0xdf   :  { %1439 = vmatpush.msrb.mxu0 %v476_v24  ;;  %1467 = vmatpush.msrb.mxu1 %v510_v30  ;;  %v2078_v30 = vld [vmem:[%s4461_s1 + $0x300] sm:$0xff]  ;;  %v2094_v20 = vld [vmem:[%s4462_s0 + $0x28] sm:$0xff] }
  0xe0   :  { %1498 = vmatpush.msrb.mxu2 %v538_v34  ;;  %1526 = vmatpush.msrb.mxu3 %v572_v38  ;;  %v3675_v62 = vpop.f32.mrf.mxu1  ;;  %v530_v33 = vunpack.c.h.bf16 %v2078_v30  ;;  %v2079_v34 = vld [vmem:[%s4462_s0 + $0x188] sm:$0xff]  ;;  %v2081_v38 = vld [vmem:[%s4461_s1 + $0x200] sm:$0xff] }
  0xe1   :  { %1440 = vmatpush.msrb.mxu0 %v474_v40  ;;  %1468 = vmatpush.msrb.mxu1 %v508_v45  ;;  %v466_v39 = vunpack.c.h.bf16 %v2081_v38  ;;  %v2082_v45 = vld [vmem:[%s4461_s1 + $0x288] sm:$0xff] }
  0xe2   :  { %1338 = vmatmul.f32.gmra.mxu0 %v2068_v4  ;;  %1396 = vmatmul.f32.gmra.mxu2 %v2071_v9  ;;  %v500_v47 = vunpack.c.h.bf16 %v2082_v45  ;;  %v2087_v4 = vld [vmem:[%s4462_s0 + $0x20] sm:$0xff] }
  0xe3   :  { %1527 = vmatpush.msrb.mxu3 %v570_v51  ;;  %1499 = vmatpush.msrb.mxu2 %v536_v55  ;;  %v3707_v24 = vpop.f32.mrf.mxu2  ;;  %v2083_v51 = vld [vmem:[%s4461_s1 + $0x380] sm:$0xff] }
  0xe4   :  { %1441 = vmatpush.msrb.mxu0 %v472_v57  ;;  %1469 = vmatpush.msrb.mxu1 %v506_v59  ;;  %v562_v52 = vunpack.c.h.bf16 %v2083_v51  ;;  %v2084_v55 = vld [vmem:[%s4461_s1 + $0x280] sm:$0xff]  ;;  %v2085_v57 = vld [vmem:[%s4461_s1 + $0x578] sm:$0xff] }
  0xe5   :  { %1425 = vmatmul.f32.gmra.mxu3 %v2076_v23  ;;  %1367 = vmatmul.f32.gmra.mxu1 %v2079_v34  ;;  %v498_v56 = vunpack.c.h.bf16 %v2084_v55  ;;  %v688_v58 = vunpack.c.h.bf16 %v2085_v57  ;;  %v2086_v59 = vld [vmem:[%s4461_s1 + $0x478] sm:$0xff]  ;;  %v2098_v34 = vld [vmem:[%s4461_s1 + $0x4f0] sm:$0xff] }
  0xe6   :  { %1500 = vmatpush.msrb.mxu2 %v534_v0  ;;  %1528 = vmatpush.msrb.mxu3 %v568_v6  ;;  %v3726_v43 = vpop.f32.mrf.mxu3  ;;  %v624_v63 = vunpack.c.h.bf16 %v2086_v59  ;;  %v686_v6 = vunpack.c.h.bf16 %v2088_v5  ;;  %v654_v35 = vunpack.c.h.bf16 %v2098_v34  ;;  %v2105_v5 = vld [vmem:[%s4461_s1 + $0x458] sm:$0xff] }
  0xe7   :  { %1442 = vmatpush.msrb.mxu0 %v470_v8  ;;  %v3724_v40 = vpop.f32.mrf.mxu0  ;;  %1470 = vmatpush.msrb.mxu1 %v504_v15  ;;  %v2090_v8 = vld [vmem:[%s4461_s1 + $0x5f8] sm:$0xff]  ;;  %v622_v15 = vunpack.c.h.bf16 %v2091_v13  ;;  %v2107_v13 = vld [vmem:[%s4462_s0 + $0xa0] sm:$0xff] }
  0xe8   :  { %1501 = vmatpush.msrb.mxu2 %v532_v17  ;;  %1529 = vmatpush.msrb.mxu3 %v566_v19  ;;  %v720_v9 = vunpack.c.h.bf16 %v2090_v8  ;;  %v656_v17 = vunpack.c.h.bf16 %v2092_v16  ;;  %v684_v19 = vunpack.c.h.bf16 %v2093_v18  ;;  %v2110_v18 = vld [vmem:[%s4461_s1 + $0x5d8] sm:$0xff] }
  0xe9   :  { %1443 = vmatpush.msrb.mxu0 %v468_v22  ;;  %1471 = vmatpush.msrb.mxu1 %v502_v29  ;;  %v2095_v22 = vld [vmem:[%s4461_s1 + $0x5f0] sm:$0xff]  ;;  %v620_v29 = vunpack.c.h.bf16 %v2096_v26  ;;  %v2114_v34 = vld [vmem:[%s4462_s0 + $0xb8] sm:$0xff] }
  0xea   :  { %1502 = vmatpush.msrb.mxu2 %v530_v33  ;;  %1530 = vmatpush.msrb.mxu3 %v564_v37  ;;  %v3743_v0 = vpop.f32.mrf.mxu1  ;;  %v718_v23 = vunpack.c.h.bf16 %v2095_v22  ;;  %v2097_v33 = vld [vmem:[%s4462_s0 + $0x38] sm:$0xff]  ;;  %v2099_v37 = vld [vmem:[%s4461_s1 + $0x560] sm:$0xff] }
  0xeb   :  { %1444 = vmatpush.msrb.mxu0 %v466_v39  ;;  %1472 = vmatpush.msrb.mxu1 %v500_v47  ;;  %v682_v38 = vunpack.c.h.bf16 %v2099_v37  ;;  %v2100_v39 = vld [vmem:[%s4461_s1 + $0x5e8] sm:$0xff]  ;;  %v2101_v47 = vld [vmem:[%s4461_s1 + $0x460] sm:$0xff] }
  0xec   :  { %1445 = vmatmul.f32.vlgmr.msrb.gmra.mxu0 %v2087_v4  ;;  %1503 = vmatmul.f32.vlgmr.msrb.gmra.mxu2 %v2089_v7  ;;  %v716_v45 = vunpack.c.h.bf16 %v2100_v39  ;;  %v618_v51 = vunpack.c.h.bf16 %v2101_v47  ;;  %v2106_v7 = vld [vmem:[%s4461_s1 + $0x4e0] sm:$0xff]  ;;  %v2117_v47 = vld [vmem:[%s4462_s0 + $0xa8] sm:$0xff] }
  0xed   :  { %1531 = vmatpush.msrb.mxu3 %v562_v52  ;;  %1603 = vmatpush.msra.mxu2 %v688_v58  ;;  %v3775_v30 = vpop.f32.mrf.mxu2  ;;  %v2103_v58 = vld [vmem:[%s4461_s1 + $0x5e0] sm:$0xff]  ;;  %v650_v8 = vunpack.c.h.bf16 %v2106_v7 }
  0xee   :  { %1473 = vmatpush.msrb.mxu1 %v498_v56  ;;  %1545 = vmatpush.msra.mxu0 %v624_v63  ;;  %v2102_v56 = vld [vmem:[%s4461_s1 + $0x4e8] sm:$0xff]  ;;  %v714_v59 = vunpack.c.h.bf16 %v2103_v58  ;;  %v2104_v63 = vld [vmem:[%s4461_s1 + $0x558] sm:$0xff] }
  0xef   :  { %1474 = vmatmul.f32.vlgmr.msrb.gmra.mxu1 %v2094_v20  ;;  %1532 = vmatmul.f32.vlgmr.msrb.gmra.mxu3 %v2097_v33  ;;  %v652_v57 = vunpack.c.h.bf16 %v2102_v56  ;;  %v680_v4 = vunpack.c.h.bf16 %v2104_v63  ;;  %v2111_v20 = vld [vmem:[%s4461_s1 + $0x450] sm:$0xff] }
  0xf0   :  { %1604 = vmatpush.msra.mxu2 %v686_v6  ;;  %1632 = vmatpush.msra.mxu3 %v720_v9  ;;  %v3792_v52 = vpop.f32.mrf.mxu3  ;;  %v616_v6 = vunpack.c.h.bf16 %v2105_v5  ;;  %v614_v22 = vunpack.c.h.bf16 %v2111_v20 }
  0xf1   :  { %1546 = vmatpush.msra.mxu0 %v622_v15  ;;  %v3794_v55 = vpop.f32.mrf.mxu0  ;;  %1574 = vmatpush.msra.mxu1 %v656_v17  ;;  %v2108_v15 = vld [vmem:[%s4461_s1 + $0x550] sm:$0xff] }
  0xf2   :  { %1605 = vmatpush.msra.mxu2 %v684_v19  ;;  %1633 = vmatpush.msra.mxu3 %v718_v23  ;;  %v678_v16 = vunpack.c.h.bf16 %v2108_v15  ;;  %v2109_v17 = vld [vmem:[%s4462_s0 + $0xb0] sm:$0xff]  ;;  %v712_v19 = vunpack.c.h.bf16 %v2110_v18  ;;  %v2112_v23 = vld [vmem:[%s4461_s1 + $0x4d8] sm:$0xff]  ;;  %v2123_v15 = vld [vmem:[%s4461_s1 + $0x5c0] sm:$0xff] }
  0xf3   :  { %1547 = vmatpush.msra.mxu0 %v620_v29  ;;  %1575 = vmatpush.msra.mxu1 %v654_v35  ;;  %v648_v26 = vunpack.c.h.bf16 %v2112_v23  ;;  %v2113_v29 = vld [vmem:[%s4461_s1 + $0x548] sm:$0xff]  ;;  %v2115_v35 = vld [vmem:[%s4461_s1 + $0x5d0] sm:$0xff] }
  0xf4   :  { %1606 = vmatpush.msra.mxu2 %v682_v38  ;;  %1634 = vmatpush.msra.mxu3 %v716_v45  ;;  %v3811_v9 = vpop.f32.mrf.mxu1  ;;  %v676_v33 = vunpack.c.h.bf16 %v2113_v29  ;;  %v710_v37 = vunpack.c.h.bf16 %v2115_v35  ;;  %v2116_v38 = vld [vmem:[%s4461_s1 + $0x448] sm:$0xff]  ;;  %v2127_v29 = vld [vmem:[%s4462_s0 + $0x120] sm:$0xff]  ;;  %v2129_v35 = vld [vmem:[%s4462_s0 + $0x130] sm:$0xff] }
  0xf5   :  { %1548 = vmatpush.msra.mxu0 %v618_v51  ;;  %1576 = vmatpush.msra.mxu1 %v652_v57  ;;  %v612_v39 = vunpack.c.h.bf16 %v2116_v38  ;;  %v2118_v51 = vld [vmem:[%s4461_s1 + $0x4d0] sm:$0xff]  ;;  %v2119_v57 = vld [vmem:[%s4461_s1 + $0x540] sm:$0xff] }
  0xf6   :  { %1448 = vmatmul.f32.gmra.mxu0 %v2107_v13  ;;  %1506 = vmatmul.f32.gmra.mxu2 %v2109_v17  ;;  %v646_v56 = vunpack.c.h.bf16 %v2118_v51  ;;  %v674_v58 = vunpack.c.h.bf16 %v2119_v57  ;;  %v2124_v17 = vld [vmem:[%s4461_s1 + $0x538] sm:$0xff]  ;;  %v2133_v57 = vld [vmem:[%s4461_s1 + $0x528] sm:$0xff] }
  0xf7   :  { %1635 = vmatpush.msra.mxu3 %v714_v59  ;;  %1607 = vmatpush.msra.mxu2 %v680_v4  ;;  %v3843_v45 = vpop.f32.mrf.mxu2  ;;  %v2120_v59 = vld [vmem:[%s4461_s1 + $0x5c8] sm:$0xff]  ;;  %v2121_v4 = vld [vmem:[%s4461_s1 + $0x440] sm:$0xff]  ;;  %v672_v18 = vunpack.c.h.bf16 %v2124_v17  ;;  %v2132_v51 = vld [vmem:[%s4461_s1 + $0x4b8] sm:$0xff] }
  0xf8   :  { %1549 = vmatpush.msra.mxu0 %v616_v6  ;;  %1577 = vmatpush.msra.mxu1 %v650_v8  ;;  %v708_v63 = vunpack.c.h.bf16 %v2120_v59  ;;  %v610_v5 = vunpack.c.h.bf16 %v2121_v4  ;;  %v2122_v8 = vld [vmem:[%s4461_s1 + $0x4c8] sm:$0xff]  ;;  %v2134_v59 = vld [vmem:[%s4462_s0 + $0x138] sm:$0xff] }
  0xf9   :  { %1535 = vmatmul.f32.gmra.mxu3 %v2114_v34  ;;  %1477 = vmatmul.f32.gmra.mxu1 %v2117_v47  ;;  %v644_v13 = vunpack.c.h.bf16 %v2122_v8 }
  0xfa   :  { %1608 = vmatpush.msra.mxu2 %v678_v16  ;;  %1636 = vmatpush.msra.mxu3 %v712_v19  ;;  %v3862_v7 = vpop.f32.mrf.mxu3  ;;  %v706_v16 = vunpack.c.h.bf16 %v2123_v15  ;;  %v2125_v19 = vld [vmem:[%s4461_s1 + $0x438] sm:$0xff]  ;;  %v2137_v15 = vld [vmem:[%s4462_s0 + $0x128] sm:$0xff] }
  0xfb   :  { %1550 = vmatpush.msra.mxu0 %v614_v22  ;;  %v3860_v6 = vpop.f32.mrf.mxu0  ;;  %1578 = vmatpush.msra.mxu1 %v648_v26  ;;  %v608_v20 = vunpack.c.h.bf16 %v2125_v19  ;;  %v2126_v22 = vld [vmem:[%s4461_s1 + $0x4c0] sm:$0xff] }
  0xfc   :  { %1609 = vmatpush.msra.mxu2 %v676_v33  ;;  %1637 = vmatpush.msra.mxu3 %v710_v37  ;;  %v642_v23 = vunpack.c.h.bf16 %v2126_v22  ;;  %v2128_v33 = vld [vmem:[%s4461_s1 + $0x530] sm:$0xff]  ;;  %v2130_v37 = vld [vmem:[%s4461_s1 + $0x5b8] sm:$0xff] }
  0xfd   :  { %1551 = vmatpush.msra.mxu0 %v612_v39  ;;  %1579 = vmatpush.msra.mxu1 %v646_v56  ;;  %v670_v34 = vunpack.c.h.bf16 %v2128_v33  ;;  %v704_v38 = vunpack.c.h.bf16 %v2130_v37  ;;  %v2131_v39 = vld [vmem:[%s4461_s1 + $0x430] sm:$0xff]  ;;  %v640_v56 = vunpack.c.h.bf16 %v2132_v51 }
  0xfe   :  { %1610 = vmatpush.msra.mxu2 %v674_v58  ;;  %1638 = vmatpush.msra.mxu3 %v708_v63  ;;  %v3879_v26 = vpop.f32.mrf.mxu1  ;;  %v606_v47 = vunpack.c.h.bf16 %v2131_v39  ;;  %v668_v58 = vunpack.c.h.bf16 %v2133_v57  ;;  %v2135_v63 = vld [vmem:[%s4461_s1 + $0x5b0] sm:$0xff] }
  0xff   :  { %1552 = vmatpush.msra.mxu0 %v610_v5  ;;  %1580 = vmatpush.msra.mxu1 %v644_v13  ;;  %v702_v4 = vunpack.c.h.bf16 %v2135_v63  ;;  %v2136_v5 = vld [vmem:[%s4461_s1 + $0x428] sm:$0xff] }
 0x100   :  { %1451 = vmatmul.f32.gmra.mxu0 %v2127_v29  ;;  %1509 = vmatmul.f32.gmra.mxu2 %v2129_v35  ;;  %v604_v8 = vunpack.c.h.bf16 %v2136_v5  ;;  %v2142_v35 = vld [vmem:[%s4461_s1 + $0x4a8] sm:$0xff]  ;;  %v2148_v5 = vld [vmem:[%s4461_s1 + $0x510] sm:$0xff] }
 0x101   :  { %1639 = vmatpush.msra.mxu3 %v706_v16  ;;  %1611 = vmatpush.msra.mxu2 %v672_v18  ;;  %v3911_v13 = vpop.f32.mrf.mxu2  ;;  %v2138_v16 = vld [vmem:[%s4461_s1 + $0x4b0] sm:$0xff]  ;;  %v2139_v18 = vld [vmem:[%s4461_s1 + $0x520] sm:$0xff]  ;;  %v636_v37 = vunpack.c.h.bf16 %v2142_v35  ;;  %v2154_v35 = vld [vmem:[%s4462_s0 + $0x1b8] sm:$0xff] }
 0x102   :  { %1553 = vmatpush.msra.mxu0 %v608_v20  ;;  %1581 = vmatpush.msra.mxu1 %v642_v23  ;;  %v638_v17 = vunpack.c.h.bf16 %v2138_v16  ;;  %v666_v19 = vunpack.c.h.bf16 %v2139_v18  ;;  %v2140_v20 = vld [vmem:[%s4461_s1 + $0x5a8] sm:$0xff]  ;;  %v2141_v23 = vld [vmem:[%s4461_s1 + $0x420] sm:$0xff]  ;;  %v2150_v16 = vld [vmem:[%s4461_s1 + $0x598] sm:$0xff] }
 0x103   :  { %1538 = vmatmul.f32.gmra.mxu3 %v2134_v59  ;;  %1480 = vmatmul.f32.gmra.mxu1 %v2137_v15  ;;  %v700_v22 = vunpack.c.h.bf16 %v2140_v20  ;;  %v602_v29 = vunpack.c.h.bf16 %v2141_v23  ;;  %v2149_v15 = vld [vmem:[%s4462_s0 + $0x1b0] sm:$0xff]  ;;  %v2152_v20 = vld [vmem:[%s4461_s1 + $0x498] sm:$0xff]  ;;  %v2153_v23 = vld [vmem:[%s4461_s1 + $0x508] sm:$0xff] }
 0x104   :  { %1612 = vmatpush.msra.mxu2 %v670_v34  ;;  %1640 = vmatpush.msra.mxu3 %v704_v38  ;;  %v3930_v34 = vpop.f32.mrf.mxu3  ;;  %v2143_v38 = vld [vmem:[%s4461_s1 + $0x5a0] sm:$0xff]  ;;  %v2151_v18 = vld [vmem:[%s4461_s1 + $0x410] sm:$0xff] }
 0x105   :  { %1554 = vmatpush.msra.mxu0 %v606_v47  ;;  %v3928_v33 = vpop.f32.mrf.mxu0  ;;  %1582 = vmatpush.msra.mxu1 %v640_v56  ;;  %v698_v39 = vunpack.c.h.bf16 %v2143_v38  ;;  %v2144_v47 = vld [vmem:[%s4461_s1 + $0x518] sm:$0xff] }
 0x106   :  { %1613 = vmatpush.msra.mxu2 %v668_v58  ;;  %1641 = vmatpush.msra.mxu3 %v702_v4  ;;  %v664_v51 = vunpack.c.h.bf16 %v2144_v47  ;;  %v2145_v56 = vld [vmem:[%s4461_s1 + $0x418] sm:$0xff]  ;;  %v2146_v58 = vld [vmem:[%s4461_s1 + $0x4a0] sm:$0xff] }
 0x107   :  { %1555 = vmatpush.msra.mxu0 %v604_v8  ;;  %1583 = vmatpush.msra.mxu1 %v638_v17  ;;  %v600_v57 = vunpack.c.h.bf16 %v2145_v56  ;;  %v634_v59 = vunpack.c.h.bf16 %v2146_v58  ;;  %v2147_v4 = vld [vmem:[%s4462_s0 + $0x1a0] sm:$0xff]  ;;  %v662_v8 = vunpack.c.h.bf16 %v2148_v5  ;;  %v696_v17 = vunpack.c.h.bf16 %v2150_v16  ;;  %v2157_v56 = vld [vmem:[%s4462_s0 + $0x1a8] sm:$0xff] }
 0x108   :  { %1614 = vmatpush.msra.mxu2 %v666_v19  ;;  %1642 = vmatpush.msra.mxu3 %v700_v22  ;;  %v3947_v63 = vpop.f32.mrf.mxu1  ;;  %v598_v19 = vunpack.c.h.bf16 %v2151_v18  ;;  %v632_v22 = vunpack.c.h.bf16 %v2152_v20  ;;  %v2160_v5 = vld [vmem:[%s4461_s1 + $0x588] sm:$0xff] }
 0x109   :  { %1556 = vmatpush.msra.mxu0 %v602_v29  ;;  %1584 = vmatpush.msra.mxu1 %v636_v37  ;;  %v660_v29 = vunpack.c.h.bf16 %v2153_v23  ;;  %v2155_v37 = vld [vmem:[%s4461_s1 + $0x590] sm:$0xff]  ;;  %v899_v23 = vadd.f32 %v3341_v3, %v3316_v53  ;;  %v2165_v53 = vld [vmem:[%s4461_s1 + $0x480] sm:$0xff] }
 0x10a   :  { %1454 = vmatmul.f32.gmra.mxu0 %v2147_v4  ;;  %1512 = vmatmul.f32.gmra.mxu2 %v2149_v15  ;;  %v694_v38 = vunpack.c.h.bf16 %v2155_v37  ;;  %v692_v15 = vunpack.c.h.bf16 %v2160_v5  ;;  %v626_v3 = vunpack.c.h.bf16 %v2165_v53  ;;  %v2171_v5 = vld [vmem:[%s4461_s1 + $0x670] sm:$0xff]  ;;  %v905_v53 = vadd.f32 %v3471_v25, %v3452_v11  ;;  %v2180_v25 = vld [vmem:[%s4461_s1 + $0x7e8] sm:$0xff] }
 0x10b   :  { %1643 = vmatpush.msra.mxu3 %v698_v39  ;;  %1615 = vmatpush.msra.mxu2 %v664_v51  ;;  %v2156_v39 = vld [vmem:[%s4461_s1 + $0x408] sm:$0xff]  ;;  %v3979_v51 = vpop.f32.mrf.mxu2 }
 0x10c   :  { %1557 = vmatpush.msra.mxu0 %v600_v57  ;;  %1585 = vmatpush.msra.mxu1 %v634_v59  ;;  %v596_v47 = vunpack.c.h.bf16 %v2156_v39  ;;  %v2158_v57 = vld [vmem:[%s4461_s1 + $0x490] sm:$0xff]  ;;  %v2159_v59 = vld [vmem:[%s4461_s1 + $0x500] sm:$0xff]  ;;  %v896_v39 = vadd.f32 %v3273_v27, %v3250_v14  ;;  %v2166_v14 = vld [vmem:[%s4461_s1 + $0x678] sm:$0xff] }
 0x10d   :  { %1541 = vmatmul.f32.gmra.mxu3 %v2154_v35  ;;  %1483 = vmatmul.f32.gmra.mxu1 %v2157_v56  ;;  %v630_v58 = vunpack.c.h.bf16 %v2158_v57  ;;  %v658_v4 = vunpack.c.h.bf16 %v2159_v59  ;;  %v2163_v35 = vld [vmem:[%s4461_s1 + $0x580] sm:$0xff]  ;;  %v752_v27 = vunpack.c.h.bf16 %v2166_v14  ;;  %v2169_v59 = vld [vmem:[%s4462_s0 + $0x50] sm:$0xff] }
 0x10e   :  { %1616 = vmatpush.msra.mxu2 %v662_v8  ;;  %1644 = vmatpush.msra.mxu3 %v696_v17  ;;  %v2161_v8 = vld [vmem:[%s4461_s1 + $0x400] sm:$0xff]  ;;  %v3998_v20 = vpop.f32.mrf.mxu3  ;;  %v2162_v17 = vld [vmem:[%s4461_s1 + $0x488] sm:$0xff]  ;;  %v690_v37 = vunpack.c.h.bf16 %v2163_v35  ;;  %v925_v57 = vadd.f32 %v3302_v44, %v896_v39  ;;  %v2170_v44 = vld [vmem:[%s4461_s1 + $0x7f8] sm:$0xff] }
 0x10f   :  { %1558 = vmatpush.msra.mxu0 %v598_v19  ;;  %v594_v16 = vunpack.c.h.bf16 %v2161_v8  ;;  %v3996_v18 = vpop.f32.mrf.mxu0  ;;  %1586 = vmatpush.msra.mxu1 %v632_v22  ;;  %v628_v19 = vunpack.c.h.bf16 %v2162_v17  ;;  %v2164_v22 = vld [vmem:[%s4461_s1 + $0x778] sm:$0xff]  ;;  %v2175_v35 = vld [vmem:[%s4461_s1 + $0x7f0] sm:$0xff]  ;;  %v2176_v39 = vld [vmem:[%s4461_s1 + $0x668] sm:$0xff] }
 0x110   :  { %1617 = vmatpush.msra.mxu2 %v660_v29  ;;  %1645 = vmatpush.msra.mxu3 %v694_v38  ;;  %v816_v29 = vunpack.c.h.bf16 %v2164_v22  ;;  %v928_v38 = vadd.f32 %v3370_v21, %v899_v23  ;;  %v2168_v21 = vld [vmem:[%s4461_s1 + $0x770] sm:$0xff]  ;;  %v2174_v23 = vld [vmem:[%s4462_s0 + $0x48] sm:$0xff]  ;;  %v748_v22 = vunpack.c.h.bf16 %v2176_v39  ;;  %v2179_v14 = vld [vmem:[%s4461_s1 + $0x760] sm:$0xff] }
 0x111   :  { %1559 = vmatpush.msra.mxu0 %v596_v47  ;;  %1587 = vmatpush.msra.mxu1 %v630_v58  ;;  %v902_v47 = vadd.f32 %v3409_v46, %v3384_v31  ;;  %v2167_v58 = vld [vmem:[%s4462_s0 + $0x40] sm:$0xff]  ;;  %v814_v31 = vunpack.c.h.bf16 %v2168_v21 }
 0x112   :  { %1618 = vmatpush.msra.mxu2 %v658_v4  ;;  %1646 = vmatpush.msra.mxu3 %v692_v15  ;;  %v4022_v56 = vpop.f32.mrf.mxu1  ;;  %v848_v4 = vunpack.c.h.bf16 %v2170_v44  ;;  %v750_v15 = vunpack.c.h.bf16 %v2171_v5  ;;  %v2183_v5 = vld [vmem:[%s4461_s1 + $0x7e0] sm:$0xff] }
 0x113   :  { %1560 = vmatpush.msra.mxu0 %v594_v16  ;;  %1588 = vmatpush.msra.mxu1 %v628_v19  ;;  %v931_v46 = vadd.f32 %v3438_v1, %v902_v47  ;;  %v2172_v1 = vld [vmem:[%s4461_s1 + $0x6f8] sm:$0xff]  ;;  %v2173_v16 = vld [vmem:[%s4461_s1 + $0x768] sm:$0xff]  ;;  %v957_v19 = vadd.f32 %v3386_v32, %v928_v38  ;;  %v954_v32 = vadd.f32 %v3318_v54, %v925_v57  ;;  %v2178_v38 = vld [vmem:[%s4461_s1 + $0x6f0] sm:$0xff]  ;;  %v844_v57 = vunpack.c.h.bf16 %v2180_v25 }
 0x114   :  { %1561 = vmatmul.f32.vlgmr.msra.gmra.mxu0 %v2167_v58  ;;  %1619 = vmatmul.f32.vlgmr.msra.gmra.mxu2 %v2169_v59  ;;  %v784_v8 = vunpack.c.h.bf16 %v2172_v1  ;;  %v812_v17 = vunpack.c.h.bf16 %v2173_v16  ;;  %v782_v47 = vunpack.c.h.bf16 %v2178_v38  ;;  %v2181_v58 = vld [vmem:[%s4461_s1 + $0x660] sm:$0xff]  ;;  %v2185_v1 = vld [vmem:[%s4461_s1 + $0x658] sm:$0xff] }
 0x115   :  { %1647 = vmatpush.msra.mxu3 %v690_v37  ;;  %1719 = vmatpush.msrb.mxu2 %v816_v29  ;;  %v846_v37 = vunpack.c.h.bf16 %v2175_v35  ;;  %v4057_v29 = vpop.f32.mrf.mxu2  ;;  %v960_v54 = vadd.f32 %v3454_v12, %v931_v46  ;;  %v986_v11 = vadd.f32 %v3588_v49, %v957_v19  ;;  %v746_v21 = vunpack.c.h.bf16 %v2181_v58  ;;  %v2182_v46 = vld [vmem:[%s4461_s1 + $0x6e8] sm:$0xff]  ;;  %v2186_v16 = vld [vmem:[%s4461_s1 + $0x6e0] sm:$0xff] }
 0x116   :  { %1589 = vmatpush.msra.mxu1 %v626_v3  ;;  %1661 = vmatpush.msrb.mxu0 %v752_v27  ;;  %v2177_v3 = vld [vmem:[%s4462_s0 + $0x58] sm:$0xff]  ;;  %v810_v27 = vunpack.c.h.bf16 %v2179_v14  ;;  %v934_v12 = vadd.f32 %v3503_v48, %v905_v53  ;;  %v983_v49 = vadd.f32 %v3522_v61, %v954_v32  ;;  %v780_v44 = vunpack.c.h.bf16 %v2182_v46  ;;  %v2196_v58 = vld [vmem:[%s4461_s1 + $0x648] sm:$0xff]  ;;  %v2199_v46 = vld [vmem:[%s4461_s1 + $0x740] sm:$0xff] }
 0x117   :  { %1590 = vmatmul.f32.vlgmr.msra.gmra.mxu1 %v2174_v23  ;;  %1648 = vmatmul.f32.vlgmr.msra.gmra.mxu3 %v2177_v3  ;;  %v2184_v48 = vld [vmem:[%s4461_s1 + $0x758] sm:$0xff]  ;;  %v2191_v3 = vld [vmem:[%s4461_s1 + $0x650] sm:$0xff] }
 0x118   :  { %1720 = vmatpush.msrb.mxu2 %v814_v31  ;;  %1748 = vmatpush.msrb.mxu3 %v848_v4  ;;  %v4079_v31 = vpop.f32.mrf.mxu3  ;;  %v989_v4 = vadd.f32 %v3656_v41, %v960_v54  ;;  %v808_v61 = vunpack.c.h.bf16 %v2184_v48  ;;  %v1015_v41 = vadd.f32 %v3607_v2, %v986_v11  ;;  %v963_v23 = vadd.f32 %v3520_v60, %v934_v12  ;;  %v2188_v2 = vld [vmem:[%s4461_s1 + $0x750] sm:$0xff]  ;;  %v2201_v48 = vld [vmem:[%s4461_s1 + $0x640] sm:$0xff] }
 0x119   :  { %1662 = vmatpush.msrb.mxu0 %v750_v15  ;;  %v4081_v59 = vpop.f32.mrf.mxu0  ;;  %1690 = vmatpush.msrb.mxu1 %v784_v8  ;;  %v842_v15 = vunpack.c.h.bf16 %v2183_v5  ;;  %v744_v8 = vunpack.c.h.bf16 %v2185_v1  ;;  %v1012_v35 = vadd.f32 %v3539_v10, %v983_v49  ;;  %v806_v39 = vunpack.c.h.bf16 %v2188_v2  ;;  %v2189_v60 = vld [vmem:[%s4462_s0 + $0xd0] sm:$0xff]  ;;  %v2190_v10 = vld [vmem:[%s4461_s1 + $0x7d8] sm:$0xff]  ;;  %v2200_v5 = vld [vmem:[%s4461_s1 + $0x7c8] sm:$0xff] }
 0x11a   :  { %1721 = vmatpush.msrb.mxu2 %v812_v17  ;;  %1749 = vmatpush.msrb.mxu3 %v846_v37  ;;  %v778_v17 = vunpack.c.h.bf16 %v2186_v16  ;;  %v2187_v37 = vld [vmem:[%s4462_s0 + $0xc0] sm:$0xff]  ;;  %v1018_v32 = vadd.f32 %v3675_v62, %v989_v4  ;;  %v840_v53 = vunpack.c.h.bf16 %v2190_v10  ;;  %v742_v38 = vunpack.c.h.bf16 %v2191_v3  ;;  %v2198_v12 = vld [vmem:[%s4461_s1 + $0x6d0] sm:$0xff]  ;;  %v2202_v16 = vld [vmem:[%s4461_s1 + $0x6c8] sm:$0xff] }
 0x11b   :  { %1663 = vmatpush.msrb.mxu0 %v748_v22  ;;  %1691 = vmatpush.msrb.mxu1 %v782_v47  ;;  %v1044_v22 = vadd.f32 %v3639_v28, %v1015_v41  ;;  %v1041_v28 = vadd.f32 %v3571_v36, %v1012_v35  ;;  %v992_v62 = vadd.f32 %v3724_v40, %v963_v23  ;;  %v2192_v47 = vld [vmem:[%s4461_s1 + $0x6d8] sm:$0xff]  ;;  %v2195_v40 = vld [vmem:[%s4461_s1 + $0x7d0] sm:$0xff]  ;;  %v774_v49 = vunpack.c.h.bf16 %v2198_v12  ;;  %v2207_v10 = vld [vmem:[%s4462_s0 + $0x140] sm:$0xff] }
 0x11c   :  { %1722 = vmatpush.msrb.mxu2 %v810_v27  ;;  %1750 = vmatpush.msrb.mxu3 %v844_v57  ;;  %v4102_v19 = vpop.f32.mrf.mxu1  ;;  %v776_v14 = vunpack.c.h.bf16 %v2192_v47  ;;  %v2193_v27 = vld [vmem:[%s4461_s1 + $0x748] sm:$0xff]  ;;  %v1047_v25 = vadd.f32 %v3707_v24, %v1018_v32  ;;  %v2194_v36 = vld [vmem:[%s4462_s0 + $0xd8] sm:$0xff]  ;;  %v838_v57 = vunpack.c.h.bf16 %v2195_v40  ;;  %v2211_v47 = vld [vmem:[%s4461_s1 + $0x630] sm:$0xff] }
 0x11d   :  { %1664 = vmatpush.msrb.mxu0 %v746_v21  ;;  %1692 = vmatpush.msrb.mxu1 %v780_v44  ;;  %v804_v54 = vunpack.c.h.bf16 %v2193_v27  ;;  %v740_v21 = vunpack.c.h.bf16 %v2196_v58  ;;  %v2197_v24 = vld [vmem:[%s4462_s0 + $0xc8] sm:$0xff]  ;;  %v802_v44 = vunpack.c.h.bf16 %v2199_v46  ;;  %v1073_v4 = vadd.f32 %v3658_v42, %v1044_v22  ;;  %v2218_v46 = vld [vmem:[%s4461_s1 + $0x6b0] sm:$0xff] }
 0x11e   :  { %1564 = vmatmul.f32.gmra.mxu0 %v2187_v37  ;;  %1622 = vmatmul.f32.gmra.mxu2 %v2189_v60  ;;  %v1070_v41 = vadd.f32 %v3590_v50, %v1041_v28  ;;  %v1021_v42 = vadd.f32 %v3743_v0, %v992_v62  ;;  %v1076_v23 = vadd.f32 %v3726_v43, %v1047_v25  ;;  %v2203_v37 = vld [vmem:[%s4461_s1 + $0x7c0] sm:$0xff]  ;;  %v2210_v28 = vld [vmem:[%s4461_s1 + $0x7b8] sm:$0xff]  ;;  %v2216_v12 = vld [vmem:[%s4461_s1 + $0x628] sm:$0xff] }
 0x11f   :  { %1751 = vmatpush.msrb.mxu3 %v842_v15  ;;  %1723 = vmatpush.msrb.mxu2 %v808_v61  ;;  %v4131_v11 = vpop.f32.mrf.mxu2  ;;  %v836_v15 = vunpack.c.h.bf16 %v2200_v5  ;;  %v738_v61 = vunpack.c.h.bf16 %v2201_v48  ;;  %v1102_v35 = vadd.f32 %v3860_v6, %v1073_v4  ;;  %v834_v50 = vunpack.c.h.bf16 %v2203_v37  ;;  %v2205_v6 = vld [vmem:[%s4461_s1 + $0x638] sm:$0xff]  ;;  %v2219_v4 = vld [vmem:[%s4461_s1 + $0x720] sm:$0xff] }
 0x120   :  { %1665 = vmatpush.msrb.mxu0 %v744_v8  ;;  %1693 = vmatpush.msrb.mxu1 %v778_v17  ;;  %v772_v17 = vunpack.c.h.bf16 %v2202_v16  ;;  %v1050_v0 = vadd.f32 %v3775_v30, %v1021_v42  ;;  %v1099_v2 = vadd.f32 %v3794_v55, %v1070_v41  ;;  %v736_v22 = vunpack.c.h.bf16 %v2205_v6  ;;  %v2206_v30 = vld [vmem:[%s4461_s1 + $0x6c0] sm:$0xff] }
 0x121   :  { %1651 = vmatmul.f32.gmra.mxu3 %v2194_v36  ;;  %1593 = vmatmul.f32.gmra.mxu1 %v2197_v24  ;;  %v1105_v32 = vadd.f32 %v3928_v33, %v1076_v23  ;;  %v770_v55 = vunpack.c.h.bf16 %v2206_v30  ;;  %v1131_v3 = vadd.f32 %v3879_v26, %v1102_v35  ;;  %v832_v62 = vunpack.c.h.bf16 %v2210_v28  ;;  %v2213_v36 = vld [vmem:[%s4461_s1 + $0x728] sm:$0xff]  ;;  %v2221_v42 = vld [vmem:[%s4461_s1 + $0x620] sm:$0xff] }
 0x122   :  { %1724 = vmatpush.msrb.mxu2 %v806_v39  ;;  %1752 = vmatpush.msrb.mxu3 %v840_v53  ;;  %v4161_v8 = vpop.f32.mrf.mxu3  ;;  %v2204_v39 = vld [vmem:[%s4461_s1 + $0x738] sm:$0xff]  ;;  %v2208_v53 = vld [vmem:[%s4461_s1 + $0x730] sm:$0xff]  ;;  %v1079_v27 = vadd.f32 %v3792_v52, %v1050_v0  ;;  %v1128_v26 = vadd.f32 %v3811_v9, %v1099_v2  ;;  %v796_v40 = vunpack.c.h.bf16 %v2213_v36  ;;  %v794_v5 = vunpack.c.h.bf16 %v2219_v4  ;;  %v2223_v35 = vld [vmem:[%s4461_s1 + $0x7a0] sm:$0xff] }
 0x123   :  { %1666 = vmatpush.msrb.mxu0 %v742_v38  ;;  %v4159_v1 = vpop.f32.mrf.mxu0  ;;  %1694 = vmatpush.msrb.mxu1 %v776_v14  ;;  %v800_v43 = vunpack.c.h.bf16 %v2204_v39  ;;  %v798_v33 = vunpack.c.h.bf16 %v2208_v53  ;;  %v2209_v38 = vld [vmem:[%s4462_s0 + $0x150] sm:$0xff]  ;;  %v734_v14 = vunpack.c.h.bf16 %v2211_v47  ;;  %v1160_v58 = vadd.f32 %v3911_v13, %v1131_v3  ;;  %v2214_v9 = vld [vmem:[%s4462_s0 + $0x158] sm:$0xff]  ;;  %v2217_v13 = vld [vmem:[%s4462_s0 + $0x148] sm:$0xff] }
 0x124   :  { %1725 = vmatpush.msrb.mxu2 %v804_v54  ;;  %1753 = vmatpush.msrb.mxu3 %v838_v57  ;;  %v2212_v54 = vld [vmem:[%s4461_s1 + $0x6b8] sm:$0xff]  ;;  %v1134_v52 = vadd.f32 %v3947_v63, %v1105_v32  ;;  %v1108_v63 = vadd.f32 %v3996_v18, %v1079_v27  ;;  %v1157_v48 = vadd.f32 %v3843_v45, %v1128_v26  ;;  %v2220_v18 = vld [vmem:[%s4461_s1 + $0x7a8] sm:$0xff]  ;;  %v730_v16 = vunpack.c.h.bf16 %v2221_v42  ;;  %v2229_v53 = vld [vmem:[%s4462_s0 + $0x1d0] sm:$0xff] }
 0x125   :  { %1667 = vmatpush.msrb.mxu0 %v740_v21  ;;  %1695 = vmatpush.msrb.mxu1 %v774_v49  ;;  %v768_v25 = vunpack.c.h.bf16 %v2212_v54  ;;  %v2215_v21 = vld [vmem:[%s4461_s1 + $0x7b0] sm:$0xff]  ;;  %v732_v49 = vunpack.c.h.bf16 %v2216_v12  ;;  %v828_v41 = vunpack.c.h.bf16 %v2220_v18  ;;  %v2222_v45 = vld [vmem:[%s4461_s1 + $0x6a8] sm:$0xff]  ;;  %v826_v37 = vunpack.c.h.bf16 %v2223_v35  ;;  %v2224_v0 = vld [vmem:[%s4461_s1 + $0x718] sm:$0xff] }
 0x126   :  { %1726 = vmatpush.msrb.mxu2 %v802_v44  ;;  %1754 = vmatpush.msrb.mxu3 %v836_v15  ;;  %v4185_v60 = vpop.f32.mrf.mxu1  ;;  %v830_v24 = vunpack.c.h.bf16 %v2215_v21  ;;  %v766_v44 = vunpack.c.h.bf16 %v2218_v46  ;;  %v764_v23 = vunpack.c.h.bf16 %v2222_v45  ;;  %v792_v2 = vunpack.c.h.bf16 %v2224_v0  ;;  %v2231_v3 = vld [vmem:[%s4461_s1 + $0x610] sm:$0xff]  ;;  %v2234_v54 = vld [vmem:[%s4462_s0 + $0x1d8] sm:$0xff]  ;;  %v2236_v36 = vld [vmem:[%s4461_s1 + $0x608] sm:$0xff] }
 0x127   :  { %1668 = vmatpush.msrb.mxu0 %v738_v61  ;;  %1696 = vmatpush.msrb.mxu1 %v772_v17  ;;  %v1163_v61 = vadd.f32 %v3979_v51, %v1134_v52  ;;  %v1189_v51 = vadd.f32 %v3930_v34, %v1160_v58  ;;  %v2225_v34 = vld [vmem:[%s4461_s1 + $0x618] sm:$0xff]  ;;  %v2237_v58 = vld [vmem:[%s4461_s1 + $0x690] sm:$0xff]  ;;  %v2238_v21 = vld [vmem:[%s4462_s0 + $0x1c8] sm:$0xff] }
 0x128   :  { %1567 = vmatmul.f32.gmra.mxu0 %v2207_v10  ;;  %1625 = vmatmul.f32.gmra.mxu2 %v2209_v38  ;;  %v728_v39 = vunpack.c.h.bf16 %v2225_v34  ;;  %v726_v38 = vunpack.c.h.bf16 %v2231_v3  ;;  %v758_v52 = vunpack.c.h.bf16 %v2237_v58  ;;  %v2239_v12 = vld [vmem:[%s4461_s1 + $0x700] sm:$0xff]  ;;  %v2254_v58 = vld [vmem:[%s4462_s0 + $0x170] sm:$0xff] }
 0x129   :  { %1755 = vmatpush.msrb.mxu3 %v834_v50  ;;  %1727 = vmatpush.msrb.mxu2 %v800_v43  ;;  %v4211_v57 = vpop.f32.mrf.mxu2  ;;  %v1137_v50 = vadd.f32 %v4022_v56, %v1108_v63  ;;  %v1186_v43 = vadd.f32 %v3862_v7, %v1157_v48  ;;  %v1192_v6 = vadd.f32 %v3998_v20, %v1163_v61  ;;  %v2226_v56 = vld [vmem:[%s4461_s1 + $0x6a0] sm:$0xff]  ;;  %v2228_v7 = vld [vmem:[%s4461_s1 + $0x710] sm:$0xff]  ;;  %v2242_v61 = vld [vmem:[%s4461_s1 + $0x688] sm:$0xff] }
 0x12a   :  { %1669 = vmatpush.msrb.mxu0 %v736_v22  ;;  %1697 = vmatpush.msrb.mxu1 %v770_v55  ;;  %v762_v22 = vunpack.c.h.bf16 %v2226_v56  ;;  %v1218_v32 = vadd.f32 %v4159_v1, %v1189_v51  ;;  %v2227_v55 = vld [vmem:[%s4462_s0 + $0x1c0] sm:$0xff]  ;;  %v790_v20 = vunpack.c.h.bf16 %v2228_v7  ;;  %v2230_v1 = vld [vmem:[%s4461_s1 + $0x798] sm:$0xff]  ;;  %v756_v18 = vunpack.c.h.bf16 %v2242_v61  ;;  %v2258_v61 = vld [vmem:[%s4462_s0 + $0x1f0] sm:$0xff] }
 0x12b   :  { %1654 = vmatmul.f32.gmra.mxu3 %v2214_v9  ;;  %1596 = vmatmul.f32.gmra.mxu1 %v2217_v13  ;;  %v1166_v10 = vadd.f32 %v4057_v29, %v1137_v50  ;;  %v1215_v28 = vadd.f32 %v4081_v59, %v1186_v43  ;;  %v2232_v29 = vld [vmem:[%s4461_s1 + $0x698] sm:$0xff]  ;;  %v2235_v59 = vld [vmem:[%s4461_s1 + $0x790] sm:$0xff]  ;;  %v2240_v13 = vld [vmem:[%s4461_s1 + $0x788] sm:$0xff] }
 0x12c   :  { %1728 = vmatpush.msrb.mxu2 %v798_v33  ;;  %v4234_v15 = vpop.f32.mrf.mxu3  ;;  %1756 = vmatpush.msrb.mxu3 %v832_v62  ;;  %v824_v33 = vunpack.c.h.bf16 %v2230_v1  ;;  %v760_v47 = vunpack.c.h.bf16 %v2232_v29  ;;  %v1247_v9 = vadd.f32 %v4185_v60, %v1218_v32  ;;  %v820_v63 = vunpack.c.h.bf16 %v2240_v13  ;;  %v2241_v60 = vld [vmem:[%s4461_s1 + $0x600] sm:$0xff]  ;;  %v2248_v43 = vld [vmem:[%s4462_s0 + $0x68] sm:$0xff]  ;;  %v2250_v1 = vld [vmem:[%s4462_s0 + $0xf0] sm:$0xff] }
 0x12d   :  { %1670 = vmatpush.msrb.mxu0 %v734_v14  ;;  %v1220_v17 = vpop.f32.mrf.mxu0  ;;  %1698 = vmatpush.msrb.mxu1 %v768_v25  ;;  %v2233_v14 = vld [vmem:[%s4461_s1 + $0x708] sm:$0xff]  ;;  %v822_v25 = vunpack.c.h.bf16 %v2235_v59  ;;  %v722_v46 = vunpack.c.h.bf16 %v2241_v60  ;;  %v2243_v42 = vld [vmem:[%s4461_s1 + $0x780] sm:$0xff] }
 0x12e   :  { %1729 = vmatpush.msrb.mxu2 %v796_v40  ;;  %1757 = vmatpush.msrb.mxu3 %v830_v24  ;;  %v1221_v62 = vadd.f32 %v1220_v17, %v1192_v6  ;;  %v788_v27 = vunpack.c.h.bf16 %v2233_v14  ;;  %v724_v40 = vunpack.c.h.bf16 %v2236_v36  ;;  %v1195_v24 = vadd.f32 %v4079_v31, %v1166_v10  ;;  %v2244_v45 = vld [vmem:[%s4461_s1 + $0x680] sm:$0xff] }
 0x12f   :  { %1671 = vmatpush.msrb.mxu0 %v732_v49  ;;  %1699 = vmatpush.msrb.mxu1 %v766_v44  ;;  %v786_v49 = vunpack.c.h.bf16 %v2239_v12  ;;  %v1244_v31 = vadd.f32 %v4102_v19, %v1215_v28  ;;  %v1276_v4 = vadd.f32 %v4211_v57, %v1247_v9  ;;  %v818_v19 = vunpack.c.h.bf16 %v2243_v42  ;;  %v2249_v10 = vld [vmem:[%s4462_s0 + $0xe0] sm:$0xff]  ;;  %v2255_v9 = vld [vmem:[%s4462_s0 + $0x178] sm:$0xff] }
 0x130   :  { %1730 = vmatpush.msrb.mxu2 %v794_v5  ;;  %1758 = vmatpush.msrb.mxu3 %v828_v41  ;;  %v1249_v30 = vpop.f32.mrf.mxu1  ;;  %v2261_v41 = vmov 32.0   ;;  %v2253_v36 = vld [vmem:[%s4462_s0 + $0x160] sm:$0xff] }
 0x131   :  { %1672 = vmatpush.msrb.mxu0 %v730_v16  ;;  %1700 = vmatpush.msrb.mxu1 %v764_v23  ;;  %v1250_v5 = vadd.f32 %v1249_v30, %v1221_v62  ;;  %1935 = vrcp.f32 %v2261_v41  ;;  %v1273_v57 = vadd.f32 %v4131_v11, %v1244_v31  ;;  %v754_v23 = vunpack.c.h.bf16 %v2244_v45  ;;  %v2245_v11 = vld [vmem:[%s4462_s0 + $0x60] sm:$0xff]  ;;  %v2252_v62 = vld [vmem:[%s4462_s0 + $0xe8] sm:$0xff] }
 0x132   :  { %1570 = vmatmul.f32.gmra.mxu0 %v2227_v55  ;;  %1628 = vmatmul.f32.gmra.mxu2 %v2229_v53  ;;  %v4326_v51 = vadd.f32 %v4234_v15, %v1276_v4  ;;  %v2247_v15 = vld [vmem:[%s4462_s0 + $0x78] sm:$0xff]  ;;  %v2257_v4 = vld [vmem:[%s4462_s0 + $0x1e0] sm:$0xff] }
 0x133   :  { %1759 = vmatpush.msrb.mxu3 %v826_v37  ;;  %1731 = vmatpush.msrb.mxu2 %v792_v2  ;;  %v1278_v26 = vpop.f32.mrf.mxu2  ;;  %v2246_v37 = vld [vmem:[%s4462_s0 + $0x70] sm:$0xff]  ;;  %v1302_v50 = vadd.f32 %v4161_v8, %v1273_v57  ;;  %v2259_v57 = vld [vmem:[%s4462_s0 + $0x1f8] sm:$0xff] }
 0x134   :  { %1673 = vmatpush.msrb.mxu0 %v728_v39  ;;  %1701 = vmatpush.msrb.mxu1 %v762_v22  ;;  %v1279_v16 = vadd.f32 %v1278_v26, %v1250_v5 }
 0x135   :  { %1657 = vmatmul.f32.gmra.mxu3 %v2234_v54  ;;  %1599 = vmatmul.f32.gmra.mxu1 %v2238_v21  ;;  %v1777_v6 = vadd.f32 %v4326_v51, %v1302_v50 }
 0x136   :  { %1732 = vmatpush.msrb.mxu2 %v790_v20  ;;  %v1307_v44 = vpop.f32.mrf.mxu3  ;;  %1760 = vmatpush.msrb.mxu3 %v824_v33 }
 0x137   :  { %1674 = vmatpush.msrb.mxu0 %v726_v38  ;;  %v1223_v48 = vpop.f32.mrf.mxu0  ;;  %1702 = vmatpush.msrb.mxu1 %v760_v47  ;;  %v1308_v0 = vadd.f32 %v1307_v44, %v1279_v16  ;;  %v1936_v34 = vpop.eup %1935  ;;  %v2251_v38 = vld [vmem:[%s4462_s0 + $0xf8] sm:$0xff] }
 0x138   :  { %1733 = vmatpush.msrb.mxu2 %v788_v27  ;;  %1761 = vmatpush.msrb.mxu3 %v822_v25  ;;  %v1224_v17 = vadd.f32 %v1223_v48, %v1195_v24  ;;  %v1796_v22 = vmul.f32 32.0, %v1936_v34  ;;  %vm1800_vm0 = vweird.f32 %v1936_v34  ;;  %v2256_v24 = vld [vmem:[%s4462_s0 + $0x168] sm:$0xff] }
 0x139   :  { %1675 = vmatpush.msrb.mxu0 %v724_v40  ;;  %1703 = vmatpush.msrb.mxu1 %v758_v52  ;;  %v1778_v32 = vadd.f32 %v1777_v6, %v1308_v0 }
 0x13a   :  { %1734 = vmatpush.msrb.mxu2 %v786_v49  ;;  %1762 = vmatpush.msrb.mxu3 %v820_v63  ;;  %v1252_v35 = vpop.f32.mrf.mxu1  ;;  %v1797_v7 = vsub.f32 1.0, %v1796_v22 }
 0x13b   :  { %1676 = vmatpush.msrb.mxu0 %v722_v46  ;;  %1704 = vmatpush.msrb.mxu1 %v756_v18  ;;  %v1253_v2 = vadd.f32 %v1252_v35, %v1224_v17  ;;  %v2260_v17 = vld [vmem:[%s4462_s0 + $0x1e8] sm:$0xff] }
 0x13c   :  { %1677 = vmatmul.f32.vlgmr.msrb.gmra.mxu0 %v2245_v11  ;;  %1735 = vmatmul.f32.vlgmr.msrb.gmra.mxu2 %v2246_v37  ;;  %v1798_v28 = vmul.f32 %v1936_v34, %v1797_v7 }
 0x13d   :  { %1763 = vmatpush.msrb.mxu3 %v818_v19  ;;  %1705 = vmatpush.msrb.mxu1 %v754_v23  ;;  %v1281_v39 = vpop.f32.mrf.mxu2 }
 0x13e   :  { %1764 = vmatmul.f32.vlgmr.msrb.gmra.mxu3 %v2247_v15  ;;  %1706 = vmatmul.f32.vlgmr.msrb.gmra.mxu1 %v2248_v43  ;;  %v1282_v56 = vadd.f32 %v1281_v39, %v1253_v2  ;;  %v1799_v26 = vadd.f32 %v1936_v34, %v1798_v28 }
 0x140   :  { %v1310_v8 = vpop.f32.mrf.mxu3  ;;  %v4363_v21 = vsel %vm1800_vm0, %v1936_v34, %v1799_v26 }
 0x141   :  { %v1311_v30 = vadd.f32 %v1310_v8, %v1282_v56  ;;  %v1330_v55 = vpop.f32.mrf.mxu0 }
 0x143   :  { %v1779_v20 = vadd.f32 %v1778_v32, %v1311_v30 }
 0x144   :  { %1680 = vmatmul.f32.gmra.mxu0 %v2249_v10  ;;  %v1359_v53 = vpop.f32.mrf.mxu1  ;;  %1738 = vmatmul.f32.gmra.mxu2 %v2250_v1 }
 0x145   :  { %v1780_v33 = vrot.slane %v1779_v20, 4  ;;  %v1360_v3 = vadd.f32 %v1359_v53, %v1330_v55 }
 0x146   :  { %1767 = vmatmul.f32.gmra.mxu3 %v2251_v38  ;;  %1709 = vmatmul.f32.gmra.mxu1 %v2252_v62 }
 0x147   :  { %v1781_v29 = vadd.f32 %v1780_v33, %v1779_v20  ;;  %v1388_v47 = vpop.f32.mrf.mxu2 }
 0x148   :  { %v1389_v27 = vadd.f32 %v1388_v47, %v1360_v3 }
 0x149   :  { %v1782_v14 = vrot.slane %v1781_v29, 2 }
 0x14a   :  { %v1417_v25 = vpop.f32.mrf.mxu3 }
 0x14b   :  { %v1783_v54 = vadd.f32 %v1782_v14, %v1781_v29  ;;  %v1333_v59 = vpop.f32.mrf.mxu0  ;;  %v1418_v40 = vadd.f32 %v1417_v25, %v1389_v27 }
 0x14c   :  { %1683 = vmatmul.f32.gmra.mxu0 %v2253_v36  ;;  %1741 = vmatmul.f32.gmra.mxu2 %v2254_v58 }
 0x14d   :  { %v1784_v52 = vrot.slane %v1783_v54, 1 }
 0x14e   :  { %1770 = vmatmul.f32.gmra.mxu3 %v2255_v9  ;;  %1712 = vmatmul.f32.gmra.mxu1 %v2256_v24  ;;  %v1362_v49 = vpop.f32.mrf.mxu1  ;;  %v4419_v24 = vld [vmem:[%s4464_s3] sm:$0x3] }
 0x14f   :  { %v1785_v12 = vadd.f32 %v1784_v52, %v1783_v54  ;;  %v1363_v13 = vadd.f32 %v1362_v49, %v1333_v59 }
 0x151   :  { %v1802_v63 = vmul.f32 %v4363_v21, %v1785_v12  ;;  %v1391_v60 = vpop.f32.mrf.mxu2 }
 0x152   :  { %v1392_v5 = vadd.f32 %v1391_v60, %v1363_v13 }
 0x153   :  { %v4369_v46 = vsub.f32 %v1302_v50, %v1802_v63  ;;  %v4372_v44 = vsub.f32 %v4326_v51, %v1802_v63  ;;  %v4374_v31 = vsub.f32 %v1308_v0, %v1802_v63  ;;  %v4382_v18 = vsub.f32 %v1311_v30, %v1802_v63 }
 0x154   :  { %1686 = vmatmul.f32.gmra.mxu0 %v2257_v4  ;;  %v1420_v48 = vpop.f32.mrf.mxu3  ;;  %1744 = vmatmul.f32.gmra.mxu2 %v2258_v61  ;;  %v1886_v4 = vperm.slane %v4419_v24, 0 }
 0x155   :  { %v1812_v41 = vmul.f32 %v4369_v46, %v4369_v46  ;;  %v1814_v42 = vmul.f32 %v4372_v44, %v4372_v44  ;;  %v1336_v19 = vpop.f32.mrf.mxu0  ;;  %v4391_v16 = vadd.f32 %v1420_v48, %v1392_v5  ;;  %v1816_v45 = vmul.f32 %v4374_v31, %v4374_v31 }
 0x156   :  { %1773 = vmatmul.f32.gmra.mxu3 %v2259_v57  ;;  %1715 = vmatmul.f32.gmra.mxu1 %v2260_v17  ;;  %v1818_v51 = vmul.f32 %v4382_v18, %v4382_v18 }
 0x157   :  { %v1820_v23 = vadd.f32 %v1814_v42, %v1812_v41 }
 0x158   :  { %v1365_v11 = vpop.f32.mrf.mxu1 }
 0x159   :  { %v1821_v35 = vadd.f32 %v1820_v23, %v1816_v45  ;;  %v1366_v37 = vadd.f32 %v1365_v11, %v1336_v19 }
 0x15b   :  { %v1822_v50 = vadd.f32 %v1821_v35, %v1818_v51  ;;  %v1394_v0 = vpop.f32.mrf.mxu2 }
 0x15c   :  { %v1395_v34 = vadd.f32 %v1394_v0, %v1366_v37 }
 0x15d   :  { %v1823_v2 = vrot.slane %v1822_v50, 4 }
 0x15e   :  { %v1423_v15 = vpop.f32.mrf.mxu3 }
 0x15f   :  { %v1824_v39 = vadd.f32 %v1823_v2, %v1822_v50  ;;  %v1339_v43 = vpop.f32.mrf.mxu0  ;;  %v4400_v6 = vadd.f32 %v1423_v15, %v1395_v34 }
 0x161   :  { %v1825_v56 = vrot.slane %v1824_v39, 2 }
 0x162   :  { %v1368_v8 = vpop.f32.mrf.mxu1 }
 0x163   :  { %v1826_v22 = vadd.f32 %v1825_v56, %v1824_v39  ;;  %v1369_v32 = vadd.f32 %v1368_v8, %v1339_v43 }
 0x165   :  { %v1827_v30 = vrot.slane %v1826_v22, 1  ;;  %v1397_v55 = vpop.f32.mrf.mxu2 }
 0x166   :  { %v1398_v20 = vadd.f32 %v1397_v55, %v1369_v32 }
 0x167   :  { %v1828_v7 = vadd.f32 %v1827_v30, %v1826_v22 }
 0x168   :  { %v1426_v10 = vpop.f32.mrf.mxu3 }
 0x169   :  { %v1838_v53 = vmul.f32 %v1828_v7, %v4363_v21  ;;  %v4403_v1 = vadd.f32 %v1426_v10, %v1398_v20  ;;  %v1446_v33 = vpop.f32.mrf.mxu0 }
 0x16a   :  { %v1447_v3 = vadd.f32 %v1446_v33, %v1418_v40  ;;  %v4414_v40 = vld [vmem:[%s4463_s2] sm:$0x3] }
 0x16b   :  { %v1840_v38 = vadd.f32 1e-05, %v1838_v53  ;;  %v1872_v49 = vperm.slane %v4414_v40, 0 }
 0x16c   :  { %v1475_v28 = vpop.f32.mrf.mxu1 }
 0x16d   :  { %1937 = vrsqrt.f32 %v1840_v38  ;;  %v1476_v62 = vadd.f32 %v1475_v28, %v1447_v3  ;;  %vm1848_vm2 = vweird.f32 %v1840_v38 }
 0x16f   :  { %v1504_v29 = vpop.f32.mrf.mxu2 }
 0x170   :  { %v1505_v47 = vadd.f32 %v1504_v29, %v1476_v62 }
 0x172   :  { %v1533_v26 = vpop.f32.mrf.mxu3 }
 0x173   :  { %v1938_v14 = vpop.eup %1937  ;;  %v4405_v27 = vpop.f32.mrf.mxu0  ;;  %v4407_v59 = vadd.f32 %v1533_v26, %v1505_v47 }
 0x174   :  { %v1843_v54 = vmul.f32 %v1938_v14, %v1840_v38  ;;  %vm1849_vm1 = vweird.f32 %v1938_v14  ;;  %v1450_v38 = vadd.f32 %v4405_v27, %v4391_v16 }
 0x175   :  { %vm1850_vm3 = vmor %vm1848_vm2, %vm1849_vm1 }
 0x176   :  { %v1844_v25 = vmul.f32 %v1938_v14, %v1843_v54  ;;  %v4409_v36 = vpop.f32.mrf.mxu1 }
 0x177   :  { %v1479_v29 = vadd.f32 %v4409_v36, %v1450_v38 }
 0x178   :  { %v1845_v58 = vmul.f32 0.5, %v1844_v25 }
 0x179   :  { %v1507_v9 = vpop.f32.mrf.mxu2 }
 0x17a   :  { %v1846_v52 = vsub.f32 1.5, %v1845_v58 }
 0x17c   :  { %v1847_v12 = vmul.f32 %v1938_v14, %v1846_v52  ;;  %v1536_v63 = vpop.f32.mrf.mxu3 }
 0x17d   :  { %v1452_v13 = vpop.f32.mrf.mxu0 }
 0x17e   :  { %v1851_v60 = vsel %vm1850_vm3, %v1938_v14, %v1847_v12  ;;  %v1508_v14 = vadd.f32 %v1507_v9, %v1479_v29  ;;  %v1453_v26 = vadd.f32 %v1452_v13, %v4400_v6 }
 0x17f   :  { %v1862_v5 = vmul.f32 %v1851_v60, %v4369_v46  ;;  %v1864_v48 = vmul.f32 %v1851_v60, %v4372_v44  ;;  %v1866_v61 = vmul.f32 %v1851_v60, %v4374_v31  ;;  %v1868_v41 = vmul.f32 %v1851_v60, %v4382_v18 }
 0x180   :  { %v1481_v45 = vpop.f32.mrf.mxu1  ;;  %v1537_v25 = vadd.f32 %v1536_v63, %v1508_v14 }
 0x181   :  { %v1876_v42 = vmul.f32 %v1872_v49, %v1862_v5  ;;  %v1878_v19 = vmul.f32 %v1872_v49, %v1864_v48  ;;  %v1880_v57 = vmul.f32 %v1872_v49, %v1866_v61  ;;  %v1882_v17 = vmul.f32 %v1872_v49, %v1868_v41 }
 0x182   :  { %v1482_v12 = vadd.f32 %v1481_v45, %v1453_v26 }
 0x183   :  { %v1890_v23 = vadd.f32 %v1886_v4, %v1876_v42  ;;  %v1892_v51 = vadd.f32 %v1886_v4, %v1878_v19  ;;  %v1894_v35 = vadd.f32 %v1886_v4, %v1880_v57  ;;  %v1896_v11 = vadd.f32 %v1886_v4, %v1882_v17  ;;  %v1510_v37 = vpop.f32.mrf.mxu2 }
 0x184   :  { %v1511_v4 = vadd.f32 %v1510_v37, %v1482_v12 }
 0x185   :  { %vm1898_vm4 = vcmp.gt.f32.partialorder %v1890_v23, 0.0  ;;  %vm1900_vm5 = vcmp.gt.f32.partialorder %v1892_v51, 0.0  ;;  %vm1902_vm6 = vcmp.gt.f32.partialorder %v1894_v35, 0.0  ;;  %vm1904_vm7 = vcmp.gt.f32.partialorder %v1896_v11, 0.0 }
 0x186   :  { %v1906_v46 = vmul.f32 0.2, %v1890_v23  ;;  %v1908_v44 = vmul.f32 0.2, %v1892_v51  ;;  %v1910_v50 = vmul.f32 0.2, %v1894_v35  ;;  %v1539_v18 = vpop.f32.mrf.mxu3 }
 0x187   :  { %v1912_v31 = vmul.f32 0.2, %v1896_v11  ;;  %v1455_v0 = vpop.f32.mrf.mxu0  ;;  %v1540_v41 = vadd.f32 %v1539_v18, %v1511_v4 }
 0x188   :  { %v1914_v2 = vsel %vm1898_vm4, %v1890_v23, %v1906_v46  ;;  %v1916_v34 = vsel %vm1900_vm5, %v1892_v51, %v1908_v44  ;;  %v1918_v15 = vsel %vm1902_vm6, %v1894_v35, %v1910_v50  ;;  %v1456_v16 = vadd.f32 %v1455_v0, %v4403_v1 }
 0x189   :  { %v1920_v39 = vsel %vm1904_vm7, %v1896_v11, %v1912_v31  ;;  %1922 = vst [vmem:[%s4465_s4] sm:$0xff] %v1914_v2 }
 0x18a   :  { %1924 = vst [vmem:[%s4465_s4 + $0x10] sm:$0xff] %v1916_v34  ;;  %v1484_v43 = vpop.f32.mrf.mxu1 }
 0x18b   :  { %1926 = vst [vmem:[%s4465_s4 + $0x20] sm:$0xff] %v1918_v15  ;;  %v1485_v42 = vadd.f32 %v1484_v43, %v1456_v16 }
 0x18c   :  { %1928 = vst [vmem:[%s4465_s4 + $0x30] sm:$0xff] %v1920_v39 }
 0x18d   :  { %v1513_v56 = vpop.f32.mrf.mxu2 }
 0x18e   :  { %v1514_v19 = vadd.f32 %v1513_v56, %v1485_v42 }
 0x190   :  { %v1542_v22 = vpop.f32.mrf.mxu3 }
 0x191   :  { %v1562_v8 = vpop.f32.mrf.mxu0  ;;  %v1543_v11 = vadd.f32 %v1542_v22, %v1514_v19 }
 0x192   :  { %v1563_v58 = vadd.f32 %v1562_v8, %v4407_v59 }
 0x194   :  { %v1591_v32 = vpop.f32.mrf.mxu1 }
 0x195   :  { %v1592_v5 = vadd.f32 %v1591_v32, %v1563_v58 }
 0x197   :  { %v1620_v30 = vpop.f32.mrf.mxu2 }
 0x198   :  { %v1621_v27 = vadd.f32 %v1620_v30, %v1592_v5 }
 0x19a   :  { %v1649_v7 = vpop.f32.mrf.mxu3 }
 0x19b   :  { %v1565_v55 = vpop.f32.mrf.mxu0  ;;  %v1650_v6 = vadd.f32 %v1649_v7, %v1621_v27 }
 0x19c   :  { %v1566_v49 = vadd.f32 %v1565_v55, %v1537_v25 }
 0x19e   :  { %v1594_v20 = vpop.f32.mrf.mxu1 }
 0x19f   :  { %v1595_v61 = vadd.f32 %v1594_v20, %v1566_v49 }
 0x1a1   :  { %v1623_v10 = vpop.f32.mrf.mxu2 }
 0x1a2   :  { %v1624_v9 = vadd.f32 %v1623_v10, %v1595_v61 }
 0x1a4   :  { %v1652_v53 = vpop.f32.mrf.mxu3 }
 0x1a5   :  { %v1568_v33 = vpop.f32.mrf.mxu0  ;;  %v1653_v59 = vadd.f32 %v1652_v53, %v1624_v9 }
 0x1a6   :  { %v1569_v13 = vadd.f32 %v1568_v33, %v1540_v41 }
 0x1a8   :  { %v1597_v3 = vpop.f32.mrf.mxu1 }
 0x1a9   :  { %v1598_v23 = vadd.f32 %v1597_v3, %v1569_v13 }
 0x1ab   :  { %v1626_v28 = vpop.f32.mrf.mxu2 }
 0x1ac   :  { %v1627_v37 = vadd.f32 %v1626_v28, %v1598_v23 }
 0x1ae   :  { %v1655_v62 = vpop.f32.mrf.mxu3 }
 0x1af   :  { %v1571_v47 = vpop.f32.mrf.mxu0  ;;  %v1656_v0 = vadd.f32 %v1655_v62, %v1627_v37 }
 0x1b0   :  { %v1572_v46 = vadd.f32 %v1571_v47, %v1543_v11 }
 0x1b2   :  { %v1600_v54 = vpop.f32.mrf.mxu1 }
 0x1b3   :  { %v1601_v15 = vadd.f32 %v1600_v54, %v1572_v46 }
 0x1b5   :  { %v1629_v52 = vpop.f32.mrf.mxu2 }
 0x1b6   :  { %v1630_v32 = vadd.f32 %v1629_v52, %v1601_v15 }
 0x1b8   :  { %v1658_v60 = vpop.f32.mrf.mxu3 }
 0x1b9   :  { %v1678_v48 = vpop.f32.mrf.mxu0  ;;  %v1659_v22 = vadd.f32 %v1658_v60, %v1630_v32 }
 0x1ba   :  { %v1679_v57 = vadd.f32 %v1678_v48, %v1650_v6 }
 0x1bb   :  { %v1707_v36 = vpop.f32.mrf.mxu1 }
 0x1bc   :  { %v1708_v1 = vadd.f32 %v1707_v36, %v1679_v57 }
 0x1bf   :  { %v1736_v63 = vpop.f32.mrf.mxu2 }
 0x1c0   :  { %v1737_v44 = vadd.f32 %v1736_v63, %v1708_v1 }
 0x1c1   :  { %v1681_v17 = vpop.f32.mrf.mxu0  ;;  %v1765_v45 = vpop.f32.mrf.mxu3 }
 0x1c2   :  { %v1682_v51 = vadd.f32 %v1681_v17, %v1653_v59  ;;  %v1766_v39 = vadd.f32 %v1765_v45, %v1737_v44 }
 0x1c3   :  { %v1710_v35 = vpop.f32.mrf.mxu1 }
 0x1c4   :  { %v1711_v50 = vadd.f32 %v1710_v35, %v1682_v51 }
 0x1c7   :  { %v1739_v31 = vpop.f32.mrf.mxu2 }
 0x1c8   :  { %v1740_v18 = vadd.f32 %v1739_v31, %v1711_v50  ;;  %v1873_v50 = vperm.slane %v4414_v40, 1 }
 0x1c9   :  { %v1684_v2 = vpop.f32.mrf.mxu0  ;;  %v1768_v34 = vpop.f32.mrf.mxu3 }
 0x1ca   :  { %v1685_v43 = vadd.f32 %v1684_v2, %v1656_v0  ;;  %v1769_v56 = vadd.f32 %v1768_v34, %v1740_v18  ;;  %v1887_v0 = vperm.slane %v4419_v24, 1 }
 0x1cb   :  { %v1713_v8 = vpop.f32.mrf.mxu1 }
 0x1cc   :  { %v1786_v30 = vadd.f32 %v1769_v56, %v1766_v39  ;;  %v1714_v55 = vadd.f32 %v1713_v8, %v1685_v43 }
 0x1cf   :  { %v1742_v7 = vpop.f32.mrf.mxu2 }
 0x1d0   :  { %v1743_v20 = vadd.f32 %v1742_v7, %v1714_v55 }
 0x1d1   :  { %v1687_v10 = vpop.f32.mrf.mxu0  ;;  %v1771_v53 = vpop.f32.mrf.mxu3 }
 0x1d2   :  { %v1688_v33 = vadd.f32 %v1687_v10, %v1659_v22  ;;  %v1772_v3 = vadd.f32 %v1771_v53, %v1743_v20 }
 0x1d3   :  { %v1716_v38 = vpop.f32.mrf.mxu1 }
 0x1d4   :  { %v1787_v28 = vadd.f32 %v1786_v30, %v1772_v3  ;;  %v1717_v62 = vadd.f32 %v1716_v38, %v1688_v33 }
 0x1d7   :  { %v1745_v29 = vpop.f32.mrf.mxu2 }
 0x1d8   :  { %v1746_v47 = vadd.f32 %v1745_v29, %v1717_v62 }
 0x1d9   :  { %v1774_v14 = vpop.f32.mrf.mxu3 }
 0x1da   :  { %v1775_v26 = vadd.f32 %v1774_v14, %v1746_v47 }
 0x1dc   :  { %v1788_v54 = vadd.f32 %v1787_v28, %v1775_v26 }
 0x1de   :  { %v1789_v25 = vrot.slane %v1788_v54, 4 }
 0x1e0   :  { %v1790_v58 = vadd.f32 %v1789_v25, %v1788_v54 }
 0x1e2   :  { %v1791_v52 = vrot.slane %v1790_v58, 2 }
 0x1e4   :  { %v1792_v12 = vadd.f32 %v1791_v52, %v1790_v58 }
 0x1e6   :  { %v1793_v49 = vrot.slane %v1792_v12, 1 }
 0x1e8   :  { %v1794_v4 = vadd.f32 %v1793_v49, %v1792_v12 }
 0x1ea   :  { %v1803_v60 = vmul.f32 %v4363_v21, %v1794_v4 }
 0x1ec   :  { %v1805_v5 = vsub.f32 %v1766_v39, %v1803_v60  ;;  %v1807_v48 = vsub.f32 %v1769_v56, %v1803_v60  ;;  %v1809_v16 = vsub.f32 %v1772_v3, %v1803_v60  ;;  %v1811_v27 = vsub.f32 %v1775_v26, %v1803_v60 }
 0x1ee   :  { %v1813_v61 = vmul.f32 %v1805_v5, %v1805_v5  ;;  %v1815_v36 = vmul.f32 %v1807_v48, %v1807_v48  ;;  %v1817_v41 = vmul.f32 %v1809_v16, %v1809_v16  ;;  %v1819_v42 = vmul.f32 %v1811_v27, %v1811_v27 }
 0x1f0   :  { %v1829_v9 = vadd.f32 %v1815_v36, %v1813_v61 }
 0x1f2   :  { %v1830_v6 = vadd.f32 %v1829_v9, %v1817_v41 }
 0x1f4   :  { %v1831_v13 = vadd.f32 %v1830_v6, %v1819_v42 }
 0x1f6   :  { %v1832_v63 = vrot.slane %v1831_v13, 4 }
 0x1f8   :  { %v1833_v19 = vadd.f32 %v1832_v63, %v1831_v13 }
 0x1fa   :  { %v1834_v59 = vrot.slane %v1833_v19, 2 }
 0x1fc   :  { %v1835_v57 = vadd.f32 %v1834_v59, %v1833_v19 }
 0x1fe   :  { %v1836_v17 = vrot.slane %v1835_v57, 1 }
 0x200   :  { %v1837_v45 = vadd.f32 %v1836_v17, %v1835_v57 }
 0x202   :  { %v1839_v23 = vmul.f32 %v1837_v45, %v4363_v21 }
 0x204   :  { %v1841_v51 = vadd.f32 1e-05, %v1839_v23 }
 0x206   :  { %1939 = vrsqrt.f32 %v1841_v51  ;;  %vm1858_vm9 = vweird.f32 %v1841_v51 }
 0x20c   :  { %v1940_v35 = vpop.eup %1939 }
 0x20d   :  { %v1853_v11 = vmul.f32 %v1940_v35, %v1841_v51  ;;  %vm1859_vm8 = vweird.f32 %v1940_v35 }
 0x20e   :  { %vm1860_vm10 = vmor %vm1858_vm9, %vm1859_vm8 }
 0x20f   :  { %v1854_v37 = vmul.f32 %v1940_v35, %v1853_v11 }
 0x211   :  { %v1855_v1 = vmul.f32 0.5, %v1854_v37 }
 0x213   :  { %v1856_v46 = vsub.f32 1.5, %v1855_v1 }
 0x215   :  { %v1857_v44 = vmul.f32 %v1940_v35, %v1856_v46 }
 0x217   :  { %v1861_v31 = vsel %vm1860_vm10, %v1940_v35, %v1857_v44 }
 0x218   :  { %v1863_v18 = vmul.f32 %v1861_v31, %v1805_v5  ;;  %v1865_v2 = vmul.f32 %v1861_v31, %v1807_v48  ;;  %v1867_v34 = vmul.f32 %v1861_v31, %v1809_v16  ;;  %v1869_v21 = vmul.f32 %v1861_v31, %v1811_v27 }
 0x21a   :  { %v1877_v15 = vmul.f32 %v1873_v50, %v1863_v18  ;;  %v1879_v39 = vmul.f32 %v1873_v50, %v1865_v2  ;;  %v1881_v43 = vmul.f32 %v1873_v50, %v1867_v34  ;;  %v1883_v56 = vmul.f32 %v1873_v50, %v1869_v21 }
 0x21c   :  { %v1891_v8 = vadd.f32 %v1887_v0, %v1877_v15  ;;  %v1893_v32 = vadd.f32 %v1887_v0, %v1879_v39  ;;  %v1895_v30 = vadd.f32 %v1887_v0, %v1881_v43  ;;  %v1897_v55 = vadd.f32 %v1887_v0, %v1883_v56 }
 0x21e   :  { %vm1899_vm11 = vcmp.gt.f32.partialorder %v1891_v8, 0.0  ;;  %vm1901_vm12 = vcmp.gt.f32.partialorder %v1893_v32, 0.0  ;;  %vm1903_vm13 = vcmp.gt.f32.partialorder %v1895_v30, 0.0  ;;  %vm1905_vm14 = vcmp.gt.f32.partialorder %v1897_v55, 0.0 }
 0x21f   :  { %v1907_v40 = vmul.f32 0.2, %v1891_v8  ;;  %v1909_v7 = vmul.f32 0.2, %v1893_v32  ;;  %v1911_v22 = vmul.f32 0.2, %v1895_v30 }
 0x220   :  { %v1913_v24 = vmul.f32 0.2, %v1897_v55 }
 0x221   :  { %v1915_v20 = vsel %vm1899_vm11, %v1891_v8, %v1907_v40  ;;  %v1917_v10 = vsel %vm1901_vm12, %v1893_v32, %v1909_v7  ;;  %v1919_v53 = vsel %vm1903_vm13, %v1895_v30, %v1911_v22 }
 0x222   :  { %v1921_v33 = vsel %vm1905_vm14, %v1897_v55, %v1913_v24  ;;  %1923 = vst [vmem:[%s4465_s4 + $0x8] sm:$0xff] %v1915_v20 }
 0x223   :  { %1925 = vst [vmem:[%s4465_s4 + $0x18] sm:$0xff] %v1917_v10 }
 0x224   :  { %1927 = vst [vmem:[%s4465_s4 + $0x28] sm:$0xff] %v1919_v53 }
 0x225   :  { %1929 = vst [vmem:[%s4465_s4 + $0x38] sm:$0xff] %v1921_v33 }

// kernel: forward.7
= control target key start
LH: loop header
LB: loop body
LE: loop exit
PB: predicated region body
PF: predicated region fallthrough
CT: control target
= control target key end

     0   :  { %10 = vsyncpa [#allocation3], 0  ;;  %s4129_s0 = inlined_call_operand.vmem [shape: f32[2,4096], index: 0, kind: input, shape index: {}]   ;;  %s4130_s1 = inlined_call_operand.vmem [shape: bf16[4096,128], index: 1, kind: input, shape index: {}]   ;;  %s4131_s2 = inlined_call_operand.vmem [shape: bf16[128,128], index: 2, kind: input, shape index: {}]   ;;  %s4132_s3 = inlined_call_operand.hbm [shape: f32[2,128], index: 3, kind: output, shape index: {0}]   ;;  %s4133_s4 = inlined_call_operand.hbm [shape: f32[2,128], index: 4, kind: output, shape index: {1}]  }
   0x1   :  { %v2922_v0 = vld [vmem:[%s4130_s1 + $0x38] sm:$0xff]   ;;  %v2921_v8 = vld [vmem:[%s4130_s1 + $0x30] sm:$0xff]   ;;  %v2920_v20 = vld [vmem:[%s4130_s1 + $0x28] sm:$0xff]  }
   0x2   :  { %v2938_v1 = vld [vmem:[%s4130_s1 + $0xb8] sm:$0xff]   ;;  %v1891_v3 = vunpack.c.h.bf16 %v2922_v0  ;;  %v1890_v5 = vunpack.c.l.bf16 %v2922_v0  ;;  %v2937_v9 = vld [vmem:[%s4130_s1 + $0xb0] sm:$0xff]   ;;  %v1887_v15 = vunpack.c.h.bf16 %v2921_v8  ;;  %v2936_v21 = vld [vmem:[%s4130_s1 + $0xa8] sm:$0xff]   ;;  %v1886_v22 = vunpack.c.l.bf16 %v2921_v8 }
   0x3   :  { %v2930_v2 = vld [vmem:[%s4130_s1 + $0x78] sm:$0xff]   ;;  %v1955_v4 = vunpack.c.h.bf16 %v2938_v1  ;;  %v1954_v10 = vunpack.c.l.bf16 %v2938_v1  ;;  %v2929_v13 = vld [vmem:[%s4130_s1 + $0x70] sm:$0xff]   ;;  %v1951_v16 = vunpack.c.h.bf16 %v2937_v9  ;;  %v1950_v23 = vunpack.c.l.bf16 %v2937_v9  ;;  %v2928_v24 = vld [vmem:[%s4130_s1 + $0x68] sm:$0xff]  }
   0x4   :  { %v1923_v6 = vunpack.c.h.bf16 %v2930_v2  ;;  %v2946_v7 = vld [vmem:[%s4130_s1 + $0xf8] sm:$0xff]   ;;  %v1922_v12 = vunpack.c.l.bf16 %v2930_v2  ;;  %v2945_v14 = vld [vmem:[%s4130_s1 + $0xf0] sm:$0xff]   ;;  %1131 = vmatpush.msra.mxu0 %v1891_v3  ;;  %v1919_v18 = vunpack.c.h.bf16 %v2929_v13  ;;  %v2944_v25 = vld [vmem:[%s4130_s1 + $0xe8] sm:$0xff]   ;;  %v1918_v26 = vunpack.c.l.bf16 %v2929_v13 }
   0x5   :  { %v1987_v11 = vunpack.c.h.bf16 %v2946_v7  ;;  %1171 = vmatpush.msra.mxu2 %v1955_v4  ;;  %v1986_v17 = vunpack.c.l.bf16 %v2946_v7  ;;  %v1983_v19 = vunpack.c.h.bf16 %v2945_v14  ;;  %v1982_v27 = vunpack.c.l.bf16 %v2945_v14  ;;  %v2919_v32 = vld [vmem:[%s4130_s1 + $0x20] sm:$0xff]   ;;  %v2918_v44 = vld [vmem:[%s4130_s1 + $0x18] sm:$0xff]   ;;  %v2917_v56 = vld [vmem:[%s4130_s1 + $0x10] sm:$0xff]  }
   0x6   :  { %1151 = vmatpush.msra.mxu1 %v1923_v6  ;;  %1132 = vmatpush.msra.mxu0 %v1890_v5  ;;  %v1883_v28 = vunpack.c.h.bf16 %v2920_v20  ;;  %v1947_v29 = vunpack.c.h.bf16 %v2936_v21  ;;  %v1915_v30 = vunpack.c.h.bf16 %v2928_v24  ;;  %v1979_v31 = vunpack.c.h.bf16 %v2944_v25  ;;  %v2935_v33 = vld [vmem:[%s4130_s1 + $0xa0] sm:$0xff]   ;;  %v2934_v45 = vld [vmem:[%s4130_s1 + $0x98] sm:$0xff]   ;;  %v2933_v57 = vld [vmem:[%s4130_s1 + $0x90] sm:$0xff]  }
   0x7   :  { %1191 = vmatpush.msra.mxu3 %v1987_v11  ;;  %1172 = vmatpush.msra.mxu2 %v1954_v10  ;;  %v1882_v34 = vunpack.c.l.bf16 %v2920_v20  ;;  %v1946_v35 = vunpack.c.l.bf16 %v2936_v21  ;;  %v2927_v36 = vld [vmem:[%s4130_s1 + $0x60] sm:$0xff]   ;;  %v1914_v38 = vunpack.c.l.bf16 %v2928_v24  ;;  %v1978_v39 = vunpack.c.l.bf16 %v2944_v25  ;;  %v2926_v48 = vld [vmem:[%s4130_s1 + $0x58] sm:$0xff]  }
   0x8   :  { %1152 = vmatpush.msra.mxu1 %v1922_v12  ;;  %1133 = vmatpush.msra.mxu0 %v1887_v15  ;;  %v2943_v37 = vld [vmem:[%s4130_s1 + $0xe0] sm:$0xff]   ;;  %v1879_v40 = vunpack.c.h.bf16 %v2919_v32  ;;  %v1943_v41 = vunpack.c.h.bf16 %v2935_v33  ;;  %v1911_v42 = vunpack.c.h.bf16 %v2927_v36  ;;  %v1878_v46 = vunpack.c.l.bf16 %v2919_v32  ;;  %v2942_v49 = vld [vmem:[%s4130_s1 + $0xd8] sm:$0xff]  }
   0x9   :  { %1192 = vmatpush.msra.mxu3 %v1986_v17  ;;  %1173 = vmatpush.msra.mxu2 %v1951_v16  ;;  %v1975_v43 = vunpack.c.h.bf16 %v2943_v37  ;;  %v1942_v47 = vunpack.c.l.bf16 %v2935_v33  ;;  %v1910_v50 = vunpack.c.l.bf16 %v2927_v36  ;;  %v1974_v51 = vunpack.c.l.bf16 %v2943_v37 }
   0xa   :  { %1153 = vmatpush.msra.mxu1 %v1919_v18  ;;  %1134 = vmatpush.msra.mxu0 %v1886_v22  ;;  %v1875_v52 = vunpack.c.h.bf16 %v2918_v44  ;;  %v1939_v53 = vunpack.c.h.bf16 %v2934_v45  ;;  %v1907_v54 = vunpack.c.h.bf16 %v2926_v48  ;;  %v1971_v55 = vunpack.c.h.bf16 %v2942_v49 }
   0xb   :  { %1193 = vmatpush.msra.mxu3 %v1983_v19  ;;  %1174 = vmatpush.msra.mxu2 %v1950_v23 }
   0xc   :  { %1154 = vmatpush.msra.mxu1 %v1918_v26  ;;  %1135 = vmatpush.msra.mxu0 %v1883_v28 }
   0xd   :  { %1194 = vmatpush.msra.mxu3 %v1982_v27  ;;  %1175 = vmatpush.msra.mxu2 %v1947_v29 }
   0xe   :  { %1155 = vmatpush.msra.mxu1 %v1915_v30  ;;  %1136 = vmatpush.msra.mxu0 %v1882_v34 }
   0xf   :  { %1195 = vmatpush.msra.mxu3 %v1979_v31  ;;  %1176 = vmatpush.msra.mxu2 %v1946_v35 }
  0x10   :  { %1156 = vmatpush.msra.mxu1 %v1914_v38  ;;  %1137 = vmatpush.msra.mxu0 %v1879_v40 }
  0x11   :  { %1196 = vmatpush.msra.mxu3 %v1978_v39  ;;  %1177 = vmatpush.msra.mxu2 %v1943_v41 }
  0x12   :  { %1157 = vmatpush.msra.mxu1 %v1911_v42 }
  0x13   :  { %1197 = vmatpush.msra.mxu3 %v1975_v43 }
  0x14   :  { %11 = vsyncpa [#allocation5], 0  ;;  %1138 = vmatpush.msra.mxu0 %v1878_v46  ;;  %1178 = vmatpush.msra.mxu2 %v1942_v47  ;;  %v1874_v58 = vunpack.c.l.bf16 %v2918_v44  ;;  %v1938_v59 = vunpack.c.l.bf16 %v2934_v45  ;;  %v2925_v60 = vld [vmem:[%s4130_s1 + $0x50] sm:$0xff]   ;;  %v1906_v62 = vunpack.c.l.bf16 %v2926_v48  ;;  %v1970_v63 = vunpack.c.l.bf16 %v2942_v49  ;;  %v2916_v4 = vld [vmem:[%s4130_s1 + $0x8] sm:$0xff]   ;;  %s1835_s12 = sshll.u32 %s4132_s3, 4  ;;  %s3233_s13 = smov [#allocation4]   ;;  %s1836_s12 = int_to_ptr.hbm [resolvable:$true] %s1835_s12 }
  0x15   :  { %v2941_v61 = vld [vmem:[%s4130_s1 + $0xd0] sm:$0xff]   ;;  %1158 = vmatpush.msra.mxu1 %v1910_v50  ;;  %1198 = vmatpush.msra.mxu3 %v1974_v51  ;;  %v1871_v0 = vunpack.c.h.bf16 %v2917_v56  ;;  %v1935_v1 = vunpack.c.h.bf16 %v2933_v57  ;;  %v1903_v2 = vunpack.c.h.bf16 %v2925_v60  ;;  %v2932_v5 = vld [vmem:[%s4130_s1 + $0x88] sm:$0xff]   ;;  %v1870_v6 = vunpack.c.l.bf16 %v2917_v56  ;;  %v18_v14 = vld [vmem:[%s4129_s0] sm:$0xff]  ;;  %s1844_s14 = sshll.u32 %s3233_s13, 4  ;;  %s1846_s16 = sshll.u32 %s4133_s4, 4  ;;  %s1845_s14 = int_to_ptr.vmem [resolvable:$true] %s1844_s14  ;;  %s1847_s16 = int_to_ptr.hbm [resolvable:$true] %s1846_s16 }
  0x16   :  { %1139 = vmatpush.msra.mxu0 %v1875_v52  ;;  %1179 = vmatpush.msra.mxu2 %v1939_v53  ;;  %v1967_v3 = vunpack.c.h.bf16 %v2941_v61  ;;  %v1934_v7 = vunpack.c.l.bf16 %v2933_v57  ;;  %v2924_v8 = vld [vmem:[%s4130_s1 + $0x48] sm:$0xff]   ;;  %v1902_v10 = vunpack.c.l.bf16 %v2925_v60  ;;  %v1966_v11 = vunpack.c.l.bf16 %v2941_v61  ;;  %v1861_v17 = vld [vmem:[%s4130_s1] sm:$0xff]   ;;  %1058 = vst [vmem:[#allocation1] ss:$4 sm:$0xff] %v18_v14  ;;  %v2954_v27 = vld [vmem:[%s4130_s1 + $0x138] sm:$0xff]  }
  0x17   :  { %1159 = vmatpush.msra.mxu1 %v1907_v54  ;;  %1199 = vmatpush.msra.mxu3 %v1971_v55  ;;  %v2940_v9 = vld [vmem:[%s4130_s1 + $0xc8] sm:$0xff]   ;;  %v1867_v12 = vunpack.c.h.bf16 %v2916_v4  ;;  %v1931_v13 = vunpack.c.h.bf16 %v2932_v5  ;;  %v1899_v15 = vunpack.c.h.bf16 %v2924_v8  ;;  %v2931_v18 = vld [vmem:[%s4130_s1 + $0x80] sm:$0xff]   ;;  %v1866_v19 = vunpack.c.l.bf16 %v2916_v4  ;;  %v2970_v28 = vld [vmem:[%s4130_s1 + $0x1b8] sm:$0xff]  }
  0x18   :  { %1140 = vmatpush.msra.mxu0 %v1874_v58  ;;  %1180 = vmatpush.msra.mxu2 %v1938_v59  ;;  %v1963_v16 = vunpack.c.h.bf16 %v2940_v9  ;;  %v1930_v20 = vunpack.c.l.bf16 %v2932_v5  ;;  %v2923_v21 = vld [vmem:[%s4130_s1 + $0x40] sm:$0xff]   ;;  %v1898_v23 = vunpack.c.l.bf16 %v2924_v8  ;;  %v1962_v24 = vunpack.c.l.bf16 %v2940_v9  ;;  %v2962_v33 = vld [vmem:[%s4130_s1 + $0x178] sm:$0xff]   ;;  %v2953_v39 = vld [vmem:[%s4130_s1 + $0x130] sm:$0xff]  }
  0x19   :  { %1160 = vmatpush.msra.mxu1 %v1906_v62  ;;  %1200 = vmatpush.msra.mxu3 %v1970_v63  ;;  %v2939_v22 = vld [vmem:[%s4130_s1 + $0xc0] sm:$0xff]   ;;  %v1863_v25 = vunpack.c.h.bf16 %v1861_v17  ;;  %v1927_v26 = vunpack.c.h.bf16 %v2931_v18  ;;  %v1895_v29 = vunpack.c.h.bf16 %v2923_v21  ;;  %v1862_v31 = vunpack.c.l.bf16 %v1861_v17  ;;  %v2978_v36 = vld [vmem:[%s4130_s1 + $0x1f8] sm:$0xff]   ;;  %v2969_v42 = vld [vmem:[%s4130_s1 + $0x1b0] sm:$0xff]  }
  0x1a   :  { %1141 = vmatpush.msra.mxu0 %v1871_v0  ;;  %1181 = vmatpush.msra.mxu2 %v1935_v1  ;;  %v1959_v30 = vunpack.c.h.bf16 %v2939_v22  ;;  %v1926_v32 = vunpack.c.l.bf16 %v2931_v18  ;;  %v2019_v34 = vunpack.c.h.bf16 %v2954_v27  ;;  %v2083_v35 = vunpack.c.h.bf16 %v2970_v28  ;;  %v2961_v45 = vld [vmem:[%s4130_s1 + $0x170] sm:$0xff]   ;;  %v2952_v51 = vld [vmem:[%s4130_s1 + $0x128] sm:$0xff]   ;;  %v2951_v5 = vld [vmem:[%s4130_s1 + $0x120] sm:$0xff]  }
  0x1b   :  { %1161 = vmatpush.msra.mxu1 %v1903_v2  ;;  %1201 = vmatpush.msra.mxu3 %v1967_v3  ;;  %v1894_v37 = vunpack.c.l.bf16 %v2923_v21  ;;  %v1958_v38 = vunpack.c.l.bf16 %v2939_v22  ;;  %v2018_v40 = vunpack.c.l.bf16 %v2954_v27  ;;  %v2051_v41 = vunpack.c.h.bf16 %v2962_v33  ;;  %v2977_v48 = vld [vmem:[%s4130_s1 + $0x1f0] sm:$0xff]   ;;  %v19_v54 = vld [vmem:[%s4129_s0 + $0x8] sm:$0xff]  ;;  %v2967_v8 = vld [vmem:[%s4130_s1 + $0x1a0] sm:$0xff]  }
  0x1c   :  { %1142 = vmatpush.msra.mxu0 %v1870_v6  ;;  %1182 = vmatpush.msra.mxu2 %v1934_v7  ;;  %v2082_v43 = vunpack.c.l.bf16 %v2970_v28  ;;  %v2115_v44 = vunpack.c.h.bf16 %v2978_v36  ;;  %v2015_v46 = vunpack.c.h.bf16 %v2953_v39  ;;  %v2050_v47 = vunpack.c.l.bf16 %v2962_v33  ;;  %v2968_v57 = vld [vmem:[%s4130_s1 + $0x1a8] sm:$0xff]   ;;  %1060 = vst [vmem:[#allocation1 + $0x20] ss:$4 sm:$0xff] %v19_v54  ;;  %v20_v62 = vld [vmem:[%s4129_s0 + $0x10] sm:$0xff]  ;;  %v2975_v14 = vld [vmem:[%s4130_s1 + $0x1e0] sm:$0xff]  }
  0x1d   :  { %1162 = vmatpush.msra.mxu1 %v1902_v10  ;;  %1202 = vmatpush.msra.mxu3 %v1966_v11  ;;  %v2079_v49 = vunpack.c.h.bf16 %v2969_v42  ;;  %v2114_v50 = vunpack.c.l.bf16 %v2978_v36  ;;  %v3385_v52 = vld.sshfl [vmem:[#allocation1 + $0x10] sm:$0xff pattern:$0x73625140]  ;;  %v3387_v53 = vld.sshfl [vmem:[#allocation1] sm:$0xff pattern:$0x73625140]  ;;  %v2014_v55 = vunpack.c.l.bf16 %v2953_v39  ;;  %v2047_v56 = vunpack.c.h.bf16 %v2961_v45 }
  0x1e   :  { %1143 = vmatpush.msra.mxu0 %v1867_v12  ;;  %1183 = vmatpush.msra.mxu2 %v1931_v13  ;;  %v3395_v58 = vld.sshfl [vmem:[#allocation1 + $0x18] sm:$0xff pattern:$0x73625140]  ;;  %v2078_v59 = vunpack.c.l.bf16 %v2969_v42  ;;  %v2111_v60 = vunpack.c.h.bf16 %v2977_v48  ;;  %v2960_v61 = vld [vmem:[%s4130_s1 + $0x168] sm:$0xff]   ;;  %v2011_v0 = vunpack.c.h.bf16 %v2952_v51  ;;  %v2046_v1 = vunpack.c.l.bf16 %v2961_v45  ;;  %v2959_v11 = vld [vmem:[%s4130_s1 + $0x160] sm:$0xff]  }
  0x1f   :  { %1163 = vmatpush.msra.mxu1 %v1899_v15  ;;  %1203 = vmatpush.msra.mxu3 %v1963_v16  ;;  %v3403_v63 = vld.sshfl [vmem:[#allocation1 + $0x8] sm:$0xff pattern:$0x73625140]  ;;  %v2075_v3 = vunpack.c.h.bf16 %v2968_v57  ;;  %v2110_v4 = vunpack.c.l.bf16 %v2977_v48  ;;  %v2010_v6 = vunpack.c.l.bf16 %v2952_v51  ;;  %v2043_v7 = vunpack.c.h.bf16 %v2960_v61  ;;  %v2950_v17 = vld [vmem:[%s4130_s1 + $0x118] sm:$0xff]  }
  0x20   :  { %1144 = vmatpush.msra.mxu0 %v1866_v19  ;;  %1184 = vmatpush.msra.mxu2 %v1930_v20  ;;  %v2976_v2 = vld [vmem:[%s4130_s1 + $0x1e8] sm:$0xff]   ;;  %1069 = vst [vmem:[#allocation1] ss:$4 sm:$0xff] %v20_v62  ;;  %v2074_v9 = vunpack.c.l.bf16 %v2968_v57  ;;  %v2007_v12 = vunpack.c.h.bf16 %v2951_v5  ;;  %v2042_v13 = vunpack.c.l.bf16 %v2960_v61  ;;  %v2071_v15 = vunpack.c.h.bf16 %v2967_v8  ;;  %v2966_v20 = vld [vmem:[%s4130_s1 + $0x198] sm:$0xff]   ;;  %v2947_v61 = vld [vmem:[%s4130_s1 + $0x100] sm:$0xff]  }
  0x21   :  { %1164 = vmatpush.msra.mxu1 %v1898_v23  ;;  %1204 = vmatpush.msra.mxu3 %v1962_v24  ;;  %v2107_v10 = vunpack.c.h.bf16 %v2976_v2  ;;  %v2106_v16 = vunpack.c.l.bf16 %v2976_v2  ;;  %v2006_v18 = vunpack.c.l.bf16 %v2951_v5  ;;  %v2039_v19 = vunpack.c.h.bf16 %v2959_v11  ;;  %v2958_v23 = vld [vmem:[%s4130_s1 + $0x158] sm:$0xff]   ;;  %v2956_v54 = vld [vmem:[%s4130_s1 + $0x148] sm:$0xff]  }
  0x22   :  { %1145 = vmatpush.msra.mxu0 %v1863_v25  ;;  %1185 = vmatpush.msra.mxu2 %v1927_v26  ;;  %v2070_v21 = vunpack.c.l.bf16 %v2967_v8  ;;  %v2103_v22 = vunpack.c.h.bf16 %v2975_v14  ;;  %v2974_v24 = vld [vmem:[%s4130_s1 + $0x1d8] sm:$0xff]   ;;  %v2003_v26 = vunpack.c.h.bf16 %v2950_v17  ;;  %v2038_v27 = vunpack.c.l.bf16 %v2959_v11  ;;  %v2972_v57 = vld [vmem:[%s4130_s1 + $0x1c8] sm:$0xff]  }
  0x23   :  { %1165 = vmatpush.msra.mxu1 %v1895_v29  ;;  %1205 = vmatpush.msra.mxu3 %v1959_v30  ;;  %v3432_v25 = vld.sshfl [vmem:[#allocation1 + $0x30] sm:$0xff pattern:$0x73625140]  ;;  %v3434_v28 = vld.sshfl [vmem:[#allocation1 + $0x20] sm:$0xff pattern:$0x73625140]  ;;  %v2067_v30 = vunpack.c.h.bf16 %v2966_v20  ;;  %v2035_v36 = vunpack.c.h.bf16 %v2958_v23  ;;  %v2099_v39 = vunpack.c.h.bf16 %v2974_v24  ;;  %v2034_v42 = vunpack.c.l.bf16 %v2958_v23 }
  0x24   :  { %1146 = vmatpush.msra.mxu0 %v1862_v31  ;;  %1186 = vmatpush.msra.mxu2 %v1926_v32  ;;  %v3436_v29 = vld.sshfl [vmem:[#allocation1 + $0x38] sm:$0xff pattern:$0x73625140]  ;;  %v2102_v31 = vunpack.c.l.bf16 %v2975_v14  ;;  %v2949_v32 = vld [vmem:[%s4130_s1 + $0x110] sm:$0xff]   ;;  %v2098_v45 = vunpack.c.l.bf16 %v2974_v24  ;;  %v2026_v5 = vunpack.c.l.bf16 %v2956_v54  ;;  %v2090_v8 = vunpack.c.l.bf16 %v2972_v57 }
  0x25   :  { %1166 = vmatpush.msra.mxu1 %v1894_v37  ;;  %1206 = vmatpush.msra.mxu3 %v1958_v38  ;;  %v21_v33 = vld [vmem:[%s4129_s0 + $0x18] sm:$0xff]  ;;  %v2965_v37 = vld [vmem:[%s4130_s1 + $0x190] sm:$0xff]   ;;  %v2066_v38 = vunpack.c.l.bf16 %v2966_v20 }
  0x26   :  { %1211 = vmatpush.msrb.mxu0 %v2019_v34  ;;  %1251 = vmatpush.msrb.mxu2 %v2083_v35  ;;  %v3444_v34 = vld.sshfl [vmem:[#allocation1 + $0x28] sm:$0xff pattern:$0x73625140]  ;;  %v2002_v35 = vunpack.c.l.bf16 %v2950_v17  ;;  %v2986_v11 = vld [vmem:[%s4130_s1 + $0x238] sm:$0xff]  }
  0x27   :  { %1231 = vmatpush.msrb.mxu1 %v2051_v41  ;;  %1271 = vmatpush.msrb.mxu3 %v2115_v44  ;;  %1070 = vst [vmem:[#allocation1 + $0x20] ss:$4 sm:$0xff] %v21_v33  ;;  %v1999_v41 = vunpack.c.h.bf16 %v2949_v32  ;;  %v2063_v44 = vunpack.c.h.bf16 %v2965_v37  ;;  %v3002_v14 = vld [vmem:[%s4130_s1 + $0x2b8] sm:$0xff]   ;;  %v2146_v23 = vunpack.c.l.bf16 %v2986_v11 }
  0x28   :  { %1212 = vmatpush.msrb.mxu0 %v2018_v40  ;;  %1252 = vmatpush.msrb.mxu2 %v2082_v43  ;;  %v2957_v40 = vld [vmem:[%s4130_s1 + $0x150] sm:$0xff]   ;;  %v2994_v17 = vld [vmem:[%s4130_s1 + $0x278] sm:$0xff]  }
  0x29   :  { %1232 = vmatpush.msrb.mxu1 %v2050_v47  ;;  %1272 = vmatpush.msrb.mxu3 %v2114_v50  ;;  %v2973_v43 = vld [vmem:[%s4130_s1 + $0x1d0] sm:$0xff]   ;;  %v1998_v47 = vunpack.c.l.bf16 %v2949_v32  ;;  %v2031_v48 = vunpack.c.h.bf16 %v2957_v40  ;;  %v2062_v50 = vunpack.c.l.bf16 %v2965_v37  ;;  %v3010_v20 = vld [vmem:[%s4130_s1 + $0x2f8] sm:$0xff]   ;;  %v2179_v24 = vunpack.c.h.bf16 %v2994_v17 }
  0x2a   :  { %1213 = vmatpush.msrb.mxu0 %v2015_v46  ;;  %1253 = vmatpush.msrb.mxu2 %v2079_v49  ;;  %v2948_v46 = vld [vmem:[%s4130_s1 + $0x108] sm:$0xff]   ;;  %v2095_v51 = vunpack.c.h.bf16 %v2973_v43  ;;  %v2993_v32 = vld [vmem:[%s4130_s1 + $0x270] sm:$0xff]   ;;  %v2242_v33 = vunpack.c.l.bf16 %v3010_v20 }
  0x2b   :  { %1233 = vmatpush.msrb.mxu1 %v2047_v56  ;;  %1273 = vmatpush.msrb.mxu3 %v2111_v60  ;;  %v2964_v49 = vld [vmem:[%s4130_s1 + $0x188] sm:$0xff]   ;;  %v2030_v56 = vunpack.c.l.bf16 %v2957_v40  ;;  %v2094_v60 = vunpack.c.l.bf16 %v2973_v43  ;;  %v1994_v62 = vunpack.c.l.bf16 %v2948_v46  ;;  %v2175_v37 = vunpack.c.h.bf16 %v2993_v32 }
  0x2c   :  { %1214 = vmatpush.msrb.mxu0 %v2014_v55  ;;  %1254 = vmatpush.msrb.mxu2 %v2078_v59  ;;  %v1995_v55 = vunpack.c.h.bf16 %v2948_v46  ;;  %v2059_v59 = vunpack.c.h.bf16 %v2964_v49  ;;  %v2058_v2 = vunpack.c.l.bf16 %v2964_v49  ;;  %v3525_v46 = vld.sshfl [vmem:[#allocation1 + $0x18] sm:$0xff pattern:$0x73625140]  ;;  %v3008_v49 = vld [vmem:[%s4130_s1 + $0x2e8] sm:$0xff]  }
  0x2d   :  { %1234 = vmatpush.msrb.mxu1 %v2046_v1  ;;  %1274 = vmatpush.msrb.mxu3 %v2110_v4  ;;  %v2963_v1 = vld [vmem:[%s4130_s1 + $0x180] sm:$0xff]   ;;  %v1991_v4 = vunpack.c.h.bf16 %v2947_v61 }
  0x2e   :  { %1215 = vmatpush.msrb.mxu0 %v2011_v0  ;;  %1255 = vmatpush.msrb.mxu2 %v2075_v3  ;;  %v2027_v0 = vunpack.c.h.bf16 %v2956_v54  ;;  %v2091_v3 = vunpack.c.h.bf16 %v2972_v57  ;;  %v2235_v57 = vunpack.c.h.bf16 %v3008_v49 }
  0x2f   :  { %1235 = vmatpush.msrb.mxu1 %v2043_v7  ;;  %1275 = vmatpush.msrb.mxu3 %v2107_v10  ;;  %v2055_v7 = vunpack.c.h.bf16 %v2963_v1  ;;  %v1990_v10 = vunpack.c.l.bf16 %v2947_v61 }
  0x30   :  { %1216 = vmatpush.msrb.mxu0 %v2010_v6  ;;  %1256 = vmatpush.msrb.mxu2 %v2074_v9  ;;  %v2955_v6 = vld [vmem:[%s4130_s1 + $0x140] sm:$0xff]  }
  0x31   :  { %1236 = vmatpush.msrb.mxu1 %v2042_v13  ;;  %1276 = vmatpush.msrb.mxu3 %v2106_v16  ;;  %v2971_v9 = vld [vmem:[%s4130_s1 + $0x1c0] sm:$0xff]   ;;  %v2054_v13 = vunpack.c.l.bf16 %v2963_v1  ;;  %v2147_v16 = vunpack.c.h.bf16 %v2986_v11  ;;  %v2981_v11 = vld [vmem:[%s4130_s1 + $0x210] sm:$0xff]  }
  0x32   :  { %1217 = vmatpush.msrb.mxu0 %v2007_v12  ;;  %1257 = vmatpush.msrb.mxu2 %v2071_v15  ;;  %v2023_v12 = vunpack.c.h.bf16 %v2955_v6  ;;  %v2087_v15 = vunpack.c.h.bf16 %v2971_v9 }
  0x33   :  { %1237 = vmatpush.msrb.mxu1 %v2039_v19  ;;  %1277 = vmatpush.msrb.mxu3 %v2103_v22  ;;  %v2022_v19 = vunpack.c.l.bf16 %v2955_v6  ;;  %v2985_v22 = vld [vmem:[%s4130_s1 + $0x230] sm:$0xff]  }
  0x34   :  { %1218 = vmatpush.msrb.mxu0 %v2006_v18  ;;  %1258 = vmatpush.msrb.mxu2 %v2070_v21  ;;  %v2211_v18 = vunpack.c.h.bf16 %v3002_v14  ;;  %v2086_v21 = vunpack.c.l.bf16 %v2971_v9 }
  0x35   :  { %1238 = vmatpush.msrb.mxu1 %v2038_v27  ;;  %1278 = vmatpush.msrb.mxu3 %v2102_v31  ;;  %v2243_v27 = vunpack.c.h.bf16 %v3010_v20  ;;  %v2178_v31 = vunpack.c.l.bf16 %v2994_v17  ;;  %v2989_v17 = vld [vmem:[%s4130_s1 + $0x250] sm:$0xff]  }
  0x36   :  { %1219 = vmatpush.msrb.mxu0 %v2003_v26  ;;  %1259 = vmatpush.msrb.mxu2 %v2067_v30  ;;  %v2210_v26 = vunpack.c.l.bf16 %v3002_v14  ;;  %v2143_v30 = vunpack.c.h.bf16 %v2985_v22  ;;  %v2997_v14 = vld [vmem:[%s4130_s1 + $0x290] sm:$0xff]  }
  0x37   :  { %1239 = vmatpush.msrb.mxu1 %v2035_v36  ;;  %1279 = vmatpush.msrb.mxu3 %v2099_v39  ;;  %v2984_v36 = vld [vmem:[%s4130_s1 + $0x228] sm:$0xff]   ;;  %v3513_v39 = vld.sshfl [vmem:[#allocation1] sm:$0xff pattern:$0x73625140]  ;;  %v3005_v20 = vld [vmem:[%s4130_s1 + $0x2d0] sm:$0xff]  }
  0x38   :  { %1220 = vmatpush.msrb.mxu0 %v2002_v35  ;;  %1260 = vmatpush.msrb.mxu2 %v2066_v38  ;;  %v2142_v35 = vunpack.c.l.bf16 %v2985_v22  ;;  %v2139_v43 = vunpack.c.h.bf16 %v2984_v36  ;;  %v2138_v54 = vunpack.c.l.bf16 %v2984_v36  ;;  %v2979_v36 = vld [vmem:[%s4130_s1 + $0x200] sm:$0xff]  }
  0x39   :  { %1240 = vmatpush.msrb.mxu1 %v2034_v42  ;;  %1280 = vmatpush.msrb.mxu3 %v2098_v45  ;;  %v3517_v42 = vld.sshfl [vmem:[#allocation1 + $0x8] sm:$0xff pattern:$0x73625140]  ;;  %v22_v45 = vld [vmem:[%s4129_s0 + $0x20] sm:$0xff] }
  0x3a   :  { %1221 = vmatpush.msrb.mxu0 %v1999_v41  ;;  %1261 = vmatpush.msrb.mxu2 %v2063_v44  ;;  %v3515_v41 = vld.sshfl [vmem:[#allocation1 + $0x10] sm:$0xff pattern:$0x73625140]  ;;  %v2992_v44 = vld [vmem:[%s4130_s1 + $0x268] sm:$0xff]  }
  0x3b   :  { %1241 = vmatpush.msrb.mxu1 %v2031_v48  ;;  %1281 = vmatpush.msrb.mxu3 %v2095_v51  ;;  %1079 = vst [vmem:[#allocation1] ss:$4 sm:$0xff] %v22_v45  ;;  %v2983_v51 = vld [vmem:[%s4130_s1 + $0x220] sm:$0xff]   ;;  %v2170_v61 = vunpack.c.l.bf16 %v2992_v44  ;;  %v2119_v45 = vunpack.c.h.bf16 %v2979_v36 }
  0x3c   :  { %1222 = vmatpush.msrb.mxu0 %v1998_v47  ;;  %1262 = vmatpush.msrb.mxu2 %v2062_v50  ;;  %v2174_v47 = vunpack.c.l.bf16 %v2993_v32  ;;  %v2134_v1 = vunpack.c.l.bf16 %v2983_v51 }
  0x3d   :  { %1242 = vmatpush.msrb.mxu1 %v2030_v56  ;;  %1282 = vmatpush.msrb.mxu3 %v2094_v60  ;;  %v2135_v60 = vunpack.c.h.bf16 %v2983_v51  ;;  %v2118_v51 = vunpack.c.l.bf16 %v2979_v36 }
  0x3e   :  { %1223 = vmatpush.msrb.mxu0 %v1995_v55  ;;  %1263 = vmatpush.msrb.mxu2 %v2059_v59  ;;  %v2999_v55 = vld [vmem:[%s4130_s1 + $0x2a0] sm:$0xff]  }
  0x3f   :  { %1243 = vmatpush.msrb.mxu1 %v2027_v0  ;;  %1283 = vmatpush.msrb.mxu3 %v2091_v3  ;;  %v2991_v59 = vld [vmem:[%s4130_s1 + $0x260] sm:$0xff]   ;;  %v2982_v0 = vld [vmem:[%s4130_s1 + $0x218] sm:$0xff]  }
  0x40   :  { %1224 = vmatpush.msrb.mxu0 %v1994_v62  ;;  %1264 = vmatpush.msrb.mxu2 %v2058_v2  ;;  %v2199_v62 = vunpack.c.h.bf16 %v2999_v55  ;;  %v2167_v2 = vunpack.c.h.bf16 %v2991_v59  ;;  %v2998_v3 = vld [vmem:[%s4130_s1 + $0x298] sm:$0xff]   ;;  %v2131_v6 = vunpack.c.h.bf16 %v2982_v0 }
  0x41   :  { %1244 = vmatpush.msrb.mxu1 %v2026_v5  ;;  %1284 = vmatpush.msrb.mxu3 %v2090_v8  ;;  %v3006_v8 = vld [vmem:[%s4130_s1 + $0x2d8] sm:$0xff]   ;;  %v2195_v9 = vunpack.c.h.bf16 %v2998_v3 }
  0x42   :  { %1225 = vmatpush.msrb.mxu0 %v1991_v4  ;;  %1265 = vmatpush.msrb.mxu2 %v2055_v7  ;;  %v2198_v4 = vunpack.c.l.bf16 %v2999_v55  ;;  %v2166_v7 = vunpack.c.l.bf16 %v2991_v59  ;;  %v2226_v22 = vunpack.c.l.bf16 %v3006_v8  ;;  %v3034_v55 = vld [vmem:[%s4130_s1 + $0x3b8] sm:$0xff]  }
  0x43   :  { %1187 = vmatmul.f32.vlgmr.msra.gmra.mxu2 %v3385_v52  ;;  %1245 = vmatpush.msrb.mxu1 %v2023_v12  ;;  %v3001_v52 = vld [vmem:[%s4130_s1 + $0x2b0] sm:$0xff]   ;;  %v2130_v12 = vunpack.c.l.bf16 %v2982_v0 }
  0x44   :  { %1226 = vmatpush.msrb.mxu0 %v1990_v10  ;;  %1266 = vmatpush.msrb.mxu2 %v2054_v13  ;;  %v2206_v38 = vunpack.c.l.bf16 %v3001_v52  ;;  %v3017_v0 = vld [vmem:[%s4130_s1 + $0x330] sm:$0xff]  }
  0x45   :  { %1285 = vmatpush.msrb.mxu3 %v2087_v15  ;;  %1147 = vmatmul.f32.vlgmr.msra.gmra.mxu0 %v3387_v53  ;;  %v2207_v53 = vunpack.c.h.bf16 %v3001_v52  ;;  %v2194_v15 = vunpack.c.l.bf16 %v2998_v3  ;;  %v2159_v52 = vunpack.c.h.bf16 %v2989_v17  ;;  %v3033_v3 = vld [vmem:[%s4130_s1 + $0x3b0] sm:$0xff]  }
  0x46   :  { %1207 = vmatmul.f32.vlgmr.msra.gmra.mxu3 %v3395_v58  ;;  %1291 = vmatpush.msra.mxu0 %v2147_v16  ;;  %v3009_v58 = vld [vmem:[%s4130_s1 + $0x2f0] sm:$0xff]   ;;  %v2227_v16 = vunpack.c.h.bf16 %v3006_v8 }
  0x47   :  { %1331 = vmatpush.msra.mxu2 %v2211_v18  ;;  %1246 = vmatpush.msrb.mxu1 %v2022_v19  ;;  %v2239_v40 = vunpack.c.h.bf16 %v3009_v58  ;;  %v2238_v50 = vunpack.c.l.bf16 %v3009_v58  ;;  %v2127_v18 = vunpack.c.h.bf16 %v2981_v11 }
  0x48   :  { %1286 = vmatpush.msrb.mxu3 %v2086_v21  ;;  %1167 = vmatmul.f32.vlgmr.msra.gmra.mxu1 %v3403_v63  ;;  %v3000_v63 = vld [vmem:[%s4130_s1 + $0x2a8] sm:$0xff]   ;;  %v2191_v21 = vunpack.c.h.bf16 %v2997_v14 }
  0x49   :  { %1292 = vmatpush.msra.mxu0 %v2146_v23  ;;  %1311 = vmatpush.msra.mxu1 %v2179_v24  ;;  %v2203_v48 = vunpack.c.h.bf16 %v3000_v63  ;;  %v2202_v56 = vunpack.c.l.bf16 %v3000_v63  ;;  %v2980_v23 = vld [vmem:[%s4130_s1 + $0x208] sm:$0xff]   ;;  %v2126_v24 = vunpack.c.l.bf16 %v2981_v11  ;;  %v2995_v63 = vld [vmem:[%s4130_s1 + $0x280] sm:$0xff]  }
  0x4a   :  { %1332 = vmatpush.msra.mxu2 %v2210_v26  ;;  %1351 = vmatpush.msra.mxu3 %v2243_v27  ;;  %v2996_v26 = vld [vmem:[%s4130_s1 + $0x288] sm:$0xff]   ;;  %v2190_v27 = vunpack.c.l.bf16 %v2997_v14  ;;  %v2123_v32 = vunpack.c.h.bf16 %v2980_v23  ;;  %v3628_v11 = vld.sshfl [vmem:[#allocation1 + $0x20] sm:$0xff pattern:$0x73625140] }
  0x4b   :  { %1293 = vmatpush.msra.mxu0 %v2143_v30  ;;  %1312 = vmatpush.msra.mxu1 %v2178_v31  ;;  %v2223_v30 = vunpack.c.h.bf16 %v3005_v20  ;;  %v2988_v31 = vld [vmem:[%s4130_s1 + $0x248] sm:$0xff]   ;;  %v2187_v58 = vunpack.c.h.bf16 %v2996_v26  ;;  %v3630_v14 = vld.sshfl [vmem:[#allocation1 + $0x30] sm:$0xff pattern:$0x73625140] }
  0x4c   :  { %1333 = vmatpush.msra.mxu2 %v2207_v53  ;;  %1352 = vmatpush.msra.mxu3 %v2242_v33  ;;  %v2158_v53 = vunpack.c.l.bf16 %v2989_v17  ;;  %v3004_v33 = vld [vmem:[%s4130_s1 + $0x2c8] sm:$0xff]  }
  0x4d   :  { %1267 = vmatmul.f32.vlgmr.msrb.gmra.mxu2 %v3432_v25  ;;  %1294 = vmatpush.msra.mxu0 %v2142_v35  ;;  %v2171_v25 = vunpack.c.h.bf16 %v2992_v44  ;;  %v2222_v35 = vunpack.c.l.bf16 %v3005_v20  ;;  %v2987_v44 = vld [vmem:[%s4130_s1 + $0x240] sm:$0xff]   ;;  %v23_v17 = vld [vmem:[%s4129_s0 + $0x28] sm:$0xff] }
  0x4e   :  { %1313 = vmatpush.msra.mxu1 %v2175_v37  ;;  %1334 = vmatpush.msra.mxu2 %v2206_v38  ;;  %v2122_v37 = vunpack.c.l.bf16 %v2980_v23  ;;  %v2155_v38 = vunpack.c.h.bf16 %v2988_v31 }
  0x4f   :  { %1353 = vmatpush.msra.mxu3 %v2239_v40  ;;  %1227 = vmatmul.f32.vlgmr.msrb.gmra.mxu0 %v3434_v28  ;;  %v3007_v28 = vld [vmem:[%s4130_s1 + $0x2e0] sm:$0xff]   ;;  %v2186_v40 = vunpack.c.l.bf16 %v2996_v26 }
  0x50   :  { %1287 = vmatmul.f32.vlgmr.msrb.gmra.mxu3 %v3436_v29  ;;  %1295 = vmatpush.msra.mxu0 %v2139_v43  ;;  %v2234_v29 = vunpack.c.l.bf16 %v3008_v49  ;;  %v2231_v5 = vunpack.c.h.bf16 %v3007_v28  ;;  %v2230_v10 = vunpack.c.l.bf16 %v3007_v28  ;;  %v2219_v43 = vunpack.c.h.bf16 %v3004_v33 }
  0x51   :  { %1314 = vmatpush.msra.mxu1 %v2174_v47  ;;  %1335 = vmatpush.msra.mxu2 %v2203_v48  ;;  %v2154_v47 = vunpack.c.l.bf16 %v2988_v31  ;;  %v3003_v48 = vld [vmem:[%s4130_s1 + $0x2c0] sm:$0xff]   ;;  %v2183_v49 = vunpack.c.h.bf16 %v2995_v63  ;;  %v2150_v28 = vunpack.c.l.bf16 %v2987_v44 }
  0x52   :  { %1354 = vmatpush.msra.mxu3 %v2238_v50  ;;  %1247 = vmatmul.f32.vlgmr.msrb.gmra.mxu1 %v3444_v34  ;;  %v2990_v34 = vld [vmem:[%s4130_s1 + $0x258] sm:$0xff]   ;;  %v2218_v50 = vunpack.c.l.bf16 %v3004_v33 }
  0x53   :  { %1296 = vmatpush.msra.mxu0 %v2138_v54  ;;  %1315 = vmatpush.msra.mxu1 %v2171_v25  ;;  %v2163_v13 = vunpack.c.h.bf16 %v2990_v34  ;;  %v2162_v19 = vunpack.c.l.bf16 %v2990_v34  ;;  %v2151_v54 = vunpack.c.h.bf16 %v2987_v44  ;;  %v3018_v25 = vld [vmem:[%s4130_s1 + $0x338] sm:$0xff]   ;;  %v3025_v34 = vld [vmem:[%s4130_s1 + $0x370] sm:$0xff]  }
  0x54   :  { %1336 = vmatpush.msra.mxu2 %v2202_v56  ;;  %1355 = vmatpush.msra.mxu3 %v2235_v57  ;;  %v2182_v56 = vunpack.c.l.bf16 %v2995_v63  ;;  %v2215_v57 = vunpack.c.h.bf16 %v3003_v48  ;;  %v2275_v59 = vunpack.c.h.bf16 %v3018_v25  ;;  %v2302_v20 = vunpack.c.l.bf16 %v3025_v34 }
  0x55   :  { %1297 = vmatpush.msra.mxu0 %v2135_v60  ;;  %1316 = vmatpush.msra.mxu1 %v2170_v61  ;;  %v2339_v60 = vunpack.c.h.bf16 %v3034_v55  ;;  %v3026_v61 = vld [vmem:[%s4130_s1 + $0x378] sm:$0xff]  }
  0x56   :  { %1337 = vmatpush.msra.mxu2 %v2199_v62  ;;  %1356 = vmatpush.msra.mxu3 %v2234_v29  ;;  %v2214_v62 = vunpack.c.l.bf16 %v3003_v48  ;;  %v3042_v29 = vld [vmem:[%s4130_s1 + $0x3f8] sm:$0xff]  }
  0x57   :  { %1298 = vmatpush.msra.mxu0 %v2134_v1  ;;  %1317 = vmatpush.msra.mxu1 %v2167_v2  ;;  %v2274_v1 = vunpack.c.l.bf16 %v3018_v25  ;;  %v2307_v2 = vunpack.c.h.bf16 %v3026_v61  ;;  %v2370_v8 = vunpack.c.l.bf16 %v3042_v29 }
  0x58   :  { %1338 = vmatpush.msra.mxu2 %v2198_v4  ;;  %1357 = vmatpush.msra.mxu3 %v2231_v5  ;;  %v2338_v4 = vunpack.c.l.bf16 %v3034_v55  ;;  %v2371_v5 = vunpack.c.h.bf16 %v3042_v29 }
  0x59   :  { %1299 = vmatpush.msra.mxu0 %v2131_v6  ;;  %1318 = vmatpush.msra.mxu1 %v2166_v7  ;;  %v2271_v6 = vunpack.c.h.bf16 %v3017_v0  ;;  %v2335_v7 = vunpack.c.h.bf16 %v3033_v3 }
  0x5a   :  { %1339 = vmatpush.msra.mxu2 %v2195_v9  ;;  %1358 = vmatpush.msra.mxu3 %v2230_v10  ;;  %v3016_v9 = vld [vmem:[%s4130_s1 + $0x328] sm:$0xff]  }
  0x5b   :  { %1300 = vmatpush.msra.mxu0 %v2130_v12  ;;  %1319 = vmatpush.msra.mxu1 %v2163_v13  ;;  %v3032_v10 = vld [vmem:[%s4130_s1 + $0x3a8] sm:$0xff]   ;;  %v2270_v12 = vunpack.c.l.bf16 %v3017_v0  ;;  %v2303_v13 = vunpack.c.h.bf16 %v3025_v34 }
  0x5c   :  { %1340 = vmatpush.msra.mxu2 %v2194_v15  ;;  %1359 = vmatpush.msra.mxu3 %v2227_v16  ;;  %v3024_v16 = vld [vmem:[%s4130_s1 + $0x368] sm:$0xff]  }
  0x5d   :  { %1301 = vmatpush.msra.mxu0 %v2127_v18  ;;  %1320 = vmatpush.msra.mxu1 %v2162_v19  ;;  %v3640_v18 = vld.sshfl [vmem:[#allocation1 + $0x38] sm:$0xff pattern:$0x73625140]  ;;  %v2267_v19 = vunpack.c.h.bf16 %v3016_v9  ;;  %v2299_v26 = vunpack.c.h.bf16 %v3024_v16  ;;  %v2298_v33 = vunpack.c.l.bf16 %v3024_v16 }
  0x5e   :  { %1341 = vmatpush.msra.mxu2 %v2191_v21  ;;  %1360 = vmatpush.msra.mxu3 %v2226_v22  ;;  %v3040_v21 = vld [vmem:[%s4130_s1 + $0x3e8] sm:$0xff]   ;;  %v2331_v22 = vunpack.c.h.bf16 %v3032_v10 }
  0x5f   :  { %1302 = vmatpush.msra.mxu0 %v2126_v24  ;;  %1321 = vmatpush.msra.mxu1 %v2159_v52  ;;  %v3015_v24 = vld [vmem:[%s4130_s1 + $0x320] sm:$0xff]   ;;  %v2266_v52 = vunpack.c.l.bf16 %v3016_v9  ;;  %v2363_v31 = vunpack.c.h.bf16 %v3040_v21  ;;  %v2362_v36 = vunpack.c.l.bf16 %v3040_v21 }
  0x60   :  { %1342 = vmatpush.msra.mxu2 %v2190_v27  ;;  %1361 = vmatpush.msra.mxu3 %v2223_v30  ;;  %v3031_v27 = vld [vmem:[%s4130_s1 + $0x3a0] sm:$0xff]   ;;  %v2330_v30 = vunpack.c.l.bf16 %v3032_v10 }
  0x61   :  { %1303 = vmatpush.msra.mxu0 %v2123_v32  ;;  %1322 = vmatpush.msra.mxu1 %v2158_v53  ;;  %v3023_v32 = vld [vmem:[%s4130_s1 + $0x360] sm:$0xff]   ;;  %v2263_v53 = vunpack.c.h.bf16 %v3015_v24 }
  0x62   :  { %1343 = vmatpush.msra.mxu2 %v2187_v58  ;;  %1362 = vmatpush.msra.mxu3 %v2222_v35  ;;  %v3039_v58 = vld [vmem:[%s4130_s1 + $0x3e0] sm:$0xff]   ;;  %v2327_v35 = vunpack.c.h.bf16 %v3031_v27  ;;  %v2295_v63 = vunpack.c.h.bf16 %v3023_v32  ;;  %v2294_v48 = vunpack.c.l.bf16 %v3023_v32 }
  0x63   :  { %1304 = vmatpush.msra.mxu0 %v2122_v37  ;;  %1323 = vmatpush.msra.mxu1 %v2155_v38  ;;  %v3014_v37 = vld [vmem:[%s4130_s1 + $0x318] sm:$0xff]   ;;  %v2262_v38 = vunpack.c.l.bf16 %v3015_v24  ;;  %v2359_v44 = vunpack.c.h.bf16 %v3039_v58  ;;  %v3011_v10 = vld [vmem:[%s4130_s1 + $0x300] sm:$0xff]  }
  0x64   :  { %1344 = vmatpush.msra.mxu2 %v2186_v40  ;;  %1363 = vmatpush.msra.mxu3 %v2219_v43  ;;  %v3030_v40 = vld [vmem:[%s4130_s1 + $0x398] sm:$0xff]   ;;  %v2326_v43 = vunpack.c.l.bf16 %v3031_v27  ;;  %v2258_v25 = vunpack.c.l.bf16 %v3014_v37  ;;  %v3035_v21 = vld [vmem:[%s4130_s1 + $0x3c0] sm:$0xff]   ;;  %v2246_v24 = vunpack.c.l.bf16 %v3011_v10 }
  0x65   :  { %1305 = vmatpush.msra.mxu0 %v2119_v45  ;;  %1324 = vmatpush.msra.mxu1 %v2154_v47  ;;  %v3022_v45 = vld [vmem:[%s4130_s1 + $0x358] sm:$0xff]   ;;  %v2259_v47 = vunpack.c.h.bf16 %v3014_v37  ;;  %v3049_v37 = vld [vmem:[%s4130_s1 + $0x430] sm:$0xff]  }
  0x66   :  { %1345 = vmatpush.msra.mxu2 %v2183_v49  ;;  %1364 = vmatpush.msra.mxu3 %v2218_v50  ;;  %v3038_v49 = vld [vmem:[%s4130_s1 + $0x3d8] sm:$0xff]   ;;  %v2323_v50 = vunpack.c.h.bf16 %v3030_v40  ;;  %v2291_v55 = vunpack.c.h.bf16 %v3022_v45 }
  0x67   :  { %1306 = vmatpush.msra.mxu0 %v2118_v51  ;;  %1325 = vmatpush.msra.mxu1 %v2151_v54  ;;  %v2358_v51 = vunpack.c.l.bf16 %v3039_v58  ;;  %v3013_v54 = vld [vmem:[%s4130_s1 + $0x310] sm:$0xff]   ;;  %v2354_v0 = vunpack.c.l.bf16 %v3038_v49  ;;  %v3066_v27 = vld [vmem:[%s4130_s1 + $0x4b8] sm:$0xff]  }
  0x68   :  { %1346 = vmatpush.msra.mxu2 %v2182_v56  ;;  %1365 = vmatpush.msra.mxu3 %v2215_v57  ;;  %v3029_v56 = vld [vmem:[%s4130_s1 + $0x390] sm:$0xff]   ;;  %v2322_v57 = vunpack.c.l.bf16 %v3030_v40 }
  0x69   :  { %1307 = vmatmul.f32.vlgmr.msra.gmra.mxu0 %v3513_v39  ;;  %1347 = vmatmul.f32.vlgmr.msra.gmra.mxu2 %v3515_v41  ;;  %v2306_v39 = vunpack.c.l.bf16 %v3026_v61  ;;  %v3041_v41 = vld [vmem:[%s4130_s1 + $0x3f0] sm:$0xff]   ;;  %v2255_v61 = vunpack.c.h.bf16 %v3013_v54  ;;  %v2319_v29 = vunpack.c.h.bf16 %v3029_v56 }
  0x6a   :  { %1371 = vmatpush.msrb.mxu0 %v2275_v59  ;;  %1411 = vmatpush.msrb.mxu2 %v2339_v60  ;;  %v2367_v15 = vunpack.c.h.bf16 %v3041_v41  ;;  %v2366_v23 = vunpack.c.l.bf16 %v3041_v41  ;;  %v2355_v59 = vunpack.c.h.bf16 %v3038_v49  ;;  %v3021_v60 = vld [vmem:[%s4130_s1 + $0x350] sm:$0xff]  }
  0x6b   :  { %1326 = vmatpush.msra.mxu1 %v2150_v28  ;;  %1366 = vmatpush.msra.mxu3 %v2214_v62  ;;  %v2290_v28 = vunpack.c.l.bf16 %v3022_v45  ;;  %v3037_v62 = vld [vmem:[%s4130_s1 + $0x3d0] sm:$0xff]   ;;  %v2286_v41 = vunpack.c.l.bf16 %v3021_v60 }
  0x6c   :  { %1327 = vmatmul.f32.vlgmr.msra.gmra.mxu1 %v3517_v42  ;;  %1367 = vmatmul.f32.vlgmr.msra.gmra.mxu3 %v3525_v46  ;;  %v3632_v42 = vld.sshfl [vmem:[#allocation1 + $0x28] sm:$0xff pattern:$0x73625140]  ;;  %v2334_v46 = vunpack.c.l.bf16 %v3033_v3  ;;  %v2287_v3 = vunpack.c.h.bf16 %v3021_v60  ;;  %v2351_v34 = vunpack.c.h.bf16 %v3037_v62  ;;  %v2350_v9 = vunpack.c.l.bf16 %v3037_v62  ;;  %v3065_v40 = vld [vmem:[%s4130_s1 + $0x4b0] sm:$0xff]  }
  0x6d   :  { %1372 = vmatpush.msrb.mxu0 %v2274_v1  ;;  %1391 = vmatpush.msrb.mxu1 %v2307_v2  ;;  %1080 = vst [vmem:[#allocation1 + $0x20] ss:$4 sm:$0xff] %v23_v17  ;;  %v3012_v1 = vld [vmem:[%s4130_s1 + $0x308] sm:$0xff]   ;;  %v2254_v2 = vunpack.c.l.bf16 %v3013_v54  ;;  %v3019_v17 = vld [vmem:[%s4130_s1 + $0x340] sm:$0xff]   ;;  %v3057_v45 = vld [vmem:[%s4130_s1 + $0x470] sm:$0xff]  }
  0x6e   :  { %1412 = vmatpush.msrb.mxu2 %v2338_v4  ;;  %1431 = vmatpush.msrb.mxu3 %v2371_v5  ;;  %v3028_v4 = vld [vmem:[%s4130_s1 + $0x388] sm:$0xff]   ;;  %v2318_v5 = vunpack.c.l.bf16 %v3029_v56  ;;  %v2278_v58 = vunpack.c.l.bf16 %v3019_v17  ;;  %v2431_v54 = vunpack.c.h.bf16 %v3057_v45 }
  0x6f   :  { %1373 = vmatpush.msrb.mxu0 %v2271_v6  ;;  %1392 = vmatpush.msrb.mxu1 %v2306_v39  ;;  %v3020_v6 = vld [vmem:[%s4130_s1 + $0x348] sm:$0xff]   ;;  %v2251_v39 = vunpack.c.h.bf16 %v3012_v1 }
  0x70   :  { %1413 = vmatpush.msrb.mxu2 %v2335_v7  ;;  %1432 = vmatpush.msrb.mxu3 %v2370_v8  ;;  %v3036_v7 = vld [vmem:[%s4130_s1 + $0x3c8] sm:$0xff]   ;;  %v2315_v8 = vunpack.c.h.bf16 %v3028_v4 }
  0x71   :  { %1374 = vmatpush.msrb.mxu0 %v2270_v12  ;;  %1393 = vmatpush.msrb.mxu1 %v2303_v13  ;;  %v2250_v12 = vunpack.c.l.bf16 %v3012_v1  ;;  %v2283_v13 = vunpack.c.h.bf16 %v3020_v6  ;;  %v2347_v16 = vunpack.c.h.bf16 %v3036_v7 }
  0x72   :  { %1414 = vmatpush.msrb.mxu2 %v2334_v46  ;;  %1433 = vmatpush.msrb.mxu3 %v2367_v15  ;;  %v3027_v46 = vld [vmem:[%s4130_s1 + $0x380] sm:$0xff]   ;;  %v2314_v15 = vunpack.c.l.bf16 %v3028_v4 }
  0x73   :  { %1375 = vmatpush.msrb.mxu0 %v2267_v19  ;;  %1394 = vmatpush.msrb.mxu1 %v2302_v20  ;;  %v2247_v19 = vunpack.c.h.bf16 %v3011_v10  ;;  %v2282_v20 = vunpack.c.l.bf16 %v3020_v6 }
  0x74   :  { %1415 = vmatpush.msrb.mxu2 %v2331_v22  ;;  %1434 = vmatpush.msrb.mxu3 %v2366_v23  ;;  %v2311_v22 = vunpack.c.h.bf16 %v3027_v46  ;;  %v2346_v23 = vunpack.c.l.bf16 %v3036_v7 }
  0x75   :  { %1376 = vmatpush.msrb.mxu0 %v2266_v52  ;;  %1395 = vmatpush.msrb.mxu1 %v2299_v26  ;;  %v2279_v52 = vunpack.c.h.bf16 %v3019_v17  ;;  %v3050_v26 = vld [vmem:[%s4130_s1 + $0x438] sm:$0xff]  }
  0x76   :  { %1416 = vmatpush.msrb.mxu2 %v2330_v30  ;;  %1435 = vmatpush.msrb.mxu3 %v2363_v31  ;;  %v2310_v30 = vunpack.c.l.bf16 %v3027_v46  ;;  %v2343_v31 = vunpack.c.h.bf16 %v3035_v21  ;;  %v2403_v32 = vunpack.c.h.bf16 %v3050_v26 }
  0x77   :  { %1377 = vmatpush.msrb.mxu0 %v2263_v53  ;;  %1396 = vmatpush.msrb.mxu1 %v2298_v33  ;;  %v2467_v53 = vunpack.c.h.bf16 %v3066_v27  ;;  %v3058_v33 = vld [vmem:[%s4130_s1 + $0x478] sm:$0xff]  }
  0x78   :  { %1417 = vmatpush.msrb.mxu2 %v2327_v35  ;;  %1436 = vmatpush.msrb.mxu3 %v2362_v36  ;;  %v2342_v35 = vunpack.c.l.bf16 %v3035_v21  ;;  %v3074_v36 = vld [vmem:[%s4130_s1 + $0x4f8] sm:$0xff]  }
  0x79   :  { %1378 = vmatpush.msrb.mxu0 %v2262_v38  ;;  %1397 = vmatpush.msrb.mxu1 %v2295_v63  ;;  %v2402_v38 = vunpack.c.l.bf16 %v3050_v26  ;;  %v2435_v63 = vunpack.c.h.bf16 %v3058_v33  ;;  %v2498_v49 = vunpack.c.l.bf16 %v3074_v36  ;;  %v3053_v26 = vld [vmem:[%s4130_s1 + $0x450] sm:$0xff]  }
  0x7a   :  { %1418 = vmatpush.msrb.mxu2 %v2326_v43  ;;  %1437 = vmatpush.msrb.mxu3 %v2359_v44  ;;  %v2466_v43 = vunpack.c.l.bf16 %v3066_v27  ;;  %v2499_v44 = vunpack.c.h.bf16 %v3074_v36  ;;  %v3060_v36 = vld [vmem:[%s4130_s1 + $0x488] sm:$0xff]  }
  0x7b   :  { %1379 = vmatpush.msrb.mxu0 %v2259_v47  ;;  %1398 = vmatpush.msrb.mxu1 %v2294_v48  ;;  %v2399_v47 = vunpack.c.h.bf16 %v3049_v37  ;;  %v2463_v48 = vunpack.c.h.bf16 %v3065_v40 }
  0x7c   :  { %1419 = vmatpush.msrb.mxu2 %v2323_v50  ;;  %1438 = vmatpush.msrb.mxu3 %v2358_v51  ;;  %v3048_v50 = vld [vmem:[%s4130_s1 + $0x428] sm:$0xff]   ;;  %v2398_v51 = vunpack.c.l.bf16 %v3049_v37 }
  0x7d   :  { %1380 = vmatpush.msrb.mxu0 %v2258_v25  ;;  %1399 = vmatpush.msrb.mxu1 %v2291_v55  ;;  %v3064_v25 = vld [vmem:[%s4130_s1 + $0x4a8] sm:$0xff]   ;;  %v2462_v55 = vunpack.c.l.bf16 %v3065_v40  ;;  %v2395_v56 = vunpack.c.h.bf16 %v3048_v50  ;;  %v2394_v62 = vunpack.c.l.bf16 %v3048_v50  ;;  %v2442_v50 = vunpack.c.l.bf16 %v3060_v36 }
  0x7e   :  { %1420 = vmatpush.msrb.mxu2 %v2322_v57  ;;  %1439 = vmatpush.msrb.mxu3 %v2355_v59  ;;  %v2430_v57 = vunpack.c.l.bf16 %v3057_v45  ;;  %v3072_v59 = vld [vmem:[%s4130_s1 + $0x4e8] sm:$0xff]   ;;  %v2459_v60 = vunpack.c.h.bf16 %v3064_v25  ;;  %v2458_v1 = vunpack.c.l.bf16 %v3064_v25  ;;  %v2443_v45 = vunpack.c.h.bf16 %v3060_v36  ;;  %v3095_v36 = vld [vmem:[%s4130_s1 + $0x5a0] sm:$0xff]  }
  0x7f   :  { %1381 = vmatpush.msrb.mxu0 %v2255_v61  ;;  %1400 = vmatpush.msrb.mxu1 %v2290_v28  ;;  %v3047_v28 = vld [vmem:[%s4130_s1 + $0x420] sm:$0xff]  }
  0x80   :  { %1421 = vmatpush.msrb.mxu2 %v2319_v29  ;;  %1440 = vmatpush.msrb.mxu3 %v2354_v0  ;;  %v3063_v0 = vld [vmem:[%s4130_s1 + $0x4a0] sm:$0xff]   ;;  %v2391_v4 = vunpack.c.h.bf16 %v3047_v28  ;;  %v2390_v7 = vunpack.c.l.bf16 %v3047_v28 }
  0x81   :  { %1382 = vmatpush.msrb.mxu0 %v2254_v2  ;;  %1401 = vmatpush.msrb.mxu1 %v2287_v3  ;;  %v2491_v2 = vunpack.c.h.bf16 %v3072_v59  ;;  %v3055_v3 = vld [vmem:[%s4130_s1 + $0x460] sm:$0xff]   ;;  %v2455_v6 = vunpack.c.h.bf16 %v3063_v0  ;;  %v2454_v10 = vunpack.c.l.bf16 %v3063_v0  ;;  %v1083_v0 = vld.sshfl [vmem:[#allocation1 + $0x10] sm:$0xff pattern:$0x73625140] }
  0x82   :  { %1422 = vmatpush.msrb.mxu2 %v2318_v5  ;;  %1441 = vmatpush.msrb.mxu3 %v2351_v34  ;;  %v3071_v34 = vld [vmem:[%s4130_s1 + $0x4e0] sm:$0xff]  }
  0x83   :  { %1383 = vmatpush.msrb.mxu0 %v2251_v39  ;;  %1402 = vmatpush.msrb.mxu1 %v2286_v41  ;;  %v2490_v39 = vunpack.c.l.bf16 %v3072_v59  ;;  %v3046_v41 = vld [vmem:[%s4130_s1 + $0x418] sm:$0xff]  }
  0x84   :  { %1423 = vmatpush.msrb.mxu2 %v2315_v8  ;;  %1442 = vmatpush.msrb.mxu3 %v2350_v9  ;;  %v2423_v8 = vunpack.c.h.bf16 %v3055_v3  ;;  %v3062_v9 = vld [vmem:[%s4130_s1 + $0x498] sm:$0xff]   ;;  %v2387_v46 = vunpack.c.h.bf16 %v3046_v41  ;;  %v2386_v21 = vunpack.c.l.bf16 %v3046_v41 }
  0x85   :  { %1384 = vmatpush.msrb.mxu0 %v2250_v12  ;;  %1403 = vmatpush.msrb.mxu1 %v2283_v13  ;;  %v2487_v12 = vunpack.c.h.bf16 %v3071_v34  ;;  %v3054_v13 = vld [vmem:[%s4130_s1 + $0x458] sm:$0xff]   ;;  %v2451_v17 = vunpack.c.h.bf16 %v3062_v9 }
  0x86   :  { %1424 = vmatpush.msrb.mxu2 %v2314_v15  ;;  %1443 = vmatpush.msrb.mxu3 %v2347_v16  ;;  %v2422_v15 = vunpack.c.l.bf16 %v3055_v3  ;;  %v3070_v16 = vld [vmem:[%s4130_s1 + $0x4d8] sm:$0xff]  }
  0x87   :  { %1385 = vmatpush.msrb.mxu0 %v2247_v19  ;;  %1404 = vmatpush.msrb.mxu1 %v2282_v20  ;;  %v2486_v19 = vunpack.c.l.bf16 %v3071_v34  ;;  %v3045_v20 = vld [vmem:[%s4130_s1 + $0x410] sm:$0xff]   ;;  %v3090_v3 = vld [vmem:[%s4130_s1 + $0x578] sm:$0xff]  }
  0x88   :  { %1425 = vmatpush.msrb.mxu2 %v2311_v22  ;;  %1444 = vmatpush.msrb.mxu3 %v2346_v23  ;;  %v2419_v22 = vunpack.c.h.bf16 %v3054_v13  ;;  %v3061_v23 = vld [vmem:[%s4130_s1 + $0x490] sm:$0xff]   ;;  %v2383_v27 = vunpack.c.h.bf16 %v3045_v20  ;;  %v3106_v34 = vld [vmem:[%s4130_s1 + $0x5f8] sm:$0xff]  }
  0x89   :  { %1386 = vmatpush.msrb.mxu0 %v2246_v24  ;;  %1405 = vmatpush.msrb.mxu1 %v2279_v52  ;;  %v2450_v24 = vunpack.c.l.bf16 %v3062_v9  ;;  %v2483_v52 = vunpack.c.h.bf16 %v3070_v16  ;;  %v2446_v37 = vunpack.c.l.bf16 %v3061_v23  ;;  %v1084_v41 = vld.sshfl [vmem:[#allocation1 + $0x18] sm:$0xff pattern:$0x73625140]  ;;  %v3097_v9 = vld [vmem:[%s4130_s1 + $0x5b0] sm:$0xff]  }
  0x8a   :  { %1426 = vmatpush.msrb.mxu2 %v2310_v30  ;;  %1445 = vmatpush.msrb.mxu3 %v2343_v31  ;;  %v2418_v30 = vunpack.c.l.bf16 %v3054_v13  ;;  %v3069_v31 = vld [vmem:[%s4130_s1 + $0x4d0] sm:$0xff]  }
  0x8b   :  { %1387 = vmatmul.f32.vlgmr.msrb.gmra.mxu0 %v3628_v11  ;;  %1427 = vmatmul.f32.vlgmr.msrb.gmra.mxu2 %v3630_v14  ;;  %v2434_v11 = vunpack.c.l.bf16 %v3058_v33  ;;  %v3073_v14 = vld [vmem:[%s4130_s1 + $0x4f0] sm:$0xff]   ;;  %v3044_v33 = vld [vmem:[%s4130_s1 + $0x408] sm:$0xff]  }
  0x8c   :  { %1451 = vmatpush.msra.mxu0 %v2403_v32  ;;  %1491 = vmatpush.msra.mxu2 %v2467_v53  ;;  %v2494_v61 = vunpack.c.l.bf16 %v3073_v14  ;;  %v2447_v32 = vunpack.c.h.bf16 %v3061_v23  ;;  %v2482_v53 = vunpack.c.l.bf16 %v3070_v16  ;;  %v2379_v40 = vunpack.c.h.bf16 %v3044_v33  ;;  %v3089_v13 = vld [vmem:[%s4130_s1 + $0x570] sm:$0xff]   ;;  %v3096_v23 = vld [vmem:[%s4130_s1 + $0x5a8] sm:$0xff]  }
  0x8d   :  { %1406 = vmatpush.msrb.mxu1 %v2278_v58  ;;  %1446 = vmatpush.msrb.mxu3 %v2342_v35  ;;  %v2382_v58 = vunpack.c.l.bf16 %v3045_v20  ;;  %v2415_v35 = vunpack.c.h.bf16 %v3053_v26  ;;  %v3105_v16 = vld [vmem:[%s4130_s1 + $0x5f0] sm:$0xff]   ;;  %v3080_v20 = vld [vmem:[%s4130_s1 + $0x528] sm:$0xff]  }
  0x8e   :  { %1407 = vmatmul.f32.vlgmr.msrb.gmra.mxu1 %v3632_v42  ;;  %1447 = vmatmul.f32.vlgmr.msrb.gmra.mxu3 %v3640_v18  ;;  %v2495_v42 = vunpack.c.h.bf16 %v3073_v14  ;;  %v3056_v18 = vld [vmem:[%s4130_s1 + $0x468] sm:$0xff]   ;;  %v2378_v14 = vunpack.c.l.bf16 %v3044_v33  ;;  %v3079_v33 = vld [vmem:[%s4130_s1 + $0x520] sm:$0xff]  }
  0x8f   :  { %1452 = vmatpush.msra.mxu0 %v2402_v38  ;;  %1471 = vmatpush.msra.mxu1 %v2435_v63  ;;  %v2427_v29 = vunpack.c.h.bf16 %v3056_v18  ;;  %v2426_v5 = vunpack.c.l.bf16 %v3056_v18  ;;  %v2479_v38 = vunpack.c.h.bf16 %v3069_v31  ;;  %v3052_v63 = vld [vmem:[%s4130_s1 + $0x448] sm:$0xff]  }
  0x90   :  { %1492 = vmatpush.msra.mxu2 %v2466_v43  ;;  %1511 = vmatpush.msra.mxu3 %v2499_v44  ;;  %v2414_v43 = vunpack.c.l.bf16 %v3053_v26  ;;  %v3068_v44 = vld [vmem:[%s4130_s1 + $0x4c8] sm:$0xff]  }
  0x91   :  { %1453 = vmatpush.msra.mxu0 %v2399_v47  ;;  %1472 = vmatpush.msra.mxu1 %v2434_v11  ;;  %v2478_v47 = vunpack.c.l.bf16 %v3069_v31  ;;  %v3043_v11 = vld [vmem:[%s4130_s1 + $0x400] sm:$0xff]   ;;  %v3088_v26 = vld [vmem:[%s4130_s1 + $0x568] sm:$0xff]  }
  0x92   :  { %1493 = vmatpush.msra.mxu2 %v2463_v48  ;;  %1512 = vmatpush.msra.mxu3 %v2498_v49  ;;  %v2411_v48 = vunpack.c.h.bf16 %v3052_v63  ;;  %v3059_v49 = vld [vmem:[%s4130_s1 + $0x480] sm:$0xff]   ;;  %v2375_v25 = vunpack.c.h.bf16 %v3043_v11  ;;  %v3104_v31 = vld [vmem:[%s4130_s1 + $0x5e8] sm:$0xff]  }
  0x93   :  { %1454 = vmatpush.msra.mxu0 %v2398_v51  ;;  %1473 = vmatpush.msra.mxu1 %v2431_v54  ;;  %v2475_v51 = vunpack.c.h.bf16 %v3068_v44  ;;  %v3051_v54 = vld [vmem:[%s4130_s1 + $0x440] sm:$0xff]   ;;  %v2439_v18 = vunpack.c.h.bf16 %v3059_v49  ;;  %v2438_v28 = vunpack.c.l.bf16 %v3059_v49  ;;  %v3094_v49 = vld [vmem:[%s4130_s1 + $0x598] sm:$0xff]  }
  0x94   :  { %1494 = vmatpush.msra.mxu2 %v2462_v55  ;;  %1513 = vmatpush.msra.mxu3 %v2495_v42  ;;  %v2410_v55 = vunpack.c.l.bf16 %v3052_v63  ;;  %v3067_v42 = vld [vmem:[%s4130_s1 + $0x4c0] sm:$0xff]   ;;  %v2407_v59 = vunpack.c.h.bf16 %v3051_v54 }
  0x95   :  { %1455 = vmatpush.msra.mxu0 %v2395_v56  ;;  %1474 = vmatpush.msra.mxu1 %v2430_v57  ;;  %v2474_v56 = vunpack.c.l.bf16 %v3068_v44  ;;  %v2374_v57 = vunpack.c.l.bf16 %v3043_v11  ;;  %v3087_v63 = vld [vmem:[%s4130_s1 + $0x560] sm:$0xff]   ;;  %v3078_v11 = vld [vmem:[%s4130_s1 + $0x518] sm:$0xff]  }
  0x96   :  { %1495 = vmatpush.msra.mxu2 %v2459_v60  ;;  %1514 = vmatpush.msra.mxu3 %v2494_v61  ;;  %v3082_v60 = vld [vmem:[%s4130_s1 + $0x538] sm:$0xff]   ;;  %v3103_v44 = vld [vmem:[%s4130_s1 + $0x5e0] sm:$0xff]  }
  0x97   :  { %1456 = vmatpush.msra.mxu0 %v2394_v62  ;;  %1475 = vmatpush.msra.mxu1 %v2427_v29  ;;  %v3098_v61 = vld [vmem:[%s4130_s1 + $0x5b8] sm:$0xff]   ;;  %v2471_v62 = vunpack.c.h.bf16 %v3067_v42  ;;  %v1081_v29 = vld.sshfl [vmem:[#allocation1] sm:$0xff pattern:$0x73625140] }
  0x98   :  { %1496 = vmatpush.msra.mxu2 %v2458_v1  ;;  %1515 = vmatpush.msra.mxu3 %v2491_v2  ;;  %v2531_v1 = vunpack.c.h.bf16 %v3082_v60  ;;  %v2595_v2 = vunpack.c.h.bf16 %v3098_v61 }
  0x99   :  { %1457 = vmatpush.msra.mxu0 %v2391_v4  ;;  %1476 = vmatpush.msra.mxu1 %v2426_v5  ;;  %v2406_v4 = vunpack.c.l.bf16 %v3051_v54  ;;  %v2470_v5 = vunpack.c.l.bf16 %v3067_v42  ;;  %v3086_v54 = vld [vmem:[%s4130_s1 + $0x558] sm:$0xff]  }
  0x9a   :  { %1497 = vmatpush.msra.mxu2 %v2455_v6  ;;  %1516 = vmatpush.msra.mxu3 %v2490_v39  ;;  %v1082_v6 = vld.sshfl [vmem:[#allocation1 + $0x8] sm:$0xff pattern:$0x73625140]  ;;  %v3081_v39 = vld [vmem:[%s4130_s1 + $0x530] sm:$0xff]   ;;  %v3102_v42 = vld [vmem:[%s4130_s1 + $0x5d8] sm:$0xff]  }
  0x9b   :  { %1458 = vmatpush.msra.mxu0 %v2390_v7  ;;  %1477 = vmatpush.msra.mxu1 %v2423_v8  ;;  %v2530_v7 = vunpack.c.l.bf16 %v3082_v60  ;;  %v2563_v8 = vunpack.c.h.bf16 %v3090_v3  ;;  %v2547_v60 = vunpack.c.h.bf16 %v3086_v54 }
  0x9c   :  { %1498 = vmatpush.msra.mxu2 %v2454_v10  ;;  %1517 = vmatpush.msra.mxu3 %v2487_v12  ;;  %v2594_v10 = vunpack.c.l.bf16 %v3098_v61  ;;  %v2627_v12 = vunpack.c.h.bf16 %v3106_v34  ;;  %v3093_v61 = vld [vmem:[%s4130_s1 + $0x590] sm:$0xff]  }
  0x9d   :  { %1459 = vmatpush.msra.mxu0 %v2387_v46  ;;  %1478 = vmatpush.msra.mxu1 %v2422_v15  ;;  %v2527_v46 = vunpack.c.h.bf16 %v3081_v39  ;;  %v2562_v15 = vunpack.c.l.bf16 %v3090_v3  ;;  %v2575_v3 = vunpack.c.h.bf16 %v3093_v61 }
  0x9e   :  { %1499 = vmatpush.msra.mxu2 %v2451_v17  ;;  %1518 = vmatpush.msra.mxu3 %v2486_v19  ;;  %v2591_v17 = vunpack.c.h.bf16 %v3097_v9  ;;  %v2626_v19 = vunpack.c.l.bf16 %v3106_v34 }
  0x9f   :  { %1460 = vmatpush.msra.mxu0 %v2386_v21  ;;  %1479 = vmatpush.msra.mxu1 %v2419_v22  ;;  %v2526_v21 = vunpack.c.l.bf16 %v3081_v39  ;;  %v2559_v22 = vunpack.c.h.bf16 %v3089_v13  ;;  %v3092_v39 = vld [vmem:[%s4130_s1 + $0x588] sm:$0xff]  }
  0xa0   :  { %1500 = vmatpush.msra.mxu2 %v2450_v24  ;;  %1519 = vmatpush.msra.mxu3 %v2483_v52  ;;  %v2590_v24 = vunpack.c.l.bf16 %v3097_v9  ;;  %v2623_v52 = vunpack.c.h.bf16 %v3105_v16 }
  0xa1   :  { %1461 = vmatpush.msra.mxu0 %v2383_v27  ;;  %1480 = vmatpush.msra.mxu1 %v2418_v30  ;;  %v2523_v27 = vunpack.c.h.bf16 %v3080_v20  ;;  %v2558_v30 = vunpack.c.l.bf16 %v3089_v13  ;;  %v2571_v13 = vunpack.c.h.bf16 %v3092_v39 }
  0xa2   :  { %1501 = vmatpush.msra.mxu2 %v2447_v32  ;;  %1520 = vmatpush.msra.mxu3 %v2482_v53  ;;  %v2587_v32 = vunpack.c.h.bf16 %v3096_v23  ;;  %v2622_v53 = vunpack.c.l.bf16 %v3105_v16 }
  0xa3   :  { %1462 = vmatpush.msra.mxu0 %v2382_v58  ;;  %1481 = vmatpush.msra.mxu1 %v2415_v35  ;;  %v2522_v58 = vunpack.c.l.bf16 %v3080_v20  ;;  %v2555_v35 = vunpack.c.h.bf16 %v3088_v26  ;;  %v2570_v20 = vunpack.c.l.bf16 %v3092_v39 }
  0xa4   :  { %1502 = vmatpush.msra.mxu2 %v2446_v37  ;;  %1521 = vmatpush.msra.mxu3 %v2479_v38  ;;  %v2586_v37 = vunpack.c.l.bf16 %v3096_v23  ;;  %v2619_v38 = vunpack.c.h.bf16 %v3104_v31 }
  0xa5   :  { %1463 = vmatpush.msra.mxu0 %v2379_v40  ;;  %1482 = vmatpush.msra.mxu1 %v2414_v43  ;;  %v2519_v40 = vunpack.c.h.bf16 %v3079_v33  ;;  %v2554_v43 = vunpack.c.l.bf16 %v3088_v26 }
  0xa6   :  { %1503 = vmatpush.msra.mxu2 %v2443_v45  ;;  %1522 = vmatpush.msra.mxu3 %v2478_v47  ;;  %v2583_v45 = vunpack.c.h.bf16 %v3095_v36  ;;  %v2618_v47 = vunpack.c.l.bf16 %v3104_v31 }
  0xa7   :  { %1464 = vmatpush.msra.mxu0 %v2378_v14  ;;  %1483 = vmatpush.msra.mxu1 %v2411_v48  ;;  %v2518_v14 = vunpack.c.l.bf16 %v3079_v33  ;;  %v2551_v48 = vunpack.c.h.bf16 %v3087_v63  ;;  %v3130_v33 = vld [vmem:[%s4130_s1 + $0x6b8] sm:$0xff]  }
  0xa8   :  { %1504 = vmatpush.msra.mxu2 %v2442_v50  ;;  %1523 = vmatpush.msra.mxu3 %v2475_v51  ;;  %v2582_v50 = vunpack.c.l.bf16 %v3095_v36  ;;  %v2615_v51 = vunpack.c.h.bf16 %v3103_v44  ;;  %v1085_v36 = vld.sshfl [vmem:[#allocation1 + $0x20] sm:$0xff pattern:$0x73625140] }
  0xa9   :  { %1465 = vmatpush.msra.mxu0 %v2375_v25  ;;  %1484 = vmatpush.msra.mxu1 %v2410_v55  ;;  %v2515_v25 = vunpack.c.h.bf16 %v3078_v11  ;;  %v2550_v55 = vunpack.c.l.bf16 %v3087_v63  ;;  %v2723_v63 = vunpack.c.h.bf16 %v3130_v33 }
  0xaa   :  { %1505 = vmatpush.msra.mxu2 %v2439_v18  ;;  %1524 = vmatpush.msra.mxu3 %v2474_v56  ;;  %v2579_v18 = vunpack.c.h.bf16 %v3094_v49  ;;  %v2614_v56 = vunpack.c.l.bf16 %v3103_v44 }
  0xab   :  { %1466 = vmatpush.msra.mxu0 %v2374_v57  ;;  %1485 = vmatpush.msra.mxu1 %v2407_v59  ;;  %v3077_v57 = vld [vmem:[%s4130_s1 + $0x510] sm:$0xff]   ;;  %v2514_v59 = vunpack.c.l.bf16 %v3078_v11 }
  0xac   :  { %1506 = vmatpush.msra.mxu2 %v2438_v28  ;;  %1525 = vmatpush.msra.mxu3 %v2471_v62  ;;  %v2578_v28 = vunpack.c.l.bf16 %v3094_v49  ;;  %v2611_v62 = vunpack.c.h.bf16 %v3102_v42  ;;  %v2510_v34 = vunpack.c.l.bf16 %v3077_v57  ;;  %v3113_v11 = vld [vmem:[%s4130_s1 + $0x630] sm:$0xff]  }
  0xad   :  { %1467 = vmatmul.f32.vlgmr.msra.gmra.mxu0 %v1081_v29  ;;  %1507 = vmatmul.f32.vlgmr.msra.gmra.mxu2 %v1083_v0  ;;  %v3085_v29 = vld [vmem:[%s4130_s1 + $0x550] sm:$0xff]   ;;  %v2511_v0 = vunpack.c.h.bf16 %v3077_v57 }
  0xae   :  { %1531 = vmatpush.msrb.mxu0 %v2531_v1  ;;  %1571 = vmatpush.msrb.mxu2 %v2595_v2  ;;  %v2546_v1 = vunpack.c.l.bf16 %v3086_v54  ;;  %v3101_v2 = vld [vmem:[%s4130_s1 + $0x5d0] sm:$0xff]  }
  0xaf   :  { %1486 = vmatpush.msra.mxu1 %v2406_v4  ;;  %1526 = vmatpush.msra.mxu3 %v2470_v5  ;;  %v2610_v4 = vunpack.c.l.bf16 %v3102_v42  ;;  %v3076_v5 = vld [vmem:[%s4130_s1 + $0x508] sm:$0xff]  }
  0xb0   :  { %1487 = vmatmul.f32.vlgmr.msra.gmra.mxu1 %v1082_v6  ;;  %1527 = vmatmul.f32.vlgmr.msra.gmra.mxu3 %v1084_v41  ;;  %v2543_v6 = vunpack.c.h.bf16 %v3085_v29  ;;  %v2574_v41 = vunpack.c.l.bf16 %v3093_v61  ;;  %v2507_v9 = vunpack.c.h.bf16 %v3076_v5  ;;  %v2506_v16 = vunpack.c.l.bf16 %v3076_v5 }
  0xb1   :  { %1532 = vmatpush.msrb.mxu0 %v2530_v7  ;;  %1551 = vmatpush.msrb.mxu1 %v2563_v8  ;;  %v2607_v7 = vunpack.c.h.bf16 %v3101_v2  ;;  %v3084_v8 = vld [vmem:[%s4130_s1 + $0x548] sm:$0xff]  }
  0xb2   :  { %1572 = vmatpush.msrb.mxu2 %v2594_v10  ;;  %1591 = vmatpush.msrb.mxu3 %v2627_v12  ;;  %v2542_v10 = vunpack.c.l.bf16 %v3085_v29  ;;  %v3100_v12 = vld [vmem:[%s4130_s1 + $0x5c8] sm:$0xff]  }
  0xb3   :  { %1533 = vmatpush.msrb.mxu0 %v2527_v46  ;;  %1552 = vmatpush.msrb.mxu1 %v2562_v15  ;;  %v2606_v46 = vunpack.c.l.bf16 %v3101_v2  ;;  %v3075_v15 = vld [vmem:[%s4130_s1 + $0x500] sm:$0xff]  }
  0xb4   :  { %1573 = vmatpush.msrb.mxu2 %v2591_v17  ;;  %1592 = vmatpush.msrb.mxu3 %v2626_v19  ;;  %v2539_v17 = vunpack.c.h.bf16 %v3084_v8  ;;  %v3091_v19 = vld [vmem:[%s4130_s1 + $0x580] sm:$0xff]   ;;  %v2503_v23 = vunpack.c.h.bf16 %v3075_v15  ;;  %v2502_v31 = vunpack.c.l.bf16 %v3075_v15 }
  0xb5   :  { %1534 = vmatpush.msrb.mxu0 %v2526_v21  ;;  %1553 = vmatpush.msrb.mxu1 %v2559_v22  ;;  %v2603_v21 = vunpack.c.h.bf16 %v3100_v12  ;;  %v3083_v22 = vld [vmem:[%s4130_s1 + $0x540] sm:$0xff]   ;;  %v2567_v26 = vunpack.c.h.bf16 %v3091_v19 }
  0xb6   :  { %1574 = vmatpush.msrb.mxu2 %v2590_v24  ;;  %1593 = vmatpush.msrb.mxu3 %v2623_v52  ;;  %v2538_v24 = vunpack.c.l.bf16 %v3084_v8  ;;  %v3099_v52 = vld [vmem:[%s4130_s1 + $0x5c0] sm:$0xff]  }
  0xb7   :  { %1535 = vmatpush.msrb.mxu0 %v2523_v27  ;;  %1554 = vmatpush.msrb.mxu1 %v2558_v30  ;;  %v2602_v27 = vunpack.c.l.bf16 %v3100_v12  ;;  %v24_v30 = vld [vmem:[%s4129_s0 + $0x30] sm:$0xff]  ;;  %v2598_v44 = vunpack.c.l.bf16 %v3099_v52 }
  0xb8   :  { %1575 = vmatpush.msrb.mxu2 %v2587_v32  ;;  %1594 = vmatpush.msrb.mxu3 %v2622_v53  ;;  %v2535_v32 = vunpack.c.h.bf16 %v3083_v22  ;;  %v3114_v53 = vld [vmem:[%s4130_s1 + $0x638] sm:$0xff]   ;;  %1089 = vst [vmem:[#allocation1] ss:$4 sm:$0xff] %v24_v30 }
  0xb9   :  { %1536 = vmatpush.msrb.mxu0 %v2522_v58  ;;  %1555 = vmatpush.msrb.mxu1 %v2555_v35  ;;  %v2566_v58 = vunpack.c.l.bf16 %v3091_v19  ;;  %v2599_v35 = vunpack.c.h.bf16 %v3099_v52 }
  0xba   :  { %1576 = vmatpush.msrb.mxu2 %v2586_v37  ;;  %1595 = vmatpush.msrb.mxu3 %v2619_v38  ;;  %v1087_v37 = vld.sshfl [vmem:[#allocation1 + $0x30] sm:$0xff pattern:$0x73625140]  ;;  %v2659_v38 = vunpack.c.h.bf16 %v3114_v53 }
  0xbb   :  { %1537 = vmatpush.msrb.mxu0 %v2519_v40  ;;  %1556 = vmatpush.msrb.mxu1 %v2554_v43  ;;  %v3122_v40 = vld [vmem:[%s4130_s1 + $0x678] sm:$0xff]   ;;  %v2534_v43 = vunpack.c.l.bf16 %v3083_v22 }
  0xbc   :  { %1577 = vmatpush.msrb.mxu2 %v2583_v45  ;;  %1596 = vmatpush.msrb.mxu3 %v2618_v47  ;;  %v3138_v45 = vld [vmem:[%s4130_s1 + $0x6f8] sm:$0xff]   ;;  %v1086_v47 = vld.sshfl [vmem:[#allocation1 + $0x28] sm:$0xff pattern:$0x73625140]  ;;  %v2691_v49 = vunpack.c.h.bf16 %v3122_v40  ;;  %v2690_v42 = vunpack.c.l.bf16 %v3122_v40 }
  0xbd   :  { %1538 = vmatpush.msrb.mxu0 %v2518_v14  ;;  %1557 = vmatpush.msrb.mxu1 %v2551_v48  ;;  %v1088_v14 = vld.sshfl [vmem:[#allocation1 + $0x38] sm:$0xff pattern:$0x73625140]  ;;  %v2658_v48 = vunpack.c.l.bf16 %v3114_v53  ;;  %v2755_v54 = vunpack.c.h.bf16 %v3138_v45  ;;  %v2754_v57 = vunpack.c.l.bf16 %v3138_v45 }
  0xbe   :  { %1578 = vmatpush.msrb.mxu2 %v2582_v50  ;;  %1597 = vmatpush.msrb.mxu3 %v2615_v51  ;;  %v3129_v50 = vld [vmem:[%s4130_s1 + $0x6b0] sm:$0xff]   ;;  %v2722_v51 = vunpack.c.l.bf16 %v3130_v33 }
  0xbf   :  { %1539 = vmatpush.msrb.mxu0 %v2515_v25  ;;  %1558 = vmatpush.msrb.mxu1 %v2550_v55  ;;  %v3121_v25 = vld [vmem:[%s4130_s1 + $0x670] sm:$0xff]   ;;  %v2655_v55 = vunpack.c.h.bf16 %v3113_v11 }
  0xc0   :  { %1579 = vmatpush.msrb.mxu2 %v2579_v18  ;;  %1598 = vmatpush.msrb.mxu3 %v2614_v56  ;;  %v3137_v18 = vld [vmem:[%s4130_s1 + $0x6f0] sm:$0xff]   ;;  %v2719_v56 = vunpack.c.h.bf16 %v3129_v50  ;;  %v2687_v61 = vunpack.c.h.bf16 %v3121_v25  ;;  %v2686_v2 = vunpack.c.l.bf16 %v3121_v25 }
  0xc1   :  { %1540 = vmatpush.msrb.mxu0 %v2514_v59  ;;  %1559 = vmatpush.msrb.mxu1 %v2547_v60  ;;  %v3112_v59 = vld [vmem:[%s4130_s1 + $0x628] sm:$0xff]   ;;  %v2654_v60 = vunpack.c.l.bf16 %v3113_v11  ;;  %v2751_v29 = vunpack.c.h.bf16 %v3137_v18  ;;  %v2750_v5 = vunpack.c.l.bf16 %v3137_v18  ;;  %v3125_v33 = vld [vmem:[%s4130_s1 + $0x690] sm:$0xff]  }
  0xc2   :  { %1580 = vmatpush.msrb.mxu2 %v2578_v28  ;;  %1599 = vmatpush.msrb.mxu3 %v2611_v62  ;;  %v3128_v28 = vld [vmem:[%s4130_s1 + $0x6a8] sm:$0xff]   ;;  %v2718_v62 = vunpack.c.l.bf16 %v3129_v50  ;;  %v2703_v40 = vunpack.c.h.bf16 %v3125_v33 }
  0xc3   :  { %1541 = vmatpush.msrb.mxu0 %v2511_v0  ;;  %1560 = vmatpush.msrb.mxu1 %v2546_v1  ;;  %v3120_v0 = vld [vmem:[%s4130_s1 + $0x668] sm:$0xff]   ;;  %v2651_v1 = vunpack.c.h.bf16 %v3112_v59 }
  0xc4   :  { %1581 = vmatpush.msrb.mxu2 %v2575_v3  ;;  %1600 = vmatpush.msrb.mxu3 %v2610_v4  ;;  %v3136_v3 = vld [vmem:[%s4130_s1 + $0x6e8] sm:$0xff]   ;;  %v2715_v4 = vunpack.c.h.bf16 %v3128_v28  ;;  %v2683_v39 = vunpack.c.h.bf16 %v3120_v0  ;;  %v2682_v12 = vunpack.c.l.bf16 %v3120_v0 }
  0xc5   :  { %1542 = vmatpush.msrb.mxu0 %v2510_v34  ;;  %1561 = vmatpush.msrb.mxu1 %v2543_v6  ;;  %v3111_v34 = vld [vmem:[%s4130_s1 + $0x620] sm:$0xff]   ;;  %v2650_v6 = vunpack.c.l.bf16 %v3112_v59  ;;  %v2747_v8 = vunpack.c.h.bf16 %v3136_v3  ;;  %v2746_v15 = vunpack.c.l.bf16 %v3136_v3  ;;  %v3124_v11 = vld [vmem:[%s4130_s1 + $0x688] sm:$0xff]  }
  0xc6   :  { %1582 = vmatpush.msrb.mxu2 %v2574_v41  ;;  %1601 = vmatpush.msrb.mxu3 %v2607_v7  ;;  %v3127_v41 = vld [vmem:[%s4130_s1 + $0x6a0] sm:$0xff]   ;;  %v2714_v7 = vunpack.c.l.bf16 %v3128_v28  ;;  %v2699_v25 = vunpack.c.h.bf16 %v3124_v11  ;;  %v2698_v59 = vunpack.c.l.bf16 %v3124_v11 }
  0xc7   :  { %1543 = vmatpush.msrb.mxu0 %v2507_v9  ;;  %1562 = vmatpush.msrb.mxu1 %v2542_v10  ;;  %v3119_v9 = vld [vmem:[%s4130_s1 + $0x660] sm:$0xff]   ;;  %v2647_v10 = vunpack.c.h.bf16 %v3111_v34 }
  0xc8   :  { %1583 = vmatpush.msrb.mxu2 %v2571_v13  ;;  %1602 = vmatpush.msrb.mxu3 %v2606_v46  ;;  %v3135_v13 = vld [vmem:[%s4130_s1 + $0x6e0] sm:$0xff]   ;;  %v2711_v46 = vunpack.c.h.bf16 %v3127_v41  ;;  %v2679_v19 = vunpack.c.h.bf16 %v3119_v9  ;;  %v2678_v52 = vunpack.c.l.bf16 %v3119_v9 }
  0xc9   :  { %1544 = vmatpush.msrb.mxu0 %v2506_v16  ;;  %1563 = vmatpush.msrb.mxu1 %v2539_v17  ;;  %v3110_v16 = vld [vmem:[%s4130_s1 + $0x618] sm:$0xff]   ;;  %v2646_v17 = vunpack.c.l.bf16 %v3111_v34  ;;  %v2743_v22 = vunpack.c.h.bf16 %v3135_v13  ;;  %v2742_v30 = vunpack.c.l.bf16 %v3135_v13 }
  0xca   :  { %1584 = vmatpush.msrb.mxu2 %v2570_v20  ;;  %1603 = vmatpush.msrb.mxu3 %v2603_v21  ;;  %v3126_v20 = vld [vmem:[%s4130_s1 + $0x698] sm:$0xff]   ;;  %v2710_v21 = vunpack.c.l.bf16 %v3127_v41  ;;  %v1091_v41 = vld.sshfl [vmem:[#allocation1] sm:$0xff pattern:$0x73625140] }
  0xcb   :  { %1545 = vmatpush.msrb.mxu0 %v2503_v23  ;;  %1564 = vmatpush.msrb.mxu1 %v2538_v24  ;;  %v3118_v23 = vld [vmem:[%s4130_s1 + $0x658] sm:$0xff]   ;;  %v2643_v24 = vunpack.c.h.bf16 %v3110_v16 }
  0xcc   :  { %1585 = vmatpush.msrb.mxu2 %v2567_v26  ;;  %1604 = vmatpush.msrb.mxu3 %v2602_v27  ;;  %v3134_v26 = vld [vmem:[%s4130_s1 + $0x6d8] sm:$0xff]   ;;  %v2707_v27 = vunpack.c.h.bf16 %v3126_v20  ;;  %v2675_v53 = vunpack.c.h.bf16 %v3118_v23 }
  0xcd   :  { %1546 = vmatpush.msrb.mxu0 %v2502_v31  ;;  %1565 = vmatpush.msrb.mxu1 %v2535_v32  ;;  %v3109_v31 = vld [vmem:[%s4130_s1 + $0x610] sm:$0xff]   ;;  %v2642_v32 = vunpack.c.l.bf16 %v3110_v16  ;;  %v3162_v34 = vld [vmem:[%s4130_s1 + $0x7b8] sm:$0xff]  }
  0xce   :  { %1586 = vmatpush.msrb.mxu2 %v2566_v58  ;;  %1605 = vmatpush.msrb.mxu3 %v2599_v35  ;;  %v2706_v58 = vunpack.c.l.bf16 %v3126_v20  ;;  %v2739_v35 = vunpack.c.h.bf16 %v3134_v26  ;;  %v2638_v45 = vunpack.c.l.bf16 %v3109_v31  ;;  %v2851_v9 = vunpack.c.h.bf16 %v3162_v34  ;;  %v3145_v16 = vld [vmem:[%s4130_s1 + $0x730] sm:$0xff]  }
  0xcf   :  { %1547 = vmatmul.f32.vlgmr.msrb.gmra.mxu0 %v1085_v36  ;;  %1587 = vmatmul.f32.vlgmr.msrb.gmra.mxu2 %v1087_v37  ;;  %v3117_v36 = vld [vmem:[%s4130_s1 + $0x650] sm:$0xff]   ;;  %v2639_v37 = vunpack.c.h.bf16 %v3109_v31 }
  0xd0   :  { %1611 = vmatpush.msra.mxu0 %v2659_v38  ;;  %1651 = vmatpush.msra.mxu2 %v2723_v63  ;;  %v2674_v38 = vunpack.c.l.bf16 %v3118_v23  ;;  %v3133_v63 = vld [vmem:[%s4130_s1 + $0x6d0] sm:$0xff]  }
  0xd1   :  { %1566 = vmatpush.msrb.mxu1 %v2534_v43  ;;  %1606 = vmatpush.msrb.mxu3 %v2598_v44  ;;  %v2738_v43 = vunpack.c.l.bf16 %v3134_v26  ;;  %v3108_v44 = vld [vmem:[%s4130_s1 + $0x608] sm:$0xff]  }
  0xd2   :  { %1567 = vmatmul.f32.vlgmr.msrb.gmra.mxu1 %v1086_v47  ;;  %1607 = vmatmul.f32.vlgmr.msrb.gmra.mxu3 %v1088_v14  ;;  %v2671_v47 = vunpack.c.h.bf16 %v3117_v36  ;;  %v2702_v14 = vunpack.c.l.bf16 %v3125_v33  ;;  %v2635_v50 = vunpack.c.h.bf16 %v3108_v44  ;;  %v2634_v18 = vunpack.c.l.bf16 %v3108_v44 }
  0xd3   :  { %1612 = vmatpush.msra.mxu0 %v2658_v48  ;;  %1631 = vmatpush.msra.mxu1 %v2691_v49  ;;  %v2735_v48 = vunpack.c.h.bf16 %v3133_v63  ;;  %v3116_v49 = vld [vmem:[%s4130_s1 + $0x648] sm:$0xff]  }
  0xd4   :  { %1652 = vmatpush.msra.mxu2 %v2722_v51  ;;  %1671 = vmatpush.msra.mxu3 %v2755_v54  ;;  %v2670_v51 = vunpack.c.l.bf16 %v3117_v36  ;;  %v3132_v54 = vld [vmem:[%s4130_s1 + $0x6c8] sm:$0xff]  }
  0xd5   :  { %1613 = vmatpush.msra.mxu0 %v2655_v55  ;;  %1632 = vmatpush.msra.mxu1 %v2690_v42  ;;  %v2734_v55 = vunpack.c.l.bf16 %v3133_v63  ;;  %v3107_v42 = vld [vmem:[%s4130_s1 + $0x600] sm:$0xff]  }
  0xd6   :  { %1653 = vmatpush.msra.mxu2 %v2719_v56  ;;  %1672 = vmatpush.msra.mxu3 %v2754_v57  ;;  %v2667_v56 = vunpack.c.h.bf16 %v3116_v49  ;;  %v3123_v57 = vld [vmem:[%s4130_s1 + $0x680] sm:$0xff]   ;;  %v2631_v28 = vunpack.c.h.bf16 %v3107_v42  ;;  %v2630_v3 = vunpack.c.l.bf16 %v3107_v42 }
  0xd7   :  { %1614 = vmatpush.msra.mxu0 %v2654_v60  ;;  %1633 = vmatpush.msra.mxu1 %v2687_v61  ;;  %v2731_v60 = vunpack.c.h.bf16 %v3132_v54  ;;  %v3115_v61 = vld [vmem:[%s4130_s1 + $0x640] sm:$0xff]   ;;  %v2695_v0 = vunpack.c.h.bf16 %v3123_v57 }
  0xd8   :  { %1654 = vmatpush.msra.mxu2 %v2718_v62  ;;  %1673 = vmatpush.msra.mxu3 %v2751_v29  ;;  %v2666_v62 = vunpack.c.l.bf16 %v3116_v49  ;;  %v3131_v29 = vld [vmem:[%s4130_s1 + $0x6c0] sm:$0xff]  }
  0xd9   :  { %1615 = vmatpush.msra.mxu0 %v2651_v1  ;;  %1634 = vmatpush.msra.mxu1 %v2686_v2  ;;  %v2730_v1 = vunpack.c.l.bf16 %v3132_v54  ;;  %v25_v2 = vld [vmem:[%s4129_s0 + $0x38] sm:$0xff]  ;;  %v2726_v13 = vunpack.c.l.bf16 %v3131_v29 }
  0xda   :  { %1655 = vmatpush.msra.mxu2 %v2715_v4  ;;  %1674 = vmatpush.msra.mxu3 %v2750_v5  ;;  %v2663_v4 = vunpack.c.h.bf16 %v3115_v61  ;;  %v3146_v5 = vld [vmem:[%s4130_s1 + $0x738] sm:$0xff]   ;;  %1090 = vst [vmem:[#allocation1 + $0x20] ss:$4 sm:$0xff] %v25_v2 }
  0xdb   :  { %1616 = vmatpush.msra.mxu0 %v2650_v6  ;;  %1635 = vmatpush.msra.mxu1 %v2683_v39  ;;  %v2694_v6 = vunpack.c.l.bf16 %v3123_v57  ;;  %v2727_v39 = vunpack.c.h.bf16 %v3131_v29 }
  0xdc   :  { %1656 = vmatpush.msra.mxu2 %v2714_v7  ;;  %1675 = vmatpush.msra.mxu3 %v2747_v8  ;;  %v1093_v7 = vld.sshfl [vmem:[#allocation1 + $0x10] sm:$0xff pattern:$0x73625140]  ;;  %v2787_v8 = vunpack.c.h.bf16 %v3146_v5 }
  0xdd   :  { %1617 = vmatpush.msra.mxu0 %v2647_v10  ;;  %1636 = vmatpush.msra.mxu1 %v2682_v12  ;;  %v3154_v10 = vld [vmem:[%s4130_s1 + $0x778] sm:$0xff]   ;;  %v2662_v12 = vunpack.c.l.bf16 %v3115_v61 }
  0xde   :  { %1657 = vmatpush.msra.mxu2 %v2711_v46  ;;  %1676 = vmatpush.msra.mxu3 %v2746_v15  ;;  %v3170_v46 = vld [vmem:[%s4130_s1 + $0x7f8] sm:$0xff]   ;;  %v1092_v15 = vld.sshfl [vmem:[#allocation1 + $0x8] sm:$0xff pattern:$0x73625140]  ;;  %v2819_v20 = vunpack.c.h.bf16 %v3154_v10  ;;  %v2818_v26 = vunpack.c.l.bf16 %v3154_v10 }
  0xdf   :  { %1618 = vmatpush.msra.mxu0 %v2646_v17  ;;  %1637 = vmatpush.msra.mxu1 %v2679_v19  ;;  %v1094_v17 = vld.sshfl [vmem:[#allocation1 + $0x18] sm:$0xff pattern:$0x73625140]  ;;  %v2786_v19 = vunpack.c.l.bf16 %v3146_v5  ;;  %v2883_v23 = vunpack.c.h.bf16 %v3170_v46  ;;  %v2882_v31 = vunpack.c.l.bf16 %v3170_v46 }
  0xe0   :  { %1658 = vmatpush.msra.mxu2 %v2710_v21  ;;  %1677 = vmatpush.msra.mxu3 %v2743_v22  ;;  %v3161_v21 = vld [vmem:[%s4130_s1 + $0x7b0] sm:$0xff]   ;;  %v2850_v22 = vunpack.c.l.bf16 %v3162_v34 }
  0xe1   :  { %1619 = vmatpush.msra.mxu0 %v2643_v24  ;;  %1638 = vmatpush.msra.mxu1 %v2678_v52  ;;  %v3153_v24 = vld [vmem:[%s4130_s1 + $0x770] sm:$0xff]   ;;  %v2783_v52 = vunpack.c.h.bf16 %v3145_v16 }
  0xe2   :  { %1659 = vmatpush.msra.mxu2 %v2707_v27  ;;  %1678 = vmatpush.msra.mxu3 %v2742_v30  ;;  %v3169_v27 = vld [vmem:[%s4130_s1 + $0x7f0] sm:$0xff]   ;;  %v2847_v30 = vunpack.c.h.bf16 %v3161_v21  ;;  %v2815_v33 = vunpack.c.h.bf16 %v3153_v24  ;;  %v2814_v63 = vunpack.c.l.bf16 %v3153_v24 }
  0xe3   :  { %1620 = vmatpush.msra.mxu0 %v2642_v32  ;;  %1639 = vmatpush.msra.mxu1 %v2675_v53  ;;  %v3144_v32 = vld [vmem:[%s4130_s1 + $0x728] sm:$0xff]   ;;  %v2782_v53 = vunpack.c.l.bf16 %v3145_v16  ;;  %v2879_v36 = vunpack.c.h.bf16 %v3169_v27  ;;  %v2878_v44 = vunpack.c.l.bf16 %v3169_v27  ;;  %v3157_v34 = vld [vmem:[%s4130_s1 + $0x790] sm:$0xff]  }
  0xe4   :  { %1660 = vmatpush.msra.mxu2 %v2706_v58  ;;  %1679 = vmatpush.msra.mxu3 %v2739_v35  ;;  %v3160_v58 = vld [vmem:[%s4130_s1 + $0x7a8] sm:$0xff]   ;;  %v2846_v35 = vunpack.c.l.bf16 %v3161_v21  ;;  %v2831_v10 = vunpack.c.h.bf16 %v3157_v34 }
  0xe5   :  { %1621 = vmatpush.msra.mxu0 %v2639_v37  ;;  %1640 = vmatpush.msra.mxu1 %v2674_v38  ;;  %v3152_v37 = vld [vmem:[%s4130_s1 + $0x768] sm:$0xff]   ;;  %v2779_v38 = vunpack.c.h.bf16 %v3144_v32 }
  0xe6   :  { %1661 = vmatpush.msra.mxu2 %v2703_v40  ;;  %1680 = vmatpush.msra.mxu3 %v2738_v43  ;;  %v3168_v40 = vld [vmem:[%s4130_s1 + $0x7e8] sm:$0xff]   ;;  %v2843_v43 = vunpack.c.h.bf16 %v3160_v58  ;;  %v2811_v11 = vunpack.c.h.bf16 %v3152_v37  ;;  %v2810_v54 = vunpack.c.l.bf16 %v3152_v37 }
  0xe7   :  { %1622 = vmatpush.msra.mxu0 %v2638_v45  ;;  %1641 = vmatpush.msra.mxu1 %v2671_v47  ;;  %v3143_v45 = vld [vmem:[%s4130_s1 + $0x720] sm:$0xff]   ;;  %v2778_v47 = vunpack.c.l.bf16 %v3144_v32  ;;  %v2875_v49 = vunpack.c.h.bf16 %v3168_v40  ;;  %v2874_v42 = vunpack.c.l.bf16 %v3168_v40  ;;  %v3156_v16 = vld [vmem:[%s4130_s1 + $0x788] sm:$0xff]  }
  0xe8   :  { %1662 = vmatpush.msra.mxu2 %v2702_v14  ;;  %1681 = vmatpush.msra.mxu3 %v2735_v48  ;;  %v3159_v14 = vld [vmem:[%s4130_s1 + $0x7a0] sm:$0xff]   ;;  %v2842_v48 = vunpack.c.l.bf16 %v3160_v58  ;;  %v2827_v24 = vunpack.c.h.bf16 %v3156_v16  ;;  %v2826_v32 = vunpack.c.l.bf16 %v3156_v16 }
  0xe9   :  { %1623 = vmatpush.msra.mxu0 %v2635_v50  ;;  %1642 = vmatpush.msra.mxu1 %v2670_v51  ;;  %v3151_v50 = vld [vmem:[%s4130_s1 + $0x760] sm:$0xff]   ;;  %v2775_v51 = vunpack.c.h.bf16 %v3143_v45 }
  0xea   :  { %1663 = vmatpush.msra.mxu2 %v2699_v25  ;;  %1682 = vmatpush.msra.mxu3 %v2734_v55  ;;  %v3167_v25 = vld [vmem:[%s4130_s1 + $0x7e0] sm:$0xff]   ;;  %v2839_v55 = vunpack.c.h.bf16 %v3159_v14  ;;  %v2807_v57 = vunpack.c.h.bf16 %v3151_v50  ;;  %v2806_v29 = vunpack.c.l.bf16 %v3151_v50  ;;  %v1168_v50 = vpop.f32.mrf.mxu1 }
  0xeb   :  { %1624 = vmatpush.msra.mxu0 %v2634_v18  ;;  %1643 = vmatpush.msra.mxu1 %v2667_v56  ;;  %v3142_v18 = vld [vmem:[%s4130_s1 + $0x718] sm:$0xff]   ;;  %v2774_v56 = vunpack.c.l.bf16 %v3143_v45  ;;  %v2871_v61 = vunpack.c.h.bf16 %v3167_v25  ;;  %v2870_v2 = vunpack.c.l.bf16 %v3167_v25  ;;  %v1095_v45 = vld.sshfl [vmem:[#allocation1 + $0x20] sm:$0xff pattern:$0x73625140]  ;;  %v1188_v25 = vpop.f32.mrf.mxu2 }
  0xec   :  { %1664 = vmatpush.msra.mxu2 %v2698_v59  ;;  %1683 = vmatpush.msra.mxu3 %v2731_v60  ;;  %v3158_v59 = vld [vmem:[%s4130_s1 + $0x798] sm:$0xff]   ;;  %v2838_v60 = vunpack.c.l.bf16 %v3159_v14 }
  0xed   :  { %1625 = vmatpush.msra.mxu0 %v2631_v28  ;;  %1644 = vmatpush.msra.mxu1 %v2666_v62  ;;  %v3150_v28 = vld [vmem:[%s4130_s1 + $0x758] sm:$0xff]   ;;  %v2771_v62 = vunpack.c.h.bf16 %v3142_v18 }
  0xee   :  { %1665 = vmatpush.msra.mxu2 %v2695_v0  ;;  %1684 = vmatpush.msra.mxu3 %v2730_v1  ;;  %v3166_v0 = vld [vmem:[%s4130_s1 + $0x7d8] sm:$0xff]   ;;  %v2835_v1 = vunpack.c.h.bf16 %v3158_v59  ;;  %v2803_v5 = vunpack.c.h.bf16 %v3150_v28 }
  0xef   :  { %1626 = vmatpush.msra.mxu0 %v2630_v3  ;;  %1645 = vmatpush.msra.mxu1 %v2663_v4  ;;  %v3141_v3 = vld [vmem:[%s4130_s1 + $0x710] sm:$0xff]   ;;  %v2770_v4 = vunpack.c.l.bf16 %v3142_v18 }
  0xf0   :  { %1666 = vmatpush.msra.mxu2 %v2694_v6  ;;  %1685 = vmatpush.msra.mxu3 %v2727_v39  ;;  %v2834_v6 = vunpack.c.l.bf16 %v3158_v59  ;;  %v2867_v39 = vunpack.c.h.bf16 %v3166_v0  ;;  %v2766_v46 = vunpack.c.l.bf16 %v3141_v3 }
  0xf1   :  { %1627 = vmatmul.f32.vlgmr.msra.gmra.mxu0 %v1091_v41  ;;  %1667 = vmatmul.f32.vlgmr.msra.gmra.mxu2 %v1093_v7  ;;  %v3149_v41 = vld [vmem:[%s4130_s1 + $0x750] sm:$0xff]   ;;  %v2767_v7 = vunpack.c.h.bf16 %v3141_v3 }
  0xf2   :  { %1691 = vmatpush.msrb.mxu0 %v2787_v8  ;;  %1731 = vmatpush.msrb.mxu2 %v2851_v9  ;;  %v2802_v8 = vunpack.c.l.bf16 %v3150_v28  ;;  %v3165_v9 = vld [vmem:[%s4130_s1 + $0x7d0] sm:$0xff]   ;;  %v1248_v59 = vpop.f32.mrf.mxu1 }
  0xf3   :  { %1646 = vmatpush.msra.mxu1 %v2662_v12  ;;  %1686 = vmatpush.msra.mxu3 %v2726_v13  ;;  %v2866_v12 = vunpack.c.l.bf16 %v3166_v0  ;;  %v3140_v13 = vld [vmem:[%s4130_s1 + $0x708] sm:$0xff]  }
  0xf4   :  { %1647 = vmatmul.f32.vlgmr.msra.gmra.mxu1 %v1092_v15  ;;  %1687 = vmatmul.f32.vlgmr.msra.gmra.mxu3 %v1094_v17  ;;  %v2799_v15 = vunpack.c.h.bf16 %v3149_v41  ;;  %v2830_v17 = vunpack.c.l.bf16 %v3157_v34  ;;  %v2763_v21 = vunpack.c.h.bf16 %v3140_v13  ;;  %v2762_v27 = vunpack.c.l.bf16 %v3140_v13 }
  0xf5   :  { %1692 = vmatpush.msrb.mxu0 %v2786_v19  ;;  %1711 = vmatpush.msrb.mxu1 %v2819_v20  ;;  %v2863_v19 = vunpack.c.h.bf16 %v3165_v9  ;;  %v3148_v20 = vld [vmem:[%s4130_s1 + $0x748] sm:$0xff]  }
  0xf6   :  { %1732 = vmatpush.msrb.mxu2 %v2850_v22  ;;  %1751 = vmatpush.msrb.mxu3 %v2883_v23  ;;  %v2798_v22 = vunpack.c.l.bf16 %v3149_v41  ;;  %v3164_v23 = vld [vmem:[%s4130_s1 + $0x7c8] sm:$0xff]  }
  0xf7   :  { %1693 = vmatpush.msrb.mxu0 %v2783_v52  ;;  %1712 = vmatpush.msrb.mxu1 %v2818_v26  ;;  %v2862_v52 = vunpack.c.l.bf16 %v3165_v9  ;;  %v3139_v26 = vld [vmem:[%s4130_s1 + $0x700] sm:$0xff]   ;;  %v3175_v9 = vld [vmem:[%s4131_s2 + $0x28] sm:$0xff]  }
  0xf8   :  { %1733 = vmatpush.msrb.mxu2 %v2847_v30  ;;  %1752 = vmatpush.msrb.mxu3 %v2882_v31  ;;  %v2795_v30 = vunpack.c.h.bf16 %v3148_v20  ;;  %v3155_v31 = vld [vmem:[%s4130_s1 + $0x780] sm:$0xff]   ;;  %v2759_v58 = vunpack.c.h.bf16 %v3139_v26 }
  0xf9   :  { %1694 = vmatpush.msrb.mxu0 %v2782_v53  ;;  %1713 = vmatpush.msrb.mxu1 %v2815_v33  ;;  %v2859_v53 = vunpack.c.h.bf16 %v3164_v23  ;;  %v3147_v33 = vld [vmem:[%s4130_s1 + $0x740] sm:$0xff]   ;;  %v2823_v37 = vunpack.c.h.bf16 %v3155_v31 }
  0xfa   :  { %1734 = vmatpush.msrb.mxu2 %v2846_v35  ;;  %1753 = vmatpush.msrb.mxu3 %v2879_v36  ;;  %v2794_v35 = vunpack.c.l.bf16 %v3148_v20  ;;  %v3163_v36 = vld [vmem:[%s4130_s1 + $0x7c0] sm:$0xff]   ;;  %v2791_v40 = vunpack.c.h.bf16 %v3147_v33 }
  0xfb   :  { %1695 = vmatpush.msrb.mxu0 %v2779_v38  ;;  %1714 = vmatpush.msrb.mxu1 %v2814_v63  ;;  %v2858_v38 = vunpack.c.l.bf16 %v3164_v23  ;;  %v2758_v63 = vunpack.c.l.bf16 %v3139_v26  ;;  %v2854_v14 = vunpack.c.l.bf16 %v3163_v36 }
  0xfc   :  { %1735 = vmatpush.msrb.mxu2 %v2843_v43  ;;  %1754 = vmatpush.msrb.mxu3 %v2878_v44  ;;  %v2822_v43 = vunpack.c.l.bf16 %v3155_v31  ;;  %v2855_v44 = vunpack.c.h.bf16 %v3163_v36 }
  0xfd   :  { %1696 = vmatpush.msrb.mxu0 %v2778_v47  ;;  %1715 = vmatpush.msrb.mxu1 %v2811_v11  ;;  %v1097_v47 = vld.sshfl [vmem:[#allocation1 + $0x30] sm:$0xff pattern:$0x73625140]  ;;  %v2790_v11 = vunpack.c.l.bf16 %v3147_v33 }
  0xfe   :  { %1736 = vmatpush.msrb.mxu2 %v2842_v48  ;;  %1755 = vmatpush.msrb.mxu3 %v2875_v49  ;;  %v1096_v48 = vld.sshfl [vmem:[#allocation1 + $0x28] sm:$0xff pattern:$0x73625140]  ;;  %v1098_v49 = vld.sshfl [vmem:[#allocation1 + $0x38] sm:$0xff pattern:$0x73625140] }
  0xff   :  { %1697 = vmatpush.msrb.mxu0 %v2775_v51  ;;  %1716 = vmatpush.msrb.mxu1 %v2810_v54  ;;  %v1148_v51 = vpop.f32.mrf.mxu0 }
 0x100   :  { %1737 = vmatpush.msrb.mxu2 %v2839_v55  ;;  %1756 = vmatpush.msrb.mxu3 %v2874_v42  ;;  %v1169_v54 = vadd.f32 %v1168_v50, %v1148_v51  ;;  %v1208_v42 = vpop.f32.mrf.mxu3 }
 0x101   :  { %1698 = vmatpush.msrb.mxu0 %v2774_v56  ;;  %1717 = vmatpush.msrb.mxu1 %v2807_v57 }
 0x102   :  { %1738 = vmatpush.msrb.mxu2 %v2838_v60  ;;  %1757 = vmatpush.msrb.mxu3 %v2871_v61  ;;  %v1189_v55 = vadd.f32 %v1188_v25, %v1169_v54  ;;  %v1268_v61 = vpop.f32.mrf.mxu2 }
 0x103   :  { %1699 = vmatpush.msrb.mxu0 %v2771_v62  ;;  %1718 = vmatpush.msrb.mxu1 %v2806_v29 }
 0x104   :  { %1739 = vmatpush.msrb.mxu2 %v2835_v1  ;;  %1758 = vmatpush.msrb.mxu3 %v2870_v2  ;;  %v1209_v18 = vadd.f32 %v1208_v42, %v1189_v55  ;;  %v1328_v2 = vpop.f32.mrf.mxu1 }
 0x105   :  { %1700 = vmatpush.msrb.mxu0 %v2770_v4  ;;  %1719 = vmatpush.msrb.mxu1 %v2803_v5  ;;  %v3177_v4 = vld [vmem:[%s4131_s2 + $0x38] sm:$0xff]   ;;  %v3176_v5 = vld [vmem:[%s4131_s2 + $0x30] sm:$0xff]  }
 0x106   :  { %1740 = vmatpush.msrb.mxu2 %v2834_v6  ;;  %1759 = vmatpush.msrb.mxu3 %v2867_v39  ;;  %v2915_v6 = vunpack.c.h.bf16 %v3177_v4  ;;  %v2914_v39 = vunpack.c.l.bf16 %v3177_v4 }
 0x107   :  { %1701 = vmatpush.msrb.mxu0 %v2767_v7  ;;  %1720 = vmatpush.msrb.mxu1 %v2802_v8  ;;  %v1228_v56 = vpop.f32.mrf.mxu0  ;;  %v2911_v7 = vunpack.c.h.bf16 %v3176_v5 }
 0x108   :  { %1741 = vmatpush.msrb.mxu2 %v2831_v10  ;;  %1760 = vmatpush.msrb.mxu3 %v2866_v12  ;;  %v1229_v57 = vadd.f32 %v1228_v56, %v1209_v18  ;;  %v1288_v62 = vpop.f32.mrf.mxu3  ;;  %v2910_v10 = vunpack.c.l.bf16 %v3176_v5 }
 0x109   :  { %1702 = vmatpush.msrb.mxu0 %v2766_v46  ;;  %1721 = vmatpush.msrb.mxu1 %v2799_v15  ;;  %v2907_v46 = vunpack.c.h.bf16 %v3175_v9  ;;  %v3174_v15 = vld [vmem:[%s4131_s2 + $0x20] sm:$0xff]  }
 0x10a   :  { %1742 = vmatpush.msrb.mxu2 %v2830_v17  ;;  %1761 = vmatpush.msrb.mxu3 %v2863_v19  ;;  %v1249_v60 = vadd.f32 %v1248_v59, %v1229_v57  ;;  %v1348_v3 = vpop.f32.mrf.mxu2  ;;  %v2906_v17 = vunpack.c.l.bf16 %v3175_v9  ;;  %v2903_v20 = vunpack.c.h.bf16 %v3174_v15 }
 0x10b   :  { %1703 = vmatpush.msrb.mxu0 %v2763_v21  ;;  %1722 = vmatpush.msrb.mxu1 %v2798_v22  ;;  %v3173_v22 = vld [vmem:[%s4131_s2 + $0x18] sm:$0xff]  }
 0x10c   :  { %1743 = vmatpush.msrb.mxu2 %v2827_v24  ;;  %1762 = vmatpush.msrb.mxu3 %v2862_v52  ;;  %v1269_v28 = vadd.f32 %v1268_v61, %v1249_v60  ;;  %v1408_v19 = vpop.f32.mrf.mxu1  ;;  %v2902_v24 = vunpack.c.l.bf16 %v3174_v15  ;;  %v2899_v26 = vunpack.c.h.bf16 %v3173_v22  ;;  %v2898_v33 = vunpack.c.l.bf16 %v3173_v22 }
 0x10d   :  { %1704 = vmatpush.msrb.mxu0 %v2762_v27  ;;  %1723 = vmatpush.msrb.mxu1 %v2795_v30 }
 0x10e   :  { %1744 = vmatpush.msrb.mxu2 %v2826_v32  ;;  %1763 = vmatpush.msrb.mxu3 %v2859_v53  ;;  %v1289_v0 = vadd.f32 %v1288_v62, %v1269_v28 }
 0x10f   :  { %1705 = vmatpush.msrb.mxu0 %v2759_v58  ;;  %1724 = vmatpush.msrb.mxu1 %v2794_v35  ;;  %v1308_v29 = vpop.f32.mrf.mxu0  ;;  %v3172_v35 = vld [vmem:[%s4131_s2 + $0x10] sm:$0xff]  }
 0x110   :  { %1745 = vmatpush.msrb.mxu2 %v2823_v37  ;;  %1764 = vmatpush.msrb.mxu3 %v2858_v38  ;;  %v1309_v1 = vadd.f32 %v1308_v29, %v1289_v0  ;;  %v1368_v8 = vpop.f32.mrf.mxu3  ;;  %v2895_v37 = vunpack.c.h.bf16 %v3172_v35 }
 0x111   :  { %1706 = vmatpush.msrb.mxu0 %v2758_v63  ;;  %1725 = vmatpush.msrb.mxu1 %v2791_v40  ;;  %v2894_v63 = vunpack.c.l.bf16 %v3172_v35 }
 0x112   :  { %1746 = vmatpush.msrb.mxu2 %v2822_v43  ;;  %1765 = vmatpush.msrb.mxu3 %v2855_v44  ;;  %v1329_v34 = vadd.f32 %v1328_v2, %v1309_v1  ;;  %v1428_v21 = vpop.f32.mrf.mxu2  ;;  %v3171_v43 = vld [vmem:[%s4131_s2 + $0x8] sm:$0xff]  }
 0x113   :  { %1707 = vmatmul.f32.vlgmr.msrb.gmra.mxu0 %v1095_v45  ;;  %1747 = vmatmul.f32.vlgmr.msrb.gmra.mxu2 %v1097_v47  ;;  %v2891_v44 = vunpack.c.h.bf16 %v3171_v43 }
 0x114   :  { %1726 = vmatpush.msrb.mxu1 %v2790_v11  ;;  %1766 = vmatpush.msrb.mxu3 %v2854_v14  ;;  %v1349_v41 = vadd.f32 %v1348_v3, %v1329_v34  ;;  %v2890_v11 = vunpack.c.l.bf16 %v3171_v43  ;;  %v2885_v14 = vld [vmem:[%s4131_s2] sm:$0xff]   ;;  %s3232_s2 = smov [#allocation2]  }
 0x115   :  { %1727 = vmatmul.f32.vlgmr.msrb.gmra.mxu1 %v1096_v48  ;;  %1767 = vmatmul.f32.vlgmr.msrb.gmra.mxu3 %v1098_v49  ;;  %v2887_v49 = vunpack.c.h.bf16 %v2885_v14  ;;  %v2886_v51 = vunpack.c.l.bf16 %v2885_v14  ;;  %s1833_s9 = sshll.u32 %s3232_s2, 4  ;;  %s1834_s9 = int_to_ptr.vmem [resolvable:$true] %s1833_s9 }
 0x116   :  { %1807 = vmatpush.msra.mxu0 %v2915_v6  ;;  %v1369_v13 = vadd.f32 %v1368_v8, %v1349_v41 }
 0x117   :  { %v1388_v12 = vpop.f32.mrf.mxu0 }
 0x118   :  { %1808 = vmatpush.msra.mxu0 %v2914_v39  ;;  %v1389_v16 = vadd.f32 %v1388_v12, %v1369_v13  ;;  %v1448_v27 = vpop.f32.mrf.mxu3 }
 0x11a   :  { %1809 = vmatpush.msra.mxu0 %v2911_v7  ;;  %v1409_v23 = vadd.f32 %v1408_v19, %v1389_v16 }
 0x11c   :  { %1810 = vmatpush.msra.mxu0 %v2910_v10  ;;  %v1429_v52 = vadd.f32 %v1428_v21, %v1409_v23 }
 0x11e   :  { %1811 = vmatpush.msra.mxu0 %v2907_v46  ;;  %v1449_v31 = vadd.f32 %v1448_v27, %v1429_v52 }
 0x120   :  { %1812 = vmatpush.msra.mxu0 %v2906_v17 }
 0x122   :  { %1813 = vmatpush.msra.mxu0 %v2903_v20 }
 0x124   :  { %1814 = vmatpush.msra.mxu0 %v2902_v24 }
 0x126   :  { %1815 = vmatpush.msra.mxu0 %v2899_v26 }
 0x128   :  { %1816 = vmatpush.msra.mxu0 %v2898_v33 }
 0x12a   :  { %v1468_v30 = vpop.f32.mrf.mxu0  ;;  %1817 = vmatpush.msra.mxu0 %v2895_v37 }
 0x12b   :  { %v1469_v32 = vadd.f32 %v1468_v30, %v1449_v31 }
 0x12c   :  { %1818 = vmatpush.msra.mxu0 %v2894_v63 }
 0x12d   :  { %v1488_v53 = vpop.f32.mrf.mxu1 }
 0x12e   :  { %v1489_v36 = vadd.f32 %v1488_v53, %v1469_v32  ;;  %1819 = vmatpush.msra.mxu0 %v2891_v44 }
 0x130   :  { %v1508_v58 = vpop.f32.mrf.mxu2  ;;  %1820 = vmatpush.msra.mxu0 %v2890_v11 }
 0x131   :  { %v1509_v38 = vadd.f32 %v1508_v58, %v1489_v36 }
 0x132   :  { %1821 = vmatpush.msra.mxu0 %v2887_v49 }
 0x133   :  { %v1528_v40 = vpop.f32.mrf.mxu3 }
 0x134   :  { %v1529_v47 = vadd.f32 %v1528_v40, %v1509_v38  ;;  %1822 = vmatpush.msra.mxu0 %v2886_v51 }
 0x14c   :  { %v1548_v45 = vpop.f32.mrf.mxu0 }
 0x14d   :  { %v1549_v48 = vadd.f32 %v1548_v45, %v1529_v47 }
 0x14f   :  { %v1568_v50 = vpop.f32.mrf.mxu1 }
 0x150   :  { %v1569_v25 = vadd.f32 %v1568_v50, %v1549_v48 }
 0x152   :  { %v1588_v54 = vpop.f32.mrf.mxu2 }
 0x153   :  { %v1589_v55 = vadd.f32 %v1588_v54, %v1569_v25 }
 0x155   :  { %v1608_v42 = vpop.f32.mrf.mxu3 }
 0x156   :  { %v1609_v56 = vadd.f32 %v1608_v42, %v1589_v55 }
 0x16e   :  { %v1628_v18 = vpop.f32.mrf.mxu0 }
 0x16f   :  { %v1629_v57 = vadd.f32 %v1628_v18, %v1609_v56 }
 0x171   :  { %v1648_v59 = vpop.f32.mrf.mxu1 }
 0x172   :  { %v1649_v61 = vadd.f32 %v1648_v59, %v1629_v57 }
 0x174   :  { %v1668_v60 = vpop.f32.mrf.mxu2 }
 0x175   :  { %v1669_v28 = vadd.f32 %v1668_v60, %v1649_v61 }
 0x177   :  { %v1688_v62 = vpop.f32.mrf.mxu3 }
 0x178   :  { %v1689_v29 = vadd.f32 %v1688_v62, %v1669_v28 }
 0x190   :  { %v1708_v0 = vpop.f32.mrf.mxu0 }
 0x191   :  { %v1709_v1 = vadd.f32 %v1708_v0, %v1689_v29 }
 0x192   :  { %v1728_v2 = vpop.f32.mrf.mxu1 }
 0x193   :  { %v1729_v3 = vadd.f32 %v1728_v2, %v1709_v1 }
 0x196   :  { %v1748_v4 = vpop.f32.mrf.mxu2 }
 0x197   :  { %v1749_v5 = vadd.f32 %v1748_v4, %v1729_v3 }
 0x198   :  { %v1768_v34 = vpop.f32.mrf.mxu3 }
 0x199   :  { %v1769_v6 = vadd.f32 %v1768_v34, %v1749_v5 }
 0x19b   :  { %1771 = vst [vmem:[#allocation2] sm:$0x3] %v1769_v6  ;;  %vm1772_vm0 = vcmp.gt.f32.partialorder %v1769_v6, 0.0  ;;  %v1773_v39 = vmul.f32 0.2, %v1769_v6 }
 0x19c   :  { %1838 = dma.vmem_to_hbm [thread:$0]  %s1834_s9, 32, %s1836_s12, [#allocation3]  }
 0x19d   :  { %v1774_v41 = vsel %vm1772_vm0, %v1769_v6, %v1773_v39 }
 0x19e   :  { %1823 = vmatmul.f32.vlgmr.msra.gmra.mxu0 %v1774_v41 }
 0x21b   :  { %v1824_v7 = vpop.f32.mrf.mxu0 }
 0x21c   :  { %1827 = vst [vmem:[#allocation4] sm:$0x3] %v1824_v7 }
 0x21d   :  { %1849 = dma.vmem_to_hbm [thread:$0]  %s1845_s14, 32, %s1847_s16, [#allocation5]  }
 0x21e   :  { %3228 = dma.done.wait [#allocation3], 32  }
 0x21f   :  { %3229 = vsyncadd [#allocation3], 4294967264 }
 0x220   :  { %3230 = dma.done.wait [#allocation5], 32  }
 0x221   :  { %3231 = vsyncadd [#allocation5], 4294967264 }
 0x222   :  { %1858 = vsyncpa [#allocation3], 1 }
 0x223   :  { %1859 = vsyncpa [#allocation5], 1 }

</bundles_post_ra>
